<compile_context>
chip_gen: v6e
topology: v6e:2x2x1
jax: 0.10.0
libtpu: 0.0.40
codegen_flags: <defaults>
</compile_context>

<pallas_src>
import math
from functools import partial

import jax
import jax.numpy as jnp
from jax import lax
from jax.experimental import pallas as pl
from jax.experimental.pallas import tpu as pltpu

HIDDEN = 512
N_LAYERS = 2
N_HEADS = 4
FF_HIDDEN = HIDDEN * 4
LN_EPS = 1e-6
HEAD1 = 128
HEAD2 = 32
NEG_INF = -1e30


# ----------------------------- fused kernel --------------------------------

def _layer_norm(x, gamma, beta, eps):
    # matches torch reference: (x - mean) / (x.std(-1, unbiased) + eps) * g + b
    d = x.shape[-1]
    mean = jnp.mean(x, axis=-1, keepdims=True)
    c = x - mean
    var = jnp.sum(c * c, axis=-1, keepdims=True) / (d - 1)
    inv = pl.reciprocal(jnp.sqrt(var) + eps)          # exact; feeds the residual
    return gamma * (c * inv) + beta


def _gelu(x):
    # BERT tanh-GELU, identical to the PyTorch reference.
    return 0.5 * x * (1.0 + jnp.tanh(math.sqrt(2.0 / math.pi)
                                     * (x + 0.044715 * x * x * x)))


def _fused_bert_kernel(
    # inputs
    h0_ref, mask_ref,
    wqkv_ref, bqkv_ref, ln1g_ref, ln1b_ref, wo_ref, bo_ref,
    w1_ref, b1_ref, w2_ref, b2_ref, ln2g_ref, ln2b_ref,
    fcw_ref, fcb_ref, fc1w_ref, fc1b_ref, fc2w_ref, fc2b_ref,
    # outputs
    logits_ref, seq_ref, clsout_ref,
    # scratch
    h_ref,
    *, B, S, D, H, eps):

    dk = D // H
    scale = 1.0 / math.sqrt(dk)
    layer = pl.program_id(0)
    n_layers = pl.num_programs(0)

    # ---- first grid step: load the resident activation -----------------
    @pl.when(layer == 0)
    def _init():
        h_ref[...] = h0_ref[...]                      # (B*S, D) -> resident VMEM

    h = h_ref[...]                                    # (B*S, D) f32
    mask = mask_ref[...]                              # (B*S, B*S) block-diagonal

    # ---- self-attention sublayer: h + Wo(Attn(LN1(h))) -------------------
    n1 = _layer_norm(h, ln1g_ref[0], ln1b_ref[0], eps)
    qkv = jnp.dot(n1.astype(jnp.bfloat16), wqkv_ref[0],
                  preferred_element_type=jnp.float32) + bqkv_ref[0]   # (B*S, 3D)

    heads = []
    for hh in range(H):
        c0 = hh * dk                                  # lane-aligned (128) slices
        q = qkv[:, c0:c0 + dk].astype(jnp.bfloat16)
        k = qkv[:, D + c0:D + c0 + dk].astype(jnp.bfloat16)
        v = qkv[:, 2 * D + c0:2 * D + c0 + dk].astype(jnp.bfloat16)
        # scores: contract last dims of q and k (no explicit transpose)
        s = lax.dot_general(q, k, (((1,), (1,)), ((), ())),
                            preferred_element_type=jnp.float32)       # (B*S, B*S)
        s = s * scale + mask                          # kill cross-sample attention
        s = s - jnp.max(s, axis=-1, keepdims=True)
        p = jnp.exp(s)
        p = p * pl.reciprocal(jnp.sum(p, axis=-1, keepdims=True), approx=True)
        heads.append(jnp.dot(p.astype(jnp.bfloat16), v,
                             preferred_element_type=jnp.float32))
    attn = jnp.concatenate(heads, axis=-1)            # (B*S, D), 128-aligned concat
    attn = jnp.dot(attn.astype(jnp.bfloat16), wo_ref[0],
                   preferred_element_type=jnp.float32) + bo_ref[0]
    h = h + attn

    # ---- feed-forward sublayer: h + W2(GELU(W1(LN2(h)))) -----------------
    n2 = _layer_norm(h, ln2g_ref[0], ln2b_ref[0], eps)
    f = jnp.dot(n2.astype(jnp.bfloat16), w1_ref[0],
                preferred_element_type=jnp.float32) + b1_ref[0]
    f = _gelu(f)
    f = jnp.dot(f.astype(jnp.bfloat16), w2_ref[0],
                preferred_element_type=jnp.float32) + b2_ref[0]
    h = h + f

    h_ref[...] = h                                    # persists to next grid step

    # ---- last grid step: normalised sequence out + batched classifier ----
    @pl.when(layer == n_layers - 1)
    def _head():
        inv_n = lax.rsqrt(jnp.sum(h * h, axis=-1, keepdims=True))
        seq_ref[...] = (h * inv_n).astype(seq_ref.dtype)    # cls rows dropped outside

        cls_tok = jnp.concatenate([h[b * S:b * S + 1, :] for b in range(B)],
                                  axis=0)             # (B, D) classification tokens
        clsout_ref[...] = cls_tok.astype(clsout_ref.dtype)
        y = jnp.dot(cls_tok, fcw_ref[...], preferred_element_type=jnp.float32) + fcb_ref[...]
        y = jnp.dot(y, fc1w_ref[...], preferred_element_type=jnp.float32) + fc1b_ref[...]
        y = jnp.dot(y, fc2w_ref[...], preferred_element_type=jnp.float32) + fc2b_ref[...]
        logits_ref[...] = y.astype(logits_ref.dtype)


# ----------------------------- parameters ----------------------------------

def _xavier(key, fan_in, fan_out):
    bound = math.sqrt(6.0 / (fan_in + fan_out))
    return jax.random.uniform(key, (fan_in, fan_out), jnp.float32, -bound, bound)


def init_params(key, length, num_classes):
    D, F = HIDDEN, FF_HIDDEN
    k_cls, k_pos, k_fc, k_fc1, k_fc2, k_layers = jax.random.split(key, 6)
    wqkv, bqkv, ln1g, ln1b, wo, bo = [], [], [], [], [], []
    w1, b1, w2, b2, ln2g, ln2b = [], [], [], [], [], []
    for lk in jax.random.split(k_layers, N_LAYERS):
        kq, kk, kv, ko, k1, k2 = jax.random.split(lk, 6)
        # fused Q|K|V projection weight (512, 1536)
        wqkv.append(jnp.concatenate(
            [_xavier(kq, D, D), _xavier(kk, D, D), _xavier(kv, D, D)], axis=-1))
        bqkv.append(jnp.zeros((1, 3 * D), jnp.float32))
        wo.append(_xavier(ko, D, D)); bo.append(jnp.zeros((1, D), jnp.float32))
        ln1g.append(jnp.ones((1, D), jnp.float32)); ln1b.append(jnp.zeros((1, D), jnp.float32))
        w1.append(_xavier(k1, D, F)); b1.append(jnp.zeros((1, F), jnp.float32))
        w2.append(_xavier(k2, F, D)); b2.append(jnp.zeros((1, D), jnp.float32))
        ln2g.append(jnp.ones((1, D), jnp.float32)); ln2b.append(jnp.zeros((1, D), jnp.float32))

    stack = lambda xs: jnp.stack(xs, axis=0)
    # big matmul weights live in bf16 (streamed per layer); f32 accumulation in-kernel
    bf16 = lambda xs: jnp.stack(xs, axis=0).astype(jnp.bfloat16)
    return dict(
        cls=jax.random.normal(k_cls, (1, 1, D), jnp.float32),
        pos=0.02 * jax.random.normal(k_pos, (1, length + 1, D), jnp.float32),
        wqkv=bf16(wqkv), wo=bf16(wo), w1=bf16(w1), w2=bf16(w2),
        bqkv=stack(bqkv), bo=stack(bo), b1=stack(b1), b2=stack(b2),
        ln1_g=stack(ln1g), ln1_b=stack(ln1b), ln2_g=stack(ln2g), ln2_b=stack(ln2b),
        fc_w=_xavier(k_fc, D, HEAD1), fc_b=jnp.zeros((1, HEAD1), jnp.float32),
        fc1_w=_xavier(k_fc1, HEAD1, HEAD2), fc1_b=jnp.zeros((1, HEAD2), jnp.float32),
        fc2_w=_xavier(k_fc2, HEAD2, num_classes),
        fc2_b=jnp.zeros((1, num_classes), jnp.float32),
    )


# ------------------------------ forward -------------------------------------

def feature_bert10_forward(params, x):
    B = x.shape[0]
    D = HIDDEN
    x = x.reshape(B, D, -1)                        # view(B, hidden, length)
    L = x.shape[-1]
    S = L + 1
    BS = B * S
    F = FF_HIDDEN
    C = params["fc2_b"].shape[-1]

    x_t = jnp.transpose(x, (0, 2, 1))              # (B, L, D)
    # input_vectors l2-normalisation stays in XLA (off the kernel's step-0 path)
    input_vectors = x_t * lax.rsqrt(jnp.sum(x_t * x_t, axis=-1, keepdims=True))

    # BERTEmbedding5: prepend cls token, add positional embedding; flatten to (B*S, D)
    cls = jnp.broadcast_to(params["cls"], (B, 1, D))
    h0 = (jnp.concatenate([cls, x_t], axis=1) + params["pos"]).reshape(BS, D)

    # block-diagonal additive mask: attention stays within each sample
    bid = jnp.arange(BS, dtype=jnp.int32) // S
    attn_mask = jnp.where(bid[:, None] == bid[None, :], 0.0, NEG_INF).astype(jnp.float32)

    const2 = lambda l: (0, 0)
    per_layer = lambda l: (l, 0, 0)                # streams layer l's weights

    in_specs = [
        pl.BlockSpec((BS, D), const2),             # h0 (flat)
        pl.BlockSpec((BS, BS), const2),            # cross-sample mask
        pl.BlockSpec((1, D, 3 * D), per_layer),    # wqkv (bf16)
        pl.BlockSpec((1, 1, 3 * D), per_layer),    # bqkv
        pl.BlockSpec((1, 1, D), per_layer),        # ln1_g
        pl.BlockSpec((1, 1, D), per_layer),        # ln1_b
        pl.BlockSpec((1, D, D), per_layer),        # wo (bf16)
        pl.BlockSpec((1, 1, D), per_layer),        # bo
        pl.BlockSpec((1, D, F), per_layer),        # w1 (bf16)
        pl.BlockSpec((1, 1, F), per_layer),        # b1
        pl.BlockSpec((1, F, D), per_layer),        # w2 (bf16)
        pl.BlockSpec((1, 1, D), per_layer),        # b2
        pl.BlockSpec((1, 1, D), per_layer),        # ln2_g
        pl.BlockSpec((1, 1, D), per_layer),        # ln2_b
        pl.BlockSpec((D, HEAD1), const2),          # fc_w
        pl.BlockSpec((1, HEAD1), const2),          # fc_b
        pl.BlockSpec((HEAD1, HEAD2), const2),      # fc1_w
        pl.BlockSpec((1, HEAD2), const2),          # fc1_b
        pl.BlockSpec((HEAD2, C), const2),          # fc2_w
        pl.BlockSpec((1, C), const2),              # fc2_b
    ]
    out_shapes = (
        jax.ShapeDtypeStruct((B, C), jnp.float32),   # logits
        jax.ShapeDtypeStruct((BS, D), jnp.float32),  # normalised output (flat, cls rows dropped outside)
        jax.ShapeDtypeStruct((B, D), jnp.float32),   # classificationOut
    )
    out_specs = (
        pl.BlockSpec((B, C), const2),
        pl.BlockSpec((BS, D), const2),
        pl.BlockSpec((B, D), const2),
    )

    logits, seq_flat, classificationOut = pl.pallas_call(
        partial(_fused_bert_kernel, B=B, S=S, D=D, H=N_HEADS, eps=LN_EPS),
        out_shape=out_shapes,
        grid=(N_LAYERS,),
        in_specs=in_specs,
        out_specs=out_specs,
        scratch_shapes=[pltpu.VMEM((BS, D), jnp.float32)],   # resident activation h
        compiler_params=pltpu.CompilerParams(
            dimension_semantics=("arbitrary",),     # sequential layer dependency via h
            vmem_limit_bytes=32 * 1024 * 1024,      # ~13 MiB live (bf16 weights, 2x buffered)
        ),
    )(
        h0, attn_mask,
        params["wqkv"], params["bqkv"], params["ln1_g"], params["ln1_b"],
        params["wo"], params["bo"], params["w1"], params["b1"],
        params["w2"], params["b2"], params["ln2_g"], params["ln2_b"],
        params["fc_w"], params["fc_b"], params["fc1_w"], params["fc1_b"],
        params["fc2_w"], params["fc2_b"],
    )

    sequenceOut = seq_flat.reshape(B, S, D)[:, 1:, :]   # drop the cls row
    maskSample = None  # TODO(synk): training-mode Bernoulli mask sampling not modeled (eval path)
    return logits, input_vectors, sequenceOut, maskSample, classificationOut


if __name__ == "__main__":
    num_classes = 10
    length = 8
    batch = 2

    key = jax.random.PRNGKey(0)
    kp, kx = jax.random.split(key)
    params = init_params(kp, length, num_classes)
    x = jax.random.normal(kx, (batch, HIDDEN, length), jnp.float32)

    fwd = jax.jit(feature_bert10_forward)
    logits, input_vectors, sequenceOut, maskSample, classificationOut = fwd(params, x)
    jax.block_until_ready((logits, input_vectors, sequenceOut, classificationOut))

    assert logits.shape == (batch, num_classes)
    assert input_vectors.shape == (batch, length, HIDDEN)
    assert sequenceOut.shape == (batch, length, HIDDEN)
    assert classificationOut.shape == (batch, HIDDEN)
    assert maskSample is None
    assert bool(jnp.all(jnp.isfinite(logits)))
    print("KERNEL_OK")
</pallas_src>

<mosaic_0001>
module attributes {stable_mosaic.version = 11 : i64} {
  func.func @_fused_bert_kernel(%arg0: i32, %arg1: memref<18x512xf32, #tpu.memory_space<vmem>>, %arg2: memref<18x18xf32, #tpu.memory_space<vmem>>, %arg3: memref<1x512x1536xbf16, #tpu.memory_space<vmem>>, %arg4: memref<1x1x1536xf32, #tpu.memory_space<vmem>>, %arg5: memref<1x1x512xf32, #tpu.memory_space<vmem>>, %arg6: memref<1x1x512xf32, #tpu.memory_space<vmem>>, %arg7: memref<1x512x512xbf16, #tpu.memory_space<vmem>>, %arg8: memref<1x1x512xf32, #tpu.memory_space<vmem>>, %arg9: memref<1x512x2048xbf16, #tpu.memory_space<vmem>>, %arg10: memref<1x1x2048xf32, #tpu.memory_space<vmem>>, %arg11: memref<1x2048x512xbf16, #tpu.memory_space<vmem>>, %arg12: memref<1x1x512xf32, #tpu.memory_space<vmem>>, %arg13: memref<1x1x512xf32, #tpu.memory_space<vmem>>, %arg14: memref<1x1x512xf32, #tpu.memory_space<vmem>>, %arg15: memref<512x128xf32, #tpu.memory_space<vmem>>, %arg16: memref<1x128xf32, #tpu.memory_space<vmem>>, %arg17: memref<128x32xf32, #tpu.memory_space<vmem>>, %arg18: memref<1x32xf32, #tpu.memory_space<vmem>>, %arg19: memref<32x10xf32, #tpu.memory_space<vmem>>, %arg20: memref<1x10xf32, #tpu.memory_space<vmem>>, %arg21: memref<2x10xf32, #tpu.memory_space<vmem>>, %arg22: memref<18x512xf32, #tpu.memory_space<vmem>>, %arg23: memref<2x512xf32, #tpu.memory_space<vmem>>, %arg24: memref<18x512xf32, #tpu.memory_space<vmem>>) attributes {dimension_semantics = [#tpu.dimension_semantics<arbitrary>], iteration_bounds = array<i64: 2>, scalar_prefetch = 0 : i64, scratch_operands = 1 : i64, tpu.core_type = #tpu.core_type<tc>, window_params = [{pipeline_mode = #tpu.pipeline_mode<synchronous>, transform_indices = @transform_0, window_bounds = array<i64: 18, 512>}, {pipeline_mode = #tpu.pipeline_mode<synchronous>, transform_indices = @transform_1, window_bounds = array<i64: 18, 18>}, {transform_indices = @transform_2, window_bounds = array<i64: 1, 512, 1536>}, {transform_indices = @transform_3, window_bounds = array<i64: 1, 1, 1536>}, {transform_indices = @transform_4, window_bounds = array<i64: 1, 1, 512>}, {transform_indices = @transform_5, window_bounds = array<i64: 1, 1, 512>}, {transform_indices = @transform_6, window_bounds = array<i64: 1, 512, 512>}, {transform_indices = @transform_7, window_bounds = array<i64: 1, 1, 512>}, {transform_indices = @transform_8, window_bounds = array<i64: 1, 512, 2048>}, {transform_indices = @transform_9, window_bounds = array<i64: 1, 1, 2048>}, {transform_indices = @transform_10, window_bounds = array<i64: 1, 2048, 512>}, {transform_indices = @transform_11, window_bounds = array<i64: 1, 1, 512>}, {transform_indices = @transform_12, window_bounds = array<i64: 1, 1, 512>}, {transform_indices = @transform_13, window_bounds = array<i64: 1, 1, 512>}, {pipeline_mode = #tpu.pipeline_mode<synchronous>, transform_indices = @transform_14, window_bounds = array<i64: 512, 128>}, {pipeline_mode = #tpu.pipeline_mode<synchronous>, transform_indices = @transform_15, window_bounds = array<i64: 1, 128>}, {pipeline_mode = #tpu.pipeline_mode<synchronous>, transform_indices = @transform_16, window_bounds = array<i64: 128, 32>}, {pipeline_mode = #tpu.pipeline_mode<synchronous>, transform_indices = @transform_17, window_bounds = array<i64: 1, 32>}, {pipeline_mode = #tpu.pipeline_mode<synchronous>, transform_indices = @transform_18, window_bounds = array<i64: 32, 10>}, {pipeline_mode = #tpu.pipeline_mode<synchronous>, transform_indices = @transform_19, window_bounds = array<i64: 1, 10>}, {pipeline_mode = #tpu.pipeline_mode<synchronous>, transform_indices = @transform_20, window_bounds = array<i64: 2, 10>}, {pipeline_mode = #tpu.pipeline_mode<synchronous>, transform_indices = @transform_21, window_bounds = array<i64: 18, 512>}, {pipeline_mode = #tpu.pipeline_mode<synchronous>, transform_indices = @transform_22, window_bounds = array<i64: 2, 512>}]} {
    %c0_i32 = arith.constant 0 : i32
    %0 = arith.cmpi eq, %arg0, %c0_i32 : i32
    %1 = arith.extui %0 : i1 to i32
    %c0_i32_0 = arith.constant 0 : i32
    %2 = arith.cmpi ne, %1, %c0_i32_0 : i32
    scf.if %2 {
      %c0_80 = arith.constant 0 : index
      %c0_81 = arith.constant 0 : index
      %195 = vector.load %arg1[%c0_80, %c0_81] : memref<18x512xf32, #tpu.memory_space<vmem>>, vector<18x512xf32>
      %c0_82 = arith.constant 0 : index
      %c0_83 = arith.constant 0 : index
      %196 = vector.load %arg24[%c0_82, %c0_83] : memref<18x512xf32, #tpu.memory_space<vmem>>, vector<18x512xf32>
      tpu.vector_store %arg24[%c0_82, %c0_83], %195 {strides = array<i32>} : memref<18x512xf32, #tpu.memory_space<vmem>>, vector<18x512xf32>,
    } else {
    }
    %c0 = arith.constant 0 : index
    %c0_1 = arith.constant 0 : index
    %3 = vector.load %arg24[%c0, %c0_1] : memref<18x512xf32, #tpu.memory_space<vmem>>, vector<18x512xf32>
    %c0_2 = arith.constant 0 : index
    %c0_3 = arith.constant 0 : index
    %4 = vector.load %arg2[%c0_2, %c0_3] : memref<18x18xf32, #tpu.memory_space<vmem>>, vector<18x18xf32>
    %c0_4 = arith.constant 0 : index
    %c0_5 = arith.constant 0 : index
    %c0_6 = arith.constant 0 : index
    %5 = vector.load %arg5[%c0_4, %c0_5, %c0_6] : memref<1x1x512xf32, #tpu.memory_space<vmem>>, vector<1x1x512xf32>
    %6 = vector.shape_cast %5 : vector<1x1x512xf32> to vector<1x512xf32>
    %c0_7 = arith.constant 0 : index
    %c0_8 = arith.constant 0 : index
    %c0_9 = arith.constant 0 : index
    %7 = vector.load %arg6[%c0_7, %c0_8, %c0_9] : memref<1x1x512xf32, #tpu.memory_space<vmem>>, vector<1x1x512xf32>
    %8 = vector.shape_cast %7 : vector<1x1x512xf32> to vector<1x512xf32>
    %cst = arith.constant dense<0.000000e+00> : vector<18xf32>
    %9 = vector.multi_reduction <add>, %3, %cst [1] : vector<18x512xf32> to vector<18xf32>
    %10 = vector.shape_cast %9 : vector<18xf32> to vector<18x1xf32>
    %cst_10 = arith.constant 5.120000e+02 : f32
    %11 = vector.broadcast %cst_10 : f32 to vector<18x1xf32>
    %12 = arith.divf %10, %11 : vector<18x1xf32>
    %13 = vector.broadcast %12 : vector<18x1xf32> to vector<18x512xf32>
    %14 = arith.subf %3, %13 : vector<18x512xf32>
    %15 = arith.mulf %14, %14 : vector<18x512xf32>
    %cst_11 = arith.constant dense<0.000000e+00> : vector<18xf32>
    %16 = vector.multi_reduction <add>, %15, %cst_11 [1] : vector<18x512xf32> to vector<18xf32>
    %17 = vector.shape_cast %16 : vector<18xf32> to vector<18x1xf32>
    %cst_12 = arith.constant 5.110000e+02 : f32
    %18 = vector.broadcast %cst_12 : f32 to vector<18x1xf32>
    %19 = arith.divf %17, %18 : vector<18x1xf32>
    %20 = math.sqrt %19 : vector<18x1xf32>
    %cst_13 = arith.constant 9.99999997E-7 : f32
    %21 = vector.broadcast %cst_13 : f32 to vector<18x1xf32>
    %22 = arith.addf %20, %21 : vector<18x1xf32>
    %23 = tpu.reciprocal %22 : vector<18x1xf32> -> vector<18x1xf32>
    %24 = vector.broadcast %23 : vector<18x1xf32> to vector<18x512xf32>
    %25 = arith.mulf %14, %24 : vector<18x512xf32>
    %26 = vector.broadcast %6 : vector<1x512xf32> to vector<18x512xf32>
    %27 = arith.mulf %26, %25 : vector<18x512xf32>
    %28 = vector.broadcast %8 : vector<1x512xf32> to vector<18x512xf32>
    %29 = arith.addf %27, %28 : vector<18x512xf32>
    %30 = arith.truncf %29 : vector<18x512xf32> to vector<18x512xbf16>
    %c0_14 = arith.constant 0 : index
    %c0_15 = arith.constant 0 : index
    %c0_16 = arith.constant 0 : index
    %31 = vector.load %arg3[%c0_14, %c0_15, %c0_16] : memref<1x512x1536xbf16, #tpu.memory_space<vmem>>, vector<1x512x1536xbf16>
    %32 = vector.shape_cast %31 : vector<1x512x1536xbf16> to vector<512x1536xbf16>
    %cst_17 = arith.constant dense<0.000000e+00> : vector<18x1536xf32>
    %33 = tpu.matmul %30, %32, %cst_17 {dimension_numbers = #tpu.dot_dimension_numbers<[1], [0], [0], [1], [0, 0, 1, 1], [], []>} : vector<18x512xbf16>, vector<512x1536xbf16>, vector<18x1536xf32> -> vector<18x1536xf32>
    %c0_18 = arith.constant 0 : index
    %c0_19 = arith.constant 0 : index
    %c0_20 = arith.constant 0 : index
    %34 = vector.load %arg4[%c0_18, %c0_19, %c0_20] : memref<1x1x1536xf32, #tpu.memory_space<vmem>>, vector<1x1x1536xf32>
    %35 = vector.shape_cast %34 : vector<1x1x1536xf32> to vector<1x1536xf32>
    %36 = vector.broadcast %35 : vector<1x1536xf32> to vector<18x1536xf32>
    %37 = arith.addf %33, %36 : vector<18x1536xf32>
    %38 = vector.extract_strided_slice %37 {offsets = [0, 0], sizes = [18, 128], strides = [1, 1]} : vector<18x1536xf32> to vector<18x128xf32>
    %39 = arith.truncf %38 : vector<18x128xf32> to vector<18x128xbf16>
    %40 = vector.extract_strided_slice %37 {offsets = [0, 512], sizes = [18, 128], strides = [1, 1]} : vector<18x1536xf32> to vector<18x128xf32>
    %41 = arith.truncf %40 : vector<18x128xf32> to vector<18x128xbf16>
    %42 = vector.extract_strided_slice %37 {offsets = [0, 1024], sizes = [18, 128], strides = [1, 1]} : vector<18x1536xf32> to vector<18x128xf32>
    %43 = arith.truncf %42 : vector<18x128xf32> to vector<18x128xbf16>
    %cst_21 = arith.constant dense<0.000000e+00> : vector<18x18xf32>
    %44 = tpu.matmul %39, %41, %cst_21 {dimension_numbers = #tpu.dot_dimension_numbers<[1], [1], [0], [0], [0, 0, 1, 0], [], []>} : vector<18x128xbf16>, vector<18x128xbf16>, vector<18x18xf32> -> vector<18x18xf32>
    %cst_22 = arith.constant 0.0883883461 : f32
    %45 = vector.broadcast %cst_22 : f32 to vector<18x18xf32>
    %46 = arith.mulf %44, %45 : vector<18x18xf32>
    %47 = arith.addf %46, %4 : vector<18x18xf32>
    %cst_23 = arith.constant dense<0xFF800000> : vector<18xf32>
    %48 = vector.multi_reduction <maximumf>, %47, %cst_23 [1] : vector<18x18xf32> to vector<18xf32>
    %49 = vector.shape_cast %48 : vector<18xf32> to vector<18x1xf32>
    %50 = vector.broadcast %49 : vector<18x1xf32> to vector<18x18xf32>
    %51 = arith.subf %47, %50 : vector<18x18xf32>
    %52 = math.exp %51 : vector<18x18xf32>
    %cst_24 = arith.constant dense<0.000000e+00> : vector<18xf32>
    %53 = vector.multi_reduction <add>, %52, %cst_24 [1] : vector<18x18xf32> to vector<18xf32>
    %54 = vector.shape_cast %53 : vector<18xf32> to vector<18x1xf32>
    %55 = tpu.reciprocal %54 {approx = true} : vector<18x1xf32> -> vector<18x1xf32>
    %56 = vector.broadcast %55 : vector<18x1xf32> to vector<18x18xf32>
    %57 = arith.mulf %52, %56 : vector<18x18xf32>
    %58 = arith.truncf %57 : vector<18x18xf32> to vector<18x18xbf16>
    %cst_25 = arith.constant dense<0.000000e+00> : vector<18x128xf32>
    %59 = tpu.matmul %58, %43, %cst_25 {dimension_numbers = #tpu.dot_dimension_numbers<[1], [0], [0], [1], [0, 0, 1, 1], [], []>} : vector<18x18xbf16>, vector<18x128xbf16>, vector<18x128xf32> -> vector<18x128xf32>
    %60 = vector.extract_strided_slice %37 {offsets = [0, 128], sizes = [18, 128], strides = [1, 1]} : vector<18x1536xf32> to vector<18x128xf32>
    %61 = arith.truncf %60 : vector<18x128xf32> to vector<18x128xbf16>
    %62 = vector.extract_strided_slice %37 {offsets = [0, 640], sizes = [18, 128], strides = [1, 1]} : vector<18x1536xf32> to vector<18x128xf32>
    %63 = arith.truncf %62 : vector<18x128xf32> to vector<18x128xbf16>
    %64 = vector.extract_strided_slice %37 {offsets = [0, 1152], sizes = [18, 128], strides = [1, 1]} : vector<18x1536xf32> to vector<18x128xf32>
    %65 = arith.truncf %64 : vector<18x128xf32> to vector<18x128xbf16>
    %cst_26 = arith.constant dense<0.000000e+00> : vector<18x18xf32>
    %66 = tpu.matmul %61, %63, %cst_26 {dimension_numbers = #tpu.dot_dimension_numbers<[1], [1], [0], [0], [0, 0, 1, 0], [], []>} : vector<18x128xbf16>, vector<18x128xbf16>, vector<18x18xf32> -> vector<18x18xf32>
    %cst_27 = arith.constant 0.0883883461 : f32
    %67 = vector.broadcast %cst_27 : f32 to vector<18x18xf32>
    %68 = arith.mulf %66, %67 : vector<18x18xf32>
    %69 = arith.addf %68, %4 : vector<18x18xf32>
    %cst_28 = arith.constant dense<0xFF800000> : vector<18xf32>
    %70 = vector.multi_reduction <maximumf>, %69, %cst_28 [1] : vector<18x18xf32> to vector<18xf32>
    %71 = vector.shape_cast %70 : vector<18xf32> to vector<18x1xf32>
    %72 = vector.broadcast %71 : vector<18x1xf32> to vector<18x18xf32>
    %73 = arith.subf %69, %72 : vector<18x18xf32>
    %74 = math.exp %73 : vector<18x18xf32>
    %cst_29 = arith.constant dense<0.000000e+00> : vector<18xf32>
    %75 = vector.multi_reduction <add>, %74, %cst_29 [1] : vector<18x18xf32> to vector<18xf32>
    %76 = vector.shape_cast %75 : vector<18xf32> to vector<18x1xf32>
    %77 = tpu.reciprocal %76 {approx = true} : vector<18x1xf32> -> vector<18x1xf32>
    %78 = vector.broadcast %77 : vector<18x1xf32> to vector<18x18xf32>
    %79 = arith.mulf %74, %78 : vector<18x18xf32>
    %80 = arith.truncf %79 : vector<18x18xf32> to vector<18x18xbf16>
    %cst_30 = arith.constant dense<0.000000e+00> : vector<18x128xf32>
    %81 = tpu.matmul %80, %65, %cst_30 {dimension_numbers = #tpu.dot_dimension_numbers<[1], [0], [0], [1], [0, 0, 1, 1], [], []>} : vector<18x18xbf16>, vector<18x128xbf16>, vector<18x128xf32> -> vector<18x128xf32>
    %82 = vector.extract_strided_slice %37 {offsets = [0, 256], sizes = [18, 128], strides = [1, 1]} : vector<18x1536xf32> to vector<18x128xf32>
    %83 = arith.truncf %82 : vector<18x128xf32> to vector<18x128xbf16>
    %84 = vector.extract_strided_slice %37 {offsets = [0, 768], sizes = [18, 128], strides = [1, 1]} : vector<18x1536xf32> to vector<18x128xf32>
    %85 = arith.truncf %84 : vector<18x128xf32> to vector<18x128xbf16>
    %86 = vector.extract_strided_slice %37 {offsets = [0, 1280], sizes = [18, 128], strides = [1, 1]} : vector<18x1536xf32> to vector<18x128xf32>
    %87 = arith.truncf %86 : vector<18x128xf32> to vector<18x128xbf16>
    %cst_31 = arith.constant dense<0.000000e+00> : vector<18x18xf32>
    %88 = tpu.matmul %83, %85, %cst_31 {dimension_numbers = #tpu.dot_dimension_numbers<[1], [1], [0], [0], [0, 0, 1, 0], [], []>} : vector<18x128xbf16>, vector<18x128xbf16>, vector<18x18xf32> -> vector<18x18xf32>
    %cst_32 = arith.constant 0.0883883461 : f32
    %89 = vector.broadcast %cst_32 : f32 to vector<18x18xf32>
    %90 = arith.mulf %88, %89 : vector<18x18xf32>
    %91 = arith.addf %90, %4 : vector<18x18xf32>
    %cst_33 = arith.constant dense<0xFF800000> : vector<18xf32>
    %92 = vector.multi_reduction <maximumf>, %91, %cst_33 [1] : vector<18x18xf32> to vector<18xf32>
    %93 = vector.shape_cast %92 : vector<18xf32> to vector<18x1xf32>
    %94 = vector.broadcast %93 : vector<18x1xf32> to vector<18x18xf32>
    %95 = arith.subf %91, %94 : vector<18x18xf32>
    %96 = math.exp %95 : vector<18x18xf32>
    %cst_34 = arith.constant dense<0.000000e+00> : vector<18xf32>
    %97 = vector.multi_reduction <add>, %96, %cst_34 [1] : vector<18x18xf32> to vector<18xf32>
    %98 = vector.shape_cast %97 : vector<18xf32> to vector<18x1xf32>
    %99 = tpu.reciprocal %98 {approx = true} : vector<18x1xf32> -> vector<18x1xf32>
    %100 = vector.broadcast %99 : vector<18x1xf32> to vector<18x18xf32>
    %101 = arith.mulf %96, %100 : vector<18x18xf32>
    %102 = arith.truncf %101 : vector<18x18xf32> to vector<18x18xbf16>
    %cst_35 = arith.constant dense<0.000000e+00> : vector<18x128xf32>
    %103 = tpu.matmul %102, %87, %cst_35 {dimension_numbers = #tpu.dot_dimension_numbers<[1], [0], [0], [1], [0, 0, 1, 1], [], []>} : vector<18x18xbf16>, vector<18x128xbf16>, vector<18x128xf32> -> vector<18x128xf32>
    %104 = vector.extract_strided_slice %37 {offsets = [0, 384], sizes = [18, 128], strides = [1, 1]} : vector<18x1536xf32> to vector<18x128xf32>
    %105 = arith.truncf %104 : vector<18x128xf32> to vector<18x128xbf16>
    %106 = vector.extract_strided_slice %37 {offsets = [0, 896], sizes = [18, 128], strides = [1, 1]} : vector<18x1536xf32> to vector<18x128xf32>
    %107 = arith.truncf %106 : vector<18x128xf32> to vector<18x128xbf16>
    %108 = vector.extract_strided_slice %37 {offsets = [0, 1408], sizes = [18, 128], strides = [1, 1]} : vector<18x1536xf32> to vector<18x128xf32>
    %109 = arith.truncf %108 : vector<18x128xf32> to vector<18x128xbf16>
    %cst_36 = arith.constant dense<0.000000e+00> : vector<18x18xf32>
    %110 = tpu.matmul %105, %107, %cst_36 {dimension_numbers = #tpu.dot_dimension_numbers<[1], [1], [0], [0], [0, 0, 1, 0], [], []>} : vector<18x128xbf16>, vector<18x128xbf16>, vector<18x18xf32> -> vector<18x18xf32>
    %cst_37 = arith.constant 0.0883883461 : f32
    %111 = vector.broadcast %cst_37 : f32 to vector<18x18xf32>
    %112 = arith.mulf %110, %111 : vector<18x18xf32>
    %113 = arith.addf %112, %4 : vector<18x18xf32>
    %cst_38 = arith.constant dense<0xFF800000> : vector<18xf32>
    %114 = vector.multi_reduction <maximumf>, %113, %cst_38 [1] : vector<18x18xf32> to vector<18xf32>
    %115 = vector.shape_cast %114 : vector<18xf32> to vector<18x1xf32>
    %116 = vector.broadcast %115 : vector<18x1xf32> to vector<18x18xf32>
    %117 = arith.subf %113, %116 : vector<18x18xf32>
    %118 = math.exp %117 : vector<18x18xf32>
    %cst_39 = arith.constant dense<0.000000e+00> : vector<18xf32>
    %119 = vector.multi_reduction <add>, %118, %cst_39 [1] : vector<18x18xf32> to vector<18xf32>
    %120 = vector.shape_cast %119 : vector<18xf32> to vector<18x1xf32>
    %121 = tpu.reciprocal %120 {approx = true} : vector<18x1xf32> -> vector<18x1xf32>
    %122 = vector.broadcast %121 : vector<18x1xf32> to vector<18x18xf32>
    %123 = arith.mulf %118, %122 : vector<18x18xf32>
    %124 = arith.truncf %123 : vector<18x18xf32> to vector<18x18xbf16>
    %cst_40 = arith.constant dense<0.000000e+00> : vector<18x128xf32>
    %125 = tpu.matmul %124, %109, %cst_40 {dimension_numbers = #tpu.dot_dimension_numbers<[1], [0], [0], [1], [0, 0, 1, 1], [], []>} : vector<18x18xbf16>, vector<18x128xbf16>, vector<18x128xf32> -> vector<18x128xf32>
    %126 = tpu.concatenate %59, %81, %103, %125 in 1 : vector<18x128xf32>, vector<18x128xf32>, vector<18x128xf32>, vector<18x128xf32> -> vector<18x512xf32>
    %127 = arith.truncf %126 : vector<18x512xf32> to vector<18x512xbf16>
    %c0_41 = arith.constant 0 : index
    %c0_42 = arith.constant 0 : index
    %c0_43 = arith.constant 0 : index
    %128 = vector.load %arg7[%c0_41, %c0_42, %c0_43] : memref<1x512x512xbf16, #tpu.memory_space<vmem>>, vector<1x512x512xbf16>
    %129 = vector.shape_cast %128 : vector<1x512x512xbf16> to vector<512x512xbf16>
    %cst_44 = arith.constant dense<0.000000e+00> : vector<18x512xf32>
    %130 = tpu.matmul %127, %129, %cst_44 {dimension_numbers = #tpu.dot_dimension_numbers<[1], [0], [0], [1], [0, 0, 1, 1], [], []>} : vector<18x512xbf16>, vector<512x512xbf16>, vector<18x512xf32> -> vector<18x512xf32>
    %c0_45 = arith.constant 0 : index
    %c0_46 = arith.constant 0 : index
    %c0_47 = arith.constant 0 : index
    %131 = vector.load %arg8[%c0_45, %c0_46, %c0_47] : memref<1x1x512xf32, #tpu.memory_space<vmem>>, vector<1x1x512xf32>
    %132 = vector.shape_cast %131 : vector<1x1x512xf32> to vector<1x512xf32>
    %133 = vector.broadcast %132 : vector<1x512xf32> to vector<18x512xf32>
    %134 = arith.addf %130, %133 : vector<18x512xf32>
    %135 = arith.addf %3, %134 : vector<18x512xf32>
    %c0_48 = arith.constant 0 : index
    %c0_49 = arith.constant 0 : index
    %c0_50 = arith.constant 0 : index
    %136 = vector.load %arg13[%c0_48, %c0_49, %c0_50] : memref<1x1x512xf32, #tpu.memory_space<vmem>>, vector<1x1x512xf32>
    %137 = vector.shape_cast %136 : vector<1x1x512xf32> to vector<1x512xf32>
    %c0_51 = arith.constant 0 : index
    %c0_52 = arith.constant 0 : index
    %c0_53 = arith.constant 0 : index
    %138 = vector.load %arg14[%c0_51, %c0_52, %c0_53] : memref<1x1x512xf32, #tpu.memory_space<vmem>>, vector<1x1x512xf32>
    %139 = vector.shape_cast %138 : vector<1x1x512xf32> to vector<1x512xf32>
    %cst_54 = arith.constant dense<0.000000e+00> : vector<18xf32>
    %140 = vector.multi_reduction <add>, %135, %cst_54 [1] : vector<18x512xf32> to vector<18xf32>
    %141 = vector.shape_cast %140 : vector<18xf32> to vector<18x1xf32>
    %cst_55 = arith.constant 5.120000e+02 : f32
    %142 = vector.broadcast %cst_55 : f32 to vector<18x1xf32>
    %143 = arith.divf %141, %142 : vector<18x1xf32>
    %144 = vector.broadcast %143 : vector<18x1xf32> to vector<18x512xf32>
    %145 = arith.subf %135, %144 : vector<18x512xf32>
    %146 = arith.mulf %145, %145 : vector<18x512xf32>
    %cst_56 = arith.constant dense<0.000000e+00> : vector<18xf32>
    %147 = vector.multi_reduction <add>, %146, %cst_56 [1] : vector<18x512xf32> to vector<18xf32>
    %148 = vector.shape_cast %147 : vector<18xf32> to vector<18x1xf32>
    %cst_57 = arith.constant 5.110000e+02 : f32
    %149 = vector.broadcast %cst_57 : f32 to vector<18x1xf32>
    %150 = arith.divf %148, %149 : vector<18x1xf32>
    %151 = math.sqrt %150 : vector<18x1xf32>
    %cst_58 = arith.constant 9.99999997E-7 : f32
    %152 = vector.broadcast %cst_58 : f32 to vector<18x1xf32>
    %153 = arith.addf %151, %152 : vector<18x1xf32>
    %154 = tpu.reciprocal %153 : vector<18x1xf32> -> vector<18x1xf32>
    %155 = vector.broadcast %154 : vector<18x1xf32> to vector<18x512xf32>
    %156 = arith.mulf %145, %155 : vector<18x512xf32>
    %157 = vector.broadcast %137 : vector<1x512xf32> to vector<18x512xf32>
    %158 = arith.mulf %157, %156 : vector<18x512xf32>
    %159 = vector.broadcast %139 : vector<1x512xf32> to vector<18x512xf32>
    %160 = arith.addf %158, %159 : vector<18x512xf32>
    %161 = arith.truncf %160 : vector<18x512xf32> to vector<18x512xbf16>
    %c0_59 = arith.constant 0 : index
    %c0_60 = arith.constant 0 : index
    %c0_61 = arith.constant 0 : index
    %162 = vector.load %arg9[%c0_59, %c0_60, %c0_61] : memref<1x512x2048xbf16, #tpu.memory_space<vmem>>, vector<1x512x2048xbf16>
    %163 = vector.shape_cast %162 : vector<1x512x2048xbf16> to vector<512x2048xbf16>
    %cst_62 = arith.constant dense<0.000000e+00> : vector<18x2048xf32>
    %164 = tpu.matmul %161, %163, %cst_62 {dimension_numbers = #tpu.dot_dimension_numbers<[1], [0], [0], [1], [0, 0, 1, 1], [], []>} : vector<18x512xbf16>, vector<512x2048xbf16>, vector<18x2048xf32> -> vector<18x2048xf32>
    %c0_63 = arith.constant 0 : index
    %c0_64 = arith.constant 0 : index
    %c0_65 = arith.constant 0 : index
    %165 = vector.load %arg10[%c0_63, %c0_64, %c0_65] : memref<1x1x2048xf32, #tpu.memory_space<vmem>>, vector<1x1x2048xf32>
    %166 = vector.shape_cast %165 : vector<1x1x2048xf32> to vector<1x2048xf32>
    %167 = vector.broadcast %166 : vector<1x2048xf32> to vector<18x2048xf32>
    %168 = arith.addf %164, %167 : vector<18x2048xf32>
    %cst_66 = arith.constant 5.000000e-01 : f32
    %169 = vector.broadcast %cst_66 : f32 to vector<18x2048xf32>
    %170 = arith.mulf %169, %168 : vector<18x2048xf32>
    %cst_67 = arith.constant 4.471500e-02 : f32
    %171 = vector.broadcast %cst_67 : f32 to vector<18x2048xf32>
    %172 = arith.mulf %171, %168 : vector<18x2048xf32>
    %173 = arith.mulf %172, %168 : vector<18x2048xf32>
    %174 = arith.mulf %173, %168 : vector<18x2048xf32>
    %175 = arith.addf %168, %174 : vector<18x2048xf32>
    %cst_68 = arith.constant 0.797884583 : f32
    %176 = vector.broadcast %cst_68 : f32 to vector<18x2048xf32>
    %177 = arith.mulf %176, %175 : vector<18x2048xf32>
    %178 = math.tanh %177 : vector<18x2048xf32>
    %cst_69 = arith.constant 1.000000e+00 : f32
    %179 = vector.broadcast %cst_69 : f32 to vector<18x2048xf32>
    %180 = arith.addf %179, %178 : vector<18x2048xf32>
    %181 = arith.mulf %170, %180 : vector<18x2048xf32>
    %182 = arith.truncf %181 : vector<18x2048xf32> to vector<18x2048xbf16>
    %c0_70 = arith.constant 0 : index
    %c0_71 = arith.constant 0 : index
    %c0_72 = arith.constant 0 : index
    %183 = vector.load %arg11[%c0_70, %c0_71, %c0_72] : memref<1x2048x512xbf16, #tpu.memory_space<vmem>>, vector<1x2048x512xbf16>
    %184 = vector.shape_cast %183 : vector<1x2048x512xbf16> to vector<2048x512xbf16>
    %cst_73 = arith.constant dense<0.000000e+00> : vector<18x512xf32>
    %185 = tpu.matmul %182, %184, %cst_73 {dimension_numbers = #tpu.dot_dimension_numbers<[1], [0], [0], [1], [0, 0, 1, 1], [], []>} : vector<18x2048xbf16>, vector<2048x512xbf16>, vector<18x512xf32> -> vector<18x512xf32>
    %c0_74 = arith.constant 0 : index
    %c0_75 = arith.constant 0 : index
    %c0_76 = arith.constant 0 : index
    %186 = vector.load %arg12[%c0_74, %c0_75, %c0_76] : memref<1x1x512xf32, #tpu.memory_space<vmem>>, vector<1x1x512xf32>
    %187 = vector.shape_cast %186 : vector<1x1x512xf32> to vector<1x512xf32>
    %188 = vector.broadcast %187 : vector<1x512xf32> to vector<18x512xf32>
    %189 = arith.addf %185, %188 : vector<18x512xf32>
    %190 = arith.addf %135, %189 : vector<18x512xf32>
    %c0_77 = arith.constant 0 : index
    %c0_78 = arith.constant 0 : index
    %191 = vector.load %arg24[%c0_77, %c0_78] : memref<18x512xf32, #tpu.memory_space<vmem>>, vector<18x512xf32>
    tpu.vector_store %arg24[%c0_77, %c0_78], %190 {strides = array<i32>} : memref<18x512xf32, #tpu.memory_space<vmem>>, vector<18x512xf32>,
    %c1_i32 = arith.constant 1 : i32
    %192 = arith.cmpi eq, %arg0, %c1_i32 : i32
    %193 = arith.extui %192 : i1 to i32
    %c0_i32_79 = arith.constant 0 : i32
    %194 = arith.cmpi ne, %193, %c0_i32_79 : i32
    scf.if %194 {
      %195 = arith.mulf %190, %190 : vector<18x512xf32>
      %cst_80 = arith.constant dense<0.000000e+00> : vector<18xf32>
      %196 = vector.multi_reduction <add>, %195, %cst_80 [1] : vector<18x512xf32> to vector<18xf32>
      %197 = vector.shape_cast %196 : vector<18xf32> to vector<18x1xf32>
      %198 = math.rsqrt %197 : vector<18x1xf32>
      %199 = vector.broadcast %198 : vector<18x1xf32> to vector<18x512xf32>
      %200 = arith.mulf %190, %199 : vector<18x512xf32>
      %c0_81 = arith.constant 0 : index
      %c0_82 = arith.constant 0 : index
      %201 = vector.load %arg22[%c0_81, %c0_82] : memref<18x512xf32, #tpu.memory_space<vmem>>, vector<18x512xf32>
      tpu.vector_store %arg22[%c0_81, %c0_82], %200 {strides = array<i32>} : memref<18x512xf32, #tpu.memory_space<vmem>>, vector<18x512xf32>,
      %202 = vector.extract_strided_slice %190 {offsets = [0, 0], sizes = [1, 512], strides = [1, 1]} : vector<18x512xf32> to vector<1x512xf32>
      %203 = vector.extract_strided_slice %190 {offsets = [9, 0], sizes = [1, 512], strides = [1, 1]} : vector<18x512xf32> to vector<1x512xf32>
      %204 = tpu.concatenate %202, %203 in 0 : vector<1x512xf32>, vector<1x512xf32> -> vector<2x512xf32>
      %c0_83 = arith.constant 0 : index
      %c0_84 = arith.constant 0 : index
      %205 = vector.load %arg23[%c0_83, %c0_84] : memref<2x512xf32, #tpu.memory_space<vmem>>, vector<2x512xf32>
      tpu.vector_store %arg23[%c0_83, %c0_84], %204 {strides = array<i32>} : memref<2x512xf32, #tpu.memory_space<vmem>>, vector<2x512xf32>,
      %c0_85 = arith.constant 0 : index
      %c0_86 = arith.constant 0 : index
      %206 = vector.load %arg15[%c0_85, %c0_86] : memref<512x128xf32, #tpu.memory_space<vmem>>, vector<512x128xf32>
      %cst_87 = arith.constant dense<0.000000e+00> : vector<2x128xf32>
      %207 = tpu.matmul %204, %206, %cst_87 {dimension_numbers = #tpu.dot_dimension_numbers<[1], [0], [0], [1], [0, 0, 1, 1], [], []>} : vector<2x512xf32>, vector<512x128xf32>, vector<2x128xf32> -> vector<2x128xf32>
      %c0_88 = arith.constant 0 : index
      %c0_89 = arith.constant 0 : index
      %208 = vector.load %arg16[%c0_88, %c0_89] : memref<1x128xf32, #tpu.memory_space<vmem>>, vector<1x128xf32>
      %209 = vector.broadcast %208 : vector<1x128xf32> to vector<2x128xf32>
      %210 = arith.addf %207, %209 : vector<2x128xf32>
      %c0_90 = arith.constant 0 : index
      %c0_91 = arith.constant 0 : index
      %211 = vector.load %arg17[%c0_90, %c0_91] : memref<128x32xf32, #tpu.memory_space<vmem>>, vector<128x32xf32>
      %cst_92 = arith.constant dense<0.000000e+00> : vector<2x32xf32>
      %212 = tpu.matmul %210, %211, %cst_92 {dimension_numbers = #tpu.dot_dimension_numbers<[1], [0], [0], [1], [0, 0, 1, 1], [], []>} : vector<2x128xf32>, vector<128x32xf32>, vector<2x32xf32> -> vector<2x32xf32>
      %c0_93 = arith.constant 0 : index
      %c0_94 = arith.constant 0 : index
      %213 = vector.load %arg18[%c0_93, %c0_94] : memref<1x32xf32, #tpu.memory_space<vmem>>, vector<1x32xf32>
      %214 = vector.broadcast %213 : vector<1x32xf32> to vector<2x32xf32>
      %215 = arith.addf %212, %214 : vector<2x32xf32>
      %c0_95 = arith.constant 0 : index
      %c0_96 = arith.constant 0 : index
      %216 = vector.load %arg19[%c0_95, %c0_96] : memref<32x10xf32, #tpu.memory_space<vmem>>, vector<32x10xf32>
      %cst_97 = arith.constant dense<0.000000e+00> : vector<2x10xf32>
      %217 = tpu.matmul %215, %216, %cst_97 {dimension_numbers = #tpu.dot_dimension_numbers<[1], [0], [0], [1], [0, 0, 1, 1], [], []>} : vector<2x32xf32>, vector<32x10xf32>, vector<2x10xf32> -> vector<2x10xf32>
      %c0_98 = arith.constant 0 : index
      %c0_99 = arith.constant 0 : index
      %218 = vector.load %arg20[%c0_98, %c0_99] : memref<1x10xf32, #tpu.memory_space<vmem>>, vector<1x10xf32>
      %219 = vector.broadcast %218 : vector<1x10xf32> to vector<2x10xf32>
      %220 = arith.addf %217, %219 : vector<2x10xf32>
      %c0_100 = arith.constant 0 : index
      %c0_101 = arith.constant 0 : index
      %221 = vector.load %arg21[%c0_100, %c0_101] : memref<2x10xf32, #tpu.memory_space<vmem>>, vector<2x10xf32>
      tpu.vector_store %arg21[%c0_100, %c0_101], %220 {strides = array<i32>} : memref<2x10xf32, #tpu.memory_space<vmem>>, vector<2x10xf32>,
    } else {
    }
    return
  }
  func.func @transform_0(%arg0: i32) -> (i32, i32) {
    %c0_i32 = arith.constant 0 : i32
    %c0_i32_0 = arith.constant 0 : i32
    %c0_i32_1 = arith.constant 0 : i32
    return %c0_i32, %c0_i32_0 : i32, i32
  }
  func.func @transform_1(%arg0: i32) -> (i32, i32) {
    %c0_i32 = arith.constant 0 : i32
    %c0_i32_0 = arith.constant 0 : i32
    %c0_i32_1 = arith.constant 0 : i32
    return %c0_i32, %c0_i32_0 : i32, i32
  }
  func.func @transform_2(%arg0: i32) -> (i32, i32, i32) {
    %c0_i32 = arith.constant 0 : i32
    %c0_i32_0 = arith.constant 0 : i32
    %c0_i32_1 = arith.constant 0 : i32
    return %arg0, %c0_i32, %c0_i32_0 : i32, i32, i32
  }
  func.func @transform_3(%arg0: i32) -> (i32, i32, i32) {
    %c0_i32 = arith.constant 0 : i32
    %c0_i32_0 = arith.constant 0 : i32
    %c0_i32_1 = arith.constant 0 : i32
    return %arg0, %c0_i32, %c0_i32_0 : i32, i32, i32
  }
  func.func @transform_4(%arg0: i32) -> (i32, i32, i32) {
    %c0_i32 = arith.constant 0 : i32
    %c0_i32_0 = arith.constant 0 : i32
    %c0_i32_1 = arith.constant 0 : i32
    return %arg0, %c0_i32, %c0_i32_0 : i32, i32, i32
  }
  func.func @transform_5(%arg0: i32) -> (i32, i32, i32) {
    %c0_i32 = arith.constant 0 : i32
    %c0_i32_0 = arith.constant 0 : i32
    %c0_i32_1 = arith.constant 0 : i32
    return %arg0, %c0_i32, %c0_i32_0 : i32, i32, i32
  }
  func.func @transform_6(%arg0: i32) -> (i32, i32, i32) {
    %c0_i32 = arith.constant 0 : i32
    %c0_i32_0 = arith.constant 0 : i32
    %c0_i32_1 = arith.constant 0 : i32
    return %arg0, %c0_i32, %c0_i32_0 : i32, i32, i32
  }
  func.func @transform_7(%arg0: i32) -> (i32, i32, i32) {
    %c0_i32 = arith.constant 0 : i32
    %c0_i32_0 = arith.constant 0 : i32
    %c0_i32_1 = arith.constant 0 : i32
    return %arg0, %c0_i32, %c0_i32_0 : i32, i32, i32
  }
  func.func @transform_8(%arg0: i32) -> (i32, i32, i32) {
    %c0_i32 = arith.constant 0 : i32
    %c0_i32_0 = arith.constant 0 : i32
    %c0_i32_1 = arith.constant 0 : i32
    return %arg0, %c0_i32, %c0_i32_0 : i32, i32, i32
  }
  func.func @transform_9(%arg0: i32) -> (i32, i32, i32) {
    %c0_i32 = arith.constant 0 : i32
    %c0_i32_0 = arith.constant 0 : i32
    %c0_i32_1 = arith.constant 0 : i32
    return %arg0, %c0_i32, %c0_i32_0 : i32, i32, i32
  }
  func.func @transform_10(%arg0: i32) -> (i32, i32, i32) {
    %c0_i32 = arith.constant 0 : i32
    %c0_i32_0 = arith.constant 0 : i32
    %c0_i32_1 = arith.constant 0 : i32
    return %arg0, %c0_i32, %c0_i32_0 : i32, i32, i32
  }
  func.func @transform_11(%arg0: i32) -> (i32, i32, i32) {
    %c0_i32 = arith.constant 0 : i32
    %c0_i32_0 = arith.constant 0 : i32
    %c0_i32_1 = arith.constant 0 : i32
    return %arg0, %c0_i32, %c0_i32_0 : i32, i32, i32
  }
  func.func @transform_12(%arg0: i32) -> (i32, i32, i32) {
    %c0_i32 = arith.constant 0 : i32
    %c0_i32_0 = arith.constant 0 : i32
    %c0_i32_1 = arith.constant 0 : i32
    return %arg0, %c0_i32, %c0_i32_0 : i32, i32, i32
  }
  func.func @transform_13(%arg0: i32) -> (i32, i32, i32) {
    %c0_i32 = arith.constant 0 : i32
    %c0_i32_0 = arith.constant 0 : i32
    %c0_i32_1 = arith.constant 0 : i32
    return %arg0, %c0_i32, %c0_i32_0 : i32, i32, i32
  }
  func.func @transform_14(%arg0: i32) -> (i32, i32) {
    %c0_i32 = arith.constant 0 : i32
    %c0_i32_0 = arith.constant 0 : i32
    %c0_i32_1 = arith.constant 0 : i32
    return %c0_i32, %c0_i32_0 : i32, i32
  }
  func.func @transform_15(%arg0: i32) -> (i32, i32) {
    %c0_i32 = arith.constant 0 : i32
    %c0_i32_0 = arith.constant 0 : i32
    %c0_i32_1 = arith.constant 0 : i32
    return %c0_i32, %c0_i32_0 : i32, i32
  }
  func.func @transform_16(%arg0: i32) -> (i32, i32) {
    %c0_i32 = arith.constant 0 : i32
    %c0_i32_0 = arith.constant 0 : i32
    %c0_i32_1 = arith.constant 0 : i32
    return %c0_i32, %c0_i32_0 : i32, i32
  }
  func.func @transform_17(%arg0: i32) -> (i32, i32) {
    %c0_i32 = arith.constant 0 : i32
    %c0_i32_0 = arith.constant 0 : i32
    %c0_i32_1 = arith.constant 0 : i32
    return %c0_i32, %c0_i32_0 : i32, i32
  }
  func.func @transform_18(%arg0: i32) -> (i32, i32) {
    %c0_i32 = arith.constant 0 : i32
    %c0_i32_0 = arith.constant 0 : i32
    %c0_i32_1 = arith.constant 0 : i32
    return %c0_i32, %c0_i32_0 : i32, i32
  }
  func.func @transform_19(%arg0: i32) -> (i32, i32) {
    %c0_i32 = arith.constant 0 : i32
    %c0_i32_0 = arith.constant 0 : i32
    %c0_i32_1 = arith.constant 0 : i32
    return %c0_i32, %c0_i32_0 : i32, i32
  }
  func.func @transform_20(%arg0: i32) -> (i32, i32) {
    %c0_i32 = arith.constant 0 : i32
    %c0_i32_0 = arith.constant 0 : i32
    %c0_i32_1 = arith.constant 0 : i32
    return %c0_i32, %c0_i32_0 : i32, i32
  }
  func.func @transform_21(%arg0: i32) -> (i32, i32) {
    %c0_i32 = arith.constant 0 : i32
    %c0_i32_0 = arith.constant 0 : i32
    %c0_i32_1 = arith.constant 0 : i32
    return %c0_i32, %c0_i32_0 : i32, i32
  }
  func.func @transform_22(%arg0: i32) -> (i32, i32) {
    %c0_i32 = arith.constant 0 : i32
    %c0_i32_0 = arith.constant 0 : i32
    %c0_i32_1 = arith.constant 0 : i32
    return %c0_i32, %c0_i32_0 : i32, i32
  }
}

</mosaic_0001>

<bundles_post_ra>
// kernel: feature_bert10_forward.1
= control target key start
LH: loop header
LB: loop body
LE: loop exit
PB: predicated region body
PF: predicated region fallthrough
CT: control target
= control target key end

     0   :  { %s23681_s0 = inlined_call_operand.vmem [shape: f32[18,512], index: 0, kind: input, shape index: {}]   ;;  %s23682_s1 = inlined_call_operand.vmem [shape: f32[18,18], index: 1, kind: input, shape index: {}]   ;;  %s23683_s2 = inlined_call_operand.hbm [shape: bf16[2,512,1536], index: 2, kind: input, shape index: {}]   ;;  %s23684_s3 = inlined_call_operand.hbm [shape: f32[2,1,1536], index: 3, kind: input, shape index: {}]   ;;  %s23685_s4 = inlined_call_operand.hbm [shape: f32[2,1,512], index: 4, kind: input, shape index: {}]   ;;  %s23686_s5 = inlined_call_operand.hbm [shape: f32[2,1,512], index: 5, kind: input, shape index: {}]   ;;  %s23687_s6 = inlined_call_operand.hbm [shape: bf16[2,512,512], index: 6, kind: input, shape index: {}]   ;;  %s23688_s7 = inlined_call_operand.hbm [shape: f32[2,1,512], index: 7, kind: input, shape index: {}]   ;;  %s23689_s8 = inlined_call_operand.hbm [shape: bf16[2,512,2048], index: 8, kind: input, shape index: {}]   ;;  %s23690_s9 = inlined_call_operand.hbm [shape: f32[2,1,2048], index: 9, kind: input, shape index: {}]   ;;  %s23691_s10 = inlined_call_operand.hbm [shape: bf16[2,2048,512], index: 10, kind: input, shape index: {}]   ;;  %s23692_s11 = inlined_call_operand.hbm [shape: f32[2,1,512], index: 11, kind: input, shape index: {}]   ;;  %s23693_s12 = inlined_call_operand.hbm [shape: f32[2,1,512], index: 12, kind: input, shape index: {}]   ;;  %s23694_s13 = inlined_call_operand.hbm [shape: f32[2,1,512], index: 13, kind: input, shape index: {}]   ;;  %s23695_s14 = inlined_call_operand.hbm [shape: f32[512,128], index: 14, kind: input, shape index: {}]   ;;  %s23696_s15 = inlined_call_operand.hbm [shape: f32[1,128], index: 15, kind: input, shape index: {}]   ;;  %s23697_s16 = inlined_call_operand.vmem [shape: f32[128,32], index: 16, kind: input, shape index: {}]   ;;  %s23698_s17 = inlined_call_operand.hbm [shape: f32[1,32], index: 17, kind: input, shape index: {}]   ;;  %s23699_s18 = inlined_call_operand.vmem [shape: f32[32,10], index: 18, kind: input, shape index: {}]   ;;  %s23700_s19 = inlined_call_operand.hbm [shape: f32[1,10], index: 19, kind: input, shape index: {}]   ;;  %s23701_s20 = inlined_call_operand.hbm [shape: f32[2,10], index: 20, kind: output, shape index: {0}]   ;;  %s23702_s21 = inlined_call_operand.vmem [shape: f32[18,512], index: 21, kind: output, shape index: {1}]   ;;  %s23703_s22 = inlined_call_operand.hbm [shape: f32[2,512], index: 22, kind: output, shape index: {2}]  }
   0x1   :  { %23751 = sst [smem:[#allocation65_spill]] %s23681_s0 }
   0x2   :  { %23752 = sst [smem:[#allocation66_spill]] %s23682_s1 }
   0x3   :  { %23753 = sst [smem:[#allocation67_spill]] %s23683_s2 }
   0x4   :  { %23754 = sst [smem:[#allocation68_spill]] %s23684_s3 }
   0x5   :  { %23755 = sst [smem:[#allocation69_spill]] %s23685_s4 }
   0x6   :  { %23756 = sst [smem:[#allocation70_spill]] %s23686_s5 }
   0x7   :  { %23757 = sst [smem:[#allocation71_spill]] %s23687_s6 }
   0x8   :  { %23758 = sst [smem:[#allocation72_spill]] %s23688_s7 }
   0x9   :  { %23759 = sst [smem:[#allocation73_spill]] %s23690_s9 }
   0xa   :  { %23760 = sst [smem:[#allocation74_spill]] %s23692_s11 }
   0xb   :  { %23761 = sst [smem:[#allocation75_spill]] %s23695_s14 }
   0xc   :  { %23762 = sst [smem:[#allocation76_spill]] %s23696_s15 }
   0xd   :  { %23763 = sst [smem:[#allocation77_spill]] %s23697_s16 }
   0xe   :  { %23764 = sst [smem:[#allocation78_spill]] %s23699_s18 }
   0xf   :  { %23765 = sst [smem:[#allocation79_spill]] %s23701_s20 }
  0x10   :  { %23766 = sst [smem:[#allocation80_spill]] %s23702_s21 }
  0x11   :  { %23767 = sst [smem:[#allocation81_spill]] %s23703_s22 }
  0x12   :  { %28 = vsyncpa [#allocation4], 0 }
  0x13   :  { %30 = vsyncpa [#allocation4 + $0x1], 0 }
  0x14   :  { %31 = vsyncpa [#allocation7], 0 }
  0x15   :  { %33 = vsyncpa [#allocation7 + $0x1], 0 }
  0x16   :  { %34 = vsyncpa [#allocation10], 0 }
  0x17   :  { %36 = vsyncpa [#allocation10 + $0x1], 0 }
  0x18   :  { %37 = vsyncpa [#allocation13], 0 }
  0x19   :  { %39 = vsyncpa [#allocation13 + $0x1], 0 }
  0x1a   :  { %40 = vsyncpa [#allocation16], 0 }
  0x1b   :  { %42 = vsyncpa [#allocation16 + $0x1], 0 }
  0x1c   :  { %43 = vsyncpa [#allocation19], 0 }
  0x1d   :  { %45 = vsyncpa [#allocation19 + $0x1], 0 }
  0x1e   :  { %46 = vsyncpa [#allocation22], 0 }
  0x1f   :  { %48 = vsyncpa [#allocation22 + $0x1], 0 }
  0x20   :  { %49 = vsyncpa [#allocation25], 0 }
  0x21   :  { %50 = vsyncpa [#allocation28], 0 }
  0x22   :  { %51 = vsyncpa [#allocation5], 0 }
  0x23   :  { %52 = vsyncpa [#allocation31], 0  ;;  %s19837_s3 = smov 0   ;;  %s19839_s28 = smov 0  }
  0x24   :  { %s19841_s29 = smov 0   ;;  %s19843_s30 = smov 0  }
  0x25 LB: > { %23768 = sst [smem:[#allocation44_spill]] %s19683_s28  ;;  %s19856_s4 = sadd.s32 4294967295, %s19691_s30   ;;  %s19691_s30 = sphi %s19843_s30, %s23860_s30   ;;  %s19687_s29 = sphi %s19841_s29, %s23863_s29   ;;  %s19683_s28 = sphi %s19839_s28, %s23862_s28   ;;  %s19679_s3 = sphi %s19837_s3, %s23861_s3  }
  0x26   : > { %23769 = sst [smem:[#allocation45_spill]] %s19687_s29  ;;  %s19859_s0 = sadd.s32 1, %s19691_s30  }
  0x27   : > { %23770 = sst [smem:[#allocation46_spill]] %s19856_s4  ;;  %s104_s23 = ssub.s32 %s19691_s30, %s19859_s0 }
  0x28   : > { %23771 = sst [smem:[#allocation47_spill]] %s19859_s0  ;;  %s107_s1 = sadd.s32 1, %s19687_s29 }
  0x29   : > { %p105_p0 = scmp.eq.s32.totalorder %s104_s23, 0  ;;  %p114_p1 = scmp.ne.s32.totalorder %s19687_s29, %s19683_s28 }
  0x2a   : > { %p115_p2 = scmp.eq.s32.totalorder %s19691_s30, 0  ;;  %p120_p3 = scmp.ne.s32.totalorder %s19683_s28, %s19679_s3 }
  0x2b   : > { %s19869_s5 = scalar_select %p105_p0, %s19687_s29, %s107_s1  }
  0x2c   : > { %p19871_p4 = por %p115_p2, %p114_p1  ;;  %p23711_p5 = scmp.eq.s32.totalorder %s19856_s4, 0 }
  0x2d   : > { %23772 = sst [smem:[#allocation48_spill]] %s19869_s5  ;;  %p15377_p6 = scmp.ge.s32.totalorder %s19691_s30, 1 }
  0x2e   : > { %p606_p7 = scmp.lt.s32.totalorder %s19691_s30, 3  ;;  %p19880_p8 = por %p23711_p5, %p120_p3 }
  0x2f   : > { %s19693_s26 = smov [#allocation23]   ;;  %p17342_p13 = scmp.lt.s32.totalorder %s19691_s30, 2 }
  0x30   : > { %s23774_s6 = scalar_select %p19880_p8, 1, 0 }
  0x31   : > { %p19885_p10 = pnand %p15377_p6, %p606_p7  ;;  %s624_s2 = sshll.u32 %s19693_s26, 4  ;;  %s625_s2 = int_to_ptr.vmem [resolvable:$true] %s624_s2 }
  0x32   : > { %23775 = sst [smem:[#allocation49_spill]] %s23774_s6  ;;  %s19899_s3 = sand.u32 1, %s19687_s29  }
  0x33   : > { %s23776_s25 = scalar_select %p19885_p10, 1, 0 }
  0x34   : > { %p17288_p11 = pneg %p19885_p10  ;;  %p19903_p0 = pnand %p17342_p13, %p19871_p4 }
  0x35   : > { %s19136_s1 = scalar_lea.vmem %s625_s2, 8192  ;;  %p19144_p7 = scmp.lt.s32.totalorder %s625_s2, %s625_s2 }
  0x36   : > { %p19893_p12 = pnand %p17288_p11, %p23711_p5  ;;  %p19137_p2 = scmp.ne.s32.totalorder %s625_s2, %s19136_s1 }
  0x37   : > { %p19145_p11 = scmp.lt.s32.totalorder %s19136_s1, %s19136_s1 }
  0x38   : > { %s23777_s27 = scalar_select %p19893_p12, 1, 0 }
  0x39   : > { %p23721_p1 = pneg %p19893_p12  ;;  %p19146_p9 = por %p19145_p11, %p19144_p7 }
  0x3b   : > { %p19139_p3 = pnand %p19137_p2, %p23721_p1 }
  0x3d   : > { %p19140_p6 = pneg %p19139_p3 }
  0x3f   : > { %p19147_p5 = pnand %p19146_p9, %p19140_p6 }
  0x41   : > { %19150 = shalt.err (!%p19147_p5)
}
  0x42   : > { %s19694_s26 = smov 128   ;;  %s19695_s24 = smov 8  }
  0x43   : > { %s23779_s14 = sld [smem:[#allocation75_spill]]  ;;  %s19696_s0 = smov [#allocation24]  }
  0x44   : > { %s638_s22 = sshll.u32 %s19696_s0, 4  ;;  %s19918_s20 = sand.u32 1, %s19691_s30   ;;  %s639_s22 = int_to_ptr.vmem [resolvable:$true] %s638_s22 }
  0x45   : > { %s19162_s21 = scalar_lea.vmem %s639_s22, 16  ;;  %s19169_s1 = scalar_lea.vmem %s639_s22, 32 }
  0x46   : > { %p19163_p4 = scmp.ne.s32.totalorder %s639_s22, %s19162_s21  ;;  %p19170_p13 = scmp.lt.s32.totalorder %s639_s22, %s639_s22 }
  0x47   : > { %p19171_p2 = scmp.lt.s32.totalorder %s19169_s1, %s19162_s21 }
  0x48   : > { %p19165_p5 = pnand %p19163_p4, %p23721_p1 }
  0x49   : > { %17291 = dma.hbm_to_vmem [thread:$0]  (!%p19893_p12), %s23779_s14, 8192, %s625_s2, [#allocation22], %s19694_s26, %s19694_s26, %s19695_s24  }
  0x4a   : > { %p19166_p9 = pneg %p19165_p5  ;;  %p19172_p3 = por %p19171_p2, %p19170_p13 }
  0x4c   : > { %p19173_p6 = pnand %p19172_p3, %p19166_p9 }
  0x4e   : > { %19176 = shalt.err (!%p19173_p6)
}
  0x4f   : > { %s23780_s15 = sld [smem:[#allocation76_spill]]  ;;  %s17236_s0 = smul.u32 12, %s19899_s3 }
  0x50   : > { %s17237_s2 = smul.u32 192, %s19691_s30  ;;  %s19931_s26 = sshll.u32 %s19899_s3, 2 }
  0x51   : > { %s19934_s21 = sshll.u32 %s19691_s30, 6  ;;  %s23781_s14 = sld [smem:[#allocation68_spill]] }
  0x52   : > { %s702_s29 = scalar_lea.vmem [#allocation6], %s17236_s0  ;;  %p19946_p11 = pneg %p19903_p0 }
  0x53   : > { %s710_s5 = sshll.u32 %s702_s29, 4  ;;  %s711_s5 = int_to_ptr.vmem [resolvable:$true] %s710_s5 }
  0x55   : > { %17294 = dma.hbm_to_vmem [thread:$0]  (!%p19893_p12), %s23780_s15, 16, %s639_s22, [#allocation25]  }
  0x57   : > { %s19939_s18 = scalar_lea.hbm %s23781_s14, %s17237_s2  ;;  %s19182_s1 = scalar_lea.hbm %s23781_s14, 384 }
  0x58   : > { %s19177_s4 = scalar_lea.hbm %s19939_s18, 192  ;;  %p19183_p9 = scmp.lt.s32.totalorder %s19939_s18, %s23781_s14 }
  0x59   : > { %p19178_p7 = scmp.ne.s32.totalorder %s19939_s18, %s19177_s4  ;;  %p19184_p13 = scmp.lt.s32.totalorder %s19182_s1, %s19177_s4 }
  0x5b   : > { %p19180_p4 = pnand %p19946_p11, %p19178_p7  ;;  %p19185_p2 = por %p19184_p13, %p19183_p9 }
  0x5d   : > { %p19181_p5 = pneg %p19180_p4 }
  0x5f   : > { %p19186_p3 = pnand %p19185_p2, %p19181_p5 }
  0x61   : > { %19189 = shalt.err (!%p19186_p3)
}
  0x62   : > { %s19190_s29 = scalar_lea.vmem %s711_s5, 192  ;;  %s19697_s16 = smov [#allocation6]  }
  0x63   : > { %p19191_p6 = scmp.ne.s32.totalorder %s711_s5, %s19190_s29  ;;  %s19195_s6 = sshll.u32 %s19697_s16, 4  ;;  %s19196_s6 = int_to_ptr.vmem [resolvable:$false] %s19195_s6 }
  0x64   : > { %s19197_s28 = scalar_lea.vmem %s19196_s6, 384  ;;  %p19198_p7 = scmp.lt.s32.totalorder %s711_s5, %s19196_s6 }
  0x65   : > { %p19193_p1 = pnand %p19191_p6, %p19946_p11  ;;  %p19199_p4 = scmp.lt.s32.totalorder %s19197_s28, %s19190_s29 }
  0x67   : > { %p19194_p8 = pneg %p19193_p1  ;;  %p19200_p10 = por %p19199_p4, %p19198_p7 }
  0x69   : > { %p19201_p12 = pnand %p19200_p10, %p19194_p8 }
  0x6b   : > { %19204 = shalt.err (!%p19201_p12)
}
  0x6c   : > { %s23783_s15 = scalar_lea.sflag [#allocation7], %s19918_s20  ;;  %s23784_s16 = sld [smem:[#allocation70_spill]] }
  0x6d   : > { %17307 = dma.hbm_to_vmem [thread:$0]  (!%p19903_p0), %s19939_s18, 192, %s711_s5, %s23783_s15  }
  0x6e   : > { %s740_s28 = scalar_lea.vmem [#allocation9], %s19931_s26 }
  0x6f   : > { %s748_s6 = sshll.u32 %s740_s28, 4  ;;  %s749_s6 = int_to_ptr.vmem [resolvable:$true] %s748_s6 }
  0x72   : > { %s19970_s24 = scalar_lea.hbm %s23784_s16, %s19934_s21  ;;  %s19210_s18 = scalar_lea.hbm %s23784_s16, 128 }
  0x73   : > { %s19205_s0 = scalar_lea.hbm %s19970_s24, 64  ;;  %p19211_p1 = scmp.lt.s32.totalorder %s19970_s24, %s23784_s16 }
  0x74   : > { %p19206_p8 = scmp.ne.s32.totalorder %s19970_s24, %s19205_s0  ;;  %p19212_p5 = scmp.lt.s32.totalorder %s19210_s18, %s19205_s0 }
  0x76   : > { %p19208_p10 = pnand %p19206_p8, %p19946_p11  ;;  %p19213_p9 = por %p19212_p5, %p19211_p1 }
  0x78   : > { %p19209_p12 = pneg %p19208_p10 }
  0x7a   : > { %p19214_p13 = pnand %p19213_p9, %p19209_p12 }
  0x7c   : > { %19217 = shalt.err (!%p19214_p13)
}
  0x7d   : > { %s19218_s4 = scalar_lea.vmem %s749_s6, 64  ;;  %s19698_s2 = smov [#allocation9]  }
  0x7e   : > { %p19219_p2 = scmp.ne.s32.totalorder %s749_s6, %s19218_s4  ;;  %s19223_s28 = sshll.u32 %s19698_s2, 4  ;;  %s19224_s28 = int_to_ptr.vmem [resolvable:$false] %s19223_s28 }
  0x7f   : > { %s19225_s1 = scalar_lea.vmem %s19224_s28, 128  ;;  %p19226_p7 = scmp.lt.s32.totalorder %s749_s6, %s19224_s28 }
  0x80   : > { %p19221_p3 = pnand %p19219_p2, %p19946_p11  ;;  %p19227_p4 = scmp.lt.s32.totalorder %s19225_s1, %s19218_s4 }
  0x82   : > { %p19222_p6 = pneg %p19221_p3  ;;  %p19228_p8 = por %p19227_p4, %p19226_p7 }
  0x84   : > { %p19229_p10 = pnand %p19228_p8, %p19222_p6 }
  0x86   : > { %19232 = shalt.err (!%p19229_p10)
}
  0x87   : > { %s23785_s14 = scalar_lea.sflag [#allocation10], %s19918_s20  ;;  %s23786_s7 = sld [smem:[#allocation72_spill]] }
  0x88   : > { %17313 = dma.hbm_to_vmem [thread:$0]  (!%p19903_p0), %s19970_s24, 64, %s749_s6, %s23785_s14  }
  0x89   : > { %s780_s1 = scalar_lea.vmem [#allocation12], %s19931_s26 }
  0x8a   : > { %s788_s5 = sshll.u32 %s780_s1, 4  ;;  %s789_s5 = int_to_ptr.vmem [resolvable:$true] %s788_s5 }
  0x8d   : > { %s19996_s18 = scalar_lea.hbm %s23786_s7, %s19934_s21  ;;  %s19238_s24 = scalar_lea.hbm %s23786_s7, 128 }
  0x8e   : > { %s19233_s4 = scalar_lea.hbm %s19996_s18, 64  ;;  %p19239_p9 = scmp.lt.s32.totalorder %s19996_s18, %s23786_s7 }
  0x8f   : > { %p19234_p12 = scmp.ne.s32.totalorder %s19996_s18, %s19233_s4  ;;  %p19240_p13 = scmp.lt.s32.totalorder %s19238_s24, %s19233_s4 }
  0x91   : > { %p19236_p1 = pnand %p19234_p12, %p19946_p11  ;;  %p19241_p2 = por %p19240_p13, %p19239_p9 }
  0x93   : > { %p19237_p5 = pneg %p19236_p1 }
  0x95   : > { %p19242_p3 = pnand %p19241_p2, %p19237_p5 }
  0x97   : > { %19245 = shalt.err (!%p19242_p3)
}
  0x98   : > { %s19246_s0 = scalar_lea.vmem %s789_s5, 64  ;;  %s19699_s29 = smov [#allocation12]  }
  0x99   : > { %p19247_p6 = scmp.ne.s32.totalorder %s789_s5, %s19246_s0  ;;  %s19251_s1 = sshll.u32 %s19699_s29, 4  ;;  %s19252_s1 = int_to_ptr.vmem [resolvable:$false] %s19251_s1 }
  0x9a   : > { %s19253_s15 = scalar_lea.vmem %s19252_s1, 128  ;;  %p19254_p8 = scmp.lt.s32.totalorder %s789_s5, %s19252_s1 }
  0x9b   : > { %p19249_p7 = pnand %p19247_p6, %p19946_p11  ;;  %p19255_p10 = scmp.lt.s32.totalorder %s19253_s15, %s19246_s0 }
  0x9d   : > { %p19250_p4 = pneg %p19249_p7  ;;  %p19256_p12 = por %p19255_p10, %p19254_p8 }
  0x9f   : > { %p19257_p1 = pnand %p19256_p12, %p19250_p4 }
  0xa1   : > { %19260 = shalt.err (!%p19257_p1)
}
  0xa2   : > { %s23787_s4 = scalar_lea.sflag [#allocation13], %s19918_s20  ;;  %s15400_s2 = sshll.u32 %s19899_s3, 4 }
  0xa3   : > { %17319 = dma.hbm_to_vmem [thread:$0]  (!%p19903_p0), %s19996_s18, 64, %s789_s5, %s23787_s4  }
  0xa4   : > { %s16991_s28 = sshll.u32 %s19691_s30, 8  ;;  %s23788_s9 = sld [smem:[#allocation73_spill]] }
  0xa5   : > { %s820_s15 = scalar_lea.vmem [#allocation15], %s15400_s2  ;;  %s23730_s29 = scalar_lea.sflag [#allocation16], %s19918_s20 }
  0xa6   : > { %s828_s0 = sshll.u32 %s820_s15, 4  ;;  %s829_s0 = int_to_ptr.vmem [resolvable:$true] %s828_s0 }
  0xaa   : > { %s20023_s14 = scalar_lea.hbm %s23788_s9, %s16991_s28  ;;  %s19266_s4 = scalar_lea.hbm %s23788_s9, 512 }
  0xab   : > { %s19261_s1 = scalar_lea.hbm %s20023_s14, 256  ;;  %p19267_p2 = scmp.lt.s32.totalorder %s20023_s14, %s23788_s9 }
  0xac   : > { %p19262_p5 = scmp.ne.s32.totalorder %s20023_s14, %s19261_s1  ;;  %p19268_p3 = scmp.lt.s32.totalorder %s19266_s4, %s19261_s1 }
  0xae   : > { %p19264_p9 = pnand %p19262_p5, %p19946_p11  ;;  %p19269_p6 = por %p19268_p3, %p19267_p2 }
  0xb0   : > { %p19265_p13 = pneg %p19264_p9 }
  0xb2   : > { %p19270_p7 = pnand %p19269_p6, %p19265_p13 }
  0xb4   : > { %19273 = shalt.err (!%p19270_p7)
}
  0xb5   : > { %s19274_s2 = scalar_lea.vmem %s829_s0, 256  ;;  %s19700_s28 = smov [#allocation15]  }
  0xb6   : > { %p19275_p4 = scmp.ne.s32.totalorder %s829_s0, %s19274_s2  ;;  %s19279_s6 = sshll.u32 %s19700_s28, 4  ;;  %s19280_s6 = int_to_ptr.vmem [resolvable:$false] %s19279_s6 }
  0xb7   : > { %s19281_s15 = scalar_lea.vmem %s19280_s6, 512  ;;  %p19282_p12 = scmp.lt.s32.totalorder %s829_s0, %s19280_s6 }
  0xb8   : > { %p19277_p8 = pnand %p19275_p4, %p19946_p11  ;;  %p19283_p1 = scmp.lt.s32.totalorder %s19281_s15, %s19274_s2 }
  0xba   : > { %p19278_p10 = pneg %p19277_p8  ;;  %p19284_p5 = por %p19283_p1, %p19282_p12 }
  0xbc   : > { %p19285_p9 = pnand %p19284_p5, %p19278_p10 }
  0xbe   : > { %19288 = shalt.err (!%p19285_p9)
}
  0xbf   : > { %17325 = dma.hbm_to_vmem [thread:$0]  (!%p19903_p0), %s20023_s14, 256, %s829_s0, %s23730_s29  }
  0xc0   : > { %s23789_s11 = sld [smem:[#allocation74_spill]]  ;;  %s860_s5 = scalar_lea.vmem [#allocation18], %s19931_s26 }
  0xc1   : > { %s868_s4 = sshll.u32 %s860_s5, 4  ;;  %s23731_s24 = scalar_lea.sflag [#allocation19], %s19918_s20  ;;  %s869_s4 = int_to_ptr.vmem [resolvable:$true] %s868_s4 }
  0xc6   : > { %s20048_s18 = scalar_lea.hbm %s23789_s11, %s19934_s21  ;;  %s19294_s14 = scalar_lea.hbm %s23789_s11, 128 }
  0xc7   : > { %s19289_s2 = scalar_lea.hbm %s20048_s18, 64  ;;  %p19295_p6 = scmp.lt.s32.totalorder %s20048_s18, %s23789_s11 }
  0xc8   : > { %p19290_p13 = scmp.ne.s32.totalorder %s20048_s18, %s19289_s2  ;;  %p19296_p7 = scmp.lt.s32.totalorder %s19294_s14, %s19289_s2 }
  0xca   : > { %p19292_p2 = pnand %p19290_p13, %p19946_p11  ;;  %p19297_p4 = por %p19296_p7, %p19295_p6 }
  0xcc   : > { %p19293_p3 = pneg %p19292_p2 }
  0xce   : > { %p19298_p8 = pnand %p19297_p4, %p19293_p3 }
  0xd0   : > { %19301 = shalt.err (!%p19298_p8)
}
  0xd1   : > { %s19302_s7 = scalar_lea.vmem %s869_s4, 64  ;;  %s19701_s1 = smov [#allocation18]  }
  0xd2   : > { %p19303_p10 = scmp.ne.s32.totalorder %s869_s4, %s19302_s7  ;;  %s19307_s5 = sshll.u32 %s19701_s1, 4  ;;  %s19308_s5 = int_to_ptr.vmem [resolvable:$false] %s19307_s5 }
  0xd3   : > { %s19309_s29 = scalar_lea.vmem %s19308_s5, 128  ;;  %p19310_p5 = scmp.lt.s32.totalorder %s869_s4, %s19308_s5 }
  0xd4   : > { %p19305_p12 = pnand %p19303_p10, %p19946_p11  ;;  %p19311_p9 = scmp.lt.s32.totalorder %s19309_s29, %s19302_s7 }
  0xd6   : > { %p19306_p1 = pneg %p19305_p12  ;;  %p19312_p13 = por %p19311_p9, %p19310_p5 }
  0xd8   : > { %p19313_p2 = pnand %p19312_p13, %p19306_p1 }
  0xda   : > { %19316 = shalt.err (!%p19313_p2)
}
  0xdb   : > { %17331 = dma.hbm_to_vmem [thread:$0]  (!%p19903_p0), %s20048_s18, 64, %s869_s4, %s23731_s24  }
  0xdc   : > { %s19702_s2 = smov [#allocation26]   ;;  %s19703_s6 = smov [#allocation27]  }
  0xdd   : > { %s652_s28 = sshll.u32 %s19702_s2, 4  ;;  %s666_s14 = sshll.u32 %s19703_s6, 4  ;;  %s653_s28 = int_to_ptr.vmem [resolvable:$true] %s652_s28  ;;  %s667_s14 = int_to_ptr.vmem [resolvable:$true] %s666_s14 }
  0xde   : > { %s19328_s0 = scalar_lea.vmem %s653_s28, 16  ;;  %p23790_p6 = scmp.ne.s32.totalorder %s23777_s27, 0 }
  0xdf   : > { %p19329_p3 = scmp.ne.s32.totalorder %s653_s28, %s19328_s0  ;;  %s19335_s29 = scalar_lea.vmem %s653_s28, 32 }
  0xe0   : > { %p23791_p7 = pneg %p23790_p6  ;;  %p19336_p10 = scmp.lt.s32.totalorder %s653_s28, %s653_s28 }
  0xe1   : > { %p19337_p12 = scmp.lt.s32.totalorder %s19335_s29, %s19328_s0 }
  0xe2   : > { %p19331_p4 = pnand %p19329_p3, %p23791_p7 }
  0xe3   : > { %p19338_p1 = por %p19337_p12, %p19336_p10 }
  0xe4   : > { %p19332_p8 = pneg %p19331_p4 }
  0xe6   : > { %p19339_p5 = pnand %p19338_p1, %p19332_p8 }
  0xe8   : > { %19342 = shalt.err (!%p19339_p5)
}
  0xe9   : > { %17297 = dma.hbm_to_vmem [thread:$0]  (!%p23790_p6), %s23698_s17, 16, %s653_s28, [#allocation25]  }
  0xea   : > { %s19354_s15 = scalar_lea.vmem %s667_s14, 16  ;;  %p23792_p13 = pmov %p23791_p7 }
  0xeb   : > { %p19355_p9 = scmp.ne.s32.totalorder %s667_s14, %s19354_s15  ;;  %s19361_s7 = scalar_lea.vmem %s667_s14, 32 }
  0xec   : > { %p19362_p7 = scmp.lt.s32.totalorder %s667_s14, %s667_s14  ;;  %p19363_p4 = scmp.lt.s32.totalorder %s19361_s7, %s19354_s15 }
  0xed   : > { %p19357_p2 = pnand %p19355_p9, %p23792_p13 }
  0xee   : > { %p19364_p10 = por %p19363_p4, %p19362_p7 }
  0xef   : > { %p19358_p3 = pneg %p19357_p2 }
  0xf1   : > { %p19365_p8 = pnand %p19364_p10, %p19358_p3 }
  0xf3   : > { %19368 = shalt.err (!%p19365_p8)
}
  0xf4   : > { %17300 = dma.hbm_to_vmem [thread:$0]  (!%p23790_p6), %s23700_s19, 16, %s667_s14, [#allocation28]  }
  0xf5   : > { %s17234_s2 = smul.u32 3072, %s19899_s3  ;;  %s23793_s29 = sld [smem:[#allocation67_spill]] }
  0xf6   : > { %s17235_s28 = smul.u32 49152, %s19691_s30  ;;  %s23795_s5 = sld [smem:[#allocation69_spill]] }
  0xf7   : > { %s681_s27 = scalar_lea.vmem [#allocation3], %s17234_s2  ;;  %s678_s14 = scalar_lea.sflag [#allocation4], %s19899_s3 }
  0xf8   : > { %s688_s15 = sshll.u32 %s681_s27, 4  ;;  %s20093_s15 = int_to_ptr.vmem [resolvable:$true] %s688_s15 }
  0xfb   : > { %s23794_s18 = smov %s23793_s29  ;;  %s20091_s4 = scalar_lea.hbm %s23793_s29, %s17235_s28 }
  0xfc   : > { %s20099_s24 = scalar_lea.hbm %s23795_s5, %s19934_s21  ;;  %s19369_s9 = scalar_lea.hbm %s20091_s4, 49152 }
  0xfd   : > { %p19370_p6 = scmp.ne.s32.totalorder %s20091_s4, %s19369_s9  ;;  %s19374_s0 = scalar_lea.hbm %s23794_s18, 98304 }
  0xfe   : > { %p19375_p5 = scmp.lt.s32.totalorder %s20091_s4, %s23794_s18  ;;  %p19376_p9 = scmp.lt.s32.totalorder %s19374_s0, %s19369_s9 }
  0xff   : > { %p19372_p12 = pnand %p19370_p6, %p19946_p11 }
 0x100   : > { %p19377_p13 = por %p19376_p9, %p19375_p5 }
 0x101   : > { %p19373_p1 = pneg %p19372_p12 }
 0x103   : > { %p19378_p2 = pnand %p19377_p13, %p19373_p1 }
 0x105   : > { %19381 = shalt.err (!%p19378_p2)
}
 0x106   : > { %s19382_s27 = scalar_lea.vmem %s20093_s15, 49152  ;;  %s19704_s7 = smov [#allocation3]  }
 0x107   : > { %p19383_p3 = scmp.ne.s32.totalorder %s20093_s15, %s19382_s27  ;;  %s19387_s1 = sshll.u32 %s19704_s7, 4  ;;  %s19388_s1 = int_to_ptr.vmem [resolvable:$false] %s19387_s1 }
 0x108   : > { %s19389_s28 = scalar_lea.vmem %s19388_s1, 98304  ;;  %p19390_p10 = scmp.lt.s32.totalorder %s20093_s15, %s19388_s1 }
 0x109   : > { %p19385_p7 = pnand %p19383_p3, %p19946_p11  ;;  %p19391_p8 = scmp.lt.s32.totalorder %s19389_s28, %s19382_s27 }
 0x10b   : > { %p19386_p4 = pneg %p19385_p7  ;;  %p19392_p6 = por %p19391_p8, %p19390_p10 }
 0x10d   : > { %p19393_p12 = pnand %p19392_p6, %p19386_p4 }
 0x10f   : > { %19396 = shalt.err (!%p19393_p12)
}
 0x110   : > { %s19705_s9 = smov 768   ;;  %s19706_s6 = smov 48  }
 0x111   : > { %17304 = dma.hbm_to_vmem [thread:$0]  (!%p19903_p0), %s20091_s4, 49152, %s20093_s15, %s678_s14, %s19705_s9, %s19705_s9, %s19706_s6  }
 0x112   : > { %s721_s0 = scalar_lea.vmem [#allocation8], %s19931_s26  ;;  %s15391_s2 = sshll.u32 %s19899_s3, 10 }
 0x113   : > { %s729_s29 = sshll.u32 %s721_s0, 4  ;;  %s19397_s27 = scalar_lea.hbm %s20099_s24, 64  ;;  %s730_s29 = int_to_ptr.vmem [resolvable:$true] %s729_s29 }
 0x114   : > { %p19398_p1 = scmp.ne.s32.totalorder %s20099_s24, %s19397_s27  ;;  %s19402_s28 = scalar_lea.hbm %s23795_s5, 128 }
 0x115   : > { %p19403_p13 = scmp.lt.s32.totalorder %s20099_s24, %s23795_s5  ;;  %p19404_p2 = scmp.lt.s32.totalorder %s19402_s28, %s19397_s27 }
 0x116   : > { %p19400_p5 = pnand %p19398_p1, %p19946_p11 }
 0x117   : > { %p19405_p3 = por %p19404_p2, %p19403_p13 }
 0x118   : > { %p19401_p9 = pneg %p19400_p5 }
 0x11a   : > { %p19406_p7 = pnand %p19405_p3, %p19401_p9 }
 0x11c   : > { %19409 = shalt.err (!%p19406_p7)
}
 0x11d   : > { %s19410_s4 = scalar_lea.vmem %s730_s29, 64  ;;  %s19707_s15 = smov [#allocation8]  }
 0x11e   : > { %p19411_p4 = scmp.ne.s32.totalorder %s730_s29, %s19410_s4  ;;  %s19415_s14 = sshll.u32 %s19707_s15, 4  ;;  %s19416_s14 = int_to_ptr.vmem [resolvable:$false] %s19415_s14 }
 0x11f   : > { %s19417_s9 = scalar_lea.vmem %s19416_s14, 128  ;;  %p19418_p6 = scmp.lt.s32.totalorder %s730_s29, %s19416_s14 }
 0x120   : > { %p19413_p10 = pnand %p19411_p4, %p19946_p11  ;;  %p19419_p12 = scmp.lt.s32.totalorder %s19417_s9, %s19410_s4 }
 0x122   : > { %p19414_p8 = pneg %p19413_p10  ;;  %p19420_p1 = por %p19419_p12, %p19418_p6 }
 0x124   : > { %p19421_p5 = pnand %p19420_p1, %p19414_p8 }
 0x126   : > { %19424 = shalt.err (!%p19421_p5)
}
 0x127   : > { %s23796_s11 = scalar_lea.sflag [#allocation7], %s19918_s20  ;;  %s16988_s16 = sshll.u32 %s19691_s30, 14 }
 0x128   : > { %17310 = dma.hbm_to_vmem [thread:$0]  (!%p19903_p0), %s20099_s24, 64, %s730_s29, %s23796_s11  }
 0x129   : > { %s759_s6 = scalar_lea.vmem [#allocation11], %s15391_s2  ;;  %s23797_s1 = sld [smem:[#allocation71_spill]] }
 0x12a   : > { %s766_s0 = sshll.u32 %s759_s6, 4  ;;  %s20150_s0 = int_to_ptr.vmem [resolvable:$true] %s766_s0 }
 0x12f   : > { %s20148_s28 = scalar_lea.hbm %s23797_s1, %s16988_s16  ;;  %s19430_s29 = scalar_lea.hbm %s23797_s1, 32768 }
 0x130   : > { %s19425_s4 = scalar_lea.hbm %s20148_s28, 16384  ;;  %p19431_p3 = scmp.lt.s32.totalorder %s20148_s28, %s23797_s1 }
 0x131   : > { %p19426_p9 = scmp.ne.s32.totalorder %s20148_s28, %s19425_s4  ;;  %p19432_p7 = scmp.lt.s32.totalorder %s19430_s29, %s19425_s4 }
 0x133   : > { %p19428_p13 = pnand %p19426_p9, %p19946_p11  ;;  %p19433_p4 = por %p19432_p7, %p19431_p3 }
 0x135   : > { %p19429_p2 = pneg %p19428_p13 }
 0x137   : > { %p19434_p10 = pnand %p19433_p4, %p19429_p2 }
 0x139   : > { %19437 = shalt.err (!%p19434_p10)
}
 0x13a   : > { %s19438_s9 = scalar_lea.vmem %s20150_s0, 16384  ;;  %s19708_s11 = smov [#allocation11]  }
 0x13b   : > { %p19439_p8 = scmp.ne.s32.totalorder %s20150_s0, %s19438_s9  ;;  %s19443_s16 = sshll.u32 %s19708_s11, 4  ;;  %s19444_s16 = int_to_ptr.vmem [resolvable:$false] %s19443_s16 }
 0x13c   : > { %s19445_s6 = scalar_lea.vmem %s19444_s16, 32768  ;;  %p19446_p1 = scmp.lt.s32.totalorder %s20150_s0, %s19444_s16 }
 0x13d   : > { %p19441_p6 = pnand %p19439_p8, %p19946_p11  ;;  %p19447_p5 = scmp.lt.s32.totalorder %s19445_s6, %s19438_s9 }
 0x13f   : > { %p19442_p12 = pneg %p19441_p6  ;;  %p19448_p9 = por %p19447_p5, %p19446_p1 }
 0x141   : > { %p19449_p13 = pnand %p19448_p9, %p19442_p12 }
 0x143   : > { %19452 = shalt.err (!%p19449_p13)
}
 0x144   : > { %s23733_s27 = smov 256   ;;  %s23734_s7 = smov 16  }
 0x145   : > { %s23798_s4 = scalar_lea.sflag [#allocation10], %s19918_s20  ;;  %s15397_s15 = sshll.u32 %s19899_s3, 12 }
 0x146   : > { %17316 = dma.hbm_to_vmem [thread:$0]  (!%p19903_p0), %s20148_s28, 16384, %s20150_s0, %s23798_s4, %s23733_s27, %s23733_s27, %s23734_s7  }
 0x147   : > { %s16990_s24 = sshll.u32 %s19691_s30, 16  ;;  %s799_s9 = scalar_lea.vmem [#allocation14], %s15397_s15 }
 0x148   : > { %s20184_s14 = scalar_lea.hbm %s23689_s8, %s16990_s24  ;;  %s806_s11 = sshll.u32 %s799_s9, 4  ;;  %s20188_s11 = int_to_ptr.vmem [resolvable:$true] %s806_s11 }
 0x149   : > { %s19453_s16 = scalar_lea.hbm %s20184_s14, 65536  ;;  %s19458_s6 = scalar_lea.hbm %s23689_s8, 131072 }
 0x14a   : > { %p19454_p2 = scmp.ne.s32.totalorder %s20184_s14, %s19453_s16  ;;  %p19459_p4 = scmp.lt.s32.totalorder %s20184_s14, %s23689_s8 }
 0x14b   : > { %p19460_p10 = scmp.lt.s32.totalorder %s19458_s6, %s19453_s16 }
 0x14c   : > { %p19456_p3 = pnand %p19454_p2, %p19946_p11 }
 0x14d   : > { %p19461_p8 = por %p19460_p10, %p19459_p4 }
 0x14e   : > { %p19457_p7 = pneg %p19456_p3 }
 0x150   : > { %p19462_p6 = pnand %p19461_p8, %p19457_p7 }
 0x152   : > { %19465 = shalt.err (!%p19462_p6)
}
 0x153   : > { %s19466_s2 = scalar_lea.vmem %s20188_s11, 65536  ;;  %s19711_s9 = smov [#allocation14]  }
 0x154   : > { %p19467_p12 = scmp.ne.s32.totalorder %s20188_s11, %s19466_s2  ;;  %s19471_s0 = sshll.u32 %s19711_s9, 4  ;;  %s19472_s0 = int_to_ptr.vmem [resolvable:$false] %s19471_s0 }
 0x155   : > { %s19473_s28 = scalar_lea.vmem %s19472_s0, 131072  ;;  %p19474_p9 = scmp.lt.s32.totalorder %s20188_s11, %s19472_s0 }
 0x156   : > { %p19469_p1 = pnand %p19467_p12, %p19946_p11  ;;  %p19475_p13 = scmp.lt.s32.totalorder %s19473_s28, %s19466_s2 }
 0x158   : > { %p19470_p5 = pneg %p19469_p1  ;;  %p19476_p2 = por %p19475_p13, %p19474_p9 }
 0x15a   : > { %p19477_p3 = pnand %p19476_p2, %p19470_p5 }
 0x15c   : > { %19480 = shalt.err (!%p19477_p3)
}
 0x15d   : > { %s19712_s16 = smov 1024   ;;  %s19713_s6 = smov 64  }
 0x15e   : > { %s23799_s4 = scalar_lea.sflag [#allocation13], %s19918_s20  ;;  %s20217_s2 = scalar_lea.hbm %s23691_s10, %s16990_s24 }
 0x15f   : > { %17322 = dma.hbm_to_vmem [thread:$0]  (!%p19903_p0), %s20184_s14, 65536, %s20188_s11, %s23799_s4, %s19712_s16, %s19712_s16, %s19713_s6  }
 0x160   : > { %s839_s0 = scalar_lea.vmem [#allocation17], %s15397_s15  ;;  %s20227_s1 = scalar_lea.hbm %s23693_s12, %s19934_s21 }
 0x161   : > { %s846_s28 = sshll.u32 %s839_s0, 4  ;;  %s19481_s14 = scalar_lea.hbm %s20217_s2, 65536  ;;  %s20221_s28 = int_to_ptr.vmem [resolvable:$true] %s846_s28 }
 0x162   : > { %p19482_p7 = scmp.ne.s32.totalorder %s20217_s2, %s19481_s14  ;;  %s19486_s3 = scalar_lea.hbm %s23691_s10, 131072 }
 0x163   : > { %p19487_p8 = scmp.lt.s32.totalorder %s20217_s2, %s23691_s10  ;;  %p19488_p6 = scmp.lt.s32.totalorder %s19486_s3, %s19481_s14 }
 0x164   : > { %p19484_p4 = pnand %p19482_p7, %p19946_p11 }
 0x165   : > { %p19489_p12 = por %p19488_p6, %p19487_p8 }
 0x166   : > { %p19485_p10 = pneg %p19484_p4 }
 0x168   : > { %p19490_p1 = pnand %p19489_p12, %p19485_p10 }
 0x16a   : > { %19493 = shalt.err (!%p19490_p1)
}
 0x16b   : > { %s19494_s27 = scalar_lea.vmem %s20221_s28, 65536  ;;  %s19714_s7 = smov [#allocation17]  }
 0x16c   : > { %p19495_p5 = scmp.ne.s32.totalorder %s20221_s28, %s19494_s27  ;;  %s19499_s15 = sshll.u32 %s19714_s7, 4  ;;  %s19500_s15 = int_to_ptr.vmem [resolvable:$false] %s19499_s15 }
 0x16d   : > { %s19501_s6 = scalar_lea.vmem %s19500_s15, 131072  ;;  %p19502_p2 = scmp.lt.s32.totalorder %s20221_s28, %s19500_s15 }
 0x16e   : > { %p19497_p9 = pnand %p19495_p5, %p19946_p11  ;;  %p19503_p3 = scmp.lt.s32.totalorder %s19501_s6, %s19494_s27 }
 0x170   : > { %p19498_p13 = pneg %p19497_p9  ;;  %p19504_p7 = por %p19503_p3, %p19502_p2 }
 0x172   : > { %p19505_p4 = pnand %p19504_p7, %p19498_p13 }
 0x174   : > { %19508 = shalt.err (!%p19505_p4)
}
 0x175   : > { %s23800_s4 = smov 16   ;;  %s23801_s29 = smov 256  }
 0x176   : > { %s23802_s9 = scalar_lea.sflag [#allocation16], %s19918_s20  ;;  %s879_s0 = scalar_lea.vmem [#allocation20], %s19931_s26 }
 0x177   : > { %17328 = dma.hbm_to_vmem [thread:$0]  (!%p19903_p0), %s20217_s2, 65536, %s20221_s28, %s23802_s9, %s23801_s29, %s23801_s29, %s23800_s4  }
 0x178   : > { %s887_s14 = sshll.u32 %s879_s0, 4  ;;  %s19509_s30 = scalar_lea.hbm %s20227_s1, 64  ;;  %s888_s14 = int_to_ptr.vmem [resolvable:$true] %s887_s14 }
 0x179   : > { %p19510_p10 = scmp.ne.s32.totalorder %s20227_s1, %s19509_s30  ;;  %s19514_s11 = scalar_lea.hbm %s23693_s12, 128 }
 0x17a   : > { %p19515_p12 = scmp.lt.s32.totalorder %s20227_s1, %s23693_s12  ;;  %p19516_p1 = scmp.lt.s32.totalorder %s19514_s11, %s19509_s30 }
 0x17b   : > { %p19512_p8 = pnand %p19510_p10, %p19946_p11 }
 0x17c   : > { %p19517_p5 = por %p19516_p1, %p19515_p12 }
 0x17d   : > { %p19513_p6 = pneg %p19512_p8 }
 0x17f   : > { %p19518_p9 = pnand %p19517_p5, %p19513_p6 }
 0x181   : > { %19521 = shalt.err (!%p19518_p9)
}
 0x182   : > { %s19522_s2 = scalar_lea.vmem %s888_s14, 64  ;;  %s19715_s28 = smov [#allocation20]  }
 0x183   : > { %p19523_p13 = scmp.ne.s32.totalorder %s888_s14, %s19522_s2  ;;  %s19527_s7 = sshll.u32 %s19715_s28, 4  ;;  %s19528_s7 = int_to_ptr.vmem [resolvable:$false] %s19527_s7 }
 0x184   : > { %s19529_s15 = scalar_lea.vmem %s19528_s7, 128  ;;  %p19530_p7 = scmp.lt.s32.totalorder %s888_s14, %s19528_s7 }
 0x185   : > { %p19525_p2 = pnand %p19523_p13, %p19946_p11  ;;  %p19531_p4 = scmp.lt.s32.totalorder %s19529_s15, %s19522_s2 }
 0x187   : > { %p19526_p3 = pneg %p19525_p2  ;;  %p19532_p10 = por %p19531_p4, %p19530_p7 }
 0x189   : > { %p19533_p8 = pnand %p19532_p10, %p19526_p3 }
 0x18b   : > { %19536 = shalt.err (!%p19533_p8)
}
 0x18c   : > { %s23803_s6 = scalar_lea.sflag [#allocation19], %s19918_s20  ;;  %s20277_s9 = scalar_lea.hbm %s23694_s13, %s19934_s21 }
 0x18d   : > { %17334 = dma.hbm_to_vmem [thread:$0]  (!%p19903_p0), %s20227_s1, 64, %s888_s14, %s23803_s6  }
 0x18e   : > { %s898_s0 = scalar_lea.vmem [#allocation21], %s19931_s26  ;;  %s895_s24 = scalar_lea.sflag [#allocation22], %s19918_s20 }
 0x18f   : > { %s906_s30 = sshll.u32 %s898_s0, 4  ;;  %s19537_s3 = scalar_lea.hbm %s20277_s9, 64  ;;  %s907_s30 = int_to_ptr.vmem [resolvable:$true] %s906_s30 }
 0x190   : > { %p19538_p6 = scmp.ne.s32.totalorder %s20277_s9, %s19537_s3  ;;  %s19542_s1 = scalar_lea.hbm %s23694_s13, 128 }
 0x191   : > { %p19543_p5 = scmp.lt.s32.totalorder %s20277_s9, %s23694_s13  ;;  %p19544_p9 = scmp.lt.s32.totalorder %s19542_s1, %s19537_s3 }
 0x192   : > { %p19540_p12 = pnand %p19538_p6, %p19946_p11 }
 0x193   : > { %p19545_p13 = por %p19544_p9, %p19543_p5 }
 0x194   : > { %p19541_p1 = pneg %p19540_p12 }
 0x196   : > { %p19546_p2 = pnand %p19545_p13, %p19541_p1 }
 0x198   : > { %19549 = shalt.err (!%p19546_p2)
}
 0x199   : > { %s19550_s26 = scalar_lea.vmem %s907_s30, 64  ;;  %s19716_s20 = smov [#allocation21]  }
 0x19a   : > { %p19551_p3 = scmp.ne.s32.totalorder %s907_s30, %s19550_s26  ;;  %s19555_s21 = sshll.u32 %s19716_s20, 4  ;;  %s19556_s21 = int_to_ptr.vmem [resolvable:$false] %s19555_s21 }
 0x19b   : > { %s19557_s2 = scalar_lea.vmem %s19556_s21, 128  ;;  %p19558_p10 = scmp.lt.s32.totalorder %s907_s30, %s19556_s21 }
 0x19c   : > { %p19553_p7 = pnand %p19551_p3, %p19946_p11  ;;  %p19559_p8 = scmp.lt.s32.totalorder %s19557_s2, %s19550_s26 }
 0x19e   : > { %p19554_p4 = pneg %p19553_p7  ;;  %p19560_p6 = por %p19559_p8, %p19558_p10 }
 0x1a0   : > { %p19561_p12 = pnand %p19560_p6, %p19554_p4 }
 0x1a2   : > { %19564 = shalt.err (!%p19561_p12)
}
 0x1a3   : > { %17337 = dma.hbm_to_vmem [thread:$0]  (!%p19903_p0), %s20277_s9, 64, %s907_s30, %s895_s24  }
 0x1a4   : > { %p23804_p1 = scmp.ne.s32.totalorder %s23776_s25, 0 }
 0x1a6   : > { %915 = sbr.rel (%p23804_p1) target bundleno = 5441 (0x1541), region = 100 }
 0x1ab   : > { %s23805_s28 = sld [smem:[#allocation44_spill]] }
 0x1ac   : > { %s23806_s22 = sld [smem:[#allocation49_spill]] }
 0x1b1   : > { %s20300_s7 = sand.u32 1, %s23805_s28  }
 0x1b2   : > { %s17238_s15 = smul.u32 3072, %s20300_s7  ;;  %s918_s6 = scalar_lea.sflag [#allocation4], %s20300_s7 }
 0x1b3   : > { %p23807_p11 = scmp.ne.s32.totalorder %s23806_s22, 0 }
 0x1b4   : > { %s20304_s4 = scalar_lea.vmem [#allocation3], %s17238_s15 }
 0x1b5   : > { %19630 = dma.done.wait (%p23807_p11), %s918_s6, 49152  }
 0x1b6   : > { %19632 = vsyncadd (%p23807_p11), %s918_s6, 4294918144  ;;  %s23808_s23 = sld [smem:[#allocation46_spill]]  ;;  %s17239_s29 = smul.u32 12, %s20300_s7 }
 0x1b8   : > { %s20315_s0 = scalar_lea.vmem [#allocation6], %s17239_s29 }
 0x1bc   : > { %s20311_s25 = sand.u32 1, %s23808_s23  }
 0x1bd   : > { %s927_s9 = scalar_lea.sflag [#allocation7], %s20311_s25 }
 0x1be   : > { %19634 = dma.done.wait (%p23807_p11), %s927_s9, 256  }
 0x1bf   : > { %19636 = vsyncadd (%p23807_p11), %s927_s9, 4294967040  ;;  %s20322_s30 = sshll.u32 %s20300_s7, 2  ;;  %s945_s3 = scalar_lea.sflag [#allocation10], %s20311_s25 }
 0x1c0   : > { %s939_s24 = scalar_lea.vmem [#allocation8], %s20322_s30  ;;  %s948_s11 = scalar_lea.vmem [#allocation9], %s20322_s30 }
 0x1c1   : > { %19638 = dma.done.wait (%p23807_p11), %s945_s3, 16448  }
 0x1c2   : > { %19640 = vsyncadd (%p23807_p11), %s945_s3, 4294950848  ;;  %s15418_s16 = sshll.u32 %s20300_s7, 10  ;;  %s963_s14 = scalar_lea.sflag [#allocation13], %s20311_s25 }
 0x1c3   : > { %s20332_s1 = scalar_lea.vmem [#allocation11], %s15418_s16  ;;  %s966_s27 = scalar_lea.vmem [#allocation12], %s20322_s30 }
 0x1c4   : > { %19642 = dma.done.wait (%p23807_p11), %s963_s14, 65600  }
 0x1c5   : > { %19644 = vsyncadd (%p23807_p11), %s963_s14, 4294901696  ;;  %s15420_s26 = sshll.u32 %s20300_s7, 12  ;;  %s15421_s20 = sshll.u32 %s20300_s7, 4 }
 0x1c6   : > { %s20342_s21 = scalar_lea.vmem [#allocation14], %s15420_s26  ;;  %s981_s2 = scalar_lea.sflag [#allocation16], %s20311_s25 }
 0x1c7   : > { %s20345_s28 = scalar_lea.vmem [#allocation15], %s15421_s20 }
 0x1c8   : > { %19646 = dma.done.wait (%p23807_p11), %s981_s2, 65792  }
 0x1c9   : > { %19648 = vsyncadd (%p23807_p11), %s981_s2, 4294901504  ;;  %s20351_s15 = scalar_lea.vmem [#allocation17], %s15420_s26  ;;  %s999_s6 = scalar_lea.sflag [#allocation19], %s20311_s25 }
 0x1ca   : > { %19650 = dma.done.wait (%p23807_p11), %s999_s6, 128  }
 0x1cb   : > { %19652 = vsyncadd (%p23807_p11), %s999_s6, 4294967168  ;;  %s1011_s7 = scalar_lea.vmem [#allocation20], %s20322_s30  ;;  %s1017_s9 = scalar_lea.sflag [#allocation22], %s20311_s25 }
 0x1cc   : > { %s1020_s3 = scalar_lea.vmem [#allocation21], %s20322_s30 }
 0x1cd   : > { %19654 = dma.done.wait (%p23807_p11), %s1017_s9, 64  }
 0x1ce   : > { %19656 = vsyncadd (%p23807_p11), %s1017_s9, 4294967232  ;;  %p23809_p0 = scmp.eq.s32.totalorder %s23808_s23, 0 }
 0x1d0   : > { %19658 = dma.done.wait (%p23809_p0), [#allocation22], 8192   ;;  %p23810_p5 = pmov %p23809_p0 }
 0x1d1   : > { %p23811_p9 = pmov %p23809_p0 }
 0x1d2   : > { %19660 = vsyncadd (%p23810_p5), [#allocation22], 4294959104 }
 0x1d3   : > { %19662 = dma.done.wait (%p23811_p9), [#allocation25], 32   ;;  %p23812_p13 = pmov %p23809_p0 }
 0x1d4   : > { %p23813_p2 = pmov %p23809_p0 }
 0x1d5   : > { %19664 = vsyncadd (%p23812_p13), [#allocation25], 4294967264 }
 0x1d6   : > { %19666 = dma.done.wait (%p23813_p2), [#allocation28], 16   ;;  %p23814_p3 = pmov %p23809_p0 }
 0x1d7   : > { %p23815_p7 = scmp.ne.s32.totalorder %s23808_s23, 0 }
 0x1d8   : > { %19668 = vsyncadd (%p23814_p3), [#allocation28], 4294967280  ;;  %s23816_s16 = sld [smem:[#allocation65_spill]] (!%p23815_p7) }
 0x1d9   : > { %1151 = sbr.rel (%p23815_p7) target bundleno = 485 (0x1e5), region = 168 }
 0x1de   : > { %v1152_v0 = vld [vmem:[%s23816_s16] sm:$0xff]  ;;  %v1153_v1 = vld [vmem:[%s23816_s16 + $0x8] sm:$0xff]  ;;  %v1154_v2 = vld [vmem:[%s23816_s16 + $0x10] sm:$0xff] }
 0x1df   : > { %1164 = vst [vmem:[#allocation2 + $0x30] sm:$0xff] %v1152_v0  ;;  %1165 = vst [vmem:[#allocation2] sm:$0xff] %v1153_v1  ;;  %v1155_v3 = vld [vmem:[%s23816_s16 + $0x18] sm:$0xff]  ;;  %v1156_v4 = vld [vmem:[%s23816_s16 + $0x20] sm:$0xff] }
 0x1e0   : > { %1166 = vst [vmem:[#allocation2 + $0x58] sm:$0xff] %v1154_v2  ;;  %v1157_v5 = vld [vmem:[%s23816_s16 + $0x28] sm:$0xff]  ;;  %1167 = vst [vmem:[#allocation2 + $0x18] sm:$0xff] %v1155_v3  ;;  %v1158_v6 = vld [vmem:[%s23816_s16 + $0x30] sm:$0xff] }
 0x1e1   : > { %1168 = vst [vmem:[#allocation2 + $0x50] sm:$0xff] %v1156_v4  ;;  %1169 = vst [vmem:[#allocation2 + $0x20] sm:$0xff] %v1157_v5  ;;  %v1159_v7 = vld [vmem:[%s23816_s16 + $0x38] sm:$0xff]  ;;  %v1160_v8 = vld [vmem:[%s23816_s16 + $0x40] sm:$0x3] }
 0x1e2   : > { %1170 = vst [vmem:[#allocation2 + $0x8] sm:$0xff] %v1158_v6  ;;  %1171 = vst [vmem:[#allocation2 + $0x38] sm:$0xff] %v1159_v7  ;;  %v1161_v9 = vld [vmem:[%s23816_s16 + $0x48] sm:$0x3]  ;;  %v1162_v10 = vld [vmem:[%s23816_s16 + $0x50] sm:$0x3] }
 0x1e3   : > { %1172 = vst [vmem:[#allocation2 + $0x28] sm:$0x3] %v1160_v8  ;;  %v1163_v11 = vld [vmem:[%s23816_s16 + $0x58] sm:$0x3]  ;;  %1173 = vst [vmem:[#allocation2 + $0x48] sm:$0x3] %v1161_v9 }
 0x1e4   : > { %1174 = vst [vmem:[#allocation2 + $0x10] sm:$0x3] %v1162_v10  ;;  %1175 = vst [vmem:[#allocation2 + $0x40] sm:$0x3] %v1163_v11 }
 0x1e5 PF: > { %vm1203_vm0 = vcmask 1041408   ;;  %v17400_v37 = vld [vmem:[%s20304_s4 + $0x2a4] ss:$48 sps:$4 sm:$0xff]   ;;  %v17404_v39 = vld [vmem:[%s20304_s4 + $0x2a0] ss:$48 sps:$4 sm:$0xff]   ;;  %vm4460_vm7 = vcmask 1040384  }
 0x1e6   : > { %v20416_v12 = vld [vmem:[#allocation2 + $0x30] sm:$0xff]  ;;  %v20418_v13 = vld [vmem:[#allocation2] sm:$0xff]  ;;  %3745 = vmatprep.subr.bf16.mxu0 %v17400_v37  ;;  %vm4417_vm8 = vcmask 146432   ;;  %vm4424_vm9 = vcmask 140288  }
 0x1e7   : > { %v20420_v14 = vld [vmem:[#allocation2 + $0x58] sm:$0xff]  ;;  %v1193_v16 = vadd.f32 %v20418_v13, %v20416_v12  ;;  %v17402_v38 = vld [vmem:[%s20304_s4 + $0x8a4] ss:$48 sps:$4 sm:$0xff]   ;;  %v17405_v40 = vld [vmem:[%s20304_s4 + $0x8a0] ss:$48 sps:$4 sm:$0xff]   ;;  %3746 = vmatpush1.bf16.msra.mxu0 %v17404_v39 }
 0x1e8   : > { %v20422_v15 = vld [vmem:[#allocation2 + $0x18] sm:$0xff]  ;;  %v20441_v26 = vld [vmem:[#allocation2 + $0x50] sm:$0xff]  ;;  %v20443_v27 = vld [vmem:[#allocation2 + $0x20] sm:$0xff]  ;;  %3796 = vmatprep.subr.bf16.mxu1 %v17402_v38 }
 0x1e9   : > { %v1194_v23 = vadd.f32 %v1193_v16, %v20420_v14  ;;  %v20445_v28 = vld [vmem:[#allocation2 + $0x8] sm:$0xff]  ;;  %v20449_v30 = vld [vmem:[#allocation2 + $0x38] sm:$0xff]  ;;  %v1198_v31 = vadd.f32 %v20443_v27, %v20441_v26  ;;  %v17406_v41 = vld [vmem:[%s20304_s4 + $0x244] ss:$48 sps:$4 sm:$0xff]   ;;  %3797 = vmatpush1.bf16.msra.mxu1 %v17405_v40 }
 0x1ea   : > { %v20426_v17 = vld [vmem:[#allocation2 + $0x28] sm:$0x3]  ;;  %v17408_v42 = vld [vmem:[%s20304_s4 + $0x844] ss:$48 sps:$4 sm:$0xff]   ;;  %v17410_v43 = vld [vmem:[%s20304_s4 + $0x240] ss:$48 sps:$4 sm:$0xff]   ;;  %3747 = vmatprep.subr.bf16.mxu0 %v17406_v41 }
 0x1eb   : > { %v20428_v18 = vld [vmem:[#allocation2 + $0x48] sm:$0x3]  ;;  %v20430_v19 = vld [vmem:[#allocation2 + $0x10] sm:$0x3]  ;;  %v20432_v20 = vld [vmem:[#allocation2 + $0x40] sm:$0x3]  ;;  %v1195_v32 = vadd.f32 %v1194_v23, %v20422_v15  ;;  %v1199_v34 = vadd.f32 %v1198_v31, %v20445_v28  ;;  %3798 = vmatprep.subr.bf16.mxu1 %v17408_v42  ;;  %3748 = vmatpush1.bf16.msra.mxu0 %v17410_v43 }
 0x1ec   : > { %v1204_v21 = vsel %vm1203_vm0, %v20426_v17, 0.0  ;;  %v1205_v22 = vsel %vm1203_vm0, %v20428_v18, 0.0  ;;  %v1207_v25 = vsel %vm1203_vm0, %v20430_v19, 0.0  ;;  %v1209_v29 = vsel %vm1203_vm0, %v20432_v20, 0.0  ;;  %v17411_v44 = vld [vmem:[%s20304_s4 + $0x840] ss:$48 sps:$4 sm:$0xff]  }
 0x1ed   : > { %v1206_v24 = vadd.f32 %v1205_v22, %v1204_v21  ;;  %1196 = vadd.xlane.f32.xlu0 %v1195_v32  ;;  %v1200_v36 = vadd.f32 %v1199_v34, %v20449_v30  ;;  %v17412_v45 = vld [vmem:[%s20304_s4 + $0x1e4] ss:$48 sps:$4 sm:$0xff]   ;;  %v17416_v47 = vld [vmem:[%s20304_s4 + $0x1e0] ss:$48 sps:$4 sm:$0xff]   ;;  %3799 = vmatpush1.bf16.msra.mxu1 %v17411_v44 }
 0x1ee   : > { %v17414_v46 = vld [vmem:[%s20304_s4 + $0x7e4] ss:$48 sps:$4 sm:$0xff]   ;;  %v17417_v48 = vld [vmem:[%s20304_s4 + $0x7e0] ss:$48 sps:$4 sm:$0xff]   ;;  %3749 = vmatprep.subr.bf16.mxu0 %v17412_v45 }
 0x1ef   : > { %v1208_v33 = vadd.f32 %v1207_v25, %v1206_v24  ;;  %v17418_v49 = vld [vmem:[%s20304_s4 + $0x184] ss:$48 sps:$4 sm:$0xff]   ;;  %3800 = vmatprep.subr.bf16.mxu1 %v17414_v46  ;;  %v17422_v51 = vld [vmem:[%s20304_s4 + $0x180] ss:$48 sps:$4 sm:$0xff]   ;;  %3750 = vmatpush1.bf16.msra.mxu0 %v17416_v47 }
 0x1f0   : > { %v17420_v50 = vld [vmem:[%s20304_s4 + $0x784] ss:$48 sps:$4 sm:$0xff]   ;;  %v17423_v52 = vld [vmem:[%s20304_s4 + $0x780] ss:$48 sps:$4 sm:$0xff]   ;;  %3751 = vmatprep.subr.bf16.mxu0 %v17418_v49 }
 0x1f1   : > { %v1210_v35 = vadd.f32 %v1209_v29, %v1208_v33  ;;  %1201 = vadd.xlane.f32.xlu0 %v1200_v36  ;;  %3801 = vmatpush1.bf16.msra.mxu1 %v17417_v48  ;;  %v17424_v32 = vld [vmem:[%s20304_s4 + $0x124] ss:$48 sps:$4 sm:$0xff]   ;;  %v17428_v34 = vld [vmem:[%s20304_s4 + $0x120] ss:$48 sps:$4 sm:$0xff]  }
 0x1f2   : > { %3802 = vmatprep.subr.bf16.mxu1 %v17420_v50  ;;  %v17426_v33 = vld [vmem:[%s20304_s4 + $0x724] ss:$48 sps:$4 sm:$0xff]   ;;  %v17434_v38 = vld [vmem:[%s20304_s4 + $0xc0] ss:$48 sps:$4 sm:$0xff]  }
 0x1f3   : > { %1211 = vadd.xlane.f32.xlu1 %v1210_v35  ;;  %3752 = vmatpush1.bf16.msra.mxu0 %v17422_v51  ;;  %v17429_v35 = vld [vmem:[%s20304_s4 + $0x720] ss:$48 sps:$4 sm:$0xff]   ;;  %v17430_v36 = vld [vmem:[%s20304_s4 + $0xc4] ss:$48 sps:$4 sm:$0xff]  }
 0x1f4   : > { %3753 = vmatprep.subr.bf16.mxu0 %v17424_v32  ;;  %v17432_v37 = vld [vmem:[%s20304_s4 + $0x6c4] ss:$48 sps:$4 sm:$0xff]   ;;  %v17435_v39 = vld [vmem:[%s20304_s4 + $0x6c0] ss:$48 sps:$4 sm:$0xff]  }
 0x1f5   : > { %3803 = vmatpush1.bf16.msra.mxu1 %v17423_v52  ;;  %v17436_v40 = vld [vmem:[%s20304_s4 + $0x64] ss:$48 sps:$4 sm:$0xff]   ;;  %v17440_v42 = vld [vmem:[%s20304_s4 + $0x60] ss:$48 sps:$4 sm:$0xff]  }
 0x1f6   : > { %3804 = vmatprep.subr.bf16.mxu1 %v17426_v33  ;;  %v17438_v41 = vld [vmem:[%s20304_s4 + $0x664] ss:$48 sps:$4 sm:$0xff]   ;;  %v17441_v43 = vld [vmem:[%s20304_s4 + $0x660] ss:$48 sps:$4 sm:$0xff]  }
 0x1f7   : > { %3754 = vmatpush1.bf16.msra.mxu0 %v17428_v34  ;;  %v17442_v44 = vld [vmem:[%s20304_s4 + $0x4] ss:$48 sps:$4 sm:$0xff]   ;;  %v17446_v46 = vld [vmem:[%s20304_s4] ss:$48 sps:$4 sm:$0xff]  }
 0x1f8   : > { %3755 = vmatprep.subr.bf16.mxu0 %v17430_v36  ;;  %v17444_v45 = vld [vmem:[%s20304_s4 + $0x604] ss:$48 sps:$4 sm:$0xff]   ;;  %v17447_v47 = vld [vmem:[%s20304_s4 + $0x600] ss:$48 sps:$4 sm:$0xff]  }
 0x1f9   : > { %3805 = vmatpush1.bf16.msra.mxu1 %v17429_v35  ;;  %v17448_v48 = vld [vmem:[%s20304_s4 + $0x5a4] ss:$48 sps:$4 sm:$0xff]   ;;  %v17452_v50 = vld [vmem:[%s20304_s4 + $0x5a0] ss:$48 sps:$4 sm:$0xff]  }
 0x1fa   : > { %3806 = vmatprep.subr.bf16.mxu1 %v17432_v37  ;;  %v17450_v49 = vld [vmem:[%s20304_s4 + $0xba4] ss:$48 sps:$4 sm:$0xff]   ;;  %v17453_v51 = vld [vmem:[%s20304_s4 + $0xba0] ss:$48 sps:$4 sm:$0xff]  }
 0x1fb   : > { %3756 = vmatpush1.bf16.msra.mxu0 %v17434_v38  ;;  %v17454_v52 = vld [vmem:[%s20304_s4 + $0x544] ss:$48 sps:$4 sm:$0xff]  }
 0x1fc   : > { %3757 = vmatprep.subr.bf16.mxu0 %v17436_v40 }
 0x1fd   : > { %3807 = vmatpush1.bf16.msra.mxu1 %v17435_v39 }
 0x1fe   : > { %3808 = vmatprep.subr.bf16.mxu1 %v17438_v41 }
 0x1ff   : > { %3758 = vmatpush1.bf16.msra.mxu0 %v17440_v42 }
 0x200   : > { %3759 = vmatprep.subr.bf16.mxu0 %v17442_v44 }
 0x201   : > { %3809 = vmatpush1.bf16.msra.mxu1 %v17441_v43 }
 0x202   : > { %3810 = vmatprep.subr.bf16.mxu1 %v17444_v45 }
 0x203   : > { %3760 = vmatpush1.bf16.msra.mxu0 %v17446_v46 }
 0x204   : > { %3761 = vmatprep.subr.bf16.mxu0 %v17448_v48 }
 0x205   : > { %3811 = vmatpush1.bf16.msra.mxu1 %v17447_v47  ;;  %v1304_v47 = vlaneseq }
 0x206   : > { %3812 = vmatprep.subr.bf16.mxu1 %v17450_v49 }
 0x207   : > { %3762 = vmatpush2.bf16.msra.mxu0 %v17452_v50 }
 0x208   : > { %3763 = vmatprep.subr.bf16.mxu0 %v17454_v52 }
 0x209   : > { %3813 = vmatpush2.bf16.msra.mxu1 %v17453_v51 }
 0x276   : > { %v1197_v53 = vpop.xlane.xlu0 %1196 }
 0x277   : > { %v1214_v54 = vmul.f32 0.001953125, %v1197_v53  ;;  %v17456_v53 = vld [vmem:[%s20304_s4 + $0xb44] ss:$48 sps:$4 sm:$0xff]  }
 0x278   : > { %3814 = vmatprep.subr.bf16.mxu1 %v17456_v53 }
 0x279   : > { %v20473_v56 = vsub.f32 %v20416_v12, %v1214_v54  ;;  %v20476_v57 = vsub.f32 %v20418_v13, %v1214_v54  ;;  %v20479_v59 = vsub.f32 %v20420_v14, %v1214_v54  ;;  %v20482_v61 = vsub.f32 %v20422_v15, %v1214_v54  ;;  %v17458_v54 = vld [vmem:[%s20304_s4 + $0x540] ss:$48 sps:$4 sm:$0xff]  }
 0x27a   : > { %v1202_v60 = vpop.xlane.xlu0 %1201  ;;  %3764 = vmatpush2.bf16.msra.mxu0 %v17458_v54 }
 0x27b   : > { %v1215_v0 = vmul.f32 0.001953125, %v1202_v60  ;;  %v1229_v1 = vmul.f32 %v20473_v56, %v20473_v56  ;;  %v1230_v2 = vmul.f32 %v20476_v57, %v20476_v57  ;;  %v1231_v3 = vmul.f32 %v20479_v59, %v20479_v59  ;;  %v17462_v60 = vld [vmem:[%s20304_s4 + $0xae4] ss:$48 sps:$4 sm:$0xff]  }
 0x27c   : > { %v1212_v55 = vpop.xlane.xlu1 %1211  ;;  %v1232_v4 = vmul.f32 %v20482_v61, %v20482_v61 }
 0x27d   : > { %v1216_v58 = vmul.f32 0.001953125, %v1212_v55  ;;  %v20502_v6 = vsub.f32 %v20441_v26, %v1215_v0  ;;  %v20505_v7 = vsub.f32 %v20443_v27, %v1215_v0  ;;  %v1241_v10 = vadd.f32 %v1230_v2, %v1229_v1  ;;  %v17459_v55 = vld [vmem:[%s20304_s4 + $0xb40] ss:$48 sps:$4 sm:$0xff]   ;;  %v17466_v2 = vld [vmem:[%s20304_s4 + $0x484] ss:$48 sps:$4 sm:$0xff]  }
 0x27e   : > { %v20517_v13 = vsub.f32 %v20445_v28, %v1215_v0  ;;  %v20523_v16 = vsub.f32 %v20449_v30, %v1215_v0  ;;  %3815 = vmatpush2.bf16.msra.mxu1 %v17459_v55  ;;  %v17464_v0 = vld [vmem:[%s20304_s4 + $0x4e0] ss:$48 sps:$4 sm:$0xff]   ;;  %v20586_v55 = vshrl.u32 %v1304_v47, 7  ;;  %v17504_v47 = vld [vmem:[%s20304_s4 + $0x24c] ss:$48 sps:$4 sm:$0xff]  }
 0x27f   : > { %v20485_v62 = vsub.f32 %v20426_v17, %v1216_v58  ;;  %v20488_v63 = vsub.f32 %v20428_v18, %v1216_v58  ;;  %v20499_v5 = vsub.f32 %v20430_v19, %v1216_v58  ;;  %v20508_v8 = vsub.f32 %v20432_v20, %v1216_v58  ;;  %v17460_v58 = vld [vmem:[%s20304_s4 + $0x4e4] ss:$48 sps:$4 sm:$0xff]   ;;  %v17465_v1 = vld [vmem:[%s20304_s4 + $0xae0] ss:$48 sps:$4 sm:$0xff]   ;;  %3816 = vmatprep.subr.bf16.mxu1 %v17462_v60 }
 0x280   : > { %v1233_v17 = vmul.f32 %v20502_v6, %v20502_v6  ;;  %v1242_v18 = vadd.f32 %v1241_v10, %v1231_v3  ;;  %v1234_v21 = vmul.f32 %v20505_v7, %v20505_v7  ;;  %v1235_v25 = vmul.f32 %v20517_v13, %v20517_v13  ;;  %3765 = vmatprep.subr.bf16.mxu0 %v17460_v58  ;;  %v17468_v3 = vld [vmem:[%s20304_s4 + $0xa84] ss:$48 sps:$4 sm:$0xff]   ;;  %v1191_v58 = vld [vmem:[%s939_s24] sm:$0xf]  ;;  %s23820_s24 = sld [smem:[#allocation66_spill]] }
 0x281   : > { %v1237_v9 = vmul.f32 %v20485_v62, %v20485_v62  ;;  %v1238_v11 = vmul.f32 %v20488_v63, %v20488_v63  ;;  %v1239_v12 = vmul.f32 %v20499_v5, %v20499_v5  ;;  %v1240_v14 = vmul.f32 %v20508_v8, %v20508_v8  ;;  %3766 = vmatpush2.bf16.msra.mxu0 %v17464_v0  ;;  %v17472_v10 = vld [vmem:[%s20304_s4 + $0x424] ss:$48 sps:$4 sm:$0xff]  }
 0x282   : > { %v1243_v23 = vadd.f32 %v1242_v18, %v1232_v4  ;;  %v1246_v26 = vadd.f32 %v1234_v21, %v1233_v17  ;;  %v1236_v28 = vmul.f32 %v20523_v16, %v20523_v16  ;;  %3817 = vmatpush2.bf16.msra.mxu1 %v17465_v1  ;;  %v17470_v4 = vld [vmem:[%s20304_s4 + $0x480] ss:$48 sps:$4 sm:$0xff]   ;;  %3767 = vmatprep.subr.bf16.mxu0 %v17466_v2  ;;  %v17480_v17 = vld [vmem:[%s20304_s4 + $0x9c4] ss:$48 sps:$4 sm:$0xff]   ;;  %v20591_v60 = vsub.s32 1, %v20586_v55 }
 0x283   : > { %v1251_v15 = vsel %vm1203_vm0, %v1237_v9, 0.0  ;;  %v1252_v19 = vsel %vm1203_vm0, %v1238_v11, 0.0  ;;  %v1254_v20 = vsel %vm1203_vm0, %v1239_v12, 0.0  ;;  %v1256_v24 = vsel %vm1203_vm0, %v1240_v14, 0.0  ;;  %v17471_v9 = vld [vmem:[%s20304_s4 + $0xa80] ss:$48 sps:$4 sm:$0xff]   ;;  %3818 = vmatprep.subr.bf16.mxu1 %v17468_v3 }
 0x284   : > { %v1253_v22 = vadd.f32 %v1252_v19, %v1251_v15  ;;  %1244 = vadd.xlane.f32.xlu1 %v1243_v23  ;;  %v1247_v29 = vadd.f32 %v1246_v26, %v1235_v25  ;;  %v17474_v11 = vld [vmem:[%s20304_s4 + $0xa24] ss:$48 sps:$4 sm:$0xff]   ;;  %v17476_v12 = vld [vmem:[%s20304_s4 + $0x420] ss:$48 sps:$4 sm:$0xff]   ;;  %23817 = vst [vmem:[#allocation50_spill] sm:$0xff] %v20586_v55  ;;  %v20594_v0 = vsub.s32 3, %v20586_v55 }
 0x285   : > { %3768 = vmatpush2.bf16.msra.mxu0 %v17470_v4  ;;  %v17477_v14 = vld [vmem:[%s20304_s4 + $0xa20] ss:$48 sps:$4 sm:$0xff]   ;;  %v17478_v15 = vld [vmem:[%s20304_s4 + $0x3c4] ss:$48 sps:$4 sm:$0xff]   ;;  %v20597_v1 = vsub.s32 0, %v20586_v55  ;;  %v20600_v2 = vsub.s32 2, %v20586_v55  ;;  %v1311_v4 = vrot.slane %v1191_v58, %v20591_v60 }
 0x286   : > { %v1255_v27 = vadd.f32 %v1254_v20, %v1253_v22  ;;  %v1248_v31 = vadd.f32 %v1247_v29, %v1236_v28  ;;  %3819 = vmatpush2.bf16.msra.mxu1 %v17471_v9  ;;  %3769 = vmatprep.subr.bf16.mxu0 %v17472_v10  ;;  %v17482_v18 = vld [vmem:[%s20304_s4 + $0x3c0] ss:$48 sps:$4 sm:$0xff]   ;;  %v17484_v20 = vld [vmem:[%s20304_s4 + $0x364] ss:$48 sps:$4 sm:$0xff]   ;;  %v17498_v28 = vld [vmem:[%s20304_s4 + $0x2ac] ss:$48 sps:$4 sm:$0xff]   ;;  %v1319_v9 = vrot.slane %v1191_v58, %v20594_v0 }
 0x287   : > { %3820 = vmatprep.subr.bf16.mxu1 %v17474_v11  ;;  %v17483_v19 = vld [vmem:[%s20304_s4 + $0x9c0] ss:$48 sps:$4 sm:$0xff]   ;;  %v17486_v21 = vld [vmem:[%s20304_s4 + $0x964] ss:$48 sps:$4 sm:$0xff]   ;;  %v17501_v29 = vld [vmem:[%s20304_s4 + $0x8ac] ss:$48 sps:$4 sm:$0xff]   ;;  %v1307_v10 = vrot.slane %v1191_v58, %v20597_v1  ;;  %v1315_v11 = vrot.slane %v1191_v58, %v20600_v2 }
 0x288   : > { %v1257_v30 = vadd.f32 %v1256_v24, %v1255_v27  ;;  %1249 = vadd.xlane.f32.xlu0 %v1248_v31  ;;  %v17488_v22 = vld [vmem:[%s20304_s4 + $0x360] ss:$48 sps:$4 sm:$0xff]   ;;  %v17490_v24 = vld [vmem:[%s20304_s4 + $0x304] ss:$48 sps:$4 sm:$0xff]   ;;  %v17510_v58 = vld [vmem:[%s20304_s4 + $0x1ec] ss:$48 sps:$4 sm:$0xff]  }
 0x289   : > { %3770 = vmatpush2.bf16.msra.mxu0 %v17476_v12  ;;  %v17489_v23 = vld [vmem:[%s20304_s4 + $0x960] ss:$48 sps:$4 sm:$0xff]   ;;  %v17492_v25 = vld [vmem:[%s20304_s4 + $0x904] ss:$48 sps:$4 sm:$0xff]  }
 0x28a   : > { %1258 = vadd.xlane.f32.xlu1 %v1257_v30  ;;  %3821 = vmatpush2.bf16.msra.mxu1 %v17477_v14  ;;  %v17494_v26 = vld [vmem:[%s20304_s4 + $0x300] ss:$48 sps:$4 sm:$0xff]  }
 0x28b   : > { %3771 = vmatprep.subr.bf16.mxu0 %v17478_v15  ;;  %3822 = vmatprep.subr.bf16.mxu1 %v17480_v17  ;;  %v17495_v27 = vld [vmem:[%s20304_s4 + $0x900] ss:$48 sps:$4 sm:$0xff]  }
 0x28c   : > { %v1192_v3 = vld [vmem:[%s948_s11] sm:$0xf] }
 0x28d   : > { %3772 = vmatpush2.bf16.msra.mxu0 %v17482_v18  ;;  %v1344_v14 = vrot.slane %v1192_v3, %v20591_v60  ;;  %v1352_v15 = vrot.slane %v1192_v3, %v20594_v0 }
 0x28e   : > { %3823 = vmatpush2.bf16.msra.mxu1 %v17483_v19  ;;  %3773 = vmatprep.subr.bf16.mxu0 %v17484_v20 }
 0x28f   : > { %3824 = vmatprep.subr.bf16.mxu1 %v17486_v21  ;;  %v1340_v21 = vrot.slane %v1192_v3, %v20597_v1 }
 0x291   : > { %3774 = vmatpush2.bf16.msra.mxu0 %v17488_v22  ;;  %v1348_v22 = vrot.slane %v1192_v3, %v20600_v2  ;;  %v17513_v3 = vld [vmem:[%s20304_s4 + $0x7ec] ss:$48 sps:$4 sm:$0xff]  }
 0x292   : > { %3825 = vmatpush2.bf16.msra.mxu1 %v17489_v23  ;;  %3775 = vmatprep.subr.bf16.mxu0 %v17490_v24 }
 0x293   : > { %3826 = vmatprep.subr.bf16.mxu1 %v17492_v25 }
 0x295   : > { %3776 = vmatpush2.bf16.msra.mxu0 %v17494_v26 }
 0x296   : > { %3827 = vmatpush2.bf16.msra.mxu1 %v17495_v27  ;;  %3847 = vmatprep.subr.bf16.mxu0 %v17498_v28 }
 0x297   : > { %3898 = vmatprep.subr.bf16.mxu1 %v17501_v29 }
 0x30d   : > { %v1245_v30 = vpop.xlane.xlu1 %1244 }
 0x30e   : > { %v1261_v31 = vmul.f32 0.0019569471, %v1245_v30 }
 0x310   : > { %18936 = vrsqrt.f32 %v1261_v31  ;;  %vm1266_vm1 = vcmp.eq.f32.partialorder %v1261_v31, inf  ;;  %v1269_v38 = vand.u32 2147483648, %v1261_v31  ;;  %vm1268_vm2 = vcmp.eq.f32.partialorder %v1261_v31, 0.0 }
 0x311   : > { %v1250_v33 = vpop.xlane.xlu0 %1249 }
 0x312   : > { %v1262_v35 = vmul.f32 0.0019569471, %v1250_v33 }
 0x313   : > { %v1259_v32 = vpop.xlane.xlu1 %1258 }
 0x314   : > { %v1263_v34 = vmul.f32 0.0019569471, %v1259_v32  ;;  %vm1273_vm5 = vcmp.eq.f32.partialorder %v1262_v35, inf  ;;  %v1276_v49 = vand.u32 2147483648, %v1262_v35  ;;  %vm1275_vm6 = vcmp.eq.f32.partialorder %v1262_v35, 0.0 }
 0x316   : > { %18938 = vrsqrt.f32 %v1263_v34  ;;  %vm1280_vm3 = vcmp.eq.f32.partialorder %v1263_v34, inf  ;;  %v1283_v42 = vand.u32 2147483648, %v1263_v34  ;;  %vm1282_vm4 = vcmp.eq.f32.partialorder %v1263_v34, 0.0 }
 0x317   : > { %18940 = vrsqrt.f32 %v1262_v35 }
 0x31d   : > { %v18937_v36 = vpop.eup %18936 }
 0x31e   : > { %v1265_v37 = vmul.f32 %v18937_v36, %v1261_v31 }
 0x320   : > { %v1267_v39 = vsel %vm1266_vm1, %v1261_v31, %v1265_v37 }
 0x321   : > { %v1270_v41 = vsel %vm1268_vm2, %v1269_v38, %v1267_v39 }
 0x322   : > { %v1285_v44 = vadd.f32 1e-06, %v1270_v41  ;;  %v17496_v41 = vld [vmem:[%s20304_s4 + $0x2a8] ss:$48 sps:$4 sm:$0xff]  }
 0x323   : > { %v18939_v40 = vpop.eup %18938 }
 0x324   : > { %v18941_v43 = vpop.eup %18940  ;;  %v1279_v45 = vmul.f32 %v18939_v40, %v1263_v34  ;;  %18942 = vrcp.f32 %v1285_v44 }
 0x325   : > { %v1272_v46 = vmul.f32 %v18941_v43, %v1262_v35 }
 0x326   : > { %v1281_v48 = vsel %vm1280_vm3, %v1263_v34, %v1279_v45 }
 0x327   : > { %v1284_v50 = vsel %vm1282_vm4, %v1283_v42, %v1281_v48  ;;  %v1274_v51 = vsel %vm1273_vm5, %v1262_v35, %v1272_v46  ;;  %v17499_v42 = vld [vmem:[%s20304_s4 + $0x8a8] ss:$48 sps:$4 sm:$0xff]  }
 0x328   : > { %v1287_v52 = vadd.f32 1e-06, %v1284_v50  ;;  %v1277_v53 = vsel %vm1275_vm6, %v1276_v49, %v1274_v51  ;;  %v17502_v50 = vld [vmem:[%s20304_s4 + $0x248] ss:$48 sps:$4 sm:$0xff]  }
 0x329   : > { %v1286_v54 = vadd.f32 1e-06, %v1277_v53  ;;  %v17505_v51 = vld [vmem:[%s20304_s4 + $0x848] ss:$48 sps:$4 sm:$0xff]  }
 0x32a   : > { %18944 = vrcp.f32 %v1287_v52  ;;  %v17507_v52 = vld [vmem:[%s20304_s4 + $0x84c] ss:$48 sps:$4 sm:$0xff]  }
 0x32b   : > { %18946 = vrcp.f32 %v1286_v54 }
 0x331   : > { %v18943_v12 = vpop.eup %18942 }
 0x332   : > { %v1292_v17 = vmul.f32 %v18943_v12, %v20476_v57  ;;  %v1294_v18 = vmul.f32 %v18943_v12, %v20482_v61  ;;  %v1291_v19 = vmul.f32 %v18943_v12, %v20473_v56  ;;  %v1293_v20 = vmul.f32 %v18943_v12, %v20479_v59  ;;  %v17516_v12 = vld [vmem:[%s20304_s4 + $0x18c] ss:$48 sps:$4 sm:$0xff]  }
 0x334   : > { %v1325_v23 = vmul.f32 %v1311_v4, %v1292_v17  ;;  %v1327_v24 = vmul.f32 %v1319_v9, %v1294_v18  ;;  %v1324_v25 = vmul.f32 %v1307_v10, %v1291_v19  ;;  %v1326_v26 = vmul.f32 %v1315_v11, %v1293_v20  ;;  %v17514_v18 = vld [vmem:[%s20304_s4 + $0x188] ss:$48 sps:$4 sm:$0xff]   ;;  %v17522_v20 = vld [vmem:[%s20304_s4 + $0x12c] ss:$48 sps:$4 sm:$0xff]  }
 0x335   : > { %v17517_v19 = vld [vmem:[%s20304_s4 + $0x788] ss:$48 sps:$4 sm:$0xff]  }
 0x336   : > { %v1358_v29 = vadd.f32 %v1344_v14, %v1325_v23  ;;  %v1360_v30 = vadd.f32 %v1352_v15, %v1327_v24  ;;  %v1357_v31 = vadd.f32 %v1340_v21, %v1324_v25  ;;  %v1359_v32 = vadd.f32 %v1348_v22, %v1326_v26  ;;  %v17523_v23 = vld [vmem:[%s20304_s4 + $0x728] ss:$48 sps:$4 sm:$0xff]   ;;  %v17528_v24 = vld [vmem:[%s20304_s4 + $0xcc] ss:$48 sps:$4 sm:$0xff]  }
 0x337   : > { %v18945_v27 = vpop.eup %18944  ;;  %v17531_v25 = vld [vmem:[%s20304_s4 + $0x6cc] ss:$48 sps:$4 sm:$0xff]   ;;  %v17526_v26 = vld [vmem:[%s20304_s4 + $0xc8] ss:$48 sps:$4 sm:$0xff]  }
 0x338   : > { %v18947_v28 = vpop.eup %18946  ;;  %v1300_v33 = vmul.f32 %v18945_v27, %v20488_v63  ;;  %v1302_v34 = vmul.f32 %v18945_v27, %v20508_v8 }
 0x339   : > { %v1296_v57 = vmul.f32 %v18947_v28, %v20505_v7  ;;  %v1298_v61 = vmul.f32 %v18947_v28, %v20523_v16  ;;  %v1295_v56 = vmul.f32 %v18947_v28, %v20502_v6  ;;  %v1297_v59 = vmul.f32 %v18947_v28, %v20517_v13  ;;  %v17534_v28 = vld [vmem:[%s20304_s4 + $0x6c] ss:$48 sps:$4 sm:$0xff]  }
 0x33a   : > { %v1333_v39 = vmul.f32 %v1311_v4, %v1300_v33  ;;  %v1335_v7 = vmul.f32 %v1319_v9, %v1302_v34  ;;  %v1299_v16 = vmul.f32 %v18945_v27, %v20485_v62  ;;  %v1301_v6 = vmul.f32 %v18945_v27, %v20499_v5  ;;  %v17529_v27 = vld [vmem:[%s20304_s4 + $0x6c8] ss:$48 sps:$4 sm:$0xff]   ;;  %v17549_v33 = vld [vmem:[%s20304_s4 + $0xbac] ss:$48 sps:$4 sm:$0xff]  }
 0x33b   : > { %v1329_v35 = vmul.f32 %v1311_v4, %v1296_v57  ;;  %v1331_v36 = vmul.f32 %v1319_v9, %v1298_v61  ;;  %v1328_v37 = vmul.f32 %v1307_v10, %v1295_v56  ;;  %v1330_v38 = vmul.f32 %v1315_v11, %v1297_v59  ;;  %v17535_v57 = vld [vmem:[%s20304_s4 + $0x668] ss:$48 sps:$4 sm:$0xff]   ;;  %v17540_v61 = vld [vmem:[%s20304_s4 + $0xc] ss:$48 sps:$4 sm:$0xff]  }
 0x33c   : > { %v1366_v43 = vadd.f32 %v1344_v14, %v1333_v39  ;;  %v1368_v44 = vadd.f32 %v1352_v15, %v1335_v7  ;;  %v1332_v48 = vmul.f32 %v1307_v10, %v1299_v16  ;;  %v1334_v49 = vmul.f32 %v1315_v11, %v1301_v6  ;;  %v17508_v10 = vld [vmem:[%s20304_s4 + $0x1e8] ss:$48 sps:$4 sm:$0xff]   ;;  %v17543_v56 = vld [vmem:[%s20304_s4 + $0x60c] ss:$48 sps:$4 sm:$0xff]  }
 0x33d   : > { %v1362_v40 = vadd.f32 %v1344_v14, %v1329_v35  ;;  %v1364_v13 = vadd.f32 %v1352_v15, %v1331_v36  ;;  %v1361_v63 = vadd.f32 %v1340_v21, %v1328_v37  ;;  %v1363_v8 = vadd.f32 %v1348_v22, %v1330_v38  ;;  %v17511_v11 = vld [vmem:[%s20304_s4 + $0x7e8] ss:$48 sps:$4 sm:$0xff]   ;;  %v17519_v14 = vld [vmem:[%s20304_s4 + $0x78c] ss:$48 sps:$4 sm:$0xff]  }
 0x33e   : > { %v20642_v53 = vpack.c.bf16 %v1366_v43, %v1366_v43  ;;  %v20644_v54 = vpack.c.bf16 %v1368_v44, %v1368_v44  ;;  %v1365_v4 = vadd.f32 %v1340_v21, %v1332_v48  ;;  %v1367_v9 = vadd.f32 %v1348_v22, %v1334_v49  ;;  %v17525_v21 = vld [vmem:[%s20304_s4 + $0x72c] ss:$48 sps:$4 sm:$0xff]   ;;  %v17520_v22 = vld [vmem:[%s20304_s4 + $0x128] ss:$48 sps:$4 sm:$0xff]  }
 0x33f   : > { %v20626_v45 = vpack.c.bf16 %v1362_v40, %v1358_v29  ;;  %v20628_v46 = vpack.c.bf16 %v1364_v13, %v1360_v30  ;;  %v20630_v62 = vpack.c.bf16 %v1361_v63, %v1357_v31  ;;  %v20632_v5 = vpack.c.bf16 %v1363_v8, %v1359_v32  ;;  %v17537_v29 = vld [vmem:[%s20304_s4 + $0x66c] ss:$48 sps:$4 sm:$0xff]   ;;  %v17532_v30 = vld [vmem:[%s20304_s4 + $0x68] ss:$48 sps:$4 sm:$0xff]  }
 0x340   : > { %v20654_v15 = vpack.c.bf16 %v1365_v4, %v1365_v4  ;;  %v20656_v17 = vpack.c.bf16 %v1367_v9, %v1367_v9  ;;  %v17538_v59 = vld [vmem:[%s20304_s4 + $0x8] ss:$48 sps:$4 sm:$0xff]   ;;  %v17546_v32 = vld [vmem:[%s20304_s4 + $0x5ac] ss:$48 sps:$4 sm:$0xff]  }
 0x341   : > { %3777 = vmatprep.mubr.bf16.mxu0 %v20626_v45  ;;  %3828 = vmatprep.mubr.bf16.mxu1 %v20628_v46  ;;  %v17541_v31 = vld [vmem:[%s20304_s4 + $0x608] ss:$48 sps:$4 sm:$0xff]   ;;  %v17552_v36 = vld [vmem:[%s20304_s4 + $0x54c] ss:$48 sps:$4 sm:$0xff]  }
 0x342   : > { %3778 = vmatmul.mubr.bf16.vlgmr.msra.gmra.mxu0 %v20630_v62  ;;  %3829 = vmatmul.mubr.bf16.vlgmr.msra.gmra.mxu1 %v20632_v5  ;;  %v17544_v34 = vld [vmem:[%s20304_s4 + $0x5a8] ss:$48 sps:$4 sm:$0xff]   ;;  %v17555_v37 = vld [vmem:[%s20304_s4 + $0xb4c] ss:$48 sps:$4 sm:$0xff]  }
 0x343   : > { %3848 = vmatpush1.bf16.msra.mxu0 %v17496_v41  ;;  %3899 = vmatpush1.bf16.msra.mxu1 %v17499_v42  ;;  %v17547_v35 = vld [vmem:[%s20304_s4 + $0xba8] ss:$48 sps:$4 sm:$0xff]   ;;  %v17558_v7 = vld [vmem:[%s20304_s4 + $0x4ec] ss:$48 sps:$4 sm:$0xff]  }
 0x344   : > { %3787 = vmatprep.mubr.bf16.mxu0 %v20642_v53  ;;  %3838 = vmatprep.mubr.bf16.mxu1 %v20644_v54  ;;  %v17550_v38 = vld [vmem:[%s20304_s4 + $0x548] ss:$48 sps:$4 sm:$0xff]   ;;  %v17561_v16 = vld [vmem:[%s20304_s4 + $0xaec] ss:$48 sps:$4 sm:$0xff]  }
 0x345   : > { %3849 = vmatprep.subr.bf16.mxu0 %v17504_v47  ;;  %3900 = vmatprep.subr.bf16.mxu1 %v17507_v52  ;;  %v17553_v39 = vld [vmem:[%s20304_s4 + $0xb48] ss:$48 sps:$4 sm:$0xff]   ;;  %v17564_v13 = vld [vmem:[%s20304_s4 + $0x48c] ss:$48 sps:$4 sm:$0xff]  }
 0x346   : > { %v17556_v6 = vld [vmem:[%s20304_s4 + $0x4e8] ss:$48 sps:$4 sm:$0xff]   ;;  %v17567_v41 = vld [vmem:[%s20304_s4 + $0xa8c] ss:$48 sps:$4 sm:$0xff]  }
 0x347   : > { %3850 = vmatpush1.bf16.msra.mxu0 %v17502_v50  ;;  %3901 = vmatpush1.bf16.msra.mxu1 %v17505_v51  ;;  %v17559_v40 = vld [vmem:[%s20304_s4 + $0xae8] ss:$48 sps:$4 sm:$0xff]   ;;  %v17570_v8 = vld [vmem:[%s20304_s4 + $0x42c] ss:$48 sps:$4 sm:$0xff]  }
 0x348   : > { %3851 = vmatprep.subr.bf16.mxu0 %v17510_v58  ;;  %3902 = vmatprep.subr.bf16.mxu1 %v17513_v3  ;;  %v17562_v42 = vld [vmem:[%s20304_s4 + $0x488] ss:$48 sps:$4 sm:$0xff]   ;;  %v17573_v43 = vld [vmem:[%s20304_s4 + $0xa2c] ss:$48 sps:$4 sm:$0xff]  }
 0x349   : > { %v17565_v63 = vld [vmem:[%s20304_s4 + $0xa88] ss:$48 sps:$4 sm:$0xff]   ;;  %v17576_v48 = vld [vmem:[%s20304_s4 + $0x3cc] ss:$48 sps:$4 sm:$0xff]  }
 0x34a   : > { %3788 = vmatmul.mubr.bf16.gmra.mxu0 %v20654_v15  ;;  %3839 = vmatmul.mubr.bf16.gmra.mxu1 %v20656_v17  ;;  %v17568_v44 = vld [vmem:[%s20304_s4 + $0x428] ss:$48 sps:$4 sm:$0xff]   ;;  %v17579_v49 = vld [vmem:[%s20304_s4 + $0x9cc] ss:$48 sps:$4 sm:$0xff]  }
 0x34b   : > { %3852 = vmatpush1.bf16.msra.mxu0 %v17508_v10  ;;  %3903 = vmatpush1.bf16.msra.mxu1 %v17511_v11  ;;  %v17571_v47 = vld [vmem:[%s20304_s4 + $0xa28] ss:$48 sps:$4 sm:$0xff]   ;;  %v17582_v52 = vld [vmem:[%s20304_s4 + $0x36c] ss:$48 sps:$4 sm:$0xff]  }
 0x34c   : > { %3879 = vmatprep.mubr.bf16.mxu0 %v20626_v45  ;;  %3930 = vmatprep.mubr.bf16.mxu1 %v20628_v46  ;;  %v17574_v50 = vld [vmem:[%s20304_s4 + $0x3c8] ss:$48 sps:$4 sm:$0xff]   ;;  %v17585_v58 = vld [vmem:[%s20304_s4 + $0x96c] ss:$48 sps:$4 sm:$0xff]  }
 0x34d   : > { %3853 = vmatprep.subr.bf16.mxu0 %v17516_v12  ;;  %3904 = vmatprep.subr.bf16.mxu1 %v17519_v14  ;;  %v17577_v51 = vld [vmem:[%s20304_s4 + $0x9c8] ss:$48 sps:$4 sm:$0xff]   ;;  %v17588_v9 = vld [vmem:[%s20304_s4 + $0x30c] ss:$48 sps:$4 sm:$0xff]   ;;  %v17594_v14 = vld [vmem:[%s20304_s4 + $0x2b4] ss:$48 sps:$4 sm:$0xff]  }
 0x34e   : > { %v17580_v3 = vld [vmem:[%s20304_s4 + $0x368] ss:$48 sps:$4 sm:$0xff]   ;;  %v17591_v10 = vld [vmem:[%s20304_s4 + $0x90c] ss:$48 sps:$4 sm:$0xff]  }
 0x34f   : > { %3854 = vmatpush1.bf16.msra.mxu0 %v17514_v18  ;;  %3905 = vmatpush1.bf16.msra.mxu1 %v17517_v19  ;;  %v17583_v4 = vld [vmem:[%s20304_s4 + $0x968] ss:$48 sps:$4 sm:$0xff]   ;;  %v17597_v18 = vld [vmem:[%s20304_s4 + $0x8b4] ss:$48 sps:$4 sm:$0xff]   ;;  %v17592_v19 = vld [vmem:[%s20304_s4 + $0x2b0] ss:$48 sps:$4 sm:$0xff]  }
 0x350   : > { %3855 = vmatprep.subr.bf16.mxu0 %v17522_v20  ;;  %3906 = vmatprep.subr.bf16.mxu1 %v17525_v21  ;;  %v17586_v11 = vld [vmem:[%s20304_s4 + $0x308] ss:$48 sps:$4 sm:$0xff]   ;;  %v17595_v20 = vld [vmem:[%s20304_s4 + $0x8b0] ss:$48 sps:$4 sm:$0xff]   ;;  %v17600_v21 = vld [vmem:[%s20304_s4 + $0x254] ss:$48 sps:$4 sm:$0xff]  }
 0x351   : > { %v17589_v12 = vld [vmem:[%s20304_s4 + $0x908] ss:$48 sps:$4 sm:$0xff]  }
 0x353   : > { %3856 = vmatpush1.bf16.msra.mxu0 %v17520_v22  ;;  %3907 = vmatpush1.bf16.msra.mxu1 %v17523_v23  ;;  %v17603_v22 = vld [vmem:[%s20304_s4 + $0x854] ss:$48 sps:$4 sm:$0xff]   ;;  %v17598_v23 = vld [vmem:[%s20304_s4 + $0x250] ss:$48 sps:$4 sm:$0xff]  }
 0x354   : > { %3857 = vmatprep.subr.bf16.mxu0 %v17528_v24  ;;  %3908 = vmatprep.subr.bf16.mxu1 %v17531_v25  ;;  %v17601_v24 = vld [vmem:[%s20304_s4 + $0x850] ss:$48 sps:$4 sm:$0xff]   ;;  %v17606_v25 = vld [vmem:[%s20304_s4 + $0x1f4] ss:$48 sps:$4 sm:$0xff]  }
 0x357   : > { %3858 = vmatpush1.bf16.msra.mxu0 %v17526_v26  ;;  %3909 = vmatpush1.bf16.msra.mxu1 %v17529_v27  ;;  %v17609_v26 = vld [vmem:[%s20304_s4 + $0x7f4] ss:$48 sps:$4 sm:$0xff]   ;;  %v17604_v27 = vld [vmem:[%s20304_s4 + $0x1f0] ss:$48 sps:$4 sm:$0xff]  }
 0x358   : > { %3859 = vmatprep.subr.bf16.mxu0 %v17534_v28  ;;  %3910 = vmatprep.subr.bf16.mxu1 %v17537_v29  ;;  %v17607_v28 = vld [vmem:[%s20304_s4 + $0x7f0] ss:$48 sps:$4 sm:$0xff]   ;;  %v17612_v29 = vld [vmem:[%s20304_s4 + $0x194] ss:$48 sps:$4 sm:$0xff]  }
 0x35b   : > { %3860 = vmatpush1.bf16.msra.mxu0 %v17532_v30  ;;  %3911 = vmatpush1.bf16.msra.mxu1 %v17535_v57  ;;  %v17615_v30 = vld [vmem:[%s20304_s4 + $0x794] ss:$48 sps:$4 sm:$0xff]   ;;  %v17610_v57 = vld [vmem:[%s20304_s4 + $0x190] ss:$48 sps:$4 sm:$0xff]  }
 0x35c   : > { %3861 = vmatprep.subr.bf16.mxu0 %v17540_v61  ;;  %3912 = vmatprep.subr.bf16.mxu1 %v17543_v56  ;;  %v17613_v61 = vld [vmem:[%s20304_s4 + $0x790] ss:$48 sps:$4 sm:$0xff]   ;;  %v17618_v56 = vld [vmem:[%s20304_s4 + $0x134] ss:$48 sps:$4 sm:$0xff]  }
 0x35f   : > { %3862 = vmatpush1.bf16.msra.mxu0 %v17538_v59  ;;  %3913 = vmatpush1.bf16.msra.mxu1 %v17541_v31  ;;  %v17621_v59 = vld [vmem:[%s20304_s4 + $0x734] ss:$48 sps:$4 sm:$0xff]   ;;  %v17616_v31 = vld [vmem:[%s20304_s4 + $0x130] ss:$48 sps:$4 sm:$0xff]  }
 0x360   : > { %3863 = vmatprep.subr.bf16.mxu0 %v17546_v32  ;;  %3914 = vmatprep.subr.bf16.mxu1 %v17549_v33  ;;  %v17619_v32 = vld [vmem:[%s20304_s4 + $0x730] ss:$48 sps:$4 sm:$0xff]   ;;  %v17624_v33 = vld [vmem:[%s20304_s4 + $0xd4] ss:$48 sps:$4 sm:$0xff]  }
 0x363   : > { %3864 = vmatpush2.bf16.msra.mxu0 %v17544_v34  ;;  %3915 = vmatpush2.bf16.msra.mxu1 %v17547_v35  ;;  %v17627_v34 = vld [vmem:[%s20304_s4 + $0x6d4] ss:$48 sps:$4 sm:$0xff]   ;;  %v17622_v35 = vld [vmem:[%s20304_s4 + $0xd0] ss:$48 sps:$4 sm:$0xff]  }
 0x364   : > { %3865 = vmatprep.subr.bf16.mxu0 %v17552_v36  ;;  %3916 = vmatprep.subr.bf16.mxu1 %v17555_v37  ;;  %v17625_v36 = vld [vmem:[%s20304_s4 + $0x6d0] ss:$48 sps:$4 sm:$0xff]   ;;  %v17630_v37 = vld [vmem:[%s20304_s4 + $0x74] ss:$48 sps:$4 sm:$0xff]  }
 0x367   : > { %3866 = vmatpush2.bf16.msra.mxu0 %v17550_v38  ;;  %3917 = vmatpush2.bf16.msra.mxu1 %v17553_v39  ;;  %v17633_v38 = vld [vmem:[%s20304_s4 + $0x674] ss:$48 sps:$4 sm:$0xff]   ;;  %v17628_v39 = vld [vmem:[%s20304_s4 + $0x70] ss:$48 sps:$4 sm:$0xff]  }
 0x368   : > { %3867 = vmatprep.subr.bf16.mxu0 %v17558_v7  ;;  %3918 = vmatprep.subr.bf16.mxu1 %v17561_v16  ;;  %v17631_v7 = vld [vmem:[%s20304_s4 + $0x670] ss:$48 sps:$4 sm:$0xff]   ;;  %v17636_v16 = vld [vmem:[%s20304_s4 + $0x14] ss:$48 sps:$4 sm:$0xff]  }
 0x36b   : > { %3868 = vmatpush2.bf16.msra.mxu0 %v17556_v6  ;;  %3919 = vmatpush2.bf16.msra.mxu1 %v17559_v40  ;;  %v17639_v6 = vld [vmem:[%s20304_s4 + $0x614] ss:$48 sps:$4 sm:$0xff]   ;;  %v17634_v40 = vld [vmem:[%s20304_s4 + $0x10] ss:$48 sps:$4 sm:$0xff]  }
 0x36c   : > { %3869 = vmatprep.subr.bf16.mxu0 %v17564_v13  ;;  %3920 = vmatprep.subr.bf16.mxu1 %v17567_v41  ;;  %v17637_v13 = vld [vmem:[%s20304_s4 + $0x610] ss:$48 sps:$4 sm:$0xff]   ;;  %v17642_v41 = vld [vmem:[%s20304_s4 + $0x5b4] ss:$48 sps:$4 sm:$0xff]  }
 0x36f   : > { %3870 = vmatpush2.bf16.msra.mxu0 %v17562_v42  ;;  %3921 = vmatpush2.bf16.msra.mxu1 %v17565_v63  ;;  %v17645_v42 = vld [vmem:[%s20304_s4 + $0xbb4] ss:$48 sps:$4 sm:$0xff]   ;;  %v17640_v63 = vld [vmem:[%s20304_s4 + $0x5b0] ss:$48 sps:$4 sm:$0xff]  }
 0x370   : > { %3871 = vmatprep.subr.bf16.mxu0 %v17570_v8  ;;  %3922 = vmatprep.subr.bf16.mxu1 %v17573_v43  ;;  %v17643_v8 = vld [vmem:[%s20304_s4 + $0xbb0] ss:$48 sps:$4 sm:$0xff]   ;;  %v17648_v43 = vld [vmem:[%s20304_s4 + $0x554] ss:$48 sps:$4 sm:$0xff]  }
 0x373   : > { %3872 = vmatpush2.bf16.msra.mxu0 %v17568_v44  ;;  %3923 = vmatpush2.bf16.msra.mxu1 %v17571_v47  ;;  %v17651_v44 = vld [vmem:[%s20304_s4 + $0xb54] ss:$48 sps:$4 sm:$0xff]   ;;  %v17646_v47 = vld [vmem:[%s20304_s4 + $0x550] ss:$48 sps:$4 sm:$0xff]  }
 0x374   : > { %3873 = vmatprep.subr.bf16.mxu0 %v17576_v48  ;;  %3924 = vmatprep.subr.bf16.mxu1 %v17579_v49  ;;  %v17649_v48 = vld [vmem:[%s20304_s4 + $0xb50] ss:$48 sps:$4 sm:$0xff]   ;;  %v17654_v49 = vld [vmem:[%s20304_s4 + $0x4f4] ss:$48 sps:$4 sm:$0xff]  }
 0x377   : > { %3874 = vmatpush2.bf16.msra.mxu0 %v17574_v50  ;;  %3925 = vmatpush2.bf16.msra.mxu1 %v17577_v51  ;;  %v17657_v50 = vld [vmem:[%s20304_s4 + $0xaf4] ss:$48 sps:$4 sm:$0xff]   ;;  %v17652_v51 = vld [vmem:[%s20304_s4 + $0x4f0] ss:$48 sps:$4 sm:$0xff]  }
 0x378   : > { %3875 = vmatprep.subr.bf16.mxu0 %v17582_v52  ;;  %3926 = vmatprep.subr.bf16.mxu1 %v17585_v58  ;;  %v17655_v52 = vld [vmem:[%s20304_s4 + $0xaf0] ss:$48 sps:$4 sm:$0xff]   ;;  %v17660_v58 = vld [vmem:[%s20304_s4 + $0x494] ss:$48 sps:$4 sm:$0xff]  }
 0x37b   : > { %3876 = vmatpush2.bf16.msra.mxu0 %v17580_v3  ;;  %3927 = vmatpush2.bf16.msra.mxu1 %v17583_v4  ;;  %v17663_v3 = vld [vmem:[%s20304_s4 + $0xa94] ss:$48 sps:$4 sm:$0xff]   ;;  %v17658_v4 = vld [vmem:[%s20304_s4 + $0x490] ss:$48 sps:$4 sm:$0xff]  }
 0x37c   : > { %3877 = vmatprep.subr.bf16.mxu0 %v17588_v9  ;;  %3928 = vmatprep.subr.bf16.mxu1 %v17591_v10  ;;  %v17661_v9 = vld [vmem:[%s20304_s4 + $0xa90] ss:$48 sps:$4 sm:$0xff]   ;;  %v17666_v10 = vld [vmem:[%s20304_s4 + $0x434] ss:$48 sps:$4 sm:$0xff]  }
 0x37f   : > { %3878 = vmatpush2.bf16.msra.mxu0 %v17586_v11  ;;  %3929 = vmatpush2.bf16.msra.mxu1 %v17589_v12  ;;  %v17669_v11 = vld [vmem:[%s20304_s4 + $0xa34] ss:$48 sps:$4 sm:$0xff]   ;;  %v17664_v12 = vld [vmem:[%s20304_s4 + $0x430] ss:$48 sps:$4 sm:$0xff]  }
 0x380   : > { %3949 = vmatprep.subr.bf16.mxu0 %v17594_v14  ;;  %4000 = vmatprep.subr.bf16.mxu1 %v17597_v18  ;;  %v17667_v14 = vld [vmem:[%s20304_s4 + $0xa30] ss:$48 sps:$4 sm:$0xff]   ;;  %v17672_v18 = vld [vmem:[%s20304_s4 + $0x3d4] ss:$48 sps:$4 sm:$0xff]  }
 0x382   : > { %3880 = vmatmul.mubr.bf16.vlgmr.msra.gmra.mxu0 %v20630_v62  ;;  %3931 = vmatmul.mubr.bf16.vlgmr.msra.gmra.mxu1 %v20632_v5 }
 0x383   : > { %3889 = vmatprep.mubr.bf16.mxu0 %v20642_v53  ;;  %3940 = vmatprep.mubr.bf16.mxu1 %v20644_v54 }
 0x384   : > { %3950 = vmatpush1.bf16.msra.mxu0 %v17592_v19  ;;  %4001 = vmatpush1.bf16.msra.mxu1 %v17595_v20  ;;  %v17675_v19 = vld [vmem:[%s20304_s4 + $0x9d4] ss:$48 sps:$4 sm:$0xff]   ;;  %v17670_v20 = vld [vmem:[%s20304_s4 + $0x3d0] ss:$48 sps:$4 sm:$0xff]  }
 0x385   : > { %3951 = vmatprep.subr.bf16.mxu0 %v17600_v21  ;;  %4002 = vmatprep.subr.bf16.mxu1 %v17603_v22  ;;  %v17673_v21 = vld [vmem:[%s20304_s4 + $0x9d0] ss:$48 sps:$4 sm:$0xff]   ;;  %v17678_v22 = vld [vmem:[%s20304_s4 + $0x374] ss:$48 sps:$4 sm:$0xff]  }
 0x388   : > { %3952 = vmatpush1.bf16.msra.mxu0 %v17598_v23  ;;  %4003 = vmatpush1.bf16.msra.mxu1 %v17601_v24  ;;  %v17681_v23 = vld [vmem:[%s20304_s4 + $0x974] ss:$48 sps:$4 sm:$0xff]   ;;  %v17676_v24 = vld [vmem:[%s20304_s4 + $0x370] ss:$48 sps:$4 sm:$0xff]  }
 0x389   : > { %3953 = vmatprep.subr.bf16.mxu0 %v17606_v25  ;;  %4004 = vmatprep.subr.bf16.mxu1 %v17609_v26  ;;  %v17679_v25 = vld [vmem:[%s20304_s4 + $0x970] ss:$48 sps:$4 sm:$0xff]   ;;  %v17684_v26 = vld [vmem:[%s20304_s4 + $0x314] ss:$48 sps:$4 sm:$0xff]  }
 0x38a   : > { %3890 = vmatmul.mubr.bf16.gmra.mxu0 %v20654_v15  ;;  %3941 = vmatmul.mubr.bf16.gmra.mxu1 %v20656_v17 }
 0x38b   : > { %3981 = vmatprep.mubr.bf16.mxu0 %v20626_v45  ;;  %4032 = vmatprep.mubr.bf16.mxu1 %v20628_v46 }
 0x38c   : > { %3954 = vmatpush1.bf16.msra.mxu0 %v17604_v27  ;;  %4005 = vmatpush1.bf16.msra.mxu1 %v17607_v28  ;;  %v17687_v27 = vld [vmem:[%s20304_s4 + $0x914] ss:$48 sps:$4 sm:$0xff]   ;;  %v17682_v28 = vld [vmem:[%s20304_s4 + $0x310] ss:$48 sps:$4 sm:$0xff]  }
 0x38d   : > { %3955 = vmatprep.subr.bf16.mxu0 %v17612_v29  ;;  %4006 = vmatprep.subr.bf16.mxu1 %v17615_v30  ;;  %v17685_v29 = vld [vmem:[%s20304_s4 + $0x910] ss:$48 sps:$4 sm:$0xff]   ;;  %v17690_v30 = vld [vmem:[%s20304_s4 + $0x2bc] ss:$48 sps:$4 sm:$0xff]  }
 0x390   : > { %3956 = vmatpush1.bf16.msra.mxu0 %v17610_v57  ;;  %4007 = vmatpush1.bf16.msra.mxu1 %v17613_v61  ;;  %v17693_v57 = vld [vmem:[%s20304_s4 + $0x8bc] ss:$48 sps:$4 sm:$0xff]   ;;  %v17688_v61 = vld [vmem:[%s20304_s4 + $0x2b8] ss:$48 sps:$4 sm:$0xff]  }
 0x391   : > { %3957 = vmatprep.subr.bf16.mxu0 %v17618_v56  ;;  %4008 = vmatprep.subr.bf16.mxu1 %v17621_v59  ;;  %v17691_v56 = vld [vmem:[%s20304_s4 + $0x8b8] ss:$48 sps:$4 sm:$0xff]   ;;  %v17696_v59 = vld [vmem:[%s20304_s4 + $0x25c] ss:$48 sps:$4 sm:$0xff]  }
 0x394   : > { %3958 = vmatpush1.bf16.msra.mxu0 %v17616_v31  ;;  %4009 = vmatpush1.bf16.msra.mxu1 %v17619_v32  ;;  %v17699_v31 = vld [vmem:[%s20304_s4 + $0x85c] ss:$48 sps:$4 sm:$0xff]   ;;  %v17694_v32 = vld [vmem:[%s20304_s4 + $0x258] ss:$48 sps:$4 sm:$0xff]  }
 0x395   : > { %3959 = vmatprep.subr.bf16.mxu0 %v17624_v33  ;;  %4010 = vmatprep.subr.bf16.mxu1 %v17627_v34  ;;  %v17697_v33 = vld [vmem:[%s20304_s4 + $0x858] ss:$48 sps:$4 sm:$0xff]   ;;  %v17702_v34 = vld [vmem:[%s20304_s4 + $0x1fc] ss:$48 sps:$4 sm:$0xff]  }
 0x398   : > { %3960 = vmatpush1.bf16.msra.mxu0 %v17622_v35  ;;  %4011 = vmatpush1.bf16.msra.mxu1 %v17625_v36  ;;  %v17705_v35 = vld [vmem:[%s20304_s4 + $0x7fc] ss:$48 sps:$4 sm:$0xff]   ;;  %v17700_v36 = vld [vmem:[%s20304_s4 + $0x1f8] ss:$48 sps:$4 sm:$0xff]  }
 0x399   : > { %3961 = vmatprep.subr.bf16.mxu0 %v17630_v37  ;;  %4012 = vmatprep.subr.bf16.mxu1 %v17633_v38  ;;  %v17703_v37 = vld [vmem:[%s20304_s4 + $0x7f8] ss:$48 sps:$4 sm:$0xff]   ;;  %v17708_v38 = vld [vmem:[%s20304_s4 + $0x19c] ss:$48 sps:$4 sm:$0xff]  }
 0x39c   : > { %3962 = vmatpush1.bf16.msra.mxu0 %v17628_v39  ;;  %4013 = vmatpush1.bf16.msra.mxu1 %v17631_v7  ;;  %v17711_v39 = vld [vmem:[%s20304_s4 + $0x79c] ss:$48 sps:$4 sm:$0xff]   ;;  %v17706_v7 = vld [vmem:[%s20304_s4 + $0x198] ss:$48 sps:$4 sm:$0xff]  }
 0x39d   : > { %3963 = vmatprep.subr.bf16.mxu0 %v17636_v16  ;;  %4014 = vmatprep.subr.bf16.mxu1 %v17639_v6  ;;  %v17709_v16 = vld [vmem:[%s20304_s4 + $0x798] ss:$48 sps:$4 sm:$0xff]   ;;  %v17714_v6 = vld [vmem:[%s20304_s4 + $0x13c] ss:$48 sps:$4 sm:$0xff]  }
 0x3a0   : > { %3964 = vmatpush1.bf16.msra.mxu0 %v17634_v40  ;;  %4015 = vmatpush1.bf16.msra.mxu1 %v17637_v13  ;;  %v17717_v40 = vld [vmem:[%s20304_s4 + $0x73c] ss:$48 sps:$4 sm:$0xff]   ;;  %v17712_v13 = vld [vmem:[%s20304_s4 + $0x138] ss:$48 sps:$4 sm:$0xff]  }
 0x3a1   : > { %3965 = vmatprep.subr.bf16.mxu0 %v17642_v41  ;;  %4016 = vmatprep.subr.bf16.mxu1 %v17645_v42  ;;  %v17715_v41 = vld [vmem:[%s20304_s4 + $0x738] ss:$48 sps:$4 sm:$0xff]   ;;  %v17720_v42 = vld [vmem:[%s20304_s4 + $0xdc] ss:$48 sps:$4 sm:$0xff]  }
 0x3a4   : > { %3966 = vmatpush2.bf16.msra.mxu0 %v17640_v63  ;;  %4017 = vmatpush2.bf16.msra.mxu1 %v17643_v8  ;;  %v17723_v63 = vld [vmem:[%s20304_s4 + $0x6dc] ss:$48 sps:$4 sm:$0xff]   ;;  %v17718_v8 = vld [vmem:[%s20304_s4 + $0xd8] ss:$48 sps:$4 sm:$0xff]  }
 0x3a5   : > { %3967 = vmatprep.subr.bf16.mxu0 %v17648_v43  ;;  %4018 = vmatprep.subr.bf16.mxu1 %v17651_v44  ;;  %v17721_v43 = vld [vmem:[%s20304_s4 + $0x6d8] ss:$48 sps:$4 sm:$0xff]   ;;  %v17726_v44 = vld [vmem:[%s20304_s4 + $0x7c] ss:$48 sps:$4 sm:$0xff]  }
 0x3a8   : > { %3968 = vmatpush2.bf16.msra.mxu0 %v17646_v47  ;;  %4019 = vmatpush2.bf16.msra.mxu1 %v17649_v48  ;;  %v17729_v47 = vld [vmem:[%s20304_s4 + $0x67c] ss:$48 sps:$4 sm:$0xff]   ;;  %v17724_v48 = vld [vmem:[%s20304_s4 + $0x78] ss:$48 sps:$4 sm:$0xff]  }
 0x3a9   : > { %3969 = vmatprep.subr.bf16.mxu0 %v17654_v49  ;;  %4020 = vmatprep.subr.bf16.mxu1 %v17657_v50  ;;  %v17727_v49 = vld [vmem:[%s20304_s4 + $0x678] ss:$48 sps:$4 sm:$0xff]   ;;  %v17732_v50 = vld [vmem:[%s20304_s4 + $0x1c] ss:$48 sps:$4 sm:$0xff]  }
 0x3ac   : > { %3970 = vmatpush2.bf16.msra.mxu0 %v17652_v51  ;;  %4021 = vmatpush2.bf16.msra.mxu1 %v17655_v52  ;;  %v17735_v51 = vld [vmem:[%s20304_s4 + $0x61c] ss:$48 sps:$4 sm:$0xff]   ;;  %v17730_v52 = vld [vmem:[%s20304_s4 + $0x18] ss:$48 sps:$4 sm:$0xff]  }
 0x3ad   : > { %3971 = vmatprep.subr.bf16.mxu0 %v17660_v58  ;;  %4022 = vmatprep.subr.bf16.mxu1 %v17663_v3  ;;  %v17733_v58 = vld [vmem:[%s20304_s4 + $0x618] ss:$48 sps:$4 sm:$0xff]   ;;  %v17738_v3 = vld [vmem:[%s20304_s4 + $0x5bc] ss:$48 sps:$4 sm:$0xff]  }
 0x3b0   : > { %3972 = vmatpush2.bf16.msra.mxu0 %v17658_v4  ;;  %4023 = vmatpush2.bf16.msra.mxu1 %v17661_v9  ;;  %v17741_v4 = vld [vmem:[%s20304_s4 + $0xbbc] ss:$48 sps:$4 sm:$0xff]   ;;  %v17736_v9 = vld [vmem:[%s20304_s4 + $0x5b8] ss:$48 sps:$4 sm:$0xff]  }
 0x3b1   : > { %3973 = vmatprep.subr.bf16.mxu0 %v17666_v10  ;;  %4024 = vmatprep.subr.bf16.mxu1 %v17669_v11  ;;  %v17739_v10 = vld [vmem:[%s20304_s4 + $0xbb8] ss:$48 sps:$4 sm:$0xff]   ;;  %v17744_v11 = vld [vmem:[%s20304_s4 + $0x55c] ss:$48 sps:$4 sm:$0xff]  }
 0x3b4   : > { %3974 = vmatpush2.bf16.msra.mxu0 %v17664_v12  ;;  %4025 = vmatpush2.bf16.msra.mxu1 %v17667_v14  ;;  %v17747_v12 = vld [vmem:[%s20304_s4 + $0xb5c] ss:$48 sps:$4 sm:$0xff]   ;;  %v17742_v14 = vld [vmem:[%s20304_s4 + $0x558] ss:$48 sps:$4 sm:$0xff]  }
 0x3b5   : > { %3975 = vmatprep.subr.bf16.mxu0 %v17672_v18  ;;  %4026 = vmatprep.subr.bf16.mxu1 %v17675_v19  ;;  %v17745_v18 = vld [vmem:[%s20304_s4 + $0xb58] ss:$48 sps:$4 sm:$0xff]   ;;  %v17750_v19 = vld [vmem:[%s20304_s4 + $0x4fc] ss:$48 sps:$4 sm:$0xff]  }
 0x3b8   : > { %3976 = vmatpush2.bf16.msra.mxu0 %v17670_v20  ;;  %4027 = vmatpush2.bf16.msra.mxu1 %v17673_v21  ;;  %v17753_v20 = vld [vmem:[%s20304_s4 + $0xafc] ss:$48 sps:$4 sm:$0xff]   ;;  %v17748_v21 = vld [vmem:[%s20304_s4 + $0x4f8] ss:$48 sps:$4 sm:$0xff]  }
 0x3b9   : > { %3977 = vmatprep.subr.bf16.mxu0 %v17678_v22  ;;  %4028 = vmatprep.subr.bf16.mxu1 %v17681_v23  ;;  %v17751_v22 = vld [vmem:[%s20304_s4 + $0xaf8] ss:$48 sps:$4 sm:$0xff]   ;;  %v17756_v23 = vld [vmem:[%s20304_s4 + $0x49c] ss:$48 sps:$4 sm:$0xff]  }
 0x3bc   : > { %3978 = vmatpush2.bf16.msra.mxu0 %v17676_v24  ;;  %4029 = vmatpush2.bf16.msra.mxu1 %v17679_v25  ;;  %v17759_v24 = vld [vmem:[%s20304_s4 + $0xa9c] ss:$48 sps:$4 sm:$0xff]   ;;  %v17754_v25 = vld [vmem:[%s20304_s4 + $0x498] ss:$48 sps:$4 sm:$0xff]  }
 0x3bd   : > { %3979 = vmatprep.subr.bf16.mxu0 %v17684_v26  ;;  %4030 = vmatprep.subr.bf16.mxu1 %v17687_v27  ;;  %v17757_v26 = vld [vmem:[%s20304_s4 + $0xa98] ss:$48 sps:$4 sm:$0xff]   ;;  %v17762_v27 = vld [vmem:[%s20304_s4 + $0x43c] ss:$48 sps:$4 sm:$0xff]  }
 0x3c0   : > { %3980 = vmatpush2.bf16.msra.mxu0 %v17682_v28  ;;  %4031 = vmatpush2.bf16.msra.mxu1 %v17685_v29  ;;  %v17765_v28 = vld [vmem:[%s20304_s4 + $0xa3c] ss:$48 sps:$4 sm:$0xff]   ;;  %v17760_v29 = vld [vmem:[%s20304_s4 + $0x438] ss:$48 sps:$4 sm:$0xff]  }
 0x3c1   : > { %4051 = vmatprep.subr.bf16.mxu0 %v17690_v30  ;;  %4102 = vmatprep.subr.bf16.mxu1 %v17693_v57  ;;  %v17763_v30 = vld [vmem:[%s20304_s4 + $0xa38] ss:$48 sps:$4 sm:$0xff]   ;;  %v17768_v57 = vld [vmem:[%s20304_s4 + $0x3dc] ss:$48 sps:$4 sm:$0xff]  }
 0x3c3   : > { %3982 = vmatmul.mubr.bf16.vlgmr.msra.gmra.mxu0 %v20630_v62  ;;  %4033 = vmatmul.mubr.bf16.vlgmr.msra.gmra.mxu1 %v20632_v5 }
 0x3c4   : > { %3991 = vmatprep.mubr.bf16.mxu0 %v20642_v53  ;;  %4042 = vmatprep.mubr.bf16.mxu1 %v20644_v54 }
 0x3c5   : > { %4052 = vmatpush1.bf16.msra.mxu0 %v17688_v61  ;;  %4103 = vmatpush1.bf16.msra.mxu1 %v17691_v56  ;;  %v17771_v61 = vld [vmem:[%s20304_s4 + $0x9dc] ss:$48 sps:$4 sm:$0xff]   ;;  %v17766_v56 = vld [vmem:[%s20304_s4 + $0x3d8] ss:$48 sps:$4 sm:$0xff]  }
 0x3c6   : > { %4053 = vmatprep.subr.bf16.mxu0 %v17696_v59  ;;  %4104 = vmatprep.subr.bf16.mxu1 %v17699_v31  ;;  %v17769_v59 = vld [vmem:[%s20304_s4 + $0x9d8] ss:$48 sps:$4 sm:$0xff]   ;;  %v17774_v31 = vld [vmem:[%s20304_s4 + $0x37c] ss:$48 sps:$4 sm:$0xff]  }
 0x3c9   : > { %4054 = vmatpush1.bf16.msra.mxu0 %v17694_v32  ;;  %4105 = vmatpush1.bf16.msra.mxu1 %v17697_v33  ;;  %v17777_v32 = vld [vmem:[%s20304_s4 + $0x97c] ss:$48 sps:$4 sm:$0xff]   ;;  %v17772_v33 = vld [vmem:[%s20304_s4 + $0x378] ss:$48 sps:$4 sm:$0xff]  }
 0x3ca   : > { %4055 = vmatprep.subr.bf16.mxu0 %v17702_v34  ;;  %4106 = vmatprep.subr.bf16.mxu1 %v17705_v35  ;;  %v17775_v34 = vld [vmem:[%s20304_s4 + $0x978] ss:$48 sps:$4 sm:$0xff]   ;;  %v17780_v35 = vld [vmem:[%s20304_s4 + $0x31c] ss:$48 sps:$4 sm:$0xff]  }
 0x3cb   : > { %3992 = vmatmul.mubr.bf16.gmra.mxu0 %v20654_v15  ;;  %4043 = vmatmul.mubr.bf16.gmra.mxu1 %v20656_v17 }
 0x3cc   : > { %4083 = vmatprep.mubr.bf16.mxu0 %v20626_v45  ;;  %4134 = vmatprep.mubr.bf16.mxu1 %v20628_v46 }
 0x3cd   : > { %4056 = vmatpush1.bf16.msra.mxu0 %v17700_v36  ;;  %4107 = vmatpush1.bf16.msra.mxu1 %v17703_v37  ;;  %v17783_v36 = vld [vmem:[%s20304_s4 + $0x91c] ss:$48 sps:$4 sm:$0xff]  }
 0x3ce   : > { %4057 = vmatprep.subr.bf16.mxu0 %v17708_v38  ;;  %4108 = vmatprep.subr.bf16.mxu1 %v17711_v39  ;;  %v20855_v37 = vld [vmem:[%s20315_s0] sm:$0xff]  ;;  %v17778_v38 = vld [vmem:[%s20304_s4 + $0x318] ss:$48 sps:$4 sm:$0xff]  }
 0x3cf   : > { %v17781_v39 = vld [vmem:[%s20304_s4 + $0x918] ss:$48 sps:$4 sm:$0xff]  }
 0x3d1   : > { %4058 = vmatpush1.bf16.msra.mxu0 %v17706_v7  ;;  %4109 = vmatpush1.bf16.msra.mxu1 %v17709_v16  ;;  %v17786_v7 = vld [vmem:[%s20304_s4 + $0x2c4] ss:$48 sps:$4 sm:$0xff]  }
 0x3d2   : > { %4059 = vmatprep.subr.bf16.mxu0 %v17714_v6  ;;  %4110 = vmatprep.subr.bf16.mxu1 %v17717_v40  ;;  %v17789_v16 = vld [vmem:[%s20304_s4 + $0x8c4] ss:$48 sps:$4 sm:$0xff]   ;;  %v1768_v6 = vrot.slane %v20855_v37, %v20597_v1  ;;  %v20865_v40 = vrot.slane %v20855_v37, %v20591_v60 }
 0x3d5   : > { %4060 = vmatpush1.bf16.msra.mxu0 %v17712_v13  ;;  %4111 = vmatpush1.bf16.msra.mxu1 %v17715_v41  ;;  %v17784_v13 = vld [vmem:[%s20304_s4 + $0x2c0] ss:$48 sps:$4 sm:$0xff]  }
 0x3d6   : > { %4061 = vmatprep.subr.bf16.mxu0 %v17720_v42  ;;  %4112 = vmatprep.subr.bf16.mxu1 %v17723_v63  ;;  %v17787_v41 = vld [vmem:[%s20304_s4 + $0x8c0] ss:$48 sps:$4 sm:$0xff]  }
 0x3d9   : > { %4062 = vmatpush1.bf16.msra.mxu0 %v17718_v8  ;;  %4113 = vmatpush1.bf16.msra.mxu1 %v17721_v43  ;;  %v17792_v43 = vld [vmem:[%s20304_s4 + $0x264] ss:$48 sps:$4 sm:$0xff]  }
 0x3da   : > { %4063 = vmatprep.subr.bf16.mxu0 %v17726_v44  ;;  %4114 = vmatprep.subr.bf16.mxu1 %v17729_v47  ;;  %v17795_v44 = vld [vmem:[%s20304_s4 + $0x864] ss:$48 sps:$4 sm:$0xff]  }
 0x3dd   : > { %4064 = vmatpush1.bf16.msra.mxu0 %v17724_v48  ;;  %4115 = vmatpush1.bf16.msra.mxu1 %v17727_v49 }
 0x3de   : > { %4065 = vmatprep.subr.bf16.mxu0 %v17732_v50  ;;  %4116 = vmatprep.subr.bf16.mxu1 %v17735_v51  ;;  %v17790_v51 = vld [vmem:[%s20304_s4 + $0x260] ss:$48 sps:$4 sm:$0xff]  }
 0x3e1   : > { %4066 = vmatpush1.bf16.msra.mxu0 %v17730_v52  ;;  %4117 = vmatpush1.bf16.msra.mxu1 %v17733_v58  ;;  %v17793_v52 = vld [vmem:[%s20304_s4 + $0x860] ss:$48 sps:$4 sm:$0xff]  }
 0x3e2   : > { %4067 = vmatprep.subr.bf16.mxu0 %v17738_v3  ;;  %4118 = vmatprep.subr.bf16.mxu1 %v17741_v4 }
 0x3e5   : > { %4068 = vmatpush2.bf16.msra.mxu0 %v17736_v9  ;;  %4119 = vmatpush2.bf16.msra.mxu1 %v17739_v10  ;;  %v17798_v10 = vld [vmem:[%s20304_s4 + $0x204] ss:$48 sps:$4 sm:$0xff]  }
 0x3e6   : > { %4069 = vmatprep.subr.bf16.mxu0 %v17744_v11  ;;  %4120 = vmatprep.subr.bf16.mxu1 %v17747_v12  ;;  %v17801_v11 = vld [vmem:[%s20304_s4 + $0x804] ss:$48 sps:$4 sm:$0xff]  }
 0x3e9   : > { %4070 = vmatpush2.bf16.msra.mxu0 %v17742_v14  ;;  %4121 = vmatpush2.bf16.msra.mxu1 %v17745_v18 }
 0x3ea   : > { %4071 = vmatprep.subr.bf16.mxu0 %v17750_v19  ;;  %4122 = vmatprep.subr.bf16.mxu1 %v17753_v20  ;;  %v17796_v19 = vld [vmem:[%s20304_s4 + $0x200] ss:$48 sps:$4 sm:$0xff]  }
 0x3eb   : > { %v17799_v20 = vld [vmem:[%s20304_s4 + $0x800] ss:$48 sps:$4 sm:$0xff]  }
 0x3ed   : > { %4072 = vmatpush2.bf16.msra.mxu0 %v17748_v21  ;;  %4123 = vmatpush2.bf16.msra.mxu1 %v17751_v22 }
 0x3ee   : > { %4073 = vmatprep.subr.bf16.mxu0 %v17756_v23  ;;  %4124 = vmatprep.subr.bf16.mxu1 %v17759_v24 }
 0x3f1   : > { %4074 = vmatpush2.bf16.msra.mxu0 %v17754_v25  ;;  %4125 = vmatpush2.bf16.msra.mxu1 %v17757_v26  ;;  %v17804_v25 = vld [vmem:[%s20304_s4 + $0x1a4] ss:$48 sps:$4 sm:$0xff]  }
 0x3f2   : > { %4075 = vmatprep.subr.bf16.mxu0 %v17762_v27  ;;  %4126 = vmatprep.subr.bf16.mxu1 %v17765_v28  ;;  %v17807_v26 = vld [vmem:[%s20304_s4 + $0x7a4] ss:$48 sps:$4 sm:$0xff]  }
 0x3f5   : > { %4076 = vmatpush2.bf16.msra.mxu0 %v17760_v29  ;;  %4127 = vmatpush2.bf16.msra.mxu1 %v17763_v30 }
 0x3f6   : > { %4077 = vmatprep.subr.bf16.mxu0 %v17768_v57  ;;  %4128 = vmatprep.subr.bf16.mxu1 %v17771_v61  ;;  %v17802_v57 = vld [vmem:[%s20304_s4 + $0x1a0] ss:$48 sps:$4 sm:$0xff]  }
 0x3f7   : > { %v17805_v61 = vld [vmem:[%s20304_s4 + $0x7a0] ss:$48 sps:$4 sm:$0xff]  }
 0x3f9   : > { %4078 = vmatpush2.bf16.msra.mxu0 %v17766_v56  ;;  %4129 = vmatpush2.bf16.msra.mxu1 %v17769_v59 }
 0x3fa   : > { %4079 = vmatprep.subr.bf16.mxu0 %v17774_v31  ;;  %4130 = vmatprep.subr.bf16.mxu1 %v17777_v32  ;;  %v17810_v32 = vld [vmem:[%s20304_s4 + $0x144] ss:$48 sps:$4 sm:$0xff]  }
 0x3fd   : > { %4080 = vmatpush2.bf16.msra.mxu0 %v17772_v33  ;;  %4131 = vmatpush2.bf16.msra.mxu1 %v17775_v34  ;;  %v17813_v33 = vld [vmem:[%s20304_s4 + $0x744] ss:$48 sps:$4 sm:$0xff]  }
 0x3fe   : > { %4081 = vmatprep.subr.bf16.mxu0 %v17780_v35  ;;  %4132 = vmatprep.subr.bf16.mxu1 %v17783_v36  ;;  %v17808_v36 = vld [vmem:[%s20304_s4 + $0x140] ss:$48 sps:$4 sm:$0xff]  }
 0x401   : > { %4082 = vmatpush2.bf16.msra.mxu0 %v17778_v38  ;;  %4133 = vmatpush2.bf16.msra.mxu1 %v17781_v39  ;;  %v17811_v38 = vld [vmem:[%s20304_s4 + $0x740] ss:$48 sps:$4 sm:$0xff]   ;;  %v17816_v39 = vld [vmem:[%s20304_s4 + $0xe4] ss:$48 sps:$4 sm:$0xff]  }
 0x402   : > { %4153 = vmatprep.subr.bf16.mxu0 %v17786_v7  ;;  %4204 = vmatprep.subr.bf16.mxu1 %v17789_v16  ;;  %v3779_v42 = vpop.f32.mrf.mxu0  ;;  %v3830_v63 = vpop.f32.mrf.mxu1  ;;  %v17819_v7 = vld [vmem:[%s20304_s4 + $0x6e4] ss:$48 sps:$4 sm:$0xff]   ;;  %v17814_v16 = vld [vmem:[%s20304_s4 + $0xe0] ss:$48 sps:$4 sm:$0xff]  }
 0x403   : > { %v3780_v8 = vadd.f32 %v3779_v42, %v1768_v6  ;;  %v17820_v42 = vld [vmem:[%s20304_s4 + $0x80] ss:$48 sps:$4 sm:$0xff]  }
 0x404   : > { %4084 = vmatmul.mubr.bf16.vlgmr.msra.gmra.mxu0 %v20630_v62  ;;  %4135 = vmatmul.mubr.bf16.vlgmr.msra.gmra.mxu1 %v20632_v5  ;;  %v3781_v47 = vpop.f32.mrf.mxu0  ;;  %v3832_v48 = vpop.f32.mrf.mxu1 }
 0x405   : > { %v20873_v49 = vadd.f32 %v3830_v63, %v3780_v8  ;;  %4093 = vmatprep.mubr.bf16.mxu0 %v20642_v53  ;;  %4144 = vmatprep.mubr.bf16.mxu1 %v20644_v54  ;;  %v3782_v50 = vadd.f32 %v3781_v47, %v20865_v40  ;;  %v17823_v63 = vld [vmem:[%s20304_s4 + $0x680] ss:$48 sps:$4 sm:$0xff]   ;;  %v17828_v8 = vld [vmem:[%s20304_s4 + $0x24] ss:$48 sps:$4 sm:$0xff]  }
 0x406   : > { %4154 = vmatpush1.bf16.msra.mxu0 %v17784_v13  ;;  %4205 = vmatpush1.bf16.msra.mxu1 %v17787_v41  ;;  %v3783_v58 = vpop.f32.mrf.mxu0  ;;  %v3834_v3 = vpop.f32.mrf.mxu1  ;;  %v17822_v13 = vld [vmem:[%s20304_s4 + $0x84] ss:$48 sps:$4 sm:$0xff]   ;;  %v17829_v47 = vld [vmem:[%s20304_s4 + $0x620] ss:$48 sps:$4 sm:$0xff]  }
 0x407   : > { %v20880_v4 = vadd.f32 %v3832_v48, %v3782_v50  ;;  %4155 = vmatprep.subr.bf16.mxu0 %v17792_v43  ;;  %4206 = vmatprep.subr.bf16.mxu1 %v17795_v44  ;;  %v3784_v9 = vadd.f32 %v3783_v58, %v1768_v6  ;;  %v17825_v41 = vld [vmem:[%s20304_s4 + $0x684] ss:$48 sps:$4 sm:$0xff]   ;;  %v17826_v44 = vld [vmem:[%s20304_s4 + $0x20] ss:$48 sps:$4 sm:$0xff]  }
 0x408   : > { %v20884_v12 = vpop.f32.mrf.mxu0  ;;  %v20886_v14 = vpop.f32.mrf.mxu1  ;;  %v17831_v43 = vld [vmem:[%s20304_s4 + $0x624] ss:$48 sps:$4 sm:$0xff]  }
 0x409   : > { %v20888_v18 = vadd.f32 %v3834_v3, %v3784_v9  ;;  %v17834_v48 = vld [vmem:[%s20304_s4 + $0x5c4] ss:$48 sps:$4 sm:$0xff]   ;;  %v17838_v9 = vld [vmem:[%s20304_s4 + $0x560] ss:$48 sps:$4 sm:$0xff]  }
 0x40a   : > { %4156 = vmatpush1.bf16.msra.mxu0 %v17790_v51  ;;  %4207 = vmatpush1.bf16.msra.mxu1 %v17793_v52  ;;  %v3789_v21 = vpop.f32.mrf.mxu0  ;;  %v3840_v22 = vpop.f32.mrf.mxu1  ;;  %v17837_v50 = vld [vmem:[%s20304_s4 + $0xbc4] ss:$48 sps:$4 sm:$0xff]   ;;  %v17832_v51 = vld [vmem:[%s20304_s4 + $0x5c0] ss:$48 sps:$4 sm:$0xff]  }
 0x40b   : > { %v4357_v23 = vpack.c.bf16 %v20888_v18, %v20873_v49  ;;  %4157 = vmatprep.subr.bf16.mxu0 %v17798_v10  ;;  %4208 = vmatprep.subr.bf16.mxu1 %v17801_v11  ;;  %v3790_v24 = vadd.f32 %v3789_v21, %v1768_v6  ;;  %v17817_v6 = vld [vmem:[%s20304_s4 + $0x6e0] ss:$48 sps:$4 sm:$0xff]   ;;  %v17840_v58 = vld [vmem:[%s20304_s4 + $0x564] ss:$48 sps:$4 sm:$0xff]  }
 0x40c   : > { %4094 = vmatmul.mubr.bf16.gmra.mxu0 %v20654_v15  ;;  %4145 = vmatmul.mubr.bf16.gmra.mxu1 %v20656_v17  ;;  %v3791_v27 = vpop.f32.mrf.mxu0  ;;  %v3842_v28 = vpop.f32.mrf.mxu1  ;;  %v17835_v52 = vld [vmem:[%s20304_s4 + $0xbc0] ss:$48 sps:$4 sm:$0xff]   ;;  %v17843_v3 = vld [vmem:[%s20304_s4 + $0xb64] ss:$48 sps:$4 sm:$0xff]  }
 0x40d   : > { %v20898_v29 = vadd.f32 %v3840_v22, %v3790_v24  ;;  %4185 = vmatprep.mubr.bf16.mxu0 %v20626_v45  ;;  %4236 = vmatprep.mubr.bf16.mxu1 %v20628_v46  ;;  %v3792_v30 = vadd.f32 %v3791_v27, %v20865_v40  ;;  %v17841_v10 = vld [vmem:[%s20304_s4 + $0xb60] ss:$48 sps:$4 sm:$0xff]   ;;  %v17846_v11 = vld [vmem:[%s20304_s4 + $0x504] ss:$48 sps:$4 sm:$0xff]  }
 0x40e   : > { %4158 = vmatpush1.bf16.msra.mxu0 %v17796_v19  ;;  %4209 = vmatpush1.bf16.msra.mxu1 %v17799_v20  ;;  %v3793_v56 = vpop.f32.mrf.mxu0  ;;  %v3844_v59 = vpop.f32.mrf.mxu1  ;;  %v17849_v19 = vld [vmem:[%s20304_s4 + $0xb04] ss:$48 sps:$4 sm:$0xff]   ;;  %v17844_v20 = vld [vmem:[%s20304_s4 + $0x500] ss:$48 sps:$4 sm:$0xff]  }
 0x40f   : > { %v20905_v31 = vadd.f32 %v3842_v28, %v3792_v30  ;;  %4159 = vmatprep.subr.bf16.mxu0 %v17804_v25  ;;  %4210 = vmatprep.subr.bf16.mxu1 %v17807_v26  ;;  %v17847_v21 = vld [vmem:[%s20304_s4 + $0xb00] ss:$48 sps:$4 sm:$0xff]   ;;  %v17852_v22 = vld [vmem:[%s20304_s4 + $0x4a4] ss:$48 sps:$4 sm:$0xff]  }
 0x410   : > { %v3794_v34 = vpop.f32.mrf.mxu0  ;;  %v3845_v35 = vpop.f32.mrf.mxu1  ;;  %v17855_v24 = vld [vmem:[%s20304_s4 + $0xaa4] ss:$48 sps:$4 sm:$0xff]   ;;  %v17850_v25 = vld [vmem:[%s20304_s4 + $0x4a0] ss:$48 sps:$4 sm:$0xff]  }
 0x411   : > { %v17853_v26 = vld [vmem:[%s20304_s4 + $0xaa0] ss:$48 sps:$4 sm:$0xff]   ;;  %v17858_v27 = vld [vmem:[%s20304_s4 + $0x444] ss:$48 sps:$4 sm:$0xff]  }
 0x412   : > { %4160 = vmatpush1.bf16.msra.mxu0 %v17802_v57  ;;  %4211 = vmatpush1.bf16.msra.mxu1 %v17805_v61  ;;  %v17861_v28 = vld [vmem:[%s20304_s4 + $0xa44] ss:$48 sps:$4 sm:$0xff]   ;;  %v17856_v30 = vld [vmem:[%s20304_s4 + $0x440] ss:$48 sps:$4 sm:$0xff]  }
 0x413   : > { %4161 = vmatprep.subr.bf16.mxu0 %v17810_v32  ;;  %4212 = vmatprep.subr.bf16.mxu1 %v17813_v33  ;;  %v17859_v57 = vld [vmem:[%s20304_s4 + $0xa40] ss:$48 sps:$4 sm:$0xff]   ;;  %v17864_v61 = vld [vmem:[%s20304_s4 + $0x3e4] ss:$48 sps:$4 sm:$0xff]  }
 0x414   : > { %v17867_v56 = vld [vmem:[%s20304_s4 + $0x9e4] ss:$48 sps:$4 sm:$0xff]   ;;  %v17862_v59 = vld [vmem:[%s20304_s4 + $0x3e0] ss:$48 sps:$4 sm:$0xff]  }
 0x415   : > { %v17865_v32 = vld [vmem:[%s20304_s4 + $0x9e0] ss:$48 sps:$4 sm:$0xff]   ;;  %v17870_v33 = vld [vmem:[%s20304_s4 + $0x384] ss:$48 sps:$4 sm:$0xff]  }
 0x416   : > { %4162 = vmatpush1.bf16.msra.mxu0 %v17808_v36  ;;  %4213 = vmatpush1.bf16.msra.mxu1 %v17811_v38  ;;  %v17873_v34 = vld [vmem:[%s20304_s4 + $0x984] ss:$48 sps:$4 sm:$0xff]   ;;  %v17868_v35 = vld [vmem:[%s20304_s4 + $0x380] ss:$48 sps:$4 sm:$0xff]  }
 0x417   : > { %4163 = vmatprep.subr.bf16.mxu0 %v17816_v39  ;;  %4214 = vmatprep.subr.bf16.mxu1 %v17819_v7  ;;  %v17871_v36 = vld [vmem:[%s20304_s4 + $0x980] ss:$48 sps:$4 sm:$0xff]   ;;  %v17876_v38 = vld [vmem:[%s20304_s4 + $0x324] ss:$48 sps:$4 sm:$0xff]  }
 0x418   : > { %v17879_v39 = vld [vmem:[%s20304_s4 + $0x924] ss:$48 sps:$4 sm:$0xff]   ;;  %v17874_v7 = vld [vmem:[%s20304_s4 + $0x320] ss:$48 sps:$4 sm:$0xff]  }
 0x41a   : > { %4164 = vmatpush1.bf16.msra.mxu0 %v17814_v16  ;;  %4215 = vmatpush1.bf16.msra.mxu1 %v17817_v6  ;;  %v17877_v16 = vld [vmem:[%s20304_s4 + $0x920] ss:$48 sps:$4 sm:$0xff]   ;;  %v1776_v6 = vrot.slane %v20855_v37, %v20600_v2 }
 0x41b   : > { %4165 = vmatprep.subr.bf16.mxu0 %v17822_v13  ;;  %4216 = vmatprep.subr.bf16.mxu1 %v17825_v41  ;;  %v17882_v13 = vld [vmem:[%s20304_s4 + $0x2cc] ss:$48 sps:$4 sm:$0xff]  }
 0x41c   : > { %v17885_v41 = vld [vmem:[%s20304_s4 + $0x8cc] ss:$48 sps:$4 sm:$0xff]  }
 0x41e   : > { %4166 = vmatpush1.bf16.msra.mxu0 %v17820_v42  ;;  %4217 = vmatpush1.bf16.msra.mxu1 %v17823_v63  ;;  %v20961_v42 = vrot.slane %v20855_v37, %v20594_v0 }
 0x41f   : > { %4167 = vmatprep.subr.bf16.mxu0 %v17828_v8  ;;  %4218 = vmatprep.subr.bf16.mxu1 %v17831_v43 }
 0x422   : > { %4168 = vmatpush1.bf16.msra.mxu0 %v17826_v44  ;;  %4219 = vmatpush1.bf16.msra.mxu1 %v17829_v47  ;;  %v17880_v44 = vld [vmem:[%s20304_s4 + $0x2c8] ss:$48 sps:$4 sm:$0xff]  }
 0x423   : > { %4169 = vmatprep.subr.bf16.mxu0 %v17834_v48  ;;  %4220 = vmatprep.subr.bf16.mxu1 %v17837_v50  ;;  %v17883_v47 = vld [vmem:[%s20304_s4 + $0x8c8] ss:$48 sps:$4 sm:$0xff]  }
 0x426   : > { %4170 = vmatpush2.bf16.msra.mxu0 %v17832_v51  ;;  %4221 = vmatpush2.bf16.msra.mxu1 %v17835_v52  ;;  %v17888_v51 = vld [vmem:[%s20304_s4 + $0x26c] ss:$48 sps:$4 sm:$0xff]  }
 0x427   : > { %4171 = vmatprep.subr.bf16.mxu0 %v17840_v58  ;;  %4222 = vmatprep.subr.bf16.mxu1 %v17843_v3  ;;  %v17891_v52 = vld [vmem:[%s20304_s4 + $0x86c] ss:$48 sps:$4 sm:$0xff]  }
 0x42a   : > { %4172 = vmatpush2.bf16.msra.mxu0 %v17838_v9  ;;  %4223 = vmatpush2.bf16.msra.mxu1 %v17841_v10 }
 0x42b   : > { %4173 = vmatprep.subr.bf16.mxu0 %v17846_v11  ;;  %4224 = vmatprep.subr.bf16.mxu1 %v17849_v19 }
 0x42e   : > { %4174 = vmatpush2.bf16.msra.mxu0 %v17844_v20  ;;  %4225 = vmatpush2.bf16.msra.mxu1 %v17847_v21  ;;  %v17886_v20 = vld [vmem:[%s20304_s4 + $0x268] ss:$48 sps:$4 sm:$0xff]  }
 0x42f   : > { %4175 = vmatprep.subr.bf16.mxu0 %v17852_v22  ;;  %4226 = vmatprep.subr.bf16.mxu1 %v17855_v24  ;;  %v17889_v21 = vld [vmem:[%s20304_s4 + $0x868] ss:$48 sps:$4 sm:$0xff]  }
 0x432   : > { %4176 = vmatpush2.bf16.msra.mxu0 %v17850_v25  ;;  %4227 = vmatpush2.bf16.msra.mxu1 %v17853_v26  ;;  %v17894_v25 = vld [vmem:[%s20304_s4 + $0x20c] ss:$48 sps:$4 sm:$0xff]  }
 0x433   : > { %4177 = vmatprep.subr.bf16.mxu0 %v17858_v27  ;;  %4228 = vmatprep.subr.bf16.mxu1 %v17861_v28  ;;  %v17897_v26 = vld [vmem:[%s20304_s4 + $0x80c] ss:$48 sps:$4 sm:$0xff]  }
 0x436   : > { %4178 = vmatpush2.bf16.msra.mxu0 %v17856_v30  ;;  %4229 = vmatpush2.bf16.msra.mxu1 %v17859_v57 }
 0x437   : > { %4179 = vmatprep.subr.bf16.mxu0 %v17864_v61  ;;  %4230 = vmatprep.subr.bf16.mxu1 %v17867_v56  ;;  %v17892_v56 = vld [vmem:[%s20304_s4 + $0x208] ss:$48 sps:$4 sm:$0xff]  }
 0x43a   : > { %4180 = vmatpush2.bf16.msra.mxu0 %v17862_v59  ;;  %4231 = vmatpush2.bf16.msra.mxu1 %v17865_v32  ;;  %v17895_v59 = vld [vmem:[%s20304_s4 + $0x808] ss:$48 sps:$4 sm:$0xff]  }
 0x43b   : > { %4181 = vmatprep.subr.bf16.mxu0 %v17870_v33  ;;  %4232 = vmatprep.subr.bf16.mxu1 %v17873_v34  ;;  %v17900_v34 = vld [vmem:[%s20304_s4 + $0x1ac] ss:$48 sps:$4 sm:$0xff]  }
 0x43e   : > { %4182 = vmatpush2.bf16.msra.mxu0 %v17868_v35  ;;  %4233 = vmatpush2.bf16.msra.mxu1 %v17871_v36  ;;  %v17903_v35 = vld [vmem:[%s20304_s4 + $0x7ac] ss:$48 sps:$4 sm:$0xff]  }
 0x43f   : > { %4183 = vmatprep.subr.bf16.mxu0 %v17876_v38  ;;  %4234 = vmatprep.subr.bf16.mxu1 %v17879_v39 }
 0x442   : > { %4184 = vmatpush2.bf16.msra.mxu0 %v17874_v7  ;;  %4235 = vmatpush2.bf16.msra.mxu1 %v17877_v16  ;;  %v3881_v63 = vpop.f32.mrf.mxu0  ;;  %v3932_v8 = vpop.f32.mrf.mxu1 }
 0x443   : > { %v3882_v43 = vadd.f32 %v3881_v63, %v1776_v6  ;;  %4255 = vmatprep.subr.bf16.mxu0 %v17882_v13  ;;  %4306 = vmatprep.subr.bf16.mxu1 %v17885_v41  ;;  %v17901_v13 = vld [vmem:[%s20304_s4 + $0x7a8] ss:$48 sps:$4 sm:$0xff]   ;;  %v17906_v63 = vld [vmem:[%s20304_s4 + $0x14c] ss:$48 sps:$4 sm:$0xff]  }
 0x444   : > { %v3883_v48 = vpop.f32.mrf.mxu0  ;;  %v3934_v50 = vpop.f32.mrf.mxu1 }
 0x445   : > { %v20967_v58 = vadd.f32 %v3932_v8, %v3882_v43  ;;  %4186 = vmatmul.mubr.bf16.vlgmr.msra.gmra.mxu0 %v20630_v62  ;;  %4237 = vmatmul.mubr.bf16.vlgmr.msra.gmra.mxu1 %v20632_v5  ;;  %v3884_v3 = vadd.f32 %v3883_v48, %v20961_v42  ;;  %v17904_v8 = vld [vmem:[%s20304_s4 + $0x148] ss:$48 sps:$4 sm:$0xff]  }
 0x446   : > { %4195 = vmatprep.mubr.bf16.mxu0 %v20642_v53  ;;  %4246 = vmatprep.mubr.bf16.mxu1 %v20644_v54  ;;  %v3885_v9 = vpop.f32.mrf.mxu0  ;;  %v3936_v10 = vpop.f32.mrf.mxu1  ;;  %v17907_v43 = vld [vmem:[%s20304_s4 + $0x748] ss:$48 sps:$4 sm:$0xff]  }
 0x447   : > { %4256 = vmatpush1.bf16.msra.mxu0 %v17880_v44  ;;  %4307 = vmatpush1.bf16.msra.mxu1 %v17883_v47  ;;  %v20974_v11 = vadd.f32 %v3934_v50, %v3884_v3  ;;  %v3886_v19 = vadd.f32 %v3885_v9, %v1776_v6  ;;  %v17912_v44 = vld [vmem:[%s20304_s4 + $0xec] ss:$48 sps:$4 sm:$0xff]   ;;  %v17910_v48 = vld [vmem:[%s20304_s4 + $0xe8] ss:$48 sps:$4 sm:$0xff]  }
 0x448   : > { %4257 = vmatprep.subr.bf16.mxu0 %v17888_v51  ;;  %4308 = vmatprep.subr.bf16.mxu1 %v17891_v52  ;;  %v20978_v22 = vpop.f32.mrf.mxu0  ;;  %v20980_v24 = vpop.f32.mrf.mxu1  ;;  %v17915_v47 = vld [vmem:[%s20304_s4 + $0x6ec] ss:$48 sps:$4 sm:$0xff]   ;;  %v17913_v50 = vld [vmem:[%s20304_s4 + $0x6e8] ss:$48 sps:$4 sm:$0xff]  }
 0x449   : > { %v20984_v27 = vadd.f32 %v3936_v10, %v3886_v19  ;;  %v17918_v51 = vld [vmem:[%s20304_s4 + $0x8c] ss:$48 sps:$4 sm:$0xff]   ;;  %v17916_v3 = vld [vmem:[%s20304_s4 + $0x88] ss:$48 sps:$4 sm:$0xff]  }
 0x44a   : > { %v3891_v28 = vpop.f32.mrf.mxu0  ;;  %v3942_v30 = vpop.f32.mrf.mxu1  ;;  %v17921_v52 = vld [vmem:[%s20304_s4 + $0x68c] ss:$48 sps:$4 sm:$0xff]   ;;  %v17919_v9 = vld [vmem:[%s20304_s4 + $0x688] ss:$48 sps:$4 sm:$0xff]  }
 0x44b   : > { %v4664_v57 = vpack.c.bf16 %v20984_v27, %v20967_v58  ;;  %4258 = vmatpush1.bf16.msra.mxu0 %v17886_v20  ;;  %4309 = vmatpush1.bf16.msra.mxu1 %v17889_v21  ;;  %v3892_v61 = vadd.f32 %v3891_v28, %v1776_v6  ;;  %v17898_v6 = vld [vmem:[%s20304_s4 + $0x1a8] ss:$48 sps:$4 sm:$0xff]   ;;  %v17924_v10 = vld [vmem:[%s20304_s4 + $0x2c] ss:$48 sps:$4 sm:$0xff]  }
 0x44c   : > { %4259 = vmatprep.subr.bf16.mxu0 %v17894_v25  ;;  %4310 = vmatprep.subr.bf16.mxu1 %v17897_v26  ;;  %v3893_v32 = vpop.f32.mrf.mxu0  ;;  %v3944_v33 = vpop.f32.mrf.mxu1  ;;  %v17927_v19 = vld [vmem:[%s20304_s4 + $0x62c] ss:$48 sps:$4 sm:$0xff]   ;;  %v17922_v20 = vld [vmem:[%s20304_s4 + $0x28] ss:$48 sps:$4 sm:$0xff]  }
 0x44d   : > { %v20992_v36 = vadd.f32 %v3942_v30, %v3892_v61  ;;  %4196 = vmatmul.mubr.bf16.gmra.mxu0 %v20654_v15  ;;  %4247 = vmatmul.mubr.bf16.gmra.mxu1 %v20656_v17  ;;  %v3894_v38 = vadd.f32 %v3893_v32, %v20961_v42  ;;  %v17925_v21 = vld [vmem:[%s20304_s4 + $0x628] ss:$48 sps:$4 sm:$0xff]   ;;  %v17930_v25 = vld [vmem:[%s20304_s4 + $0x5cc] ss:$48 sps:$4 sm:$0xff]  }
 0x44e   : > { %4287 = vmatprep.mubr.bf16.mxu0 %v20626_v45  ;;  %4338 = vmatprep.mubr.bf16.mxu1 %v20628_v46  ;;  %v3895_v39 = vpop.f32.mrf.mxu0  ;;  %v3946_v7 = vpop.f32.mrf.mxu1  ;;  %v17909_v46 = vld [vmem:[%s20304_s4 + $0x74c] ss:$48 sps:$4 sm:$0xff]   ;;  %v17928_v28 = vld [vmem:[%s20304_s4 + $0x5c8] ss:$48 sps:$4 sm:$0xff]  }
 0x44f   : > { %4260 = vmatpush1.bf16.msra.mxu0 %v17892_v56  ;;  %4311 = vmatpush1.bf16.msra.mxu1 %v17895_v59  ;;  %v20999_v16 = vadd.f32 %v3944_v33, %v3894_v38  ;;  %v17933_v26 = vld [vmem:[%s20304_s4 + $0xbcc] ss:$48 sps:$4 sm:$0xff]   ;;  %v17931_v30 = vld [vmem:[%s20304_s4 + $0xbc8] ss:$48 sps:$4 sm:$0xff]  }
 0x450   : > { %4261 = vmatprep.subr.bf16.mxu0 %v17900_v34  ;;  %4312 = vmatprep.subr.bf16.mxu1 %v17903_v35  ;;  %v3896_v41 = vpop.f32.mrf.mxu0  ;;  %v3947_v45 = vpop.f32.mrf.mxu1  ;;  %v17936_v61 = vld [vmem:[%s20304_s4 + $0x56c] ss:$48 sps:$4 sm:$0xff]   ;;  %v17934_v59 = vld [vmem:[%s20304_s4 + $0x568] ss:$48 sps:$4 sm:$0xff]  }
 0x451   : > { %v17939_v56 = vld [vmem:[%s20304_s4 + $0xb6c] ss:$48 sps:$4 sm:$0xff]   ;;  %v17937_v32 = vld [vmem:[%s20304_s4 + $0xb68] ss:$48 sps:$4 sm:$0xff]  }
 0x452   : > { %v17942_v33 = vld [vmem:[%s20304_s4 + $0x50c] ss:$48 sps:$4 sm:$0xff]   ;;  %v17940_v35 = vld [vmem:[%s20304_s4 + $0x508] ss:$48 sps:$4 sm:$0xff]  }
 0x453   : > { %4262 = vmatpush1.bf16.msra.mxu0 %v17898_v6  ;;  %4313 = vmatpush1.bf16.msra.mxu1 %v17901_v13  ;;  %v17945_v34 = vld [vmem:[%s20304_s4 + $0xb0c] ss:$48 sps:$4 sm:$0xff]   ;;  %v17943_v38 = vld [vmem:[%s20304_s4 + $0xb08] ss:$48 sps:$4 sm:$0xff]  }
 0x454   : > { %4263 = vmatprep.subr.bf16.mxu0 %v17906_v63  ;;  %4314 = vmatprep.subr.bf16.mxu1 %v17909_v46  ;;  %v17948_v39 = vld [vmem:[%s20304_s4 + $0x4ac] ss:$48 sps:$4 sm:$0xff]   ;;  %v17946_v6 = vld [vmem:[%s20304_s4 + $0x4a8] ss:$48 sps:$4 sm:$0xff]  }
 0x455   : > { %v17951_v7 = vld [vmem:[%s20304_s4 + $0xaac] ss:$48 sps:$4 sm:$0xff]   ;;  %v17949_v13 = vld [vmem:[%s20304_s4 + $0xaa8] ss:$48 sps:$4 sm:$0xff]  }
 0x456   : > { %v17954_v41 = vld [vmem:[%s20304_s4 + $0x44c] ss:$48 sps:$4 sm:$0xff]   ;;  %v17952_v63 = vld [vmem:[%s20304_s4 + $0x448] ss:$48 sps:$4 sm:$0xff]  }
 0x457   : > { %4264 = vmatpush1.bf16.msra.mxu0 %v17904_v8  ;;  %4315 = vmatpush1.bf16.msra.mxu1 %v17907_v43  ;;  %v17957_v45 = vld [vmem:[%s20304_s4 + $0xa4c] ss:$48 sps:$4 sm:$0xff]   ;;  %v17955_v46 = vld [vmem:[%s20304_s4 + $0xa48] ss:$48 sps:$4 sm:$0xff]  }
 0x458   : > { %4265 = vmatprep.subr.bf16.mxu0 %v17912_v44  ;;  %4316 = vmatprep.subr.bf16.mxu1 %v17915_v47  ;;  %v17960_v8 = vld [vmem:[%s20304_s4 + $0x3ec] ss:$48 sps:$4 sm:$0xff]   ;;  %v17958_v44 = vld [vmem:[%s20304_s4 + $0x3e8] ss:$48 sps:$4 sm:$0xff]  }
 0x459   : > { %v17963_v43 = vld [vmem:[%s20304_s4 + $0x9ec] ss:$48 sps:$4 sm:$0xff]   ;;  %v17961_v47 = vld [vmem:[%s20304_s4 + $0x9e8] ss:$48 sps:$4 sm:$0xff]  }
 0x45b   : > { %4266 = vmatpush1.bf16.msra.mxu0 %v17910_v48  ;;  %4317 = vmatpush1.bf16.msra.mxu1 %v17913_v50  ;;  %v17966_v48 = vld [vmem:[%s20304_s4 + $0x38c] ss:$48 sps:$4 sm:$0xff]  }
 0x45c   : > { %4267 = vmatprep.subr.bf16.mxu0 %v17918_v51  ;;  %4318 = vmatprep.subr.bf16.mxu1 %v17921_v52  ;;  %v17969_v50 = vld [vmem:[%s20304_s4 + $0x98c] ss:$48 sps:$4 sm:$0xff]   ;;  %v17964_v51 = vld [vmem:[%s20304_s4 + $0x388] ss:$48 sps:$4 sm:$0xff]  }
 0x45d   : > { %v17967_v52 = vld [vmem:[%s20304_s4 + $0x988] ss:$48 sps:$4 sm:$0xff]  }
 0x45f   : > { %4268 = vmatpush1.bf16.msra.mxu0 %v17916_v3  ;;  %4319 = vmatpush1.bf16.msra.mxu1 %v17919_v9  ;;  %v17972_v3 = vld [vmem:[%s20304_s4 + $0x32c] ss:$48 sps:$4 sm:$0xff]  }
 0x460   : > { %4269 = vmatprep.subr.bf16.mxu0 %v17924_v10  ;;  %4320 = vmatprep.subr.bf16.mxu1 %v17927_v19  ;;  %v17975_v9 = vld [vmem:[%s20304_s4 + $0x92c] ss:$48 sps:$4 sm:$0xff]   ;;  %v17970_v10 = vld [vmem:[%s20304_s4 + $0x328] ss:$48 sps:$4 sm:$0xff]  }
 0x461   : > { %v17973_v19 = vld [vmem:[%s20304_s4 + $0x928] ss:$48 sps:$4 sm:$0xff]  }
 0x463   : > { %4270 = vmatpush1.bf16.msra.mxu0 %v17922_v20  ;;  %4321 = vmatpush1.bf16.msra.mxu1 %v17925_v21 }
 0x464   : > { %4271 = vmatprep.subr.bf16.mxu0 %v17930_v25  ;;  %4322 = vmatprep.subr.bf16.mxu1 %v17933_v26  ;;  %v21052_v25 = vsub.s32 4, %v20586_v55 }
 0x467   : > { %4272 = vmatpush2.bf16.msra.mxu0 %v17928_v28  ;;  %4323 = vmatpush2.bf16.msra.mxu1 %v17931_v30 }
 0x468   : > { %4273 = vmatprep.subr.bf16.mxu0 %v17936_v61  ;;  %4324 = vmatprep.subr.bf16.mxu1 %v17939_v56  ;;  %v1784_v56 = vrot.slane %v20855_v37, %v21052_v25 }
 0x46b   : > { %4274 = vmatpush2.bf16.msra.mxu0 %v17934_v59  ;;  %4325 = vmatpush2.bf16.msra.mxu1 %v17937_v32 }
 0x46c   : > { %4275 = vmatprep.subr.bf16.mxu0 %v17942_v33  ;;  %4326 = vmatprep.subr.bf16.mxu1 %v17945_v34 }
 0x46f   : > { %4276 = vmatpush2.bf16.msra.mxu0 %v17940_v35  ;;  %4327 = vmatpush2.bf16.msra.mxu1 %v17943_v38 }
 0x470   : > { %4277 = vmatprep.subr.bf16.mxu0 %v17948_v39  ;;  %4328 = vmatprep.subr.bf16.mxu1 %v17951_v7  ;;  %v21061_v39 = vsub.s32 5, %v20586_v55 }
 0x473   : > { %4278 = vmatpush2.bf16.msra.mxu0 %v17946_v6  ;;  %4329 = vmatpush2.bf16.msra.mxu1 %v17949_v13 }
 0x474   : > { %4279 = vmatprep.subr.bf16.mxu0 %v17954_v41  ;;  %4330 = vmatprep.subr.bf16.mxu1 %v17957_v45  ;;  %v1788_v45 = vrot.slane %v20855_v37, %v21061_v39 }
 0x477   : > { %4280 = vmatpush2.bf16.msra.mxu0 %v17952_v63  ;;  %4331 = vmatpush2.bf16.msra.mxu1 %v17955_v46 }
 0x478   : > { %4281 = vmatprep.subr.bf16.mxu0 %v17960_v8  ;;  %4332 = vmatprep.subr.bf16.mxu1 %v17963_v43 }
 0x47b   : > { %4282 = vmatpush2.bf16.msra.mxu0 %v17958_v44  ;;  %4333 = vmatpush2.bf16.msra.mxu1 %v17961_v47 }
 0x47c   : > { %4283 = vmatprep.subr.bf16.mxu0 %v17966_v48  ;;  %4334 = vmatprep.subr.bf16.mxu1 %v17969_v50  ;;  %v4358_v50 = vpack.c.bf16 %v20898_v29, %v20898_v29 }
 0x47f   : > { %4284 = vmatpush2.bf16.msra.mxu0 %v17964_v51  ;;  %4335 = vmatpush2.bf16.msra.mxu1 %v17967_v52 }
 0x480   : > { %4285 = vmatprep.subr.bf16.mxu0 %v17972_v3  ;;  %4336 = vmatprep.subr.bf16.mxu1 %v17975_v9 }
 0x483   : > { %4286 = vmatpush2.bf16.msra.mxu0 %v17970_v10  ;;  %4337 = vmatpush2.bf16.msra.mxu1 %v17973_v19  ;;  %v3983_v20 = vpop.f32.mrf.mxu0  ;;  %v4034_v21 = vpop.f32.mrf.mxu1 }
 0x484   : > { %v3984_v38 = vadd.f32 %v3983_v20, %v1784_v56 }
 0x485   : > { %v3985_v26 = vpop.f32.mrf.mxu0  ;;  %v4036_v28 = vpop.f32.mrf.mxu1 }
 0x486   : > { %4288 = vmatmul.mubr.bf16.vlgmr.msra.gmra.mxu0 %v20630_v62  ;;  %4339 = vmatmul.mubr.bf16.vlgmr.msra.gmra.mxu1 %v20632_v5  ;;  %v4035_v41 = vadd.f32 %v4034_v21, %v3984_v38 }
 0x487   : > { %4297 = vmatprep.mubr.bf16.mxu0 %v20642_v53  ;;  %4348 = vmatprep.mubr.bf16.mxu1 %v20644_v54  ;;  %v3987_v30 = vpop.f32.mrf.mxu0  ;;  %v4038_v61 = vpop.f32.mrf.mxu1 }
 0x488   : > { %v3988_v33 = vadd.f32 %v3987_v30, %v1784_v56 }
 0x489   : > { %v3989_v59 = vpop.f32.mrf.mxu0  ;;  %v4040_v32 = vpop.f32.mrf.mxu1 }
 0x48a   : > { %v4039_v53 = vadd.f32 %v4038_v61, %v3988_v33  ;;  %v3990_v49 = vadd.f32 %v3989_v59, %v1788_v45 }
 0x48b   : > { %v3993_v34 = vpop.f32.mrf.mxu0  ;;  %v4044_v35 = vpop.f32.mrf.mxu1 }
 0x48c   : > { %v3994_v62 = vadd.f32 %v3993_v34, %v1784_v56  ;;  %v4359_v43 = vpack.c.bf16 %v4039_v53, %v4035_v41  ;;  %v4041_v48 = vadd.f32 %v4040_v32, %v3990_v49 }
 0x48d   : > { %v3995_v5 = vpop.f32.mrf.mxu0  ;;  %v4046_v7 = vpop.f32.mrf.mxu1 }
 0x48e   : > { %v4045_v6 = vadd.f32 %v4044_v35, %v3994_v62  ;;  %4298 = vmatmul.mubr.bf16.gmra.mxu0 %v20654_v15  ;;  %4349 = vmatmul.mubr.bf16.gmra.mxu1 %v20656_v17  ;;  %v3996_v44 = vadd.f32 %v3995_v5, %v1788_v45  ;;  %v3786_v17 = vadd.f32 %v20884_v12, %v20865_v40  ;;  %v21079_v12 = vsub.s32 6, %v20586_v55 }
 0x48f   : > { %17124 = vmatprep.mubr.bf16.mxu0 %v4357_v23  ;;  %v3997_v54 = vpop.f32.mrf.mxu0  ;;  %v4048_v13 = vpop.f32.mrf.mxu1  ;;  %v3986_v23 = vadd.f32 %v3985_v26, %v1788_v45  ;;  %v4513_v40 = vpack.c.bf16 %v20905_v31, %v20905_v31 }
 0x490   : > { %v4360_v63 = vpack.c.bf16 %v4045_v6, %v4045_v6  ;;  %v4047_v15 = vadd.f32 %v4046_v7, %v3996_v44  ;;  %v3837_v47 = vadd.f32 %v20886_v14, %v3786_v17  ;;  %23818 = vst [vmem:[#allocation51_spill] sm:$0xff] %v21079_v12  ;;  %v21082_v14 = vsub.s32 7, %v20586_v55 }
 0x491   : > { %v3998_v46 = vpop.f32.mrf.mxu0  ;;  %v4049_v8 = vpop.f32.mrf.mxu1  ;;  %v4037_v51 = vadd.f32 %v4036_v28, %v3986_v23  ;;  %v1792_v29 = vrot.slane %v20855_v37, %v21079_v12 }
 0x492   : > { %17120 = vmatprep.subr.bf16.mxu0 %v4360_v63  ;;  %v4515_v18 = vpack.c.bf16 %v4047_v15, %v4047_v15  ;;  %v4512_v52 = vpack.c.bf16 %v3837_v47, %v20880_v4  ;;  %23819 = vst [vmem:[#allocation52_spill] sm:$0xff] %v21082_v14  ;;  %v1796_v4 = vrot.slane %v20855_v37, %v21082_v14 }
 0x493   : > { %17121 = vmatpush3.bf16.xpose.msra.mxu0 %v4360_v63  ;;  %v4514_v3 = vpack.c.bf16 %v4041_v48, %v4037_v51 }
 0x494   : > { %17122 = vmatprep.subr.bf16.mxu0 %v4359_v43 }
 0x49b   : > { %17123 = vmatpush3.bf16.xpose.msra.mxu0 %v4359_v43  ;;  %v1762_v43 = vld [vmem:[%s20315_s0 + $0x8] sm:$0xf] }
 0x49c   : > { %17136 = vmatprep.subr.bf16.mxu0 %v4515_v18  ;;  %v1804_v44 = vrot.slane %v1762_v43, %v20591_v60 }
 0x4a2   : > { %17125 = vmatmul.mubr.bf16.vlgmr.msra.gmra.mxu0 %v4358_v50  ;;  %v1800_v50 = vrot.slane %v1762_v43, %v20597_v1 }
 0x4a3   : > { %17137 = vmatpush3.bf16.xpose.msra.mxu0 %v4515_v18  ;;  %17140 = vmatprep.mubr.bf16.mxu0 %v4512_v52 }
 0x4a4   : > { %17138 = vmatprep.subr.bf16.mxu0 %v4514_v3 }
 0x4ab   : > { %17139 = vmatpush3.bf16.xpose.msra.mxu0 %v4514_v3 }
 0x4b2   : > { %17141 = vmatmul.mubr.bf16.vlgmr.msra.gmra.mxu0 %v4513_v40 }
 0x4c4   : > { %v4085_v9 = vpop.f32.mrf.mxu0  ;;  %v4136_v10 = vpop.f32.mrf.mxu1 }
 0x4c5   : > { %v4086_v19 = vadd.f32 %v4085_v9, %v1792_v29 }
 0x4c6   : > { %v4087_v20 = vpop.f32.mrf.mxu0  ;;  %v4138_v21 = vpop.f32.mrf.mxu1 }
 0x4c7   : > { %v4137_v26 = vadd.f32 %v4136_v10, %v4086_v19  ;;  %v4088_v31 = vadd.f32 %v4087_v20, %v1796_v4 }
 0x4c8   : > { %v4089_v28 = vpop.f32.mrf.mxu0  ;;  %v4140_v30 = vpop.f32.mrf.mxu1 }
 0x4c9   : > { %v4139_v61 = vadd.f32 %v4138_v21, %v4088_v31  ;;  %v4090_v56 = vadd.f32 %v4089_v28, %v1792_v29 }
 0x4ca   : > { %v4091_v59 = vpop.f32.mrf.mxu0  ;;  %v4142_v32 = vpop.f32.mrf.mxu1 }
 0x4cb   : > { %v4141_v33 = vadd.f32 %v4140_v30, %v4090_v56  ;;  %v4092_v34 = vadd.f32 %v4091_v59, %v1796_v4 }
 0x4cc   : > { %v4095_v35 = vpop.f32.mrf.mxu0  ;;  %v4146_v38 = vpop.f32.mrf.mxu1 }
 0x4cd   : > { %v21088_v62 = vpack.c.bf16 %v4141_v33, %v4137_v26  ;;  %v4143_v37 = vadd.f32 %v4142_v32, %v4092_v34  ;;  %v4096_v5 = vadd.f32 %v4095_v35, %v1792_v29 }
 0x4ce   : > { %v4097_v7 = vpop.f32.mrf.mxu0  ;;  %v4148_v53 = vpop.f32.mrf.mxu1 }
 0x4cf   : > { %v21090_v6 = vpack.c.bf16 %v4143_v37, %v4139_v61  ;;  %v21092_v54 = vadd.f32 %v4146_v38, %v4096_v5  ;;  %v4098_v13 = vadd.f32 %v4097_v7, %v1796_v4 }
 0x4d0   : > { %v4099_v41 = vpop.f32.mrf.mxu0  ;;  %v4150_v45 = vpop.f32.mrf.mxu1 }
 0x4d1   : > { %v21094_v63 = vadd.f32 %v4148_v53, %v4098_v13  ;;  %v21108_v53 = vrot.slane %v1762_v43, %v20594_v0 }
 0x4d2   : > { %v4100_v46 = vpop.f32.mrf.mxu0  ;;  %v4151_v8 = vpop.f32.mrf.mxu1 }
 0x505   : > { %v4187_v15 = vpop.f32.mrf.mxu0  ;;  %v4238_v17 = vpop.f32.mrf.mxu1 }
 0x506   : > { %v4188_v10 = vadd.f32 %v4187_v15, %v1800_v50 }
 0x507   : > { %v4189_v49 = vpop.f32.mrf.mxu0  ;;  %v4240_v18 = vpop.f32.mrf.mxu1 }
 0x508   : > { %v4190_v23 = vadd.f32 %v4189_v49, %v1804_v44  ;;  %v4239_v32 = vadd.f32 %v4238_v17, %v4188_v10  ;;  %v1808_v17 = vrot.slane %v1762_v43, %v20600_v2 }
 0x509   : > { %v4191_v47 = vpop.f32.mrf.mxu0  ;;  %v4242_v48 = vpop.f32.mrf.mxu1 }
 0x50a   : > { %v4241_v51 = vadd.f32 %v4240_v18, %v4190_v23  ;;  %v4192_v40 = vadd.f32 %v4191_v47, %v1800_v50 }
 0x50b   : > { %v4193_v52 = vpop.f32.mrf.mxu0  ;;  %v4244_v3 = vpop.f32.mrf.mxu1 }
 0x50c   : > { %v4194_v29 = vadd.f32 %v4193_v52, %v1804_v44  ;;  %v4243_v31 = vadd.f32 %v4242_v48, %v4192_v40 }
 0x50d   : > { %v4197_v4 = vpop.f32.mrf.mxu0  ;;  %v4248_v9 = vpop.f32.mrf.mxu1 }
 0x50e   : > { %v4245_v19 = vadd.f32 %v4244_v3, %v4194_v29  ;;  %v4198_v20 = vadd.f32 %v4197_v4, %v1800_v50  ;;  %v4361_v38 = vpack.c.bf16 %v4243_v31, %v4239_v32 }
 0x50f   : > { %v4199_v21 = vpop.f32.mrf.mxu0  ;;  %v4250_v26 = vpop.f32.mrf.mxu1 }
 0x510   : > { %v21099_v28 = vpack.c.bf16 %v4245_v19, %v4241_v51  ;;  %v4249_v30 = vadd.f32 %v4248_v9, %v4198_v20  ;;  %v4200_v61 = vadd.f32 %v4199_v21, %v1804_v44 }
 0x511   : > { %v4201_v56 = vpop.f32.mrf.mxu0  ;;  %v4252_v59 = vpop.f32.mrf.mxu1 }
 0x512   : > { %v4362_v33 = vpack.c.bf16 %v4249_v30, %v4249_v30  ;;  %v4251_v5 = vadd.f32 %v4250_v26, %v4200_v61  ;;  %v21125_v56 = vpack.c.bf16 %v21094_v63, %v21094_v63 }
 0x513   : > { %v4202_v34 = vpop.f32.mrf.mxu0  ;;  %v4253_v35 = vpop.f32.mrf.mxu1 }
 0x514   : > { %v4462_v37 = vsel %vm4460_vm7, %v4362_v33, 0  ;;  %17230 = vmatprep.subr.msk.bf16.mxu1 %vm4460_vm7, %v4362_v33  ;;  %v21103_v7 = vpack.c.bf16 %v4251_v5, %v4251_v5  ;;  %v21131_v33 = vld [vmem:[%s23820_s24] sm:$0xff] }
 0x515   : > { %17129 = vmatpush3.bf16.msra.mxu1 %v4462_v37  ;;  %v21136_v37 = vld [vmem:[%s23820_s24 + $0x10] sm:$0x3] }
 0x516   : > { %17130 = vmatprep.subr.bf16.mxu1 %v4361_v38 }
 0x519   : > { %17131 = vmatpush3.bf16.msra.mxu1 %v4361_v38 }
 0x51a   : > { %17231 = vmatprep.subr.msk.bf16.mxu1 %vm4460_vm7, %v21103_v7 }
 0x546   : > { %v4289_v13 = vpop.f32.mrf.mxu0  ;;  %v4340_v41 = vpop.f32.mrf.mxu1 }
 0x547   : > { %v4290_v51 = vadd.f32 %v4289_v13, %v1808_v17  ;;  %v21142_v13 = vld [vmem:[%s23820_s24 + $0x8] sm:$0xff] }
 0x548   : > { %v4291_v45 = vpop.f32.mrf.mxu0  ;;  %v4342_v46 = vpop.f32.mrf.mxu1 }
 0x549   : > { %v4292_v8 = vadd.f32 %v4291_v45, %v21108_v53  ;;  %v4341_v43 = vadd.f32 %v4340_v41, %v4290_v51 }
 0x54a   : > { %v4293_v44 = vpop.f32.mrf.mxu0  ;;  %v4344_v15 = vpop.f32.mrf.mxu1 }
 0x54b   : > { %v21112_v49 = vadd.f32 %v4342_v46, %v4292_v8  ;;  %v4294_v47 = vadd.f32 %v4293_v44, %v1808_v17 }
 0x54c   : > { %v21114_v18 = vpop.f32.mrf.mxu0  ;;  %v21116_v23 = vpop.f32.mrf.mxu1 }
 0x54d   : > { %v4345_v29 = vadd.f32 %v4344_v15, %v4294_v47 }
 0x54e   : > { %v4299_v48 = vpop.f32.mrf.mxu0  ;;  %v4350_v50 = vpop.f32.mrf.mxu1 }
 0x54f   : > { %v4300_v52 = vadd.f32 %v4299_v48, %v1808_v17  ;;  %v4668_v30 = vpack.c.bf16 %v4345_v29, %v4341_v43 }
 0x550   : > { %v4301_v3 = vpop.f32.mrf.mxu0  ;;  %v4352_v40 = vpop.f32.mrf.mxu1 }
 0x551   : > { %v4351_v4 = vadd.f32 %v4350_v50, %v4300_v52  ;;  %v4302_v9 = vadd.f32 %v4301_v3, %v21108_v53 }
 0x552   : > { %v4303_v10 = vpop.f32.mrf.mxu0  ;;  %v4354_v19 = vpop.f32.mrf.mxu1 }
 0x553   : > { %v4669_v20 = vpack.c.bf16 %v4351_v4, %v4351_v4  ;;  %v21119_v21 = vadd.f32 %v4352_v40, %v4302_v9 }
 0x554   : > { %v4304_v26 = vpop.f32.mrf.mxu0  ;;  %v4355_v31 = vpop.f32.mrf.mxu1 }
 0x555   : > { %v4766_v61 = vsel %vm4460_vm7, %v4669_v20, 0  ;;  %17232 = vmatprep.subr.msk.bf16.mxu0 %vm4460_vm7, %v4669_v20 }
 0x556   : > { %17161 = vmatpush3.bf16.msra.mxu0 %v4766_v61 }
 0x557   : > { %17162 = vmatprep.subr.bf16.mxu0 %v4668_v30 }
 0x55a   : > { %17163 = vmatpush3.bf16.msra.mxu0 %v4668_v30 }
 0x55b   : > { %17168 = vmatprep.subr.bf16.mxu0 %v21125_v56 }
 0x562   : > { %v17126_v59 = vpop.f32.mrf.mxu0 }
 0x563   : > { %v4413_v34 = vmul.f32 0.088388346, %v17126_v59 }
 0x564   : > { %v4397_v32 = vpop.f32.mrf.mxu0 }
 0x565   : > { %v4411_v35 = vmul.f32 0.088388346, %v4397_v32  ;;  %v4416_v46 = vadd.f32 %v4413_v34, %v21136_v37 }
 0x566   : > { %v17127_v38 = vpop.f32.mrf.mxu0 }
 0x567   : > { %v4414_v63 = vadd.f32 %v4411_v35, %v21131_v33  ;;  %v4425_v44 = vsel %vm4424_vm9, %v4416_v46, -inf }
 0x568   : > { %v4400_v5 = vpop.f32.mrf.mxu0 }
 0x569   : > { %v4412_v41 = vmul.f32 0.088388346, %v4400_v5  ;;  %v4418_v45 = vsel %vm4417_vm8, %v4414_v63, -inf }
 0x56a   : > { %4419 = vmax.xlane.f32.xlu0 %v4418_v45 }
 0x56b   : > { %v4415_v8 = vadd.f32 %v4412_v41, %v21142_v13 }
 0x56d   : > { %v4421_v15 = vsel %vm4417_vm8, %v4415_v8, -inf }
 0x56e   : > { %4426 = vmax.xlane.f32.xlu0 %v4425_v44  ;;  %4422 = vmax.xlane.f32.xlu1 %v4421_v15 }
 0x572   : > { %v17142_v17 = vpop.f32.mrf.mxu0 }
 0x573   : > { %v4568_v48 = vmul.f32 0.088388346, %v17142_v17 }
 0x574   : > { %v4552_v47 = vpop.f32.mrf.mxu0 }
 0x575   : > { %v4566_v50 = vmul.f32 0.088388346, %v4552_v47  ;;  %v4571_v4 = vadd.f32 %v4568_v48, %v21136_v37 }
 0x576   : > { %v17143_v51 = vpop.f32.mrf.mxu0 }
 0x577   : > { %v4569_v52 = vadd.f32 %v4566_v50, %v21131_v33  ;;  %v4578_v19 = vsel %vm4424_vm9, %v4571_v4, -inf }
 0x578   : > { %v4555_v3 = vpop.f32.mrf.mxu0 }
 0x579   : > { %v4567_v40 = vmul.f32 0.088388346, %v4555_v3  ;;  %v4572_v29 = vsel %vm4417_vm8, %v4569_v52, -inf }
 0x57a   : > { %4573 = vmax.xlane.f32.xlu1 %v4572_v29 }
 0x57b   : > { %v4570_v9 = vadd.f32 %v4567_v40, %v21142_v13 }
 0x57d   : > { %v4575_v10 = vsel %vm4417_vm8, %v4570_v9, -inf }
 0x57e   : > { %4576 = vmax.xlane.f32.xlu0 %v4575_v10  ;;  %4579 = vmax.xlane.f32.xlu1 %v4578_v19 }
 0x5f3   : > { %v4420_v43 = vpop.xlane.xlu0 %4419 }
 0x5f4   : > { %v4428_v20 = vsub.f32 %v4414_v63, %v4420_v43 }
 0x5f6   : > { %v4431_v26 = vmul.f32 1.442695, %v4428_v20 }
 0x5f7   : > { %v4427_v31 = vpop.xlane.xlu0 %4426  ;;  %v4423_v30 = vpop.xlane.xlu1 %4422 }
 0x5f8   : > { %18948 = vpow2.f32 %v4431_v26  ;;  %v4430_v61 = vsub.f32 %v4416_v46, %v4427_v31  ;;  %v4429_v59 = vsub.f32 %v4415_v8, %v4423_v30 }
 0x5fa   : > { %v4435_v32 = vmul.f32 1.442695, %v4430_v61  ;;  %v4433_v34 = vmul.f32 1.442695, %v4429_v59 }
 0x5fc   : > { %18950 = vpow2.f32 %v4435_v32 }
 0x5fd   : > { %18952 = vpow2.f32 %v4433_v34 }
 0x603   : > { %v4574_v35 = vpop.xlane.xlu1 %4573 }
 0x604   : > { %v4581_v38 = vsub.f32 %v4569_v52, %v4574_v35 }
 0x605   : > { %v18949_v5 = vpop.eup %18948 }
 0x606   : > { %v4584_v41 = vmul.f32 1.442695, %v4581_v38  ;;  %v4437_v45 = vsel %vm4417_vm8, %v18949_v5, 0.0 }
 0x607   : > { %4438 = vadd.xlane.f32.xlu0 %v4437_v45  ;;  %v4577_v44 = vpop.xlane.xlu0 %4576  ;;  %v4580_v15 = vpop.xlane.xlu1 %4579  ;;  %v4614_v45 = vsel %vm4460_vm7, %v21103_v7, 0 }
 0x608   : > { %18954 = vpow2.f32 %v4584_v41  ;;  %v4582_v63 = vsub.f32 %v4570_v9, %v4577_v44  ;;  %v4583_v17 = vsub.f32 %v4571_v4, %v4580_v15  ;;  %v4667_v44 = vpack.c.bf16 %v21092_v54, %v21092_v54 }
 0x609   : > { %v18951_v47 = vpop.eup %18950  ;;  %v4296_v54 = vadd.f32 %v21114_v18, %v21108_v53 }
 0x60a   : > { %v18953_v48 = vpop.eup %18952  ;;  %v4586_v46 = vmul.f32 1.442695, %v4582_v63  ;;  %v4588_v8 = vmul.f32 1.442695, %v4583_v17  ;;  %v4443_v50 = vsel %vm4424_vm9, %v18951_v47, 0.0 }
 0x60b   : > { %4444 = vadd.xlane.f32.xlu0 %v4443_v50  ;;  %v4440_v51 = vsel %vm4417_vm8, %v18953_v48, 0.0  ;;  %v4347_v7 = vadd.f32 %v21116_v23, %v4296_v54  ;;  %v4665_v50 = vpack.c.bf16 %v20992_v36, %v20992_v36  ;;  %v3888_v54 = vadd.f32 %v20978_v22, %v20961_v42 }
 0x60c   : > { %18956 = vpow2.f32 %v4586_v46  ;;  %4441 = vadd.xlane.f32.xlu1 %v4440_v51  ;;  %v4817_v42 = vpack.c.bf16 %v20999_v16, %v20999_v16 }
 0x60d   : > { %18958 = vpow2.f32 %v4588_v8  ;;  %v4820_v58 = vpack.c.bf16 %v4347_v7, %v21112_v49 }
 0x615   : > { %v18955_v52 = vpop.eup %18954 }
 0x616   : > { %v4590_v3 = vsel %vm4417_vm8, %v18955_v52, 0.0 }
 0x617   : > { %4591 = vadd.xlane.f32.xlu1 %v4590_v3 }
 0x619   : > { %v18957_v40 = vpop.eup %18956 }
 0x61a   : > { %v18959_v29 = vpop.eup %18958  ;;  %v4593_v4 = vsel %vm4417_vm8, %v18957_v40, 0.0 }
 0x61b   : > { %4594 = vadd.xlane.f32.xlu0 %v4593_v4  ;;  %v4596_v9 = vsel %vm4424_vm9, %v18959_v29, 0.0 }
 0x61c   : > { %4597 = vadd.xlane.f32.xlu1 %v4596_v9 }
 0x690   : > { %v4439_v10 = vpop.xlane.xlu0 %4438 }
 0x691   : > { %18960 = vrcp.f32 %v4439_v10 }
 0x694   : > { %v4445_v19 = vpop.xlane.xlu0 %4444 }
 0x695   : > { %18962 = vrcp.f32 %v4445_v19  ;;  %v4442_v43 = vpop.xlane.xlu1 %4441 }
 0x696   : > { %18964 = vrcp.f32 %v4442_v43 }
 0x69e   : > { %v18961_v26 = vpop.eup %18960 }
 0x69f   : > { %v4449_v32 = vmul.f32 %v18961_v26, %v18949_v5 }
 0x6a0   : > { %v4592_v20 = vpop.xlane.xlu1 %4591 }
 0x6a1   : > { %18966 = vrcp.f32 %v4592_v20 }
 0x6a2   : > { %v18963_v31 = vpop.eup %18962 }
 0x6a3   : > { %v18965_v30 = vpop.eup %18964  ;;  %v4451_v61 = vmul.f32 %v18963_v31, %v18951_v47 }
 0x6a4   : > { %v4595_v59 = vpop.xlane.xlu0 %4594  ;;  %v4450_v34 = vmul.f32 %v18965_v30, %v18953_v48 }
 0x6a5   : > { %v4453_v35 = vpack.c.bf16 %v4451_v61, %v4451_v61  ;;  %18968 = vrcp.f32 %v4595_v59  ;;  %v4598_v38 = vpop.xlane.xlu1 %4597 }
 0x6a6   : > { %18970 = vrcp.f32 %v4598_v38  ;;  %v4452_v41 = vpack.c.bf16 %v4450_v34, %v4449_v32 }
 0x6a8   : > { %17132 = vmatprep.mubr.msk.bf16.mxu1 %vm4417_vm8, %v4452_v41 }
 0x6a9   : > { %17133 = vmatmul.mubr.msk.bf16.vlgmr.msra.gmra.mxu1 %vm4417_vm8, %v4453_v35 }
 0x6aa   : > { %17145 = vmatpush3.bf16.msra.mxu1 %v4614_v45 }
 0x6ab   : > { %17146 = vmatprep.subr.bf16.mxu1 %v21099_v28 }
 0x6ae   : > { %17147 = vmatpush3.bf16.msra.mxu1 %v21099_v28  ;;  %v18967_v5 = vpop.eup %18966  ;;  %v4821_v28 = vpack.c.bf16 %v21119_v21, %v21119_v21 }
 0x6af   : > { %17152 = vmatprep.subr.bf16.mxu1 %v4667_v44  ;;  %v4602_v17 = vmul.f32 %v18967_v5, %v18955_v52 }
 0x6b0   : > { %v4918_v27 = vsel %vm4460_vm7, %v4821_v28, 0 }
 0x6b2   : > { %v18969_v15 = vpop.eup %18968 }
 0x6b3   : > { %v18971_v63 = vpop.eup %18970  ;;  %v4603_v47 = vmul.f32 %v18969_v15, %v18957_v40 }
 0x6b4   : > { %v4604_v48 = vmul.f32 %v18971_v63, %v18959_v29 }
 0x6b5   : > { %v4605_v46 = vpack.c.bf16 %v4603_v47, %v4602_v17 }
 0x6b6   : > { %v4606_v8 = vpack.c.bf16 %v4604_v48, %v4604_v48 }
 0x6b7   : > { %17148 = vmatprep.mubr.msk.bf16.mxu1 %vm4417_vm8, %v4605_v46 }
 0x6b8   : > { %17149 = vmatmul.mubr.msk.bf16.vlgmr.msra.gmra.mxu1 %vm4417_vm8, %v4606_v8 }
 0x6b9   : > { %17153 = vmatpush3.bf16.xpose.msra.mxu1 %v4667_v44  ;;  %17156 = vmatprep.mubr.bf16.mxu1 %v4664_v57 }
 0x6ba   : > { %17154 = vmatprep.subr.bf16.mxu1 %v21088_v62 }
 0x6c1   : > { %17155 = vmatpush3.bf16.xpose.msra.mxu1 %v21088_v62 }
 0x6c2   : > { %17233 = vmatprep.subr.msk.bf16.mxu1 %vm4460_vm7, %v4821_v28 }
 0x6c8   : > { %17157 = vmatmul.mubr.bf16.vlgmr.msra.gmra.mxu1 %v4665_v50 }
 0x6c9   : > { %17177 = vmatpush3.bf16.msra.mxu1 %v4918_v27  ;;  %v3939_v27 = vadd.f32 %v20980_v24, %v3888_v54 }
 0x6ca   : > { %17178 = vmatprep.subr.bf16.mxu1 %v4820_v58 }
 0x6cd   : > { %17179 = vmatpush3.bf16.msra.mxu1 %v4820_v58 }
 0x769   : > { %v21186_v57 = vpop.f32.mrf.mxu1 }
 0x76b   : > { %v21188_v53 = vpop.f32.mrf.mxu1 }
 0x76d   : > { %v17135_v62 = vpop.f32.mrf.mxu1 }
 0x76f   : > { %v21190_v18 = vpop.f32.mrf.mxu1 }
 0x778   : > { %v21192_v21 = vpop.f32.mrf.mxu1 }
 0x77a   : > { %v21194_v23 = vpop.f32.mrf.mxu1 }
 0x77c   : > { %v17151_v36 = vpop.f32.mrf.mxu1 }
 0x77e   : > { %v21196_v51 = vpop.f32.mrf.mxu1 }
 0x788   : > { %v17158_v49 = vpop.f32.mrf.mxu1 }
 0x789   : > { %v4720_v3 = vmul.f32 0.088388346, %v17158_v49 }
 0x78a   : > { %v4704_v52 = vpop.f32.mrf.mxu1 }
 0x78b   : > { %v4718_v40 = vmul.f32 0.088388346, %v4704_v52  ;;  %v4723_v43 = vadd.f32 %v4720_v3, %v21136_v37  ;;  %v4816_v3 = vpack.c.bf16 %v3939_v27, %v20974_v11 }
 0x78c   : > { %v17159_v29 = vpop.f32.mrf.mxu1 }
 0x78d   : > { %v4721_v4 = vadd.f32 %v4718_v40, %v21131_v33  ;;  %v4730_v26 = vsel %vm4424_vm9, %v4723_v43, -inf }
 0x78e   : > { %v4707_v9 = vpop.f32.mrf.mxu1 }
 0x78f   : > { %v4719_v10 = vmul.f32 0.088388346, %v4707_v9  ;;  %v4724_v19 = vsel %vm4417_vm8, %v4721_v4, -inf }
 0x790   : > { %4725 = vmax.xlane.f32.xlu0 %v4724_v19 }
 0x791   : > { %v4722_v20 = vadd.f32 %v4719_v10, %v21142_v13 }
 0x793   : > { %v4727_v31 = vsel %vm4417_vm8, %v4722_v20, -inf }
 0x794   : > { %4731 = vmax.xlane.f32.xlu0 %v4730_v26  ;;  %4728 = vmax.xlane.f32.xlu1 %v4727_v31 }
 0x819   : > { %v4726_v30 = vpop.xlane.xlu0 %4725 }
 0x81a   : > { %v4733_v61 = vsub.f32 %v4721_v4, %v4726_v30 }
 0x81c   : > { %v4736_v59 = vmul.f32 1.442695, %v4733_v61 }
 0x81d   : > { %v4732_v32 = vpop.xlane.xlu0 %4731  ;;  %v4729_v34 = vpop.xlane.xlu1 %4728 }
 0x81e   : > { %18972 = vpow2.f32 %v4736_v59  ;;  %v4735_v35 = vsub.f32 %v4723_v43, %v4732_v32  ;;  %v4734_v38 = vsub.f32 %v4722_v20, %v4729_v34 }
 0x820   : > { %v4740_v41 = vmul.f32 1.442695, %v4735_v35  ;;  %v4738_v45 = vmul.f32 1.442695, %v4734_v38 }
 0x822   : > { %18974 = vpow2.f32 %v4740_v41 }
 0x823   : > { %18976 = vpow2.f32 %v4738_v45 }
 0x82b   : > { %v18973_v44 = vpop.eup %18972 }
 0x82c   : > { %v4742_v5 = vsel %vm4417_vm8, %v18973_v44, 0.0 }
 0x82d   : > { %4743 = vadd.xlane.f32.xlu1 %v4742_v5 }
 0x82f   : > { %v18975_v15 = vpop.eup %18974 }
 0x830   : > { %v18977_v63 = vpop.eup %18976  ;;  %v4748_v17 = vsel %vm4424_vm9, %v18975_v15, 0.0 }
 0x831   : > { %4749 = vadd.xlane.f32.xlu1 %v4748_v17  ;;  %v4745_v47 = vsel %vm4417_vm8, %v18977_v63, 0.0  ;;  %v17978_v17 = vld [vmem:[%s20332_s1 + $0xe4] ss:$16 sps:$4 sm:$0xff]  }
 0x832   : > { %4746 = vadd.xlane.f32.xlu0 %v4745_v47  ;;  %5766 = vmatprep.subr.bf16.mxu1 %v17978_v17  ;;  %v18093_v17 = vld [vmem:[%s20332_s1 + $0x200] ss:$16 sps:$4 sm:$0xff]  }
 0x8b6   : > { %v4744_v48 = vpop.xlane.xlu1 %4743 }
 0x8b7   : > { %18978 = vrcp.f32 %v4744_v48 }
 0x8ba   : > { %v4750_v46 = vpop.xlane.xlu1 %4749 }
 0x8bb   : > { %v4747_v8 = vpop.xlane.xlu0 %4746  ;;  %18980 = vrcp.f32 %v4750_v46 }
 0x8bc   : > { %18982 = vrcp.f32 %v4747_v8 }
 0x8c4   : > { %v18979_v28 = vpop.eup %18978 }
 0x8c5   : > { %v4754_v62 = vmul.f32 %v18979_v28, %v18973_v44 }
 0x8c8   : > { %v18981_v7 = vpop.eup %18980 }
 0x8c9   : > { %v18983_v50 = vpop.eup %18982  ;;  %v4756_v58 = vmul.f32 %v18981_v7, %v18975_v15 }
 0x8ca   : > { %v4755_v36 = vmul.f32 %v18983_v50, %v18977_v63 }
 0x8cb   : > { %v4758_v49 = vpack.c.bf16 %v4756_v58, %v4756_v58 }
 0x8cc   : > { %v4757_v52 = vpack.c.bf16 %v4755_v36, %v4754_v62  ;;  %v17976_v36 = vld [vmem:[%s20332_s1 + $0xe0] ss:$16 sps:$4 sm:$0xff]  }
 0x8ce   : > { %17164 = vmatprep.mubr.msk.bf16.mxu0 %vm4417_vm8, %v4757_v52  ;;  %v21238_v52 = vpack.c.bf16 %v21196_v51, %v21194_v23  ;;  %v17987_v23 = vld [vmem:[%s20332_s1 + $0x84] ss:$16 sps:$4 sm:$0xff]   ;;  %v18072_v51 = vld [vmem:[%s20332_s1 + $0x2e0] ss:$16 sps:$4 sm:$0xff]  }
 0x8cf   : > { %17165 = vmatmul.mubr.msk.bf16.vlgmr.msra.gmra.mxu0 %vm4417_vm8, %v4758_v49  ;;  %v17981_v49 = vld [vmem:[%s20332_s1 + $0xc4] ss:$16 sps:$4 sm:$0xff]  }
 0x8d0   : > { %17169 = vmatpush3.bf16.xpose.msra.mxu0 %v21125_v56  ;;  %17172 = vmatprep.mubr.bf16.mxu0 %v4816_v3  ;;  %v17979_v3 = vld [vmem:[%s20332_s1 + $0xc0] ss:$16 sps:$4 sm:$0xff]  }
 0x8d1   : > { %17170 = vmatprep.subr.bf16.mxu0 %v21090_v6 }
 0x8d8   : > { %17171 = vmatpush3.bf16.xpose.msra.mxu0 %v21090_v6 }
 0x8df   : > { %17173 = vmatmul.mubr.bf16.vlgmr.msra.gmra.mxu0 %v4817_v42  ;;  %v17984_v42 = vld [vmem:[%s20332_s1 + $0xa4] ss:$16 sps:$4 sm:$0xff]  }
 0x98f   : > { %v21218_v22 = vpop.f32.mrf.mxu0 }
 0x991   : > { %v21220_v24 = vpop.f32.mrf.mxu0 }
 0x993   : > { %v17167_v11 = vpop.f32.mrf.mxu0 }
 0x994   : > { %v17982_v11 = vld [vmem:[%s20332_s1 + $0xa0] ss:$16 sps:$4 sm:$0xff]  }
 0x995   : > { %v21222_v40 = vpop.f32.mrf.mxu0 }
 0x99f   : > { %v17174_v29 = vpop.f32.mrf.mxu0 }
 0x9a0   : > { %v4872_v9 = vmul.f32 0.088388346, %v17174_v29  ;;  %v18074_v29 = vld [vmem:[%s20332_s1 + $0x2e4] ss:$16 sps:$4 sm:$0xff]  }
 0x9a1   : > { %v4856_v4 = vpop.f32.mrf.mxu0  ;;  %5817 = vmatprep.subr.bf16.mxu0 %v18074_v29  ;;  %v18023_v29 = vld [vmem:[%s20332_s1 + $0x104] ss:$16 sps:$4 sm:$0xff]  }
 0x9a2   : > { %v4870_v56 = vmul.f32 0.088388346, %v4856_v4  ;;  %v4875_v16 = vadd.f32 %v4872_v9, %v21136_v37  ;;  %v17985_v4 = vld [vmem:[%s20332_s1 + $0x80] ss:$16 sps:$4 sm:$0xff]   ;;  %v18077_v9 = vld [vmem:[%s20332_s1 + $0x2c4] ss:$16 sps:$4 sm:$0xff]   ;;  %5818 = vmatpush1.bf16.msra.mxu0 %v18072_v51 }
 0x9a3   : > { %v17175_v10 = vpop.f32.mrf.mxu0  ;;  %5819 = vmatprep.subr.bf16.mxu0 %v18077_v9  ;;  %v18018_v51 = vld [vmem:[%s20332_s1 + $0x120] ss:$16 sps:$4 sm:$0xff]   ;;  %v18113_v9 = vld [vmem:[%s20332_s1 + $0x344] ss:$16 sps:$4 sm:$0xff]  }
 0x9a4   : > { %v4873_v19 = vadd.f32 %v4870_v56, %v21131_v33  ;;  %v4882_v31 = vsel %vm4424_vm9, %v4875_v16, -inf  ;;  %v17990_v56 = vld [vmem:[%s20332_s1 + $0x64] ss:$16 sps:$4 sm:$0xff]   ;;  %v18075_v10 = vld [vmem:[%s20332_s1 + $0x2c0] ss:$16 sps:$4 sm:$0xff]  }
 0x9a5   : > { %v4859_v43 = vpop.f32.mrf.mxu0 }
 0x9a6   : > { %v4871_v6 = vmul.f32 0.088388346, %v4859_v43  ;;  %v4876_v20 = vsel %vm4417_vm8, %v4873_v19, -inf  ;;  %v17988_v43 = vld [vmem:[%s20332_s1 + $0x60] ss:$16 sps:$4 sm:$0xff]   ;;  %5820 = vmatpush1.bf16.msra.mxu0 %v18075_v10 }
 0x9a7   : > { %4877 = vmax.xlane.f32.xlu0 %v4876_v20  ;;  %v18078_v20 = vld [vmem:[%s20332_s1 + $0x2a0] ss:$16 sps:$4 sm:$0xff]   ;;  %v18026_v10 = vld [vmem:[%s20332_s1 + $0xec] ss:$16 sps:$4 sm:$0xff]  }
 0x9a8   : > { %v4874_v26 = vadd.f32 %v4871_v6, %v21142_v13  ;;  %v17993_v6 = vld [vmem:[%s20332_s1 + $0x44] ss:$16 sps:$4 sm:$0xff]  }
 0x9aa   : > { %v4879_v30 = vsel %vm4417_vm8, %v4874_v26, -inf }
 0x9ab   : > { %4883 = vmax.xlane.f32.xlu0 %v4882_v31  ;;  %4880 = vmax.xlane.f32.xlu1 %v4879_v30  ;;  %v17996_v31 = vld [vmem:[%s20332_s1 + $0x24] ss:$16 sps:$4 sm:$0xff]   ;;  %v18081_v30 = vld [vmem:[%s20332_s1 + $0x280] ss:$16 sps:$4 sm:$0xff]  }
 0xa30   : > { %v4878_v61 = vpop.xlane.xlu0 %4877 }
 0xa31   : > { %v4885_v59 = vsub.f32 %v4873_v19, %v4878_v61  ;;  %v18080_v19 = vld [vmem:[%s20332_s1 + $0x2a4] ss:$16 sps:$4 sm:$0xff]  }
 0xa32   : > { %5821 = vmatprep.subr.bf16.mxu0 %v18080_v19  ;;  %v18086_v61 = vld [vmem:[%s20332_s1 + $0x264] ss:$16 sps:$4 sm:$0xff]   ;;  %v18111_v19 = vld [vmem:[%s20332_s1 + $0x340] ss:$16 sps:$4 sm:$0xff]  }
 0xa33   : > { %v4888_v32 = vmul.f32 1.442695, %v4885_v59  ;;  %5822 = vmatpush1.bf16.msra.mxu0 %v18078_v20  ;;  %v17994_v59 = vld [vmem:[%s20332_s1 + $0x20] ss:$16 sps:$4 sm:$0xff]   ;;  %v18029_v20 = vld [vmem:[%s20332_s1 + $0xcc] ss:$16 sps:$4 sm:$0xff]  }
 0xa34   : > { %v4884_v34 = vpop.xlane.xlu0 %4883  ;;  %v4881_v33 = vpop.xlane.xlu1 %4880 }
 0xa35   : > { %18984 = vpow2.f32 %v4888_v32  ;;  %v4887_v35 = vsub.f32 %v4875_v16, %v4884_v34  ;;  %v4886_v38 = vsub.f32 %v4874_v26, %v4881_v33  ;;  %v18083_v16 = vld [vmem:[%s20332_s1 + $0x284] ss:$16 sps:$4 sm:$0xff]   ;;  %v17991_v26 = vld [vmem:[%s20332_s1 + $0x40] ss:$16 sps:$4 sm:$0xff]  }
 0xa36   : > { %5823 = vmatprep.subr.bf16.mxu0 %v18083_v16  ;;  %v17999_v32 = vld [vmem:[%s20332_s1 + $0x4] ss:$16 sps:$4 sm:$0xff]   ;;  %v18084_v34 = vld [vmem:[%s20332_s1 + $0x260] ss:$16 sps:$4 sm:$0xff]   ;;  %v21309_v16 = vpack.c.bf16 %v21192_v21, %v21192_v21 }
 0xa37   : > { %v4892_v41 = vmul.f32 1.442695, %v4887_v35  ;;  %v4890_v37 = vmul.f32 1.442695, %v4886_v38  ;;  %5824 = vmatpush1.bf16.msra.mxu0 %v18081_v30  ;;  %v18089_v33 = vld [vmem:[%s20332_s1 + $0x244] ss:$16 sps:$4 sm:$0xff]  }
 0xa38   : > { %5825 = vmatprep.subr.bf16.mxu0 %v18086_v61  ;;  %v17997_v35 = vld [vmem:[%s20332_s1] ss:$16 sps:$4 sm:$0xff]   ;;  %v18002_v38 = vld [vmem:[%s20332_s1 + $0x1e4] ss:$16 sps:$4 sm:$0xff]   ;;  %v18030_v61 = vld [vmem:[%s20332_s1 + $0xa8] ss:$16 sps:$4 sm:$0xff]  }
 0xa39   : > { %18986 = vpow2.f32 %v4892_v41  ;;  %v18087_v41 = vld [vmem:[%s20332_s1 + $0x240] ss:$16 sps:$4 sm:$0xff]   ;;  %v18119_v21 = vld [vmem:[%s20332_s1 + $0x304] ss:$16 sps:$4 sm:$0xff]  }
 0xa3a   : > { %18988 = vpow2.f32 %v4890_v37  ;;  %v18092_v37 = vld [vmem:[%s20332_s1 + $0x224] ss:$16 sps:$4 sm:$0xff]   ;;  %v18117_v30 = vld [vmem:[%s20332_s1 + $0x300] ss:$16 sps:$4 sm:$0xff]  }
 0xa3b   : > { %5826 = vmatpush1.bf16.msra.mxu0 %v18084_v34  ;;  %v18122_v34 = vld [vmem:[%s20332_s1 + $0x2ec] ss:$16 sps:$4 sm:$0xff]  }
 0xa3c   : > { %5827 = vmatprep.subr.bf16.mxu0 %v18089_v33  ;;  %v18033_v33 = vld [vmem:[%s20332_s1 + $0x88] ss:$16 sps:$4 sm:$0xff]  }
 0xa3f   : > { %5828 = vmatpush1.bf16.msra.mxu0 %v18087_v41  ;;  %v18039_v41 = vld [vmem:[%s20332_s1 + $0x48] ss:$16 sps:$4 sm:$0xff]  }
 0xa40   : > { %5829 = vmatprep.subr.bf16.mxu0 %v18092_v37  ;;  %v18044_v37 = vld [vmem:[%s20332_s1 + $0x2c] ss:$16 sps:$4 sm:$0xff]  }
 0xa42   : > { %v18985_v13 = vpop.eup %18984 }
 0xa43   : > { %v4894_v45 = vsel %vm4417_vm8, %v18985_v13, 0.0 }
 0xa44   : > { %4895 = vadd.xlane.f32.xlu1 %v4894_v45  ;;  %v18005_v45 = vld [vmem:[%s20332_s1 + $0x1c4] ss:$16 sps:$4 sm:$0xff]  }
 0xa46   : > { %v18987_v44 = vpop.eup %18986 }
 0xa47   : > { %v18989_v5 = vpop.eup %18988  ;;  %v4900_v15 = vsel %vm4424_vm9, %v18987_v44, 0.0 }
 0xa48   : > { %4901 = vadd.xlane.f32.xlu1 %v4900_v15  ;;  %v4897_v63 = vsel %vm4417_vm8, %v18989_v5, 0.0  ;;  %v18003_v15 = vld [vmem:[%s20332_s1 + $0x1c0] ss:$16 sps:$4 sm:$0xff]  }
 0xa49   : > { %4898 = vadd.xlane.f32.xlu0 %v4897_v63  ;;  %v18008_v63 = vld [vmem:[%s20332_s1 + $0x1a4] ss:$16 sps:$4 sm:$0xff]  }
 0xacd   : > { %v4896_v47 = vpop.xlane.xlu1 %4895 }
 0xace   : > { %18990 = vrcp.f32 %v4896_v47  ;;  %v18098_v47 = vld [vmem:[%s20332_s1 + $0x3e4] ss:$16 sps:$4 sm:$0xff]  }
 0xad1   : > { %v4902_v48 = vpop.xlane.xlu1 %4901 }
 0xad2   : > { %v4899_v46 = vpop.xlane.xlu0 %4898  ;;  %18992 = vrcp.f32 %v4902_v48  ;;  %v18006_v48 = vld [vmem:[%s20332_s1 + $0x1a0] ss:$16 sps:$4 sm:$0xff]  }
 0xad3   : > { %18994 = vrcp.f32 %v4899_v46  ;;  %v18011_v46 = vld [vmem:[%s20332_s1 + $0x184] ss:$16 sps:$4 sm:$0xff]  }
 0xadb   : > { %v18991_v8 = vpop.eup %18990 }
 0xadc   : > { %v4906_v50 = vmul.f32 %v18991_v8, %v18985_v13  ;;  %v18000_v13 = vld [vmem:[%s20332_s1 + $0x1e0] ss:$16 sps:$4 sm:$0xff]  }
 0xadd   : > { %v18096_v8 = vld [vmem:[%s20332_s1 + $0x3e0] ss:$16 sps:$4 sm:$0xff]  }
 0xadf   : > { %v18993_v54 = vpop.eup %18992 }
 0xae0   : > { %v18995_v28 = vpop.eup %18994  ;;  %v4908_v7 = vmul.f32 %v18993_v54, %v18987_v44  ;;  %v18090_v44 = vld [vmem:[%s20332_s1 + $0x220] ss:$16 sps:$4 sm:$0xff]   ;;  %v18101_v54 = vld [vmem:[%s20332_s1 + $0x3c4] ss:$16 sps:$4 sm:$0xff]  }
 0xae1   : > { %v4907_v58 = vmul.f32 %v18995_v28, %v18989_v5  ;;  %v18095_v5 = vld [vmem:[%s20332_s1 + $0x204] ss:$16 sps:$4 sm:$0xff]   ;;  %5830 = vmatpush1.bf16.msra.mxu0 %v18090_v44  ;;  %v18009_v28 = vld [vmem:[%s20332_s1 + $0x180] ss:$16 sps:$4 sm:$0xff]   ;;  %v18050_v44 = vld [vmem:[%s20332_s1 + $0x1ec] ss:$16 sps:$4 sm:$0xff]  }
 0xae2   : > { %v4910_v27 = vpack.c.bf16 %v4908_v7, %v4908_v7  ;;  %5831 = vmatprep.subr.bf16.mxu0 %v18095_v5  ;;  %v18014_v7 = vld [vmem:[%s20332_s1 + $0x164] ss:$16 sps:$4 sm:$0xff]   ;;  %v18048_v5 = vld [vmem:[%s20332_s1 + $0x1e8] ss:$16 sps:$4 sm:$0xff]  }
 0xae3   : > { %v4909_v62 = vpack.c.bf16 %v4907_v58, %v4906_v50  ;;  %v18099_v50 = vld [vmem:[%s20332_s1 + $0x3c0] ss:$16 sps:$4 sm:$0xff]   ;;  %v18104_v58 = vld [vmem:[%s20332_s1 + $0x3a4] ss:$16 sps:$4 sm:$0xff]  }
 0xae5   : > { %17180 = vmatprep.mubr.msk.bf16.mxu1 %vm4417_vm8, %v4909_v62  ;;  %5832 = vmatpush1.bf16.msra.mxu0 %v18093_v17  ;;  %v18017_v62 = vld [vmem:[%s20332_s1 + $0x144] ss:$16 sps:$4 sm:$0xff]   ;;  %v18056_v17 = vld [vmem:[%s20332_s1 + $0x1ac] ss:$16 sps:$4 sm:$0xff]  }
 0xae6   : > { %17181 = vmatmul.mubr.msk.bf16.vlgmr.msra.gmra.mxu1 %vm4417_vm8, %v4910_v27  ;;  %5833 = vmatprep.subr.bf16.mxu0 %v18098_v47  ;;  %v18012_v27 = vld [vmem:[%s20332_s1 + $0x160] ss:$16 sps:$4 sm:$0xff]   ;;  %v18054_v47 = vld [vmem:[%s20332_s1 + $0x1a8] ss:$16 sps:$4 sm:$0xff]  }
 0xae7   : > { %5767 = vmatpush1.bf16.msra.mxu1 %v17976_v36  ;;  %5798 = vmatprep.mubr.bf16.mxu1 %v21238_v52  ;;  %v18102_v36 = vld [vmem:[%s20332_s1 + $0x3a0] ss:$16 sps:$4 sm:$0xff]  }
 0xae8   : > { %5768 = vmatprep.subr.bf16.mxu1 %v17981_v49  ;;  %v18107_v49 = vld [vmem:[%s20332_s1 + $0x384] ss:$16 sps:$4 sm:$0xff]  }
 0xae9   : > { %5834 = vmatpush2.bf16.msra.mxu0 %v18096_v8  ;;  %v18062_v8 = vld [vmem:[%s20332_s1 + $0x16c] ss:$16 sps:$4 sm:$0xff]  }
 0xaea   : > { %5835 = vmatprep.subr.bf16.mxu0 %v18101_v54  ;;  %v18060_v54 = vld [vmem:[%s20332_s1 + $0x168] ss:$16 sps:$4 sm:$0xff]  }
 0xaeb   : > { %5769 = vmatpush1.bf16.msra.mxu1 %v17979_v3  ;;  %v18015_v3 = vld [vmem:[%s20332_s1 + $0x140] ss:$16 sps:$4 sm:$0xff]  }
 0xaec   : > { %5770 = vmatprep.subr.bf16.mxu1 %v17984_v42  ;;  %v18020_v42 = vld [vmem:[%s20332_s1 + $0x124] ss:$16 sps:$4 sm:$0xff]  }
 0xaed   : > { %5836 = vmatpush2.bf16.msra.mxu0 %v18099_v50  ;;  %v18068_v50 = vld [vmem:[%s20332_s1 + $0x12c] ss:$16 sps:$4 sm:$0xff]  }
 0xaee   : > { %5837 = vmatprep.subr.bf16.mxu0 %v18104_v58  ;;  %v18066_v58 = vld [vmem:[%s20332_s1 + $0x128] ss:$16 sps:$4 sm:$0xff]  }
 0xaef   : > { %5771 = vmatpush1.bf16.msra.mxu1 %v17982_v11  ;;  %v18105_v11 = vld [vmem:[%s20332_s1 + $0x380] ss:$16 sps:$4 sm:$0xff]  }
 0xaf0   : > { %5772 = vmatprep.subr.bf16.mxu1 %v17987_v23  ;;  %v18110_v23 = vld [vmem:[%s20332_s1 + $0x364] ss:$16 sps:$4 sm:$0xff]  }
 0xaf1   : > { %5838 = vmatpush2.bf16.msra.mxu0 %v18102_v36 }
 0xaf2   : > { %5839 = vmatprep.subr.bf16.mxu0 %v18107_v49 }
 0xaf3   : > { %5773 = vmatpush1.bf16.msra.mxu1 %v17985_v4  ;;  %v18108_v4 = vld [vmem:[%s20332_s1 + $0x360] ss:$16 sps:$4 sm:$0xff]  }
 0xaf4   : > { %5774 = vmatprep.subr.bf16.mxu1 %v17990_v56  ;;  %v18021_v56 = vld [vmem:[%s20332_s1 + $0x100] ss:$16 sps:$4 sm:$0xff]  }
 0xaf5   : > { %5840 = vmatpush2.bf16.msra.mxu0 %v18105_v11 }
 0xaf6   : > { %5841 = vmatprep.subr.bf16.mxu0 %v18110_v23  ;;  %v18120_v23 = vld [vmem:[%s20332_s1 + $0x2e8] ss:$16 sps:$4 sm:$0xff]  }
 0xaf7   : > { %5775 = vmatpush1.bf16.msra.mxu1 %v17988_v43  ;;  %v18024_v43 = vld [vmem:[%s20332_s1 + $0xe8] ss:$16 sps:$4 sm:$0xff]  }
 0xaf8   : > { %5776 = vmatprep.subr.bf16.mxu1 %v17993_v6  ;;  %v21304_v6 = vpack.c.bf16 %v21190_v18, %v21188_v53  ;;  %v18114_v53 = vld [vmem:[%s20332_s1 + $0x320] ss:$16 sps:$4 sm:$0xff]   ;;  %v18032_v18 = vld [vmem:[%s20332_s1 + $0xac] ss:$16 sps:$4 sm:$0xff]  }
 0xaf9   : > { %5842 = vmatpush2.bf16.msra.mxu0 %v18108_v4 }
 0xafa   : > { %5843 = vmatprep.subr.bf16.mxu0 %v18113_v9  ;;  %v18123_v9 = vld [vmem:[%s20332_s1 + $0x2c8] ss:$16 sps:$4 sm:$0xff]  }
 0xafb   : > { %5777 = vmatpush1.bf16.msra.mxu1 %v17991_v26  ;;  %v18116_v26 = vld [vmem:[%s20332_s1 + $0x324] ss:$16 sps:$4 sm:$0xff]  }
 0xafc   : > { %5778 = vmatprep.subr.bf16.mxu1 %v17996_v31  ;;  %v18027_v31 = vld [vmem:[%s20332_s1 + $0xc8] ss:$16 sps:$4 sm:$0xff]  }
 0xafd   : > { %5844 = vmatpush2.bf16.msra.mxu0 %v18111_v19  ;;  %v18129_v19 = vld [vmem:[%s20332_s1 + $0x288] ss:$16 sps:$4 sm:$0xff]  }
 0xafe   : > { %5845 = vmatprep.subr.bf16.mxu0 %v18116_v26  ;;  %v18138_v26 = vld [vmem:[%s20332_s1 + $0x228] ss:$16 sps:$4 sm:$0xff]  }
 0xaff   : > { %5779 = vmatpush1.bf16.msra.mxu1 %v17994_v59  ;;  %v4972_v59 = vpack.c.bf16 %v21186_v57, %v21186_v57  ;;  %v18036_v57 = vld [vmem:[%s20332_s1 + $0x68] ss:$16 sps:$4 sm:$0xff]  }
 0xb00   : > { %5780 = vmatprep.subr.bf16.mxu1 %v17999_v32  ;;  %v18035_v32 = vld [vmem:[%s20332_s1 + $0x8c] ss:$16 sps:$4 sm:$0xff]  }
 0xb01   : > { %5846 = vmatpush2.bf16.msra.mxu0 %v18114_v53  ;;  %v18141_v53 = vld [vmem:[%s20332_s1 + $0x208] ss:$16 sps:$4 sm:$0xff]  }
 0xb02   : > { %5847 = vmatprep.subr.bf16.mxu0 %v18119_v21  ;;  %v18149_v21 = vld [vmem:[%s20332_s1 + $0x3cc] ss:$16 sps:$4 sm:$0xff]  }
 0xb03   : > { %5781 = vmatpush1.bf16.msra.mxu1 %v17997_v35  ;;  %v18038_v35 = vld [vmem:[%s20332_s1 + $0x6c] ss:$16 sps:$4 sm:$0xff]  }
 0xb04   : > { %5782 = vmatprep.subr.bf16.mxu1 %v18002_v38  ;;  %v18041_v38 = vld [vmem:[%s20332_s1 + $0x4c] ss:$16 sps:$4 sm:$0xff]  }
 0xb05   : > { %5848 = vmatpush2.bf16.msra.mxu0 %v18117_v30  ;;  %v18144_v30 = vld [vmem:[%s20332_s1 + $0x3e8] ss:$16 sps:$4 sm:$0xff]  }
 0xb06   : > { %5919 = vmatprep.subr.bf16.mxu0 %v18122_v34  ;;  %v18155_v34 = vld [vmem:[%s20332_s1 + $0x38c] ss:$16 sps:$4 sm:$0xff]  }
 0xb07   : > { %5783 = vmatpush2.bf16.msra.mxu1 %v18000_v13  ;;  %v18047_v13 = vld [vmem:[%s20332_s1 + $0xc] ss:$16 sps:$4 sm:$0xff]  }
 0xb08   : > { %5784 = vmatprep.subr.bf16.mxu1 %v18005_v45  ;;  %v18045_v45 = vld [vmem:[%s20332_s1 + $0x8] ss:$16 sps:$4 sm:$0xff]  }
 0xb0b   : > { %5785 = vmatpush2.bf16.msra.mxu1 %v18003_v15  ;;  %v18053_v15 = vld [vmem:[%s20332_s1 + $0x1cc] ss:$16 sps:$4 sm:$0xff]  }
 0xb0c   : > { %5786 = vmatprep.subr.bf16.mxu1 %v18008_v63  ;;  %v18051_v63 = vld [vmem:[%s20332_s1 + $0x1c8] ss:$16 sps:$4 sm:$0xff]  }
 0xb0f   : > { %5787 = vmatpush2.bf16.msra.mxu1 %v18006_v48  ;;  %v18059_v48 = vld [vmem:[%s20332_s1 + $0x18c] ss:$16 sps:$4 sm:$0xff]  }
 0xb10   : > { %5788 = vmatprep.subr.bf16.mxu1 %v18011_v46  ;;  %v18057_v46 = vld [vmem:[%s20332_s1 + $0x188] ss:$16 sps:$4 sm:$0xff]  }
 0xb13   : > { %5789 = vmatpush2.bf16.msra.mxu1 %v18009_v28  ;;  %v18065_v28 = vld [vmem:[%s20332_s1 + $0x14c] ss:$16 sps:$4 sm:$0xff]  }
 0xb14   : > { %5790 = vmatprep.subr.bf16.mxu1 %v18014_v7  ;;  %v18063_v7 = vld [vmem:[%s20332_s1 + $0x148] ss:$16 sps:$4 sm:$0xff]  }
 0xb17   : > { %5791 = vmatpush2.bf16.msra.mxu1 %v18012_v27  ;;  %v18071_v27 = vld [vmem:[%s20332_s1 + $0x10c] ss:$16 sps:$4 sm:$0xff]  }
 0xb18   : > { %5792 = vmatprep.subr.bf16.mxu1 %v18017_v62  ;;  %v18069_v62 = vld [vmem:[%s20332_s1 + $0x108] ss:$16 sps:$4 sm:$0xff]  }
 0xb1b   : > { %5793 = vmatpush2.bf16.msra.mxu1 %v18015_v3 }
 0xb1c   : > { %5794 = vmatprep.subr.bf16.mxu1 %v18020_v42 }
 0xb1f   : > { %5795 = vmatpush2.bf16.msra.mxu1 %v18018_v51  ;;  %v21355_v51 = vpack.c.bf16 %v21222_v40, %v21220_v24  ;;  %v18126_v24 = vld [vmem:[%s20332_s1 + $0x2a8] ss:$16 sps:$4 sm:$0xff]   ;;  %v21367_v40 = vpack.c.bf16 %v21218_v22, %v21218_v22  ;;  %v18137_v22 = vld [vmem:[%s20332_s1 + $0x24c] ss:$16 sps:$4 sm:$0xff]  }
 0xb20   : > { %5796 = vmatprep.subr.bf16.mxu1 %v18023_v29  ;;  %v18125_v29 = vld [vmem:[%s20332_s1 + $0x2cc] ss:$16 sps:$4 sm:$0xff]  }
 0xb23   : > { %5797 = vmatpush2.bf16.msra.mxu1 %v18021_v56  ;;  %v18128_v56 = vld [vmem:[%s20332_s1 + $0x2ac] ss:$16 sps:$4 sm:$0xff]  }
 0xb24   : > { %5868 = vmatprep.subr.bf16.mxu1 %v18026_v10  ;;  %v18131_v10 = vld [vmem:[%s20332_s1 + $0x28c] ss:$16 sps:$4 sm:$0xff]  }
 0xb26   : > { %5799 = vmatmul.mubr.bf16.vlgmr.msra.gmra.mxu1 %v21304_v6 }
 0xb27   : > { %5808 = vmatprep.mubr.bf16.mxu1 %v21309_v16  ;;  %5869 = vmatpush1.bf16.msra.mxu1 %v18024_v43  ;;  %v18134_v43 = vld [vmem:[%s20332_s1 + $0x26c] ss:$16 sps:$4 sm:$0xff]  }
 0xb28   : > { %5870 = vmatprep.subr.bf16.mxu1 %v18029_v20  ;;  %v18135_v20 = vld [vmem:[%s20332_s1 + $0x248] ss:$16 sps:$4 sm:$0xff]  }
 0xb2b   : > { %5871 = vmatpush1.bf16.msra.mxu1 %v18027_v31  ;;  %v18143_v31 = vld [vmem:[%s20332_s1 + $0x20c] ss:$16 sps:$4 sm:$0xff]  }
 0xb2c   : > { %5872 = vmatprep.subr.bf16.mxu1 %v18032_v18  ;;  %v18146_v18 = vld [vmem:[%s20332_s1 + $0x3ec] ss:$16 sps:$4 sm:$0xff]  }
 0xb2e   : > { %5809 = vmatmul.mubr.bf16.gmra.mxu1 %v4972_v59 }
 0xb2f   : > { %5873 = vmatpush1.bf16.msra.mxu1 %v18030_v61  ;;  %5900 = vmatprep.mubr.bf16.mxu1 %v21238_v52  ;;  %v18042_v52 = vld [vmem:[%s20332_s1 + $0x28] ss:$16 sps:$4 sm:$0xff]  }
 0xb30   : > { %5874 = vmatprep.subr.bf16.mxu1 %v18035_v32  ;;  %v18147_v61 = vld [vmem:[%s20332_s1 + $0x3c8] ss:$16 sps:$4 sm:$0xff]  }
 0xb31   : > { %v18150_v32 = vld [vmem:[%s20332_s1 + $0x3a8] ss:$16 sps:$4 sm:$0xff]  }
 0xb33   : > { %5875 = vmatpush1.bf16.msra.mxu1 %v18033_v33  ;;  %v18153_v33 = vld [vmem:[%s20332_s1 + $0x388] ss:$16 sps:$4 sm:$0xff]  }
 0xb34   : > { %5876 = vmatprep.subr.bf16.mxu1 %v18038_v35  ;;  %v18158_v35 = vld [vmem:[%s20332_s1 + $0x36c] ss:$16 sps:$4 sm:$0xff]  }
 0xb37   : > { %5877 = vmatpush1.bf16.msra.mxu1 %v18036_v57  ;;  %v18156_v57 = vld [vmem:[%s20332_s1 + $0x368] ss:$16 sps:$4 sm:$0xff]  }
 0xb38   : > { %5878 = vmatprep.subr.bf16.mxu1 %v18041_v38  ;;  %v18161_v38 = vld [vmem:[%s20332_s1 + $0x34c] ss:$16 sps:$4 sm:$0xff]  }
 0xb3b   : > { %5879 = vmatpush1.bf16.msra.mxu1 %v18039_v41  ;;  %v18159_v41 = vld [vmem:[%s20332_s1 + $0x348] ss:$16 sps:$4 sm:$0xff]  }
 0xb3c   : > { %5880 = vmatprep.subr.bf16.mxu1 %v18044_v37  ;;  %v18164_v37 = vld [vmem:[%s20332_s1 + $0x32c] ss:$16 sps:$4 sm:$0xff]  }
 0xb3f   : > { %5881 = vmatpush1.bf16.msra.mxu1 %v18042_v52  ;;  %v18162_v52 = vld [vmem:[%s20332_s1 + $0x328] ss:$16 sps:$4 sm:$0xff]  }
 0xb40   : > { %5882 = vmatprep.subr.bf16.mxu1 %v18047_v13 }
 0xb43   : > { %5883 = vmatpush1.bf16.msra.mxu1 %v18045_v45  ;;  %v18167_v45 = vld [vmem:[%s20332_s1 + $0x30c] ss:$16 sps:$4 sm:$0xff]  }
 0xb44   : > { %5884 = vmatprep.subr.bf16.mxu1 %v18050_v44 }
 0xb47   : > { %5885 = vmatpush2.bf16.msra.mxu1 %v18048_v5  ;;  %v18165_v5 = vld [vmem:[%s20332_s1 + $0x308] ss:$16 sps:$4 sm:$0xff]  }
 0xb48   : > { %5886 = vmatprep.subr.bf16.mxu1 %v18053_v15 }
 0xb4b   : > { %5887 = vmatpush2.bf16.msra.mxu1 %v18051_v63 }
 0xb4c   : > { %5888 = vmatprep.subr.bf16.mxu1 %v18056_v17 }
 0xb4f   : > { %5889 = vmatpush2.bf16.msra.mxu1 %v18054_v47 }
 0xb50   : > { %5890 = vmatprep.subr.bf16.mxu1 %v18059_v48 }
 0xb53   : > { %5891 = vmatpush2.bf16.msra.mxu1 %v18057_v46 }
 0xb54   : > { %5892 = vmatprep.subr.bf16.mxu1 %v18062_v8 }
 0xb57   : > { %5893 = vmatpush2.bf16.msra.mxu1 %v18060_v54 }
 0xb58   : > { %5894 = vmatprep.subr.bf16.mxu1 %v18065_v28 }
 0xb5b   : > { %5895 = vmatpush2.bf16.msra.mxu1 %v18063_v7 }
 0xb5c   : > { %5896 = vmatprep.subr.bf16.mxu1 %v18068_v50 }
 0xb5f   : > { %5897 = vmatpush2.bf16.msra.mxu1 %v18066_v58 }
 0xb60   : > { %5898 = vmatprep.subr.bf16.mxu1 %v18071_v27 }
 0xb63   : > { %5899 = vmatpush2.bf16.msra.mxu1 %v18069_v62 }
 0xb66   : > { %5901 = vmatmul.mubr.bf16.vlgmr.msra.gmra.mxu1 %v21304_v6  ;;  %v18132_v6 = vld [vmem:[%s20332_s1 + $0x268] ss:$16 sps:$4 sm:$0xff]  }
 0xb67   : > { %5910 = vmatprep.mubr.bf16.mxu1 %v21309_v16  ;;  %v18140_v16 = vld [vmem:[%s20332_s1 + $0x22c] ss:$16 sps:$4 sm:$0xff]  }
 0xb6e   : > { %5911 = vmatmul.mubr.bf16.gmra.mxu1 %v4972_v59  ;;  %v18152_v59 = vld [vmem:[%s20332_s1 + $0x3ac] ss:$16 sps:$4 sm:$0xff]   ;;  %s23837_s1 = scalar_lea.vmem [#allocation18], %s20322_s30  ;;  %s23851_s30 = sld [smem:[#allocation46_spill]] }
 0xb74   : > { %p16975_p4 = scmp.ne.s32.totalorder %s23851_s30, 1 }
 0xb75   : > { %s23854_s20 = sld [smem:[#allocation78_spill]] (!%p16975_p4) }
 0xba6   : > { %v17182_v36 = vpop.f32.mrf.mxu1 }
 0xba7   : > { %v21358_v4 = vpack.c.bf16 %v17182_v36, %v17182_v36 }
 0xba8   : > { %v4954_v49 = vpop.f32.mrf.mxu1 }
 0xbaa   : > { %v17183_v3 = vpop.f32.mrf.mxu1 }
 0xbac   : > { %v4957_v42 = vpop.f32.mrf.mxu1 }
 0xbad   : > { %v4971_v11 = vpack.c.bf16 %v4957_v42, %v4954_v49 }
 0xbaf   : > { %5849 = vmatprep.mubr.bf16.mxu0 %v4971_v11 }
 0xbb0   : > { %5850 = vmatmul.mubr.bf16.vlgmr.msra.gmra.mxu0 %v21355_v51 }
 0xbb1   : > { %5920 = vmatpush1.bf16.msra.mxu0 %v18120_v23  ;;  %5859 = vmatprep.mubr.bf16.mxu0 %v21358_v4 }
 0xbb2   : > { %5921 = vmatprep.subr.bf16.mxu0 %v18125_v29 }
 0xbb5   : > { %5922 = vmatpush1.bf16.msra.mxu0 %v18123_v9 }
 0xbb6   : > { %5923 = vmatprep.subr.bf16.mxu0 %v18128_v56 }
 0xbb8   : > { %5860 = vmatmul.mubr.bf16.gmra.mxu0 %v21367_v40 }
 0xbb9   : > { %5924 = vmatpush1.bf16.msra.mxu0 %v18126_v24  ;;  %5951 = vmatprep.mubr.bf16.mxu0 %v4971_v11 }
 0xbba   : > { %5925 = vmatprep.subr.bf16.mxu0 %v18131_v10 }
 0xbbd   : > { %5926 = vmatpush1.bf16.msra.mxu0 %v18129_v19 }
 0xbbe   : > { %5927 = vmatprep.subr.bf16.mxu0 %v18134_v43 }
 0xbc1   : > { %5928 = vmatpush1.bf16.msra.mxu0 %v18132_v6 }
 0xbc2   : > { %5929 = vmatprep.subr.bf16.mxu0 %v18137_v22 }
 0xbc5   : > { %5930 = vmatpush1.bf16.msra.mxu0 %v18135_v20 }
 0xbc6   : > { %5931 = vmatprep.subr.bf16.mxu0 %v18140_v16 }
 0xbc9   : > { %5932 = vmatpush1.bf16.msra.mxu0 %v18138_v26 }
 0xbca   : > { %5933 = vmatprep.subr.bf16.mxu0 %v18143_v31  ;;  %v19104_v31 = vld [vmem:[#allocation2] sm:$0xff] }
 0xbcd   : > { %5934 = vmatpush1.bf16.msra.mxu0 %v18141_v53 }
 0xbce   : > { %5935 = vmatprep.subr.bf16.mxu0 %v18146_v18 }
 0xbd1   : > { %5936 = vmatpush2.bf16.msra.mxu0 %v18144_v30 }
 0xbd2   : > { %5937 = vmatprep.subr.bf16.mxu0 %v18149_v21 }
 0xbd5   : > { %5938 = vmatpush2.bf16.msra.mxu0 %v18147_v61 }
 0xbd6   : > { %5939 = vmatprep.subr.bf16.mxu0 %v18152_v59 }
 0xbd9   : > { %5940 = vmatpush2.bf16.msra.mxu0 %v18150_v32  ;;  %v19105_v32 = vld [vmem:[#allocation2 + $0x30] sm:$0xff] }
 0xbda   : > { %5941 = vmatprep.subr.bf16.mxu0 %v18155_v34 }
 0xbdd   : > { %5942 = vmatpush2.bf16.msra.mxu0 %v18153_v33 }
 0xbde   : > { %5943 = vmatprep.subr.bf16.mxu0 %v18158_v35 }
 0xbe1   : > { %5944 = vmatpush2.bf16.msra.mxu0 %v18156_v57 }
 0xbe2   : > { %5945 = vmatprep.subr.bf16.mxu0 %v18161_v38 }
 0xbe5   : > { %5946 = vmatpush2.bf16.msra.mxu0 %v18159_v41 }
 0xbe6   : > { %v5800_v13 = vpop.f32.mrf.mxu1  ;;  %5947 = vmatprep.subr.bf16.mxu0 %v18164_v37  ;;  %v19106_v37 = vld [vmem:[#allocation2 + $0x20] sm:$0xff] }
 0xbe8   : > { %v5802_v44 = vpop.f32.mrf.mxu1 }
 0xbe9   : > { %5948 = vmatpush2.bf16.msra.mxu0 %v18162_v52 }
 0xbea   : > { %v5804_v15 = vpop.f32.mrf.mxu1  ;;  %5949 = vmatprep.subr.bf16.mxu0 %v18167_v45 }
 0xbec   : > { %v5806_v63 = vpop.f32.mrf.mxu1 }
 0xbed   : > { %5950 = vmatpush2.bf16.msra.mxu0 %v18165_v5 }
 0xbee   : > { %v5810_v17 = vpop.f32.mrf.mxu1 }
 0xbf0   : > { %v5812_v47 = vpop.f32.mrf.mxu1  ;;  %5952 = vmatmul.mubr.bf16.vlgmr.msra.gmra.mxu0 %v21355_v51 }
 0xbf1   : > { %5961 = vmatprep.mubr.bf16.mxu0 %v21358_v4  ;;  %v5104_v4 = vld [vmem:[%s966_s27] sm:$0xf]  ;;  %s23844_s27 = smov %s23837_s1 }
 0xbf2   : > { %v5814_v48 = vpop.f32.mrf.mxu1  ;;  %v5113_v9 = vrot.slane %v5104_v4, %v20591_v60  ;;  %v5109_v56 = vrot.slane %v5104_v4, %v20597_v1  ;;  %v5117_v10 = vrot.slane %v5104_v4, %v20600_v2  ;;  %v5121_v6 = vrot.slane %v5104_v4, %v20594_v0 }
 0xbf3   : > { %v19109_v48 = vld [vmem:[#allocation2 + $0x48] sm:$0x3] }
 0xbf4   : > { %v5815_v46 = vpop.f32.mrf.mxu1  ;;  %v5803_v24 = vadd.f32 %v5802_v44, %v5113_v9  ;;  %v5807_v43 = vadd.f32 %v5806_v63, %v5113_v9  ;;  %v5805_v20 = vadd.f32 %v5804_v15, %v5109_v56  ;;  %v5813_v16 = vadd.f32 %v5812_v47, %v5113_v9  ;;  %v19108_v63 = vld [vmem:[#allocation2 + $0x50] sm:$0xff]  ;;  %v19113_v9 = vld [vmem:[#allocation2 + $0x38] sm:$0xff] }
 0xbf5   : > { %v5811_v30 = vadd.f32 %v5810_v17, %v5109_v56 }
 0xbf8   : > { %5962 = vmatmul.mubr.bf16.gmra.mxu0 %v21367_v40  ;;  %v5801_v40 = vadd.f32 %v5800_v13, %v5109_v56  ;;  %v19107_v13 = vld [vmem:[#allocation2 + $0x58] sm:$0xff] }
 0xc26   : > { %v5902_v8 = vpop.f32.mrf.mxu1 }
 0xc27   : > { %v5903_v26 = vadd.f32 %v5902_v8, %v5117_v10  ;;  %v19110_v8 = vld [vmem:[#allocation2 + $0x18] sm:$0xff] }
 0xc28   : > { %v5904_v54 = vpop.f32.mrf.mxu1 }
 0xc29   : > { %v5905_v59 = vadd.f32 %v5904_v54, %v5121_v6 }
 0xc2a   : > { %v5906_v28 = vpop.f32.mrf.mxu1 }
 0xc2b   : > { %v5907_v57 = vadd.f32 %v5906_v28, %v5117_v10 }
 0xc2c   : > { %v5908_v7 = vpop.f32.mrf.mxu1 }
 0xc2d   : > { %v5909_v15 = vadd.f32 %v5908_v7, %v5121_v6 }
 0xc2e   : > { %v5912_v50 = vpop.f32.mrf.mxu1 }
 0xc30   : > { %v21399_v58 = vpop.f32.mrf.mxu1 }
 0xc32   : > { %v5916_v27 = vpop.f32.mrf.mxu1 }
 0xc34   : > { %v5917_v62 = vpop.f32.mrf.mxu1 }
 0xc35   : > { %v5913_v62 = vadd.f32 %v5912_v50, %v5117_v10 }
 0xc70   : > { %v5851_v36 = vpop.f32.mrf.mxu0 }
 0xc71   : > { %v5852_v22 = vadd.f32 %v5851_v36, %v5801_v40  ;;  %v19111_v36 = vld [vmem:[#allocation2 + $0x28] sm:$0x3] }
 0xc72   : > { %v5853_v49 = vpop.f32.mrf.mxu0 }
 0xc73   : > { %v5854_v19 = vadd.f32 %v5853_v49, %v5803_v24  ;;  %v21409_v34 = vadd.f32 %v19105_v32, %v5852_v22  ;;  %v6277_v32 = vld [vmem:[%s20342_s21 + $0x380] sm:$0xff] }
 0xc74   : > { %v5855_v3 = vpop.f32.mrf.mxu0 }
 0xc75   : > { %v21407_v53 = vadd.f32 %v19104_v31, %v5854_v19  ;;  %v5856_v21 = vadd.f32 %v5855_v3, %v5805_v20  ;;  %23822 = vst [vmem:[#allocation54_spill] sm:$0xff] %v21409_v34  ;;  %v19114_v19 = vld [vmem:[#allocation2 + $0x10] sm:$0x3] }
 0xc76   : > { %v5857_v42 = vpop.f32.mrf.mxu0 }
 0xc77   : > { %23821 = vst [vmem:[#allocation53_spill] sm:$0xff] %v21407_v53  ;;  %v5858_v18 = vadd.f32 %v5857_v42, %v5807_v43  ;;  %v5984_v5 = vadd.f32 %v21407_v53, %v21409_v34  ;;  %v21417_v17 = vadd.f32 %v19108_v63, %v5856_v21  ;;  %v19112_v42 = vld [vmem:[#allocation2 + $0x8] sm:$0xff]  ;;  %v6517_v63 = vld [vmem:[%s20342_s21 + $0xb00] sm:$0xff] }
 0xc78   : > { %v5861_v11 = vpop.f32.mrf.mxu0 }
 0xc79   : > { %v5862_v38 = vadd.f32 %v5861_v11, %v5811_v30  ;;  %v21411_v52 = vadd.f32 %v19106_v37, %v5858_v18  ;;  %23825 = vst [vmem:[#allocation57_spill] sm:$0xff] %v21417_v17  ;;  %v6261_v37 = vld [vmem:[%s20342_s21 + $0x300] sm:$0xff] }
 0xc7a   : > { %v5863_v23 = vpop.f32.mrf.mxu0 }
 0xc7b   : > { %v5864_v33 = vadd.f32 %v5863_v23, %v5813_v16  ;;  %23823 = vst [vmem:[#allocation55_spill] sm:$0xff] %v21411_v52  ;;  %v21424_v49 = vadd.f32 %v19111_v36, %v5862_v38 }
 0xc7c   : > { %v5865_v51 = vpop.f32.mrf.mxu0 }
 0xc7d   : > { %v21419_v46 = vadd.f32 %v19109_v48, %v5864_v33  ;;  %23828 = vst [vmem:[#allocation60_spill] sm:$0xff] %v21424_v49  ;;  %v5989_v51 = vadd.f32 %v21411_v52, %v21417_v17  ;;  %v6285_v33 = vld [vmem:[%s20342_s21 + $0x3c0] sm:$0xff] }
 0xc7e   : > { %v5866_v29 = vpop.f32.mrf.mxu0  ;;  %v16064_v38 = vcombine.high %v6277_v32, %v6285_v33  ;;  %v6245_v48 = vld [vmem:[%s20342_s21 + $0x280] sm:$0xff] }
 0xc7f   : > { %23826 = vst [vmem:[#allocation58_spill] sm:$0xff] %v21419_v46  ;;  %v5915_v29 = vadd.f32 %v21399_v58, %v5121_v6  ;;  %v5995_v40 = vsel %vm1203_vm0, %v21419_v46, 0.0  ;;  %v5994_v6 = vsel %vm1203_vm0, %v21424_v49, 0.0 }
 0xc80   : > { %v5996_v16 = vadd.f32 %v5995_v40, %v5994_v6  ;;  %9321 = vmatprep.subr.bf16.mxu1 %v16064_v38 }
 0xcb0   : > { %v5953_v61 = vpop.f32.mrf.mxu0 }
 0xcb1   : > { %v5954_v35 = vadd.f32 %v5953_v61, %v5903_v26  ;;  %v19115_v26 = vld [vmem:[#allocation2 + $0x40] sm:$0x3] }
 0xcb2   : > { %v5955_v41 = vpop.f32.mrf.mxu0 }
 0xcb3   : > { %v21413_v45 = vadd.f32 %v19107_v13, %v5954_v35  ;;  %v5956_v44 = vadd.f32 %v5955_v41, %v5905_v59  ;;  %v6533_v35 = vld [vmem:[%s20342_s21 + $0xb80] sm:$0xff] }
 0xcb4   : > { %v5957_v47 = vpop.f32.mrf.mxu0  ;;  %v6541_v41 = vld [vmem:[%s20342_s21 + $0xbc0] sm:$0xff] }
 0xcb5   : > { %23824 = vst [vmem:[#allocation56_spill] sm:$0xff] %v21413_v45  ;;  %v21421_v54 = vadd.f32 %v19110_v8, %v5956_v44  ;;  %v5958_v28 = vadd.f32 %v5957_v47, %v5907_v57  ;;  %v5985_v27 = vadd.f32 %v5984_v5, %v21413_v45  ;;  %v16063_v57 = vcombine.low %v6277_v32, %v6285_v33  ;;  %v6269_v13 = vld [vmem:[%s20342_s21 + $0x340] sm:$0xff] }
 0xcb6   : > { %v5959_v3 = vpop.f32.mrf.mxu0  ;;  %v16319_v44 = vcombine.low %v6533_v35, %v6541_v41  ;;  %v16320_v5 = vcombine.high %v6533_v35, %v6541_v41  ;;  %v6525_v47 = vld [vmem:[%s20342_s21 + $0xb40] sm:$0xff]  ;;  %v16047_v36 = vcombine.low %v6261_v37, %v6269_v13 }
 0xcb7   : > { %23827 = vst [vmem:[#allocation59_spill] sm:$0xff] %v21421_v54  ;;  %v21426_v7 = vadd.f32 %v19112_v42, %v5958_v28  ;;  %v5960_v11 = vadd.f32 %v5959_v3, %v5909_v15  ;;  %v5986_v23 = vadd.f32 %v5985_v27, %v21421_v54  ;;  %v16048_v15 = vcombine.high %v6261_v37, %v6269_v13  ;;  %v6253_v28 = vld [vmem:[%s20342_s21 + $0x2c0] sm:$0xff] }
 0xcb8   : > { %v5963_v4 = vpop.f32.mrf.mxu0  ;;  %v16304_v8 = vcombine.high %v6517_v63, %v6525_v47  ;;  %v6501_v27 = vld [vmem:[%s20342_s21 + $0xa80] sm:$0xff]  ;;  %9372 = vmatprep.subr.bf16.mxu0 %v16320_v5  ;;  %9322 = vmatpush1.bf16.msra.mxu1 %v16063_v57  ;;  %v16303_v3 = vcombine.low %v6517_v63, %v6525_v47  ;;  %v16032_v42 = vcombine.high %v6245_v48, %v6253_v28 }
 0xcb9   : > { %23829 = vst [vmem:[#allocation61_spill] sm:$0xff] %v21426_v7  ;;  %v21432_v56 = vadd.f32 %v19113_v9, %v5960_v11  ;;  %v5964_v50 = vadd.f32 %v5963_v4, %v5913_v62  ;;  %5987 = vadd.xlane.f32.xlu0 %v5986_v23  ;;  %v5990_v24 = vadd.f32 %v5989_v51, %v21426_v7  ;;  %v6509_v62 = vld [vmem:[%s20342_s21 + $0xac0] sm:$0xff] }
 0xcba   : > { %v5965_v10 = vpop.f32.mrf.mxu0  ;;  %9373 = vmatpush1.bf16.msra.mxu0 %v16319_v44  ;;  %9323 = vmatprep.subr.bf16.mxu1 %v16048_v15  ;;  %v16288_v11 = vcombine.high %v6501_v27, %v6509_v62  ;;  %v6229_v23 = vld [vmem:[%s20342_s21 + $0x200] sm:$0xff]  ;;  %v16031_v9 = vcombine.low %v6245_v48, %v6253_v28 }
 0xcbb   : > { %23830 = vst [vmem:[#allocation62_spill] sm:$0xff] %v21432_v56  ;;  %v21437_v43 = vadd.f32 %v19114_v19, %v5964_v50  ;;  %v5966_v22 = vadd.f32 %v5965_v10, %v5915_v29  ;;  %v5991_v58 = vadd.f32 %v5990_v24, %v21432_v56  ;;  %9374 = vmatprep.subr.bf16.mxu0 %v16304_v8  ;;  %v6237_v51 = vld [vmem:[%s20342_s21 + $0x240] sm:$0xff] }
 0xcbc   : > { %v5967_v20 = vpop.f32.mrf.mxu0  ;;  %v6485_v29 = vld [vmem:[%s20342_s21 + $0xa00] sm:$0xff]  ;;  %9324 = vmatpush1.bf16.msra.mxu1 %v16047_v36  ;;  %v16287_v50 = vcombine.low %v6501_v27, %v6509_v62  ;;  %v16016_v24 = vcombine.high %v6229_v23, %v6237_v51  ;;  %v16015_v10 = vcombine.low %v6229_v23, %v6237_v51 }
 0xcbd   : > { %23831 = vst [vmem:[#allocation63_spill] sm:$0xff] %v21437_v43  ;;  %v21442_v31 = vadd.f32 %v19115_v26, %v5966_v22  ;;  %5992 = vadd.xlane.f32.xlu1 %v5991_v58  ;;  %v5997_v18 = vsel %vm1203_vm0, %v21437_v43, 0.0  ;;  %v6493_v4 = vld [vmem:[%s20342_s21 + $0xa40] sm:$0xff]  ;;  %9325 = vmatprep.subr.bf16.mxu1 %v16032_v42 }
 0xcbe   : > { %v5968_v30 = vpop.f32.mrf.mxu0  ;;  %v5998_v21 = vadd.f32 %v5997_v18, %v5996_v16  ;;  %9375 = vmatpush1.bf16.msra.mxu0 %v16303_v3  ;;  %v16272_v40 = vcombine.high %v6485_v29, %v6493_v4  ;;  %v16271_v19 = vcombine.low %v6485_v29, %v6493_v4 }
 0xcbf   : > { %23832 = vst [vmem:[#allocation64_spill] sm:$0xff] %v21442_v31  ;;  %v5999_v61 = vsel %vm1203_vm0, %v21442_v31, 0.0  ;;  %9376 = vmatprep.subr.bf16.mxu0 %v16288_v11 }
 0xcc0   : > { %v6000_v59 = vadd.f32 %v5999_v61, %v5998_v21  ;;  %9326 = vmatpush1.bf16.msra.mxu1 %v16031_v9 }
 0xcc1   : > { %9327 = vmatprep.subr.bf16.mxu1 %v16016_v24 }
 0xcc2   : > { %6001 = vadd.xlane.f32.xlu0 %v6000_v59  ;;  %9377 = vmatpush1.bf16.msra.mxu0 %v16287_v50 }
 0xcc3   : > { %9378 = vmatprep.subr.bf16.mxu0 %v16272_v40 }
 0xcc4   : > { %9328 = vmatpush1.bf16.msra.mxu1 %v16015_v10 }
 0xcc6   : > { %9379 = vmatpush1.bf16.msra.mxu0 %v16271_v19 }
 0xd42   : > { %v5988_v22 = vpop.xlane.xlu0 %5987 }
 0xd43   : > { %v6003_v58 = vmul.f32 0.001953125, %v5988_v22  ;;  %v6213_v22 = vld [vmem:[%s20342_s21 + $0x180] sm:$0xff] }
 0xd45   : > { %v21465_v6 = vsub.f32 %v21409_v34, %v6003_v58  ;;  %v21468_v20 = vsub.f32 %v21407_v53, %v6003_v58  ;;  %v21471_v16 = vsub.f32 %v21413_v45, %v6003_v58  ;;  %v21474_v18 = vsub.f32 %v21421_v54, %v6003_v58  ;;  %v6221_v58 = vld [vmem:[%s20342_s21 + $0x1c0] sm:$0xff] }
 0xd46   : > { %v5993_v26 = vpop.xlane.xlu1 %5992 }
 0xd47   : > { %v6004_v30 = vmul.f32 0.001953125, %v5993_v26  ;;  %v6018_v21 = vmul.f32 %v21465_v6, %v21465_v6  ;;  %v6019_v61 = vmul.f32 %v21468_v20, %v21468_v20  ;;  %v6020_v59 = vmul.f32 %v21471_v16, %v21471_v16  ;;  %v6469_v26 = vld [vmem:[%s20342_s21 + $0x980] sm:$0xff] }
 0xd48   : > { %v6021_v38 = vmul.f32 %v21474_v18, %v21474_v18 }
 0xd49   : > { %v21483_v32 = vsub.f32 %v21417_v17, %v6004_v30  ;;  %v21486_v33 = vsub.f32 %v21411_v52, %v6004_v30  ;;  %v6030_v35 = vadd.f32 %v6019_v61, %v6018_v21  ;;  %v21489_v57 = vsub.f32 %v21426_v7, %v6004_v30  ;;  %v6477_v21 = vld [vmem:[%s20342_s21 + $0x9c0] sm:$0xff]  ;;  %v6218_v7 = vld [vmem:[%s20342_s21 + $0x1a8] sm:$0xff]  ;;  %v6219_v52 = vld [vmem:[%s20342_s21 + $0x1b0] sm:$0xff] }
 0xd4a   : > { %v21494_v13 = vsub.f32 %v21432_v56, %v6004_v30  ;;  %v16000_v30 = vcombine.high %v6213_v22, %v6221_v58  ;;  %v15999_v61 = vcombine.low %v6213_v22, %v6221_v58  ;;  %v6405_v58 = vld [vmem:[%s20342_s21 + $0x780] sm:$0xff] }
 0xd4b   : > { %v6002_v41 = vpop.xlane.xlu0 %6001  ;;  %v6031_v37 = vadd.f32 %v6030_v35, %v6020_v59  ;;  %v6022_v44 = vmul.f32 %v21483_v32, %v21483_v32  ;;  %v6023_v5 = vmul.f32 %v21486_v33, %v21486_v33  ;;  %v6024_v47 = vmul.f32 %v21489_v57, %v21489_v57 }
 0xd4c   : > { %v6005_v15 = vmul.f32 0.001953125, %v6002_v41  ;;  %v6025_v36 = vmul.f32 %v21494_v13, %v21494_v13  ;;  %v16255_v59 = vcombine.low %v6469_v26, %v6477_v21  ;;  %v16256_v35 = vcombine.high %v6469_v26, %v6477_v21  ;;  %9329 = vmatprep.subr.bf16.mxu1 %v16000_v30  ;;  %v6205_v41 = vld [vmem:[%s20342_s21 + $0x140] sm:$0xff] }
 0xd4d   : > { %v6032_v63 = vadd.f32 %v6031_v37, %v6021_v38  ;;  %v6035_v48 = vadd.f32 %v6023_v5, %v6022_v44  ;;  %9330 = vmatpush1.bf16.msra.mxu1 %v15999_v61  ;;  %v6197_v38 = vld [vmem:[%s20342_s21 + $0x100] sm:$0xff] }
 0xd4e   : > { %v21503_v8 = vsub.f32 %v21424_v49, %v6005_v15  ;;  %v21506_v28 = vsub.f32 %v21419_v46, %v6005_v15  ;;  %v21509_v27 = vsub.f32 %v21437_v43, %v6005_v15  ;;  %v21512_v62 = vsub.f32 %v21442_v31, %v6005_v15  ;;  %9380 = vmatprep.subr.bf16.mxu0 %v16256_v35  ;;  %v6453_v37 = vld [vmem:[%s20342_s21 + $0x900] sm:$0xff] }
 0xd4f   : > { %6033 = vadd.xlane.f32.xlu1 %v6032_v63  ;;  %v6036_v3 = vadd.f32 %v6035_v48, %v6024_v47  ;;  %9381 = vmatpush1.bf16.msra.mxu0 %v16255_v59  ;;  %v15984_v44 = vcombine.high %v6197_v38, %v6205_v41  ;;  %v6461_v5 = vld [vmem:[%s20342_s21 + $0x940] sm:$0xff]  ;;  %v15983_v15 = vcombine.low %v6197_v38, %v6205_v41 }
 0xd50   : > { %v6026_v42 = vmul.f32 %v21503_v8, %v21503_v8  ;;  %v6027_v11 = vmul.f32 %v21506_v28, %v21506_v28  ;;  %v6028_v23 = vmul.f32 %v21509_v27, %v21509_v27  ;;  %v6029_v29 = vmul.f32 %v21512_v62, %v21512_v62  ;;  %v6181_v48 = vld [vmem:[%s20342_s21 + $0x80] sm:$0xff] }
 0xd51   : > { %v6037_v51 = vadd.f32 %v6036_v3, %v6025_v36  ;;  %v16239_v63 = vcombine.low %v6453_v37, %v6461_v5  ;;  %v16240_v47 = vcombine.high %v6453_v37, %v6461_v5  ;;  %9331 = vmatprep.subr.bf16.mxu1 %v15984_v44  ;;  %v6189_v36 = vld [vmem:[%s20342_s21 + $0xc0] sm:$0xff] }
 0xd52   : > { %v6040_v4 = vsel %vm1203_vm0, %v6026_v42, 0.0  ;;  %v6041_v9 = vsel %vm1203_vm0, %v6027_v11, 0.0  ;;  %v6043_v24 = vsel %vm1203_vm0, %v6028_v23, 0.0  ;;  %v6045_v10 = vsel %vm1203_vm0, %v6029_v29, 0.0  ;;  %9332 = vmatpush1.bf16.msra.mxu1 %v15983_v15  ;;  %v6437_v3 = vld [vmem:[%s20342_s21 + $0x880] sm:$0xff] }
 0xd53   : > { %6038 = vadd.xlane.f32.xlu0 %v6037_v51  ;;  %v6042_v50 = vadd.f32 %v6041_v9, %v6040_v4  ;;  %9382 = vmatprep.subr.bf16.mxu0 %v16240_v47  ;;  %v15968_v42 = vcombine.high %v6181_v48, %v6189_v36  ;;  %v6445_v11 = vld [vmem:[%s20342_s21 + $0x8c0] sm:$0xff]  ;;  %v15967_v23 = vcombine.low %v6181_v48, %v6189_v36 }
 0xd54   : > { %9383 = vmatpush1.bf16.msra.mxu0 %v16239_v63  ;;  %v16223_v51 = vcombine.low %v6437_v3, %v6445_v11  ;;  %v16224_v29 = vcombine.high %v6437_v3, %v6445_v11  ;;  %v6165_v4 = vld [vmem:[%s20342_s21] sm:$0xff] }
 0xd55   : > { %v6044_v40 = vadd.f32 %v6043_v24, %v6042_v50  ;;  %9333 = vmatprep.subr.bf16.mxu1 %v15968_v42  ;;  %v6173_v9 = vld [vmem:[%s20342_s21 + $0x40] sm:$0xff] }
 0xd56   : > { %9384 = vmatprep.subr.bf16.mxu0 %v16224_v29  ;;  %9334 = vmatpush1.bf16.msra.mxu1 %v15967_v23  ;;  %v6421_v50 = vld [vmem:[%s20342_s21 + $0x800] sm:$0xff]  ;;  %v15952_v24 = vcombine.high %v6165_v4, %v6173_v9 }
 0xd57   : > { %v6046_v19 = vadd.f32 %v6045_v10, %v6044_v40  ;;  %v6429_v40 = vld [vmem:[%s20342_s21 + $0x840] sm:$0xff]  ;;  %v15951_v10 = vcombine.low %v6165_v4, %v6173_v9 }
 0xd58   : > { %9385 = vmatpush1.bf16.msra.mxu0 %v16223_v51  ;;  %v16208_v22 = vcombine.high %v6421_v50, %v6429_v40  ;;  %9335 = vmatprep.subr.bf16.mxu1 %v15952_v24  ;;  %v6413_v26 = vld [vmem:[%s20342_s21 + $0x7c0] sm:$0xff] }
 0xd59   : > { %6047 = vadd.xlane.f32.xlu1 %v6046_v19  ;;  %v16207_v19 = vcombine.low %v6421_v50, %v6429_v40  ;;  %v6661_v30 = vld [vmem:[%s20342_s21 + $0xf80] sm:$0xff]  ;;  %v16192_v21 = vcombine.high %v6405_v58, %v6413_v26  ;;  %v16191_v59 = vcombine.low %v6405_v58, %v6413_v26 }
 0xd5a   : > { %9386 = vmatprep.subr.bf16.mxu0 %v16208_v22  ;;  %9336 = vmatpush1.bf16.msra.mxu1 %v15951_v10  ;;  %v6669_v61 = vld [vmem:[%s20342_s21 + $0xfc0] sm:$0xff] }
 0xd5b   : > { %v16447_v35 = vcombine.low %v6661_v30, %v6669_v61  ;;  %v16448_v38 = vcombine.high %v6661_v30, %v6669_v61  ;;  %9337 = vmatprep.subr.bf16.mxu1 %v16192_v21  ;;  %v6389_v41 = vld [vmem:[%s20342_s21 + $0x700] sm:$0xff] }
 0xd5c   : > { %9387 = vmatpush1.bf16.msra.mxu0 %v16207_v19  ;;  %v6397_v37 = vld [vmem:[%s20342_s21 + $0x740] sm:$0xff] }
 0xd5d   : > { %9388 = vmatprep.subr.bf16.mxu0 %v16448_v38  ;;  %v6645_v44 = vld [vmem:[%s20342_s21 + $0xf00] sm:$0xff]  ;;  %v16176_v5 = vcombine.high %v6389_v41, %v6397_v37  ;;  %v16175_v63 = vcombine.low %v6389_v41, %v6397_v37 }
 0xd5e   : > { %9338 = vmatpush2.bf16.msra.mxu1 %v16191_v59  ;;  %v6653_v15 = vld [vmem:[%s20342_s21 + $0xf40] sm:$0xff] }
 0xd5f   : > { %v16431_v47 = vcombine.low %v6645_v44, %v6653_v15  ;;  %v16432_v48 = vcombine.high %v6645_v44, %v6653_v15  ;;  %9339 = vmatprep.subr.bf16.mxu1 %v16176_v5  ;;  %v6373_v36 = vld [vmem:[%s20342_s21 + $0x680] sm:$0xff] }
 0xd60   : > { %9389 = vmatpush2.bf16.msra.mxu0 %v16447_v35  ;;  %v6381_v3 = vld [vmem:[%s20342_s21 + $0x6c0] sm:$0xff] }
 0xd61   : > { %9390 = vmatprep.subr.bf16.mxu0 %v16432_v48  ;;  %v6629_v42 = vld [vmem:[%s20342_s21 + $0xe80] sm:$0xff]  ;;  %v16160_v11 = vcombine.high %v6373_v36, %v6381_v3  ;;  %v16159_v51 = vcombine.low %v6373_v36, %v6381_v3 }
 0xd62   : > { %9340 = vmatpush2.bf16.msra.mxu1 %v16175_v63  ;;  %v6637_v23 = vld [vmem:[%s20342_s21 + $0xec0] sm:$0xff] }
 0xd63   : > { %v16415_v29 = vcombine.low %v6629_v42, %v6637_v23  ;;  %v16416_v4 = vcombine.high %v6629_v42, %v6637_v23  ;;  %9341 = vmatprep.subr.bf16.mxu1 %v16160_v11  ;;  %v6357_v9 = vld [vmem:[%s20342_s21 + $0x600] sm:$0xff] }
 0xd64   : > { %9391 = vmatpush2.bf16.msra.mxu0 %v16431_v47  ;;  %v6365_v50 = vld [vmem:[%s20342_s21 + $0x640] sm:$0xff] }
 0xd65   : > { %9392 = vmatprep.subr.bf16.mxu0 %v16416_v4  ;;  %v6613_v24 = vld [vmem:[%s20342_s21 + $0xe00] sm:$0xff]  ;;  %v16144_v40 = vcombine.high %v6357_v9, %v6365_v50  ;;  %v16143_v19 = vcombine.low %v6357_v9, %v6365_v50 }
 0xd66   : > { %9342 = vmatpush2.bf16.msra.mxu1 %v16159_v51  ;;  %v6621_v10 = vld [vmem:[%s20342_s21 + $0xe40] sm:$0xff] }
 0xd67   : > { %v16399_v22 = vcombine.low %v6613_v24, %v6621_v10  ;;  %v16400_v58 = vcombine.high %v6613_v24, %v6621_v10  ;;  %9343 = vmatprep.subr.bf16.mxu1 %v16144_v40  ;;  %v6341_v26 = vld [vmem:[%s20342_s21 + $0x580] sm:$0xff] }
 0xd68   : > { %9393 = vmatpush2.bf16.msra.mxu0 %v16415_v29  ;;  %v6349_v30 = vld [vmem:[%s20342_s21 + $0x5c0] sm:$0xff] }
 0xd69   : > { %9394 = vmatprep.subr.bf16.mxu0 %v16400_v58  ;;  %v6597_v21 = vld [vmem:[%s20342_s21 + $0xd80] sm:$0xff]  ;;  %v16128_v61 = vcombine.high %v6341_v26, %v6349_v30  ;;  %v16127_v35 = vcombine.low %v6341_v26, %v6349_v30  ;;  %v21577_v30 = vld [vmem:[%s20342_s21 + $0x388] sm:$0xff] }
 0xd6a   : > { %9344 = vmatpush2.bf16.msra.mxu1 %v16143_v19  ;;  %v6605_v59 = vld [vmem:[%s20342_s21 + $0xdc0] sm:$0xff] }
 0xd6b   : > { %v16383_v38 = vcombine.low %v6597_v21, %v6605_v59  ;;  %v16384_v41 = vcombine.high %v6597_v21, %v6605_v59  ;;  %v6325_v37 = vld [vmem:[%s20342_s21 + $0x500] sm:$0xff]  ;;  %9345 = vmatprep.subr.bf16.mxu1 %v16128_v61  ;;  %v21580_v21 = vld [vmem:[%s20342_s21 + $0x3c8] sm:$0xff] }
 0xd6c   : > { %9395 = vmatpush2.bf16.msra.mxu0 %v16399_v22  ;;  %v6333_v44 = vld [vmem:[%s20342_s21 + $0x540] sm:$0xff]  ;;  %v21583_v61 = vld [vmem:[%s20342_s21 + $0xb88] sm:$0xff]  ;;  %v16066_v59 = vcombine.high %v21577_v30, %v21580_v21 }
 0xd6d   : > { %v6581_v5 = vld [vmem:[%s20342_s21 + $0xd00] sm:$0xff]  ;;  %v16112_v15 = vcombine.high %v6325_v37, %v6333_v44  ;;  %9396 = vmatprep.subr.bf16.mxu0 %v16384_v41  ;;  %v16111_v36 = vcombine.low %v6325_v37, %v6333_v44 }
 0xd6e   : > { %v6589_v63 = vld [vmem:[%s20342_s21 + $0xd40] sm:$0xff]  ;;  %9346 = vmatpush2.bf16.msra.mxu1 %v16127_v35  ;;  %v21588_v35 = vld [vmem:[%s20342_s21 + $0xbc8] sm:$0xff] }
 0xd6f   : > { %v6309_v47 = vld [vmem:[%s20342_s21 + $0x480] sm:$0xff]  ;;  %v16368_v3 = vcombine.high %v6581_v5, %v6589_v63  ;;  %9347 = vmatprep.subr.bf16.mxu1 %v16112_v15  ;;  %v16367_v23 = vcombine.low %v6581_v5, %v6589_v63  ;;  %v16322_v37 = vcombine.high %v21583_v61, %v21588_v35 }
 0xd70   : > { %v6317_v48 = vld [vmem:[%s20342_s21 + $0x4c0] sm:$0xff]  ;;  %9397 = vmatpush2.bf16.msra.mxu0 %v16383_v38 }
 0xd71   : > { %v6565_v42 = vld [vmem:[%s20342_s21 + $0xc80] sm:$0xff]  ;;  %v16096_v51 = vcombine.high %v6309_v47, %v6317_v48  ;;  %9398 = vmatprep.subr.bf16.mxu0 %v16368_v3  ;;  %v16095_v40 = vcombine.low %v6309_v47, %v6317_v48 }
 0xd72   : > { %v6573_v11 = vld [vmem:[%s20342_s21 + $0xcc0] sm:$0xff]  ;;  %9348 = vmatpush2.bf16.msra.mxu1 %v16111_v36 }
 0xd73   : > { %v16352_v29 = vcombine.high %v6565_v42, %v6573_v11  ;;  %v6293_v4 = vld [vmem:[%s20342_s21 + $0x400] sm:$0xff]  ;;  %9349 = vmatprep.subr.bf16.mxu1 %v16096_v51  ;;  %v16351_v10 = vcombine.low %v6565_v42, %v6573_v11 }
 0xd74   : > { %v6301_v9 = vld [vmem:[%s20342_s21 + $0x440] sm:$0xff]  ;;  %9399 = vmatpush2.bf16.msra.mxu0 %v16367_v23 }
 0xd75   : > { %v6549_v50 = vld [vmem:[%s20342_s21 + $0xc00] sm:$0xff]  ;;  %v16080_v19 = vcombine.high %v6293_v4, %v6301_v9  ;;  %9400 = vmatprep.subr.bf16.mxu0 %v16352_v29  ;;  %v16079_v58 = vcombine.low %v6293_v4, %v6301_v9 }
 0xd76   : > { %v6557_v24 = vld [vmem:[%s20342_s21 + $0xc40] sm:$0xff]  ;;  %9350 = vmatpush2.bf16.msra.mxu1 %v16095_v40 }
 0xd77   : > { %v16336_v22 = vcombine.high %v6549_v50, %v6557_v24  ;;  %9351 = vmatprep.subr.bf16.mxu1 %v16080_v19  ;;  %v16335_v26 = vcombine.low %v6549_v50, %v6557_v24 }
 0xd78   : > { %9401 = vmatpush2.bf16.msra.mxu0 %v16351_v10 }
 0xd79   : > { %9402 = vmatprep.subr.bf16.mxu0 %v16336_v22 }
 0xd7a   : > { %9352 = vmatpush2.bf16.msra.mxu1 %v16079_v58 }
 0xd7b   : > { %9423 = vmatprep.subr.bf16.mxu1 %v16066_v59 }
 0xd7c   : > { %9403 = vmatpush2.bf16.msra.mxu0 %v16335_v26 }
 0xd7d   : > { %9474 = vmatprep.subr.bf16.mxu0 %v16322_v37  ;;  %v5982_v37 = vld [vmem:[%s1011_s7] sm:$0xf] }
 0xdd8   : > { %v6034_v44 = vpop.xlane.xlu1 %6033 }
 0xdd9   : > { %v6049_v5 = vmul.f32 0.0019569471, %v6034_v44 }
 0xddb   : > { %18996 = vrsqrt.f32 %v6049_v5  ;;  %vm6054_vm10 = vcmp.eq.f32.partialorder %v6049_v5, inf  ;;  %v6057_v42 = vand.u32 2147483648, %v6049_v5  ;;  %vm6056_vm11 = vcmp.eq.f32.partialorder %v6049_v5, 0.0 }
 0xddc   : > { %v6039_v15 = vpop.xlane.xlu0 %6038 }
 0xddd   : > { %v6050_v63 = vmul.f32 0.0019569471, %v6039_v15 }
 0xddf   : > { %18998 = vrsqrt.f32 %v6050_v63  ;;  %vm6061_vm12 = vcmp.eq.f32.partialorder %v6050_v63, inf  ;;  %v6064_v9 = vand.u32 2147483648, %v6050_v63  ;;  %vm6063_vm13 = vcmp.eq.f32.partialorder %v6050_v63, 0.0 }
 0xde2   : > { %v6048_v47 = vpop.xlane.xlu1 %6047 }
 0xde3   : > { %v6051_v48 = vmul.f32 0.0019569471, %v6048_v47 }
 0xde5   : > { %19000 = vrsqrt.f32 %v6051_v48  ;;  %vm6068_vm14 = vcmp.eq.f32.partialorder %v6051_v48, inf  ;;  %v6071_v22 = vand.u32 2147483648, %v6051_v48  ;;  %vm6070_vm15 = vcmp.eq.f32.partialorder %v6051_v48, 0.0 }
 0xde8   : > { %v18997_v36 = vpop.eup %18996 }
 0xde9   : > { %v6053_v3 = vmul.f32 %v18997_v36, %v6049_v5  ;;  %v6107_v36 = vrot.slane %v5982_v37, %v20594_v0 }
 0xdeb   : > { %v6055_v11 = vsel %vm6054_vm10, %v6049_v5, %v6053_v3  ;;  %v5983_v5 = vld [vmem:[%s1020_s3] sm:$0xf]  ;;  %v6095_v3 = vrot.slane %v5982_v37, %v20597_v1  ;;  %s23855_s3 = sld [smem:[#allocation80_spill]] (!%p16975_p4) }
 0xdec   : > { %v18999_v23 = vpop.eup %18998  ;;  %v6058_v51 = vsel %vm6056_vm11, %v6057_v42, %v6055_v11  ;;  %v6103_v11 = vrot.slane %v5982_v37, %v20600_v2 }
 0xded   : > { %v6073_v29 = vadd.f32 1e-06, %v6058_v51  ;;  %v6060_v4 = vmul.f32 %v18999_v23, %v6050_v63  ;;  %v6140_v51 = vrot.slane %v5983_v5, %v20594_v0 }
 0xdef   : > { %19002 = vrcp.f32 %v6073_v29  ;;  %v6062_v50 = vsel %vm6061_vm12, %v6050_v63, %v6060_v4  ;;  %v6099_v63 = vrot.slane %v5982_v37, %v20591_v60  ;;  %v6136_v29 = vrot.slane %v5983_v5, %v20600_v2  ;;  %v21613_v4 = vld [vmem:[%s20342_s21 + $0x308] sm:$0xff] }
 0xdf0   : > { %v6065_v24 = vsel %vm6063_vm13, %v6064_v9, %v6062_v50 }
 0xdf1   : > { %v6074_v40 = vadd.f32 1e-06, %v6065_v24  ;;  %s23856_s9 = smov (!%p16975_p4), %s23855_s3 }
 0xdf2   : > { %v19001_v10 = vpop.eup %19000 }
 0xdf3   : > { %19004 = vrcp.f32 %v6074_v40  ;;  %v6067_v19 = vmul.f32 %v19001_v10, %v6051_v48  ;;  %v6518_v40 = vld [vmem:[%s20342_s21 + $0xb08] sm:$0xff] }
 0xdf4   : > { %v6526_v10 = vld [vmem:[%s20342_s21 + $0xb48] sm:$0xff] }
 0xdf5   : > { %v6069_v58 = vsel %vm6068_vm14, %v6051_v48, %v6067_v19 }
 0xdf6   : > { %v6072_v26 = vsel %vm6070_vm15, %v6071_v22, %v6069_v58 }
 0xdf7   : > { %v6075_v59 = vadd.f32 1e-06, %v6072_v26 }
 0xdf9   : > { %19006 = vrcp.f32 %v6075_v59 }
 0xdfc   : > { %v19003_v44 = vpop.eup %19002 }
 0xdfd   : > { %v6080_v15 = vmul.f32 %v19003_v44, %v21468_v20  ;;  %v6082_v47 = vmul.f32 %v19003_v44, %v21474_v18  ;;  %v6079_v48 = vmul.f32 %v19003_v44, %v21465_v6  ;;  %v6081_v42 = vmul.f32 %v19003_v44, %v21471_v16  ;;  %v6270_v16 = vld [vmem:[%s20342_s21 + $0x348] sm:$0xff] }
 0xdfe   : > { %v6132_v20 = vrot.slane %v5983_v5, %v20591_v60  ;;  %v6128_v18 = vrot.slane %v5983_v5, %v20597_v1  ;;  %v16050_v41 = vcombine.high %v21613_v4, %v6270_v16 }
 0xdff   : > { %v6113_v9 = vmul.f32 %v6099_v63, %v6080_v15  ;;  %v6115_v24 = vmul.f32 %v6107_v36, %v6082_v47  ;;  %v6112_v22 = vmul.f32 %v6095_v3, %v6079_v48  ;;  %v6114_v26 = vmul.f32 %v6103_v11, %v6081_v42 }
 0xe00   : > { %v19005_v23 = vpop.eup %19004 }
 0xe01   : > { %v6084_v6 = vmul.f32 %v19005_v23, %v21486_v33  ;;  %v6086_v50 = vmul.f32 %v19005_v23, %v21494_v13  ;;  %v6083_v19 = vmul.f32 %v19005_v23, %v21483_v32  ;;  %v6085_v58 = vmul.f32 %v19005_v23, %v21489_v57 }
 0xe02   : > { %v16306_v33 = vcombine.high %v6518_v40, %v6526_v10  ;;  %v6146_v15 = vadd.f32 %v6132_v20, %v6113_v9  ;;  %v6148_v13 = vadd.f32 %v6140_v51, %v6115_v24  ;;  %v6145_v31 = vadd.f32 %v6128_v18, %v6112_v22  ;;  %v6246_v22 = vld [vmem:[%s20342_s21 + $0x288] sm:$0xff] }
 0xe03   : > { %v6117_v59 = vmul.f32 %v6099_v63, %v6084_v6  ;;  %v6119_v37 = vmul.f32 %v6107_v36, %v6086_v50  ;;  %v6116_v44 = vmul.f32 %v6095_v3, %v6083_v19  ;;  %v6118_v5 = vmul.f32 %v6103_v11, %v6085_v58 }
 0xe04   : > { %v6147_v32 = vadd.f32 %v6136_v29, %v6114_v26 }
 0xe05   : > { %v6150_v38 = vadd.f32 %v6132_v20, %v6117_v59  ;;  %v6152_v47 = vadd.f32 %v6140_v51, %v6119_v37  ;;  %v6149_v43 = vadd.f32 %v6128_v18, %v6116_v44  ;;  %v6151_v48 = vadd.f32 %v6136_v29, %v6118_v5  ;;  %v6230_v59 = vld [vmem:[%s20342_s21 + $0x208] sm:$0xff] }
 0xe06   : > { %v19007_v55 = vpop.eup %19006  ;;  %v6238_v37 = vld [vmem:[%s20342_s21 + $0x248] sm:$0xff] }
 0xe07   : > { %v21623_v56 = vpack.c.bf16 %v6150_v38, %v6146_v15  ;;  %v21625_v57 = vpack.c.bf16 %v6152_v47, %v6148_v13  ;;  %v6088_v42 = vmul.f32 %v19007_v55, %v21506_v28  ;;  %v6090_v23 = vmul.f32 %v19007_v55, %v21512_v62  ;;  %v6502_v28 = vld [vmem:[%s20342_s21 + $0xa88] sm:$0xff] }
 0xe08   : > { %v21629_v6 = vpack.c.bf16 %v6149_v43, %v6145_v31  ;;  %v21631_v9 = vpack.c.bf16 %v6151_v48, %v6147_v32  ;;  %v6087_v50 = vmul.f32 %v19007_v55, %v21503_v8  ;;  %v6089_v24 = vmul.f32 %v19007_v55, %v21509_v27  ;;  %v6254_v31 = vld [vmem:[%s20342_s21 + $0x2c8] sm:$0xff] }
 0xe09   : > { %9353 = vmatprep.mubr.bf16.mxu1 %v21623_v56  ;;  %9404 = vmatprep.mubr.bf16.mxu0 %v21625_v57  ;;  %v6121_v38 = vmul.f32 %v6099_v63, %v6088_v42  ;;  %v6123_v19 = vmul.f32 %v6107_v36, %v6090_v23  ;;  %v16049_v43 = vcombine.low %v21613_v4, %v6270_v16  ;;  %v6510_v62 = vld [vmem:[%s20342_s21 + $0xac8] sm:$0xff] }
 0xe0a   : > { %9354 = vmatmul.mubr.bf16.vlgmr.msra.gmra.mxu1 %v21629_v6  ;;  %9405 = vmatmul.mubr.bf16.vlgmr.msra.gmra.mxu0 %v21631_v9  ;;  %v6120_v8 = vmul.f32 %v6095_v3, %v6087_v50  ;;  %v6122_v55 = vmul.f32 %v6103_v11, %v6089_v24  ;;  %v23833_v27 = vcombine.low %v21577_v30, %v21580_v21  ;;  %v6222_v44 = vld [vmem:[%s20342_s21 + $0x1c8] sm:$0xff] }
 0xe0b   : > { %v23834_v63 = vcombine.low %v21583_v61, %v21588_v35  ;;  %v16305_v36 = vcombine.low %v6518_v40, %v6526_v10  ;;  %v6154_v58 = vadd.f32 %v6132_v20, %v6121_v38  ;;  %v6156_v4 = vadd.f32 %v6140_v51, %v6123_v19  ;;  %v6486_v61 = vld [vmem:[%s20342_s21 + $0xa08] sm:$0xff] }
 0xe0c   : > { %9424 = vmatpush1.bf16.msra.mxu1 %v23833_v27  ;;  %v6153_v16 = vadd.f32 %v6128_v18, %v6120_v8  ;;  %v6155_v26 = vadd.f32 %v6136_v29, %v6122_v55  ;;  %v16034_v30 = vcombine.high %v6246_v22, %v6254_v31  ;;  %v16290_v21 = vcombine.high %v6502_v28, %v6510_v62  ;;  %v6494_v35 = vld [vmem:[%s20342_s21 + $0xa48] sm:$0xff] }
 0xe0d   : > { %9475 = vmatpush1.bf16.msra.mxu0 %v23834_v63  ;;  %9425 = vmatprep.subr.bf16.mxu1 %v16050_v41  ;;  %v21650_v3 = vpack.c.bf16 %v6154_v58, %v6154_v58  ;;  %v21652_v11 = vpack.c.bf16 %v6156_v4, %v6156_v4  ;;  %v16033_v41 = vcombine.low %v6246_v22, %v6254_v31  ;;  %v6214_v29 = vld [vmem:[%s20342_s21 + $0x188] sm:$0xff] }
 0xe0e   : > { %9476 = vmatprep.subr.bf16.mxu0 %v16306_v33  ;;  %v16289_v20 = vcombine.low %v6502_v28, %v6510_v62  ;;  %v21660_v51 = vpack.c.bf16 %v6153_v16, %v6153_v16  ;;  %v21662_v18 = vpack.c.bf16 %v6155_v26, %v6155_v26  ;;  %v16018_v40 = vcombine.high %v6230_v59, %v6238_v37  ;;  %v6470_v5 = vld [vmem:[%s20342_s21 + $0x988] sm:$0xff] }
 0xe0f   : > { %9363 = vmatprep.mubr.bf16.mxu1 %v21650_v3  ;;  %9414 = vmatprep.mubr.bf16.mxu0 %v21652_v11  ;;  %v16274_v10 = vcombine.high %v6486_v61, %v6494_v35  ;;  %v6478_v33 = vld [vmem:[%s20342_s21 + $0x9c8] sm:$0xff]  ;;  %v16017_v15 = vcombine.low %v6230_v59, %v6238_v37  ;;  %v16273_v13 = vcombine.low %v6486_v61, %v6494_v35 }
 0xe10   : > { %9426 = vmatpush1.bf16.msra.mxu1 %v16049_v43  ;;  %v16002_v47 = vcombine.high %v6214_v29, %v6222_v44  ;;  %v16258_v32 = vcombine.high %v6470_v5, %v6478_v33  ;;  %v6198_v48 = vld [vmem:[%s20342_s21 + $0x108] sm:$0xff]  ;;  %v16001_v24 = vcombine.low %v6214_v29, %v6222_v44  ;;  %v16257_v38 = vcombine.low %v6470_v5, %v6478_v33 }
 0xe11   : > { %9477 = vmatpush1.bf16.msra.mxu0 %v16305_v36  ;;  %9427 = vmatprep.subr.bf16.mxu1 %v16034_v30  ;;  %v6206_v42 = vld [vmem:[%s20342_s21 + $0x148] sm:$0xff] }
 0xe12   : > { %9478 = vmatprep.subr.bf16.mxu0 %v16290_v21  ;;  %9364 = vmatmul.mubr.bf16.gmra.mxu1 %v21660_v51  ;;  %v6454_v23 = vld [vmem:[%s20342_s21 + $0x908] sm:$0xff]  ;;  %v15986_v19 = vcombine.high %v6198_v48, %v6206_v42  ;;  %v15985_v8 = vcombine.low %v6198_v48, %v6206_v42 }
 0xe13   : > { %9415 = vmatmul.mubr.bf16.gmra.mxu0 %v21662_v18  ;;  %9455 = vmatprep.mubr.bf16.mxu1 %v21623_v56  ;;  %v6462_v50 = vld [vmem:[%s20342_s21 + $0x948] sm:$0xff] }
 0xe14   : > { %9428 = vmatpush1.bf16.msra.mxu1 %v16033_v41  ;;  %9506 = vmatprep.mubr.bf16.mxu0 %v21625_v57  ;;  %v16242_v22 = vcombine.high %v6454_v23, %v6462_v50  ;;  %v6182_v43 = vld [vmem:[%s20342_s21 + $0x88] sm:$0xff]  ;;  %v16241_v55 = vcombine.low %v6454_v23, %v6462_v50 }
 0xe15   : > { %9479 = vmatpush1.bf16.msra.mxu0 %v16289_v20  ;;  %9429 = vmatprep.subr.bf16.mxu1 %v16018_v40  ;;  %v6190_v31 = vld [vmem:[%s20342_s21 + $0xc8] sm:$0xff] }
 0xe16   : > { %9480 = vmatprep.subr.bf16.mxu0 %v16274_v10  ;;  %v6438_v28 = vld [vmem:[%s20342_s21 + $0x888] sm:$0xff]  ;;  %v15970_v27 = vcombine.high %v6182_v43, %v6190_v31  ;;  %v15969_v26 = vcombine.low %v6182_v43, %v6190_v31 }
 0xe17   : > { %v6446_v62 = vld [vmem:[%s20342_s21 + $0x8c8] sm:$0xff] }
 0xe18   : > { %9430 = vmatpush1.bf16.msra.mxu1 %v16017_v15  ;;  %v16226_v63 = vcombine.high %v6438_v28, %v6446_v62  ;;  %v6166_v36 = vld [vmem:[%s20342_s21 + $0x8] sm:$0xff]  ;;  %v16225_v30 = vcombine.low %v6438_v28, %v6446_v62 }
 0xe19   : > { %9481 = vmatpush1.bf16.msra.mxu0 %v16273_v13  ;;  %9431 = vmatprep.subr.bf16.mxu1 %v16002_v47  ;;  %v6174_v58 = vld [vmem:[%s20342_s21 + $0x48] sm:$0xff] }
 0xe1a   : > { %9482 = vmatprep.subr.bf16.mxu0 %v16258_v32  ;;  %v6422_v4 = vld [vmem:[%s20342_s21 + $0x808] sm:$0xff]  ;;  %v15954_v21 = vcombine.high %v6166_v36, %v6174_v58  ;;  %v15953_v20 = vcombine.low %v6166_v36, %v6174_v58 }
 0xe1b   : > { %v6430_v16 = vld [vmem:[%s20342_s21 + $0x848] sm:$0xff] }
 0xe1c   : > { %9432 = vmatpush1.bf16.msra.mxu1 %v16001_v24  ;;  %v16210_v59 = vcombine.high %v6422_v4, %v6430_v16  ;;  %v6406_v37 = vld [vmem:[%s20342_s21 + $0x788] sm:$0xff]  ;;  %v16209_v29 = vcombine.low %v6422_v4, %v6430_v16 }
 0xe1d   : > { %9483 = vmatpush1.bf16.msra.mxu0 %v16257_v38  ;;  %9433 = vmatprep.subr.bf16.mxu1 %v15986_v19  ;;  %v6414_v61 = vld [vmem:[%s20342_s21 + $0x7c8] sm:$0xff] }
 0xe1e   : > { %9484 = vmatprep.subr.bf16.mxu0 %v16242_v22  ;;  %v6662_v35 = vld [vmem:[%s20342_s21 + $0xf88] sm:$0xff]  ;;  %v16194_v40 = vcombine.high %v6406_v37, %v6414_v61  ;;  %v16193_v13 = vcombine.low %v6406_v37, %v6414_v61 }
 0xe1f   : > { %v6670_v41 = vld [vmem:[%s20342_s21 + $0xfc8] sm:$0xff] }
 0xe20   : > { %9434 = vmatpush1.bf16.msra.mxu1 %v15985_v8  ;;  %v16450_v10 = vcombine.high %v6662_v35, %v6670_v41  ;;  %v6390_v44 = vld [vmem:[%s20342_s21 + $0x708] sm:$0xff]  ;;  %v16449_v47 = vcombine.low %v6662_v35, %v6670_v41 }
 0xe21   : > { %9485 = vmatpush1.bf16.msra.mxu0 %v16241_v55  ;;  %9435 = vmatprep.subr.bf16.mxu1 %v15970_v27  ;;  %v6398_v5 = vld [vmem:[%s20342_s21 + $0x748] sm:$0xff] }
 0xe22   : > { %9486 = vmatprep.subr.bf16.mxu0 %v16226_v63  ;;  %v6646_v33 = vld [vmem:[%s20342_s21 + $0xf08] sm:$0xff]  ;;  %v16178_v32 = vcombine.high %v6390_v44, %v6398_v5  ;;  %v16177_v38 = vcombine.low %v6390_v44, %v6398_v5 }
 0xe23   : > { %v6654_v15 = vld [vmem:[%s20342_s21 + $0xf48] sm:$0xff] }
 0xe24   : > { %9436 = vmatpush1.bf16.msra.mxu1 %v15969_v26  ;;  %v16434_v48 = vcombine.high %v6646_v33, %v6654_v15  ;;  %v6374_v42 = vld [vmem:[%s20342_s21 + $0x688] sm:$0xff]  ;;  %v16433_v19 = vcombine.low %v6646_v33, %v6654_v15 }
 0xe25   : > { %9487 = vmatpush1.bf16.msra.mxu0 %v16225_v30  ;;  %9437 = vmatprep.subr.bf16.mxu1 %v15954_v21  ;;  %v6382_v23 = vld [vmem:[%s20342_s21 + $0x6c8] sm:$0xff] }
 0xe26   : > { %9488 = vmatprep.subr.bf16.mxu0 %v16210_v59  ;;  %v6630_v50 = vld [vmem:[%s20342_s21 + $0xe88] sm:$0xff]  ;;  %v16162_v22 = vcombine.high %v6374_v42, %v6382_v23  ;;  %v16161_v55 = vcombine.low %v6374_v42, %v6382_v23 }
 0xe27   : > { %v6638_v24 = vld [vmem:[%s20342_s21 + $0xec8] sm:$0xff] }
 0xe28   : > { %9438 = vmatpush1.bf16.msra.mxu1 %v15953_v20  ;;  %v16418_v43 = vcombine.high %v6630_v50, %v6638_v24  ;;  %v6358_v31 = vld [vmem:[%s20342_s21 + $0x608] sm:$0xff]  ;;  %v16417_v27 = vcombine.low %v6630_v50, %v6638_v24 }
 0xe29   : > { %9489 = vmatpush1.bf16.msra.mxu0 %v16209_v29  ;;  %9439 = vmatprep.subr.bf16.mxu1 %v16194_v40  ;;  %v6366_v28 = vld [vmem:[%s20342_s21 + $0x648] sm:$0xff] }
 0xe2a   : > { %9490 = vmatprep.subr.bf16.mxu0 %v16450_v10  ;;  %v6614_v62 = vld [vmem:[%s20342_s21 + $0xe08] sm:$0xff]  ;;  %v16146_v63 = vcombine.high %v6358_v31, %v6366_v28  ;;  %v16145_v30 = vcombine.low %v6358_v31, %v6366_v28  ;;  %v6279_v28 = vld [vmem:[%s20342_s21 + $0x390] sm:$0xff] }
 0xe2b   : > { %v6622_v8 = vld [vmem:[%s20342_s21 + $0xe48] sm:$0xff] }
 0xe2c   : > { %9440 = vmatpush2.bf16.msra.mxu1 %v16193_v13  ;;  %v16402_v36 = vcombine.high %v6614_v62, %v6622_v8  ;;  %v6342_v58 = vld [vmem:[%s20342_s21 + $0x588] sm:$0xff]  ;;  %v16401_v21 = vcombine.low %v6614_v62, %v6622_v8  ;;  %v6287_v62 = vld [vmem:[%s20342_s21 + $0x3d0] sm:$0xff] }
 0xe2d   : > { %9491 = vmatpush2.bf16.msra.mxu0 %v16449_v47  ;;  %9441 = vmatprep.subr.bf16.mxu1 %v16178_v32  ;;  %v6350_v4 = vld [vmem:[%s20342_s21 + $0x5c8] sm:$0xff]  ;;  %v6535_v8 = vld [vmem:[%s20342_s21 + $0xb90] sm:$0xff] }
 0xe2e   : > { %9492 = vmatprep.subr.bf16.mxu0 %v16434_v48  ;;  %v6598_v16 = vld [vmem:[%s20342_s21 + $0xd88] sm:$0xff]  ;;  %v16130_v59 = vcombine.high %v6342_v58, %v6350_v4  ;;  %v16129_v29 = vcombine.low %v6342_v58, %v6350_v4  ;;  %v6263_v4 = vld [vmem:[%s20342_s21 + $0x310] sm:$0xff] }
 0xe2f   : > { %v6606_v26 = vld [vmem:[%s20342_s21 + $0xdc8] sm:$0xff] }
 0xe30   : > { %9442 = vmatpush2.bf16.msra.mxu1 %v16177_v38  ;;  %v16386_v37 = vcombine.high %v6598_v16, %v6606_v26  ;;  %v6326_v61 = vld [vmem:[%s20342_s21 + $0x508] sm:$0xff]  ;;  %v16385_v40 = vcombine.low %v6598_v16, %v6606_v26  ;;  %v6271_v16 = vld [vmem:[%s20342_s21 + $0x350] sm:$0xff] }
 0xe31   : > { %9493 = vmatpush2.bf16.msra.mxu0 %v16433_v19  ;;  %9443 = vmatprep.subr.bf16.mxu1 %v16162_v22  ;;  %v6334_v35 = vld [vmem:[%s20342_s21 + $0x548] sm:$0xff]  ;;  %v6519_v26 = vld [vmem:[%s20342_s21 + $0xb10] sm:$0xff] }
 0xe32   : > { %9494 = vmatprep.subr.bf16.mxu0 %v16418_v43  ;;  %v6582_v41 = vld [vmem:[%s20342_s21 + $0xd08] sm:$0xff]  ;;  %v16114_v10 = vcombine.high %v6326_v61, %v6334_v35  ;;  %v16113_v47 = vcombine.low %v6326_v61, %v6334_v35  ;;  %v6247_v35 = vld [vmem:[%s20342_s21 + $0x290] sm:$0xff] }
 0xe33   : > { %v6590_v20 = vld [vmem:[%s20342_s21 + $0xd48] sm:$0xff] }
 0xe34   : > { %9444 = vmatpush2.bf16.msra.mxu1 %v16161_v55  ;;  %v16370_v44 = vcombine.high %v6582_v41, %v6590_v20  ;;  %v6310_v5 = vld [vmem:[%s20342_s21 + $0x488] sm:$0xff]  ;;  %v16369_v32 = vcombine.low %v6582_v41, %v6590_v20  ;;  %v6543_v55 = vld [vmem:[%s20342_s21 + $0xbd0] sm:$0xff] }
 0xe35   : > { %9495 = vmatpush2.bf16.msra.mxu0 %v16417_v27  ;;  %9445 = vmatprep.subr.bf16.mxu1 %v16146_v63  ;;  %v6318_v33 = vld [vmem:[%s20342_s21 + $0x4c8] sm:$0xff]  ;;  %v16324_v58 = vcombine.high %v6535_v8, %v6543_v55  ;;  %v6255_v41 = vld [vmem:[%s20342_s21 + $0x2d0] sm:$0xff] }
 0xe36   : > { %9496 = vmatprep.subr.bf16.mxu0 %v16402_v36  ;;  %v6566_v15 = vld [vmem:[%s20342_s21 + $0xc88] sm:$0xff]  ;;  %v16098_v48 = vcombine.high %v6310_v5, %v6318_v33  ;;  %v16097_v19 = vcombine.low %v6310_v5, %v6318_v33  ;;  %v16068_v36 = vcombine.high %v6279_v28, %v6287_v62  ;;  %v6503_v20 = vld [vmem:[%s20342_s21 + $0xa90] sm:$0xff] }
 0xe37   : > { %v6574_v13 = vld [vmem:[%s20342_s21 + $0xcc8] sm:$0xff]  ;;  %v6231_v33 = vld [vmem:[%s20342_s21 + $0x210] sm:$0xff] }
 0xe38   : > { %9446 = vmatpush2.bf16.msra.mxu1 %v16145_v30  ;;  %v16354_v42 = vcombine.high %v6566_v15, %v6574_v13  ;;  %v6294_v23 = vld [vmem:[%s20342_s21 + $0x408] sm:$0xff]  ;;  %v16353_v22 = vcombine.low %v6566_v15, %v6574_v13  ;;  %v6527_v30 = vld [vmem:[%s20342_s21 + $0xb50] sm:$0xff] }
 0xe39   : > { %9497 = vmatpush2.bf16.msra.mxu0 %v16401_v21  ;;  %9447 = vmatprep.subr.bf16.mxu1 %v16130_v59  ;;  %v6302_v50 = vld [vmem:[%s20342_s21 + $0x448] sm:$0xff]  ;;  %v16067_v21 = vcombine.low %v6279_v28, %v6287_v62  ;;  %v16323_v59 = vcombine.low %v6535_v8, %v6543_v55  ;;  %v16308_v61 = vcombine.high %v6519_v26, %v6527_v30  ;;  %v6239_v15 = vld [vmem:[%s20342_s21 + $0x250] sm:$0xff] }
 0xe3a   : > { %9498 = vmatprep.subr.bf16.mxu0 %v16386_v37  ;;  %v6550_v24 = vld [vmem:[%s20342_s21 + $0xc08] sm:$0xff]  ;;  %v16082_v43 = vcombine.high %v6294_v23, %v6302_v50  ;;  %v16081_v27 = vcombine.low %v6294_v23, %v6302_v50  ;;  %v16052_v37 = vcombine.high %v6263_v4, %v6271_v16  ;;  %v6487_v13 = vld [vmem:[%s20342_s21 + $0xa10] sm:$0xff] }
 0xe3b   : > { %v6558_v38 = vld [vmem:[%s20342_s21 + $0xc48] sm:$0xff]  ;;  %v6215_v50 = vld [vmem:[%s20342_s21 + $0x190] sm:$0xff] }
 0xe3c   : > { %9448 = vmatpush2.bf16.msra.mxu1 %v16129_v29  ;;  %v16338_v31 = vcombine.high %v6550_v24, %v6558_v38  ;;  %v16337_v63 = vcombine.low %v6550_v24, %v6558_v38  ;;  %v6511_v29 = vld [vmem:[%s20342_s21 + $0xad0] sm:$0xff] }
 0xe3d   : > { %9499 = vmatpush2.bf16.msra.mxu0 %v16385_v40  ;;  %9449 = vmatprep.subr.bf16.mxu1 %v16114_v10  ;;  %v16051_v40 = vcombine.low %v6263_v4, %v6271_v16  ;;  %v16307_v10 = vcombine.low %v6519_v26, %v6527_v30  ;;  %v16292_v5 = vcombine.high %v6503_v20, %v6511_v29  ;;  %v6223_v24 = vld [vmem:[%s20342_s21 + $0x1d0] sm:$0xff] }
 0xe3e   : > { %9500 = vmatprep.subr.bf16.mxu0 %v16370_v44  ;;  %v16036_v44 = vcombine.high %v6247_v35, %v6255_v41  ;;  %v6471_v38 = vld [vmem:[%s20342_s21 + $0x990] sm:$0xff] }
 0xe3f   : > { %v6199_v62 = vld [vmem:[%s20342_s21 + $0x110] sm:$0xff] }
 0xe40   : > { %9450 = vmatpush2.bf16.msra.mxu1 %v16113_v47  ;;  %v6495_v47 = vld [vmem:[%s20342_s21 + $0xa50] sm:$0xff] }
 0xe41   : > { %9501 = vmatpush2.bf16.msra.mxu0 %v16369_v32  ;;  %9451 = vmatprep.subr.bf16.mxu1 %v16098_v48  ;;  %v16035_v32 = vcombine.low %v6247_v35, %v6255_v41  ;;  %v16291_v48 = vcombine.low %v6503_v20, %v6511_v29  ;;  %v16276_v23 = vcombine.high %v6487_v13, %v6495_v47  ;;  %v6207_v8 = vld [vmem:[%s20342_s21 + $0x150] sm:$0xff] }
 0xe42   : > { %9502 = vmatprep.subr.bf16.mxu0 %v16354_v42  ;;  %v16020_v42 = vcombine.high %v6231_v33, %v6239_v15  ;;  %v6455_v55 = vld [vmem:[%s20342_s21 + $0x910] sm:$0xff] }
 0xe43   : > { %v6183_v16 = vld [vmem:[%s20342_s21 + $0x90] sm:$0xff] }
 0xe44   : > { %9452 = vmatpush2.bf16.msra.mxu1 %v16097_v19  ;;  %v6479_v19 = vld [vmem:[%s20342_s21 + $0x9d0] sm:$0xff] }
 0xe45   : > { %9503 = vmatpush2.bf16.msra.mxu0 %v16353_v22  ;;  %9453 = vmatprep.subr.bf16.mxu1 %v16082_v43  ;;  %v16019_v22 = vcombine.low %v6231_v33, %v6239_v15  ;;  %v16275_v43 = vcombine.low %v6487_v13, %v6495_v47  ;;  %v16260_v28 = vcombine.high %v6471_v38, %v6479_v19  ;;  %v6191_v26 = vld [vmem:[%s20342_s21 + $0xd0] sm:$0xff] }
 0xe46   : > { %9504 = vmatprep.subr.bf16.mxu0 %v16338_v31  ;;  %v16004_v31 = vcombine.high %v6215_v50, %v6223_v24  ;;  %v6439_v30 = vld [vmem:[%s20342_s21 + $0x890] sm:$0xff] }
 0xe47   : > { %v6167_v41 = vld [vmem:[%s20342_s21 + $0x10] sm:$0xff] }
 0xe48   : > { %9454 = vmatpush2.bf16.msra.mxu1 %v16081_v27  ;;  %v6463_v27 = vld [vmem:[%s20342_s21 + $0x950] sm:$0xff] }
 0xe49   : > { %9505 = vmatpush2.bf16.msra.mxu0 %v16337_v63  ;;  %9525 = vmatprep.subr.bf16.mxu1 %v16068_v36  ;;  %v16003_v63 = vcombine.low %v6215_v50, %v6223_v24  ;;  %v16259_v36 = vcombine.low %v6471_v38, %v6479_v19  ;;  %v16244_v4 = vcombine.high %v6455_v55, %v6463_v27  ;;  %v6175_v20 = vld [vmem:[%s20342_s21 + $0x50] sm:$0xff] }
 0xe4a   : > { %9576 = vmatprep.subr.bf16.mxu0 %v16324_v58  ;;  %v15988_v58 = vcombine.high %v6199_v62, %v6207_v8  ;;  %v6423_v29 = vld [vmem:[%s20342_s21 + $0x810] sm:$0xff] }
 0xe4b   : > { %9456 = vmatmul.mubr.bf16.vlgmr.msra.gmra.mxu1 %v21629_v6  ;;  %v6407_v15 = vld [vmem:[%s20342_s21 + $0x790] sm:$0xff] }
 0xe4c   : > { %9507 = vmatmul.mubr.bf16.vlgmr.msra.gmra.mxu0 %v21631_v9  ;;  %9465 = vmatprep.mubr.bf16.mxu1 %v21650_v3  ;;  %v6415_v13 = vld [vmem:[%s20342_s21 + $0x7d0] sm:$0xff] }
 0xe4d   : > { %9516 = vmatprep.mubr.bf16.mxu0 %v21652_v11  ;;  %9526 = vmatpush1.bf16.msra.mxu1 %v16067_v21  ;;  %v6447_v21 = vld [vmem:[%s20342_s21 + $0x8d0] sm:$0xff] }
 0xe4e   : > { %9577 = vmatpush1.bf16.msra.mxu0 %v16323_v59  ;;  %9527 = vmatprep.subr.bf16.mxu1 %v16052_v37  ;;  %v15987_v59 = vcombine.low %v6199_v62, %v6207_v8  ;;  %v16243_v37 = vcombine.low %v6455_v55, %v6463_v27  ;;  %v16228_v35 = vcombine.high %v6439_v30, %v6447_v21  ;;  %v6663_v47 = vld [vmem:[%s20342_s21 + $0xf90] sm:$0xff] }
 0xe4f   : > { %9578 = vmatprep.subr.bf16.mxu0 %v16308_v61  ;;  %v15972_v61 = vcombine.high %v6183_v16, %v6191_v26  ;;  %v6391_v24 = vld [vmem:[%s20342_s21 + $0x710] sm:$0xff] }
 0xe50   : > { %v6399_v38 = vld [vmem:[%s20342_s21 + $0x750] sm:$0xff] }
 0xe51   : > { %9528 = vmatpush1.bf16.msra.mxu1 %v16051_v40  ;;  %v6431_v40 = vld [vmem:[%s20342_s21 + $0x850] sm:$0xff] }
 0xe52   : > { %9579 = vmatpush1.bf16.msra.mxu0 %v16307_v10  ;;  %9529 = vmatprep.subr.bf16.mxu1 %v16036_v44  ;;  %v15971_v10 = vcombine.low %v6183_v16, %v6191_v26  ;;  %v16227_v44 = vcombine.low %v6439_v30, %v6447_v21  ;;  %v16212_v33 = vcombine.high %v6423_v29, %v6431_v40  ;;  %v6647_v19 = vld [vmem:[%s20342_s21 + $0xf10] sm:$0xff] }
 0xe53   : > { %9580 = vmatprep.subr.bf16.mxu0 %v16292_v5  ;;  %9466 = vmatmul.mubr.bf16.gmra.mxu1 %v21660_v51  ;;  %v15956_v5 = vcombine.high %v6167_v41, %v6175_v20  ;;  %v6375_v8 = vld [vmem:[%s20342_s21 + $0x690] sm:$0xff] }
 0xe54   : > { %9517 = vmatmul.mubr.bf16.gmra.mxu0 %v21662_v18  ;;  %9557 = vmatprep.mubr.bf16.mxu1 %v21623_v56  ;;  %v6383_v55 = vld [vmem:[%s20342_s21 + $0x6d0] sm:$0xff] }
 0xe55   : > { %9608 = vmatprep.mubr.bf16.mxu0 %v21625_v57  ;;  %9530 = vmatpush1.bf16.msra.mxu1 %v16035_v32  ;;  %v6671_v32 = vld [vmem:[%s20342_s21 + $0xfd0] sm:$0xff] }
 0xe56   : > { %9581 = vmatpush1.bf16.msra.mxu0 %v16291_v48  ;;  %9531 = vmatprep.subr.bf16.mxu1 %v16020_v42  ;;  %v15955_v48 = vcombine.low %v6167_v41, %v6175_v20  ;;  %v16211_v42 = vcombine.low %v6423_v29, %v6431_v40  ;;  %v16452_v50 = vcombine.high %v6663_v47, %v6671_v32  ;;  %v6631_v27 = vld [vmem:[%s20342_s21 + $0xe90] sm:$0xff] }
 0xe57   : > { %9582 = vmatprep.subr.bf16.mxu0 %v16276_v23  ;;  %v16196_v23 = vcombine.high %v6407_v15, %v6415_v13  ;;  %v6359_v26 = vld [vmem:[%s20342_s21 + $0x610] sm:$0xff] }
 0xe58   : > { %v6367_v30 = vld [vmem:[%s20342_s21 + $0x650] sm:$0xff] }
 0xe59   : > { %9532 = vmatpush1.bf16.msra.mxu1 %v16019_v22  ;;  %v6655_v22 = vld [vmem:[%s20342_s21 + $0xf50] sm:$0xff] }
 0xe5a   : > { %9583 = vmatpush1.bf16.msra.mxu0 %v16275_v43  ;;  %9533 = vmatprep.subr.bf16.mxu1 %v16004_v31  ;;  %v16195_v43 = vcombine.low %v6407_v15, %v6415_v13  ;;  %v16451_v31 = vcombine.low %v6663_v47, %v6671_v32  ;;  %v16436_v62 = vcombine.high %v6647_v19, %v6655_v22  ;;  %v6615_v21 = vld [vmem:[%s20342_s21 + $0xe10] sm:$0xff] }
 0xe5b   : > { %9584 = vmatprep.subr.bf16.mxu0 %v16260_v28  ;;  %v16180_v28 = vcombine.high %v6391_v24, %v6399_v38  ;;  %v6343_v20 = vld [vmem:[%s20342_s21 + $0x590] sm:$0xff] }
 0xe5c   : > { %v6351_v29 = vld [vmem:[%s20342_s21 + $0x5d0] sm:$0xff] }
 0xe5d   : > { %9534 = vmatpush1.bf16.msra.mxu1 %v16003_v63  ;;  %v6639_v63 = vld [vmem:[%s20342_s21 + $0xed0] sm:$0xff] }
 0xe5e   : > { %9585 = vmatpush1.bf16.msra.mxu0 %v16259_v36  ;;  %9535 = vmatprep.subr.bf16.mxu1 %v15988_v58  ;;  %v16179_v36 = vcombine.low %v6391_v24, %v6399_v38  ;;  %v16435_v58 = vcombine.low %v6647_v19, %v6655_v22  ;;  %v16420_v16 = vcombine.high %v6631_v27, %v6639_v63  ;;  %v6599_v40 = vld [vmem:[%s20342_s21 + $0xd90] sm:$0xff] }
 0xe5f   : > { %9586 = vmatprep.subr.bf16.mxu0 %v16244_v4  ;;  %v16164_v4 = vcombine.high %v6375_v8, %v6383_v55  ;;  %v6327_v13 = vld [vmem:[%s20342_s21 + $0x510] sm:$0xff] }
 0xe60   : > { %v6335_v47 = vld [vmem:[%s20342_s21 + $0x550] sm:$0xff] }
 0xe61   : > { %9536 = vmatpush1.bf16.msra.mxu1 %v15987_v59  ;;  %v6623_v59 = vld [vmem:[%s20342_s21 + $0xe50] sm:$0xff] }
 0xe62   : > { %9587 = vmatpush1.bf16.msra.mxu0 %v16243_v37  ;;  %9537 = vmatprep.subr.bf16.mxu1 %v15972_v61  ;;  %v16163_v37 = vcombine.low %v6375_v8, %v6383_v55  ;;  %v16419_v61 = vcombine.low %v6631_v27, %v6639_v63  ;;  %v16404_v41 = vcombine.high %v6615_v21, %v6623_v59  ;;  %v6583_v32 = vld [vmem:[%s20342_s21 + $0xd10] sm:$0xff] }
 0xe63   : > { %9588 = vmatprep.subr.bf16.mxu0 %v16228_v35  ;;  %v16148_v35 = vcombine.high %v6359_v26, %v6367_v30  ;;  %v6311_v38 = vld [vmem:[%s20342_s21 + $0x490] sm:$0xff] }
 0xe64   : > { %v6319_v19 = vld [vmem:[%s20342_s21 + $0x4d0] sm:$0xff] }
 0xe65   : > { %9538 = vmatpush1.bf16.msra.mxu1 %v15971_v10  ;;  %v6607_v10 = vld [vmem:[%s20342_s21 + $0xdd0] sm:$0xff] }
 0xe66   : > { %9589 = vmatpush1.bf16.msra.mxu0 %v16227_v44  ;;  %9539 = vmatprep.subr.bf16.mxu1 %v15956_v5  ;;  %v16147_v44 = vcombine.low %v6359_v26, %v6367_v30  ;;  %v16403_v5 = vcombine.low %v6615_v21, %v6623_v59  ;;  %v16388_v15 = vcombine.high %v6599_v40, %v6607_v10  ;;  %v6567_v22 = vld [vmem:[%s20342_s21 + $0xc90] sm:$0xff]  ;;  %v6280_v30 = vld [vmem:[%s20342_s21 + $0x398] sm:$0xff] }
 0xe67   : > { %9590 = vmatprep.subr.bf16.mxu0 %v16212_v33  ;;  %v16132_v33 = vcombine.high %v6343_v20, %v6351_v29  ;;  %v6295_v55 = vld [vmem:[%s20342_s21 + $0x410] sm:$0xff]  ;;  %v6288_v21 = vld [vmem:[%s20342_s21 + $0x3d8] sm:$0xff] }
 0xe68   : > { %v6303_v27 = vld [vmem:[%s20342_s21 + $0x450] sm:$0xff]  ;;  %v6536_v59 = vld [vmem:[%s20342_s21 + $0xb98] sm:$0xff] }
 0xe69   : > { %9540 = vmatpush1.bf16.msra.mxu1 %v15955_v48  ;;  %v6591_v48 = vld [vmem:[%s20342_s21 + $0xd50] sm:$0xff] }
 0xe6a   : > { %9591 = vmatpush1.bf16.msra.mxu0 %v16211_v42  ;;  %9541 = vmatprep.subr.bf16.mxu1 %v16196_v23  ;;  %v16131_v42 = vcombine.low %v6343_v20, %v6351_v29  ;;  %v16387_v23 = vcombine.low %v6599_v40, %v6607_v10  ;;  %v16372_v24 = vcombine.high %v6583_v32, %v6591_v48  ;;  %v6551_v63 = vld [vmem:[%s20342_s21 + $0xc10] sm:$0xff]  ;;  %v6264_v29 = vld [vmem:[%s20342_s21 + $0x318] sm:$0xff] }
 0xe6b   : > { %9592 = vmatprep.subr.bf16.mxu0 %v16452_v50  ;;  %v16116_v50 = vcombine.high %v6327_v13, %v6335_v47  ;;  %v6272_v40 = vld [vmem:[%s20342_s21 + $0x358] sm:$0xff] }
 0xe6c   : > { %v6520_v10 = vld [vmem:[%s20342_s21 + $0xb18] sm:$0xff] }
 0xe6d   : > { %9542 = vmatpush2.bf16.msra.mxu1 %v16195_v43  ;;  %v6575_v43 = vld [vmem:[%s20342_s21 + $0xcd0] sm:$0xff] }
 0xe6e   : > { %9593 = vmatpush2.bf16.msra.mxu0 %v16451_v31  ;;  %9543 = vmatprep.subr.bf16.mxu1 %v16180_v28  ;;  %v16115_v31 = vcombine.low %v6327_v13, %v6335_v47  ;;  %v16371_v28 = vcombine.low %v6583_v32, %v6591_v48  ;;  %v16356_v8 = vcombine.high %v6567_v22, %v6575_v43  ;;  %v6248_v47 = vld [vmem:[%s20342_s21 + $0x298] sm:$0xff] }
 0xe6f   : > { %9594 = vmatprep.subr.bf16.mxu0 %v16436_v62  ;;  %v16100_v62 = vcombine.high %v6311_v38, %v6319_v19  ;;  %v6256_v32 = vld [vmem:[%s20342_s21 + $0x2d8] sm:$0xff] }
 0xe70   : > { %v6504_v48 = vld [vmem:[%s20342_s21 + $0xa98] sm:$0xff] }
 0xe71   : > { %9544 = vmatpush2.bf16.msra.mxu1 %v16179_v36  ;;  %v6559_v36 = vld [vmem:[%s20342_s21 + $0xc50] sm:$0xff] }
 0xe72   : > { %9595 = vmatpush2.bf16.msra.mxu0 %v16435_v58  ;;  %9545 = vmatprep.subr.bf16.mxu1 %v16164_v4  ;;  %v16099_v58 = vcombine.low %v6311_v38, %v6319_v19  ;;  %v16355_v4 = vcombine.low %v6567_v22, %v6575_v43  ;;  %v16340_v26 = vcombine.high %v6551_v63, %v6559_v36  ;;  %v6232_v19 = vld [vmem:[%s20342_s21 + $0x218] sm:$0xff] }
 0xe73   : > { %9596 = vmatprep.subr.bf16.mxu0 %v16420_v16  ;;  %v16084_v16 = vcombine.high %v6295_v55, %v6303_v27  ;;  %v6240_v22 = vld [vmem:[%s20342_s21 + $0x258] sm:$0xff] }
 0xe74   : > { %v6488_v43 = vld [vmem:[%s20342_s21 + $0xa18] sm:$0xff] }
 0xe75   : > { %9546 = vmatpush2.bf16.msra.mxu1 %v16163_v37  ;;  %v6544_v37 = vld [vmem:[%s20342_s21 + $0xbd8] sm:$0xff] }
 0xe76   : > { %9597 = vmatpush2.bf16.msra.mxu0 %v16419_v61  ;;  %9547 = vmatprep.subr.bf16.mxu1 %v16148_v35  ;;  %v16083_v61 = vcombine.low %v6295_v55, %v6303_v27  ;;  %v16339_v35 = vcombine.low %v6551_v63, %v6559_v36  ;;  %v16326_v20 = vcombine.high %v6536_v59, %v6544_v37  ;;  %v6216_v27 = vld [vmem:[%s20342_s21 + $0x198] sm:$0xff] }
 0xe77   : > { %9598 = vmatprep.subr.bf16.mxu0 %v16404_v41  ;;  %v16070_v41 = vcombine.high %v6280_v30, %v6288_v21  ;;  %v6224_v63 = vld [vmem:[%s20342_s21 + $0x1d8] sm:$0xff] }
 0xe78   : > { %v6472_v36 = vld [vmem:[%s20342_s21 + $0x998] sm:$0xff] }
 0xe79   : > { %9548 = vmatpush2.bf16.msra.mxu1 %v16147_v44  ;;  %v6528_v44 = vld [vmem:[%s20342_s21 + $0xb58] sm:$0xff] }
 0xe7a   : > { %9599 = vmatpush2.bf16.msra.mxu0 %v16403_v5  ;;  %9549 = vmatprep.subr.bf16.mxu1 %v16132_v33  ;;  %v16069_v5 = vcombine.low %v6280_v30, %v6288_v21  ;;  %v16325_v33 = vcombine.low %v6536_v59, %v6544_v37  ;;  %v16310_v13 = vcombine.high %v6520_v10, %v6528_v44  ;;  %v6200_v21 = vld [vmem:[%s20342_s21 + $0x118] sm:$0xff] }
 0xe7b   : > { %9600 = vmatprep.subr.bf16.mxu0 %v16388_v15  ;;  %v16054_v15 = vcombine.high %v6264_v29, %v6272_v40  ;;  %v6208_v59 = vld [vmem:[%s20342_s21 + $0x158] sm:$0xff] }
 0xe7c   : > { %v6456_v37 = vld [vmem:[%s20342_s21 + $0x918] sm:$0xff] }
 0xe7d   : > { %9550 = vmatpush2.bf16.msra.mxu1 %v16131_v42  ;;  %v6512_v42 = vld [vmem:[%s20342_s21 + $0xad8] sm:$0xff] }
 0xe7e   : > { %9601 = vmatpush2.bf16.msra.mxu0 %v16387_v23  ;;  %9551 = vmatprep.subr.bf16.mxu1 %v16116_v50  ;;  %v16053_v23 = vcombine.low %v6264_v29, %v6272_v40  ;;  %v16309_v50 = vcombine.low %v6520_v10, %v6528_v44  ;;  %v16294_v38 = vcombine.high %v6504_v48, %v6512_v42  ;;  %v6184_v40 = vld [vmem:[%s20342_s21 + $0x98] sm:$0xff] }
 0xe7f   : > { %9602 = vmatprep.subr.bf16.mxu0 %v16372_v24  ;;  %v16038_v24 = vcombine.high %v6248_v47, %v6256_v32  ;;  %v6192_v10 = vld [vmem:[%s20342_s21 + $0xd8] sm:$0xff] }
 0xe80   : > { %v6440_v44 = vld [vmem:[%s20342_s21 + $0x898] sm:$0xff] }
 0xe81   : > { %9552 = vmatpush2.bf16.msra.mxu1 %v16115_v31  ;;  %v6496_v31 = vld [vmem:[%s20342_s21 + $0xa58] sm:$0xff] }
 0xe82   : > { %9603 = vmatpush2.bf16.msra.mxu0 %v16371_v28  ;;  %9553 = vmatprep.subr.bf16.mxu1 %v16100_v62  ;;  %v16037_v28 = vcombine.low %v6248_v47, %v6256_v32  ;;  %v16293_v62 = vcombine.low %v6504_v48, %v6512_v42  ;;  %v16278_v55 = vcombine.high %v6488_v43, %v6496_v31  ;;  %v6168_v32 = vld [vmem:[%s20342_s21 + $0x18] sm:$0xff] }
 0xe83   : > { %9604 = vmatprep.subr.bf16.mxu0 %v16356_v8  ;;  %v16022_v8 = vcombine.high %v6232_v19, %v6240_v22  ;;  %v6176_v48 = vld [vmem:[%s20342_s21 + $0x58] sm:$0xff] }
 0xe84   : > { %v6424_v42 = vld [vmem:[%s20342_s21 + $0x818] sm:$0xff] }
 0xe85   : > { %9554 = vmatpush2.bf16.msra.mxu1 %v16099_v58  ;;  %v6480_v58 = vld [vmem:[%s20342_s21 + $0x9d8] sm:$0xff] }
 0xe86   : > { %9605 = vmatpush2.bf16.msra.mxu0 %v16355_v4  ;;  %9555 = vmatprep.subr.bf16.mxu1 %v16084_v16  ;;  %v16021_v4 = vcombine.low %v6232_v19, %v6240_v22  ;;  %v16277_v16 = vcombine.low %v6488_v43, %v6496_v31  ;;  %v16262_v30 = vcombine.high %v6472_v36, %v6480_v58  ;;  %v6408_v22 = vld [vmem:[%s20342_s21 + $0x798] sm:$0xff] }
 0xe87   : > { %9606 = vmatprep.subr.bf16.mxu0 %v16340_v26  ;;  %v16006_v26 = vcombine.high %v6216_v27, %v6224_v63  ;;  %v6416_v43 = vld [vmem:[%s20342_s21 + $0x7d8] sm:$0xff] }
 0xe88   : > { %v6664_v31 = vld [vmem:[%s20342_s21 + $0xf98] sm:$0xff] }
 0xe89   : > { %9556 = vmatpush2.bf16.msra.mxu1 %v16083_v61  ;;  %v6464_v61 = vld [vmem:[%s20342_s21 + $0x958] sm:$0xff] }
 0xe8a   : > { %9607 = vmatpush2.bf16.msra.mxu0 %v16339_v35  ;;  %9627 = vmatprep.subr.bf16.mxu1 %v16070_v41  ;;  %v16005_v35 = vcombine.low %v6216_v27, %v6224_v63  ;;  %v16261_v41 = vcombine.low %v6472_v36, %v6480_v58  ;;  %v16246_v29 = vcombine.high %v6456_v37, %v6464_v61  ;;  %v6392_v63 = vld [vmem:[%s20342_s21 + $0x718] sm:$0xff] }
 0xe8b   : > { %9678 = vmatprep.subr.bf16.mxu0 %v16326_v20  ;;  %v15990_v20 = vcombine.high %v6200_v21, %v6208_v59  ;;  %v6400_v36 = vld [vmem:[%s20342_s21 + $0x758] sm:$0xff] }
 0xe8c   : > { %9558 = vmatmul.mubr.bf16.vlgmr.msra.gmra.mxu1 %v21629_v6  ;;  %v6648_v58 = vld [vmem:[%s20342_s21 + $0xf18] sm:$0xff] }
 0xe8d   : > { %9609 = vmatmul.mubr.bf16.vlgmr.msra.gmra.mxu0 %v21631_v9  ;;  %9567 = vmatprep.mubr.bf16.mxu1 %v21650_v3 }
 0xe8e   : > { %9618 = vmatprep.mubr.bf16.mxu0 %v21652_v11  ;;  %9628 = vmatpush1.bf16.msra.mxu1 %v16069_v5  ;;  %v6448_v5 = vld [vmem:[%s20342_s21 + $0x8d8] sm:$0xff] }
 0xe8f   : > { %9679 = vmatpush1.bf16.msra.mxu0 %v16325_v33  ;;  %9629 = vmatprep.subr.bf16.mxu1 %v16054_v15  ;;  %v15989_v33 = vcombine.low %v6200_v21, %v6208_v59  ;;  %v16245_v15 = vcombine.low %v6456_v37, %v6464_v61  ;;  %v16230_v47 = vcombine.high %v6440_v44, %v6448_v5  ;;  %v6376_v59 = vld [vmem:[%s20342_s21 + $0x698] sm:$0xff] }
 0xe90   : > { %9680 = vmatprep.subr.bf16.mxu0 %v16310_v13  ;;  %v15974_v13 = vcombine.high %v6184_v40, %v6192_v10  ;;  %v6384_v37 = vld [vmem:[%s20342_s21 + $0x6d8] sm:$0xff] }
 0xe91   : > { %v6632_v61 = vld [vmem:[%s20342_s21 + $0xe98] sm:$0xff] }
 0xe92   : > { %9630 = vmatpush1.bf16.msra.mxu1 %v16053_v23  ;;  %v6432_v23 = vld [vmem:[%s20342_s21 + $0x858] sm:$0xff] }
 0xe93   : > { %9681 = vmatpush1.bf16.msra.mxu0 %v16309_v50  ;;  %9631 = vmatprep.subr.bf16.mxu1 %v16038_v24  ;;  %v15973_v50 = vcombine.low %v6184_v40, %v6192_v10  ;;  %v16229_v24 = vcombine.low %v6440_v44, %v6448_v5  ;;  %v16214_v19 = vcombine.high %v6424_v42, %v6432_v23  ;;  %v6360_v10 = vld [vmem:[%s20342_s21 + $0x618] sm:$0xff] }
 0xe94   : > { %9682 = vmatprep.subr.bf16.mxu0 %v16294_v38  ;;  %9568 = vmatmul.mubr.bf16.gmra.mxu1 %v21660_v51  ;;  %v15958_v38 = vcombine.high %v6168_v32, %v6176_v48  ;;  %v6368_v44 = vld [vmem:[%s20342_s21 + $0x658] sm:$0xff] }
 0xe95   : > { %9619 = vmatmul.mubr.bf16.gmra.mxu0 %v21662_v18  ;;  %9659 = vmatprep.mubr.bf16.mxu1 %v21623_v56  ;;  %v6616_v5 = vld [vmem:[%s20342_s21 + $0xe18] sm:$0xff] }
 0xe96   : > { %9710 = vmatprep.mubr.bf16.mxu0 %v21625_v57  ;;  %9632 = vmatpush1.bf16.msra.mxu1 %v16037_v28  ;;  %v6672_v28 = vld [vmem:[%s20342_s21 + $0xfd8] sm:$0xff] }
 0xe97   : > { %9683 = vmatpush1.bf16.msra.mxu0 %v16293_v62  ;;  %9633 = vmatprep.subr.bf16.mxu1 %v16022_v8  ;;  %v15957_v62 = vcombine.low %v6168_v32, %v6176_v48  ;;  %v16213_v8 = vcombine.low %v6424_v42, %v6432_v23  ;;  %v16454_v27 = vcombine.high %v6664_v31, %v6672_v28  ;;  %v6344_v48 = vld [vmem:[%s20342_s21 + $0x598] sm:$0xff] }
 0xe98   : > { %9684 = vmatprep.subr.bf16.mxu0 %v16278_v55  ;;  %v16198_v55 = vcombine.high %v6408_v22, %v6416_v43  ;;  %v6352_v42 = vld [vmem:[%s20342_s21 + $0x5d8] sm:$0xff] }
 0xe99   : > { %v6600_v23 = vld [vmem:[%s20342_s21 + $0xd98] sm:$0xff] }
 0xe9a   : > { %9634 = vmatpush1.bf16.msra.mxu1 %v16021_v4  ;;  %v6656_v4 = vld [vmem:[%s20342_s21 + $0xf58] sm:$0xff] }
 0xe9b   : > { %9685 = vmatpush1.bf16.msra.mxu0 %v16277_v16  ;;  %9635 = vmatprep.subr.bf16.mxu1 %v16006_v26  ;;  %v16197_v16 = vcombine.low %v6408_v22, %v6416_v43  ;;  %v16453_v26 = vcombine.low %v6664_v31, %v6672_v28  ;;  %v16438_v21 = vcombine.high %v6648_v58, %v6656_v4  ;;  %v6328_v43 = vld [vmem:[%s20342_s21 + $0x518] sm:$0xff] }
 0xe9c   : > { %9686 = vmatprep.subr.bf16.mxu0 %v16262_v30  ;;  %v16182_v30 = vcombine.high %v6392_v63, %v6400_v36  ;;  %v6336_v31 = vld [vmem:[%s20342_s21 + $0x558] sm:$0xff] }
 0xe9d   : > { %v6584_v28 = vld [vmem:[%s20342_s21 + $0xd18] sm:$0xff] }
 0xe9e   : > { %9636 = vmatpush1.bf16.msra.mxu1 %v16005_v35  ;;  %v6640_v35 = vld [vmem:[%s20342_s21 + $0xed8] sm:$0xff] }
 0xe9f   : > { %9687 = vmatpush1.bf16.msra.mxu0 %v16261_v41  ;;  %9637 = vmatprep.subr.bf16.mxu1 %v15990_v20  ;;  %v16181_v41 = vcombine.low %v6392_v63, %v6400_v36  ;;  %v16437_v20 = vcombine.low %v6648_v58, %v6656_v4  ;;  %v16422_v40 = vcombine.high %v6632_v61, %v6640_v35  ;;  %v6312_v36 = vld [vmem:[%s20342_s21 + $0x498] sm:$0xff] }
 0xea0   : > { %9688 = vmatprep.subr.bf16.mxu0 %v16246_v29  ;;  %v16166_v29 = vcombine.high %v6376_v59, %v6384_v37  ;;  %v6320_v58 = vld [vmem:[%s20342_s21 + $0x4d8] sm:$0xff] }
 0xea1   : > { %v6568_v4 = vld [vmem:[%s20342_s21 + $0xc98] sm:$0xff] }
 0xea2   : > { %9638 = vmatpush1.bf16.msra.mxu1 %v15989_v33  ;;  %v6624_v33 = vld [vmem:[%s20342_s21 + $0xe58] sm:$0xff] }
 0xea3   : > { %9689 = vmatpush1.bf16.msra.mxu0 %v16245_v15  ;;  %9639 = vmatprep.subr.bf16.mxu1 %v15974_v13  ;;  %v16165_v15 = vcombine.low %v6376_v59, %v6384_v37  ;;  %v16421_v13 = vcombine.low %v6632_v61, %v6640_v35  ;;  %v16406_v32 = vcombine.high %v6616_v5, %v6624_v33  ;;  %v6296_v37 = vld [vmem:[%s20342_s21 + $0x418] sm:$0xff] }
 0xea4   : > { %9690 = vmatprep.subr.bf16.mxu0 %v16230_v47  ;;  %v16150_v47 = vcombine.high %v6360_v10, %v6368_v44  ;;  %v6304_v61 = vld [vmem:[%s20342_s21 + $0x458] sm:$0xff] }
 0xea5   : > { %v6552_v35 = vld [vmem:[%s20342_s21 + $0xc18] sm:$0xff] }
 0xea6   : > { %9640 = vmatpush1.bf16.msra.mxu1 %v15973_v50  ;;  %v6608_v50 = vld [vmem:[%s20342_s21 + $0xdd8] sm:$0xff] }
 0xea7   : > { %9691 = vmatpush1.bf16.msra.mxu0 %v16229_v24  ;;  %9641 = vmatprep.subr.bf16.mxu1 %v15958_v38  ;;  %v16149_v24 = vcombine.low %v6360_v10, %v6368_v44  ;;  %v16405_v38 = vcombine.low %v6616_v5, %v6624_v33  ;;  %v16390_v22 = vcombine.high %v6600_v23, %v6608_v50  ;;  %v6281_v44 = vld [vmem:[%s20342_s21 + $0x3a0] sm:$0xff] }
 0xea8   : > { %9692 = vmatprep.subr.bf16.mxu0 %v16214_v19  ;;  %v16134_v19 = vcombine.high %v6344_v48, %v6352_v42  ;;  %v6289_v5 = vld [vmem:[%s20342_s21 + $0x3e0] sm:$0xff] }
 0xea9   : > { %v6537_v33 = vld [vmem:[%s20342_s21 + $0xba0] sm:$0xff] }
 0xeaa   : > { %9642 = vmatpush1.bf16.msra.mxu1 %v15957_v62  ;;  %v6592_v62 = vld [vmem:[%s20342_s21 + $0xd58] sm:$0xff] }
 0xeab   : > { %9693 = vmatpush1.bf16.msra.mxu0 %v16213_v8  ;;  %9643 = vmatprep.subr.bf16.mxu1 %v16198_v55  ;;  %v16133_v8 = vcombine.low %v6344_v48, %v6352_v42  ;;  %v16389_v55 = vcombine.low %v6600_v23, %v6608_v50  ;;  %v16374_v63 = vcombine.high %v6584_v28, %v6592_v62  ;;  %v6265_v50 = vld [vmem:[%s20342_s21 + $0x320] sm:$0xff] }
 0xeac   : > { %9694 = vmatprep.subr.bf16.mxu0 %v16454_v27  ;;  %v16118_v27 = vcombine.high %v6328_v43, %v6336_v31  ;;  %v16072_v48 = vcombine.high %v6281_v44, %v6289_v5 }
 0xeae   : > { %9644 = vmatpush2.bf16.msra.mxu1 %v16197_v16  ;;  %v6576_v16 = vld [vmem:[%s20342_s21 + $0xcd8] sm:$0xff] }
 0xeaf   : > { %9695 = vmatpush2.bf16.msra.mxu0 %v16453_v26  ;;  %9645 = vmatprep.subr.bf16.mxu1 %v16182_v30  ;;  %v16117_v26 = vcombine.low %v6328_v43, %v6336_v31  ;;  %v16373_v30 = vcombine.low %v6584_v28, %v6592_v62  ;;  %v16358_v59 = vcombine.high %v6568_v4, %v6576_v16 }
 0xeb0   : > { %9696 = vmatprep.subr.bf16.mxu0 %v16438_v21  ;;  %v16102_v21 = vcombine.high %v6312_v36, %v6320_v58  ;;  %v16071_v43 = vcombine.low %v6281_v44, %v6289_v5  ;;  %v6233_v44 = vld [vmem:[%s20342_s21 + $0x220] sm:$0xff] }
 0xeb2   : > { %9646 = vmatpush2.bf16.msra.mxu1 %v16181_v41  ;;  %v6560_v41 = vld [vmem:[%s20342_s21 + $0xc58] sm:$0xff] }
 0xeb3   : > { %9697 = vmatpush2.bf16.msra.mxu0 %v16437_v20  ;;  %9647 = vmatprep.subr.bf16.mxu1 %v16166_v29  ;;  %v16101_v20 = vcombine.low %v6312_v36, %v6320_v58  ;;  %v16357_v29 = vcombine.low %v6568_v4, %v6576_v16  ;;  %v16342_v10 = vcombine.high %v6552_v35, %v6560_v41  ;;  %v6257_v36 = vld [vmem:[%s20342_s21 + $0x2e0] sm:$0xff] }
 0xeb4   : > { %9698 = vmatprep.subr.bf16.mxu0 %v16422_v40  ;;  %v16086_v40 = vcombine.high %v6296_v37, %v6304_v61  ;;  %v6505_v16 = vld [vmem:[%s20342_s21 + $0xaa0] sm:$0xff] }
 0xeb6   : > { %9648 = vmatpush2.bf16.msra.mxu1 %v16165_v15  ;;  %v6545_v15 = vld [vmem:[%s20342_s21 + $0xbe0] sm:$0xff] }
 0xeb7   : > { %9699 = vmatpush2.bf16.msra.mxu0 %v16421_v13  ;;  %9649 = vmatprep.subr.bf16.mxu1 %v16150_v47  ;;  %v21865_v13 = vld [vmem:[%s20345_s28] sm:$0xff]  ;;  %v16085_v47 = vcombine.low %v6296_v37, %v6304_v61  ;;  %v16328_v42 = vcombine.high %v6537_v33, %v6545_v15  ;;  %v16327_v31 = vcombine.low %v6537_v33, %v6545_v15 }
 0xeb8   : > { %9700 = vmatprep.subr.bf16.mxu0 %v16406_v32  ;;  %v16341_v32 = vcombine.low %v6552_v35, %v6560_v41  ;;  %v21869_v23 = vrot.slane %v21865_v13, %v20597_v1  ;;  %v6241_v15 = vld [vmem:[%s20342_s21 + $0x260] sm:$0xff] }
 0xeba   : > { %9650 = vmatpush2.bf16.msra.mxu1 %v16149_v24  ;;  %v6273_v24 = vld [vmem:[%s20342_s21 + $0x360] sm:$0xff] }
 0xebb   : > { %9701 = vmatpush2.bf16.msra.mxu0 %v16405_v38  ;;  %9651 = vmatprep.subr.bf16.mxu1 %v16134_v19  ;;  %v6521_v38 = vld [vmem:[%s20342_s21 + $0xb20] sm:$0xff] }
 0xebc   : > { %9702 = vmatprep.subr.bf16.mxu0 %v16390_v22  ;;  %v6529_v19 = vld [vmem:[%s20342_s21 + $0xb60] sm:$0xff]  ;;  %v21877_v22 = vrot.slane %v21865_v13, %v20591_v60 }
 0xebd   : > { %v16311_v37 = vcombine.low %v6521_v38, %v6529_v19 }
 0xebe   : > { %9652 = vmatpush2.bf16.msra.mxu1 %v16133_v8 }
 0xebf   : > { %9703 = vmatpush2.bf16.msra.mxu0 %v16389_v55  ;;  %9653 = vmatprep.subr.bf16.mxu1 %v16118_v27  ;;  %v16056_v55 = vcombine.high %v6265_v50, %v6273_v24  ;;  %v16312_v27 = vcombine.high %v6521_v38, %v6529_v19 }
 0xec0   : > { %9704 = vmatprep.subr.bf16.mxu0 %v16374_v63  ;;  %v6249_v63 = vld [vmem:[%s20342_s21 + $0x2a0] sm:$0xff] }
 0xec1   : > { %v16040_v41 = vcombine.high %v6249_v63, %v6257_v36 }
 0xec2   : > { %9654 = vmatpush2.bf16.msra.mxu1 %v16117_v26  ;;  %v6513_v26 = vld [vmem:[%s20342_s21 + $0xae0] sm:$0xff] }
 0xec3   : > { %9705 = vmatpush2.bf16.msra.mxu0 %v16373_v30  ;;  %9655 = vmatprep.subr.bf16.mxu1 %v16102_v21 }
 0xec4   : > { %9706 = vmatprep.subr.bf16.mxu0 %v16358_v59  ;;  %v16055_v59 = vcombine.low %v6265_v50, %v6273_v24  ;;  %v16039_v50 = vcombine.low %v6249_v63, %v6257_v36  ;;  %v16295_v24 = vcombine.low %v6505_v16, %v6513_v26  ;;  %v6225_v36 = vld [vmem:[%s20342_s21 + $0x1e0] sm:$0xff] }
 0xec6   : > { %9656 = vmatpush2.bf16.msra.mxu1 %v16101_v20 }
 0xec7   : > { %9707 = vmatpush2.bf16.msra.mxu0 %v16357_v29  ;;  %9657 = vmatprep.subr.bf16.mxu1 %v16086_v40 }
 0xec8   : > { %9708 = vmatprep.subr.bf16.mxu0 %v16342_v10  ;;  %v16296_v10 = vcombine.high %v6505_v16, %v6513_v26 }
 0xeca   : > { %9658 = vmatpush2.bf16.msra.mxu1 %v16085_v47  ;;  %v9355_v28 = vpop.f32.mrf.mxu1  ;;  %v9406_v62 = vpop.f32.mrf.mxu0  ;;  %v6489_v47 = vld [vmem:[%s20342_s21 + $0xa20] sm:$0xff] }
 0xecb   : > { %9709 = vmatpush2.bf16.msra.mxu0 %v16341_v32  ;;  %9729 = vmatprep.subr.bf16.mxu1 %v16072_v48  ;;  %v9356_v8 = vadd.f32 %v9355_v28, %v21869_v23  ;;  %v6497_v32 = vld [vmem:[%s20342_s21 + $0xa60] sm:$0xff]  ;;  %v16024_v28 = vcombine.high %v6233_v44, %v6241_v15 }
 0xecc   : > { %9780 = vmatprep.subr.bf16.mxu0 %v16328_v42  ;;  %v9357_v58 = vpop.f32.mrf.mxu1  ;;  %v9408_v4 = vpop.f32.mrf.mxu0 }
 0xecd   : > { %9660 = vmatmul.mubr.bf16.vlgmr.msra.gmra.mxu1 %v21629_v6  ;;  %v21886_v30 = vadd.f32 %v9406_v62, %v9356_v8  ;;  %v9358_v21 = vadd.f32 %v9357_v58, %v21877_v22  ;;  %v16280_v62 = vcombine.high %v6489_v47, %v6497_v32  ;;  %v6217_v8 = vld [vmem:[%s20342_s21 + $0x1a0] sm:$0xff] }
 0xece   : > { %9711 = vmatmul.mubr.bf16.vlgmr.msra.gmra.mxu0 %v21631_v9  ;;  %9669 = vmatprep.mubr.bf16.mxu1 %v21650_v3  ;;  %v9359_v61 = vpop.f32.mrf.mxu1  ;;  %v9410_v35 = vpop.f32.mrf.mxu0  ;;  %v6473_v58 = vld [vmem:[%s20342_s21 + $0x9a0] sm:$0xff] }
 0xecf   : > { %9720 = vmatprep.mubr.bf16.mxu0 %v21652_v11  ;;  %9730 = vmatpush1.bf16.msra.mxu1 %v16071_v43  ;;  %v10185_v20 = vmul.f32 0.044715, %v21886_v30  ;;  %v21892_v29 = vadd.f32 %v9408_v4, %v9358_v21  ;;  %v9360_v40 = vadd.f32 %v9359_v61, %v21869_v23  ;;  %v6481_v4 = vld [vmem:[%s20342_s21 + $0x9e0] sm:$0xff]  ;;  %v16023_v21 = vcombine.low %v6233_v44, %v6241_v15 }
 0xed0   : > { %9781 = vmatpush1.bf16.msra.mxu0 %v16327_v31  ;;  %9731 = vmatprep.subr.bf16.mxu1 %v16056_v55  ;;  %v21896_v5 = vpop.f32.mrf.mxu1  ;;  %v21898_v33 = vpop.f32.mrf.mxu0  ;;  %v6201_v44 = vld [vmem:[%s20342_s21 + $0x120] sm:$0xff] }
 0xed1   : > { %9782 = vmatprep.subr.bf16.mxu0 %v16312_v27  ;;  %v10233_v48 = vmul.f32 %v10185_v20, %v21886_v30  ;;  %v21904_v42 = vadd.f32 %v9410_v35, %v9360_v40  ;;  %v16008_v40 = vcombine.high %v6217_v8, %v6225_v36 }
 0xed2   : > { %v9365_v38 = vpop.f32.mrf.mxu1 }
 0xed3   : > { %9732 = vmatpush1.bf16.msra.mxu1 %v16055_v59  ;;  %v9416_v19 = vpop.f32.mrf.mxu0  ;;  %v10281_v43 = vmul.f32 %v10233_v48, %v21886_v30  ;;  %v10201_v31 = vmul.f32 0.044715, %v21904_v42  ;;  %v9366_v55 = vadd.f32 %v9365_v38, %v21869_v23  ;;  %v6457_v38 = vld [vmem:[%s20342_s21 + $0x920] sm:$0xff] }
 0xed4   : > { %9783 = vmatpush1.bf16.msra.mxu0 %v16311_v37  ;;  %9733 = vmatprep.subr.bf16.mxu1 %v16040_v41  ;;  %v9367_v27 = vpop.f32.mrf.mxu1  ;;  %v16279_v37 = vcombine.low %v6489_v47, %v6497_v32  ;;  %v6465_v47 = vld [vmem:[%s20342_s21 + $0x960] sm:$0xff] }
 0xed5   : > { %9784 = vmatprep.subr.bf16.mxu0 %v16296_v10  ;;  %9670 = vmatmul.mubr.bf16.gmra.mxu1 %v21660_v51  ;;  %v9418_v63 = vpop.f32.mrf.mxu0  ;;  %v10329_v16 = vadd.f32 %v10281_v43, %v21886_v30  ;;  %v10249_v26 = vmul.f32 %v10201_v31, %v21904_v42  ;;  %v21919_v59 = vadd.f32 %v9416_v19, %v9366_v55  ;;  %v6185_v55 = vld [vmem:[%s20342_s21 + $0xa0] sm:$0xff] }
 0xed6   : > { %9721 = vmatmul.mubr.bf16.gmra.mxu0 %v21662_v18  ;;  %9761 = vmatprep.mubr.bf16.mxu1 %v21623_v56  ;;  %v9368_v23 = vadd.f32 %v9367_v27, %v21877_v22  ;;  %v9369_v61 = vpop.f32.mrf.mxu1  ;;  %v16264_v10 = vcombine.high %v6473_v58, %v6481_v4  ;;  %v16007_v19 = vcombine.low %v6217_v8, %v6225_v36  ;;  %v6193_v27 = vld [vmem:[%s20342_s21 + $0xe0] sm:$0xff] }
 0xed7   : > { %9812 = vmatprep.mubr.bf16.mxu0 %v21625_v57  ;;  %9734 = vmatpush1.bf16.msra.mxu1 %v16039_v50  ;;  %v9420_v35 = vpop.f32.mrf.mxu0  ;;  %v10377_v41 = vmul.f32 0.7978846, %v10329_v16  ;;  %v10297_v20 = vmul.f32 %v10249_v26, %v21904_v42  ;;  %v16263_v43 = vcombine.low %v6473_v58, %v6481_v4  ;;  %v6449_v16 = vld [vmem:[%s20342_s21 + $0x8e0] sm:$0xff]  ;;  %v15976_v8 = vcombine.high %v6185_v55, %v6193_v27 }
 0xed8   : > { %9785 = vmatpush1.bf16.msra.mxu0 %v16295_v24  ;;  %9735 = vmatprep.subr.bf16.mxu1 %v16024_v28  ;;  %v21924_v15 = vadd.f32 %v9418_v63, %v9368_v23  ;;  %v9370_v48 = vpop.f32.mrf.mxu1  ;;  %v6209_v24 = vld [vmem:[%s20342_s21 + $0x160] sm:$0xff]  ;;  %v15975_v61 = vcombine.low %v6185_v55, %v6193_v27 }
 0xed9   : > { %9786 = vmatprep.subr.bf16.mxu0 %v16280_v62  ;;  %v9421_v50 = vpop.f32.mrf.mxu0  ;;  %19008 = vtanh.f32 %v10377_v41  ;;  %v10345_v32 = vadd.f32 %v10297_v20, %v21904_v42  ;;  %v15992_v28 = vcombine.high %v6201_v44, %v6209_v24  ;;  %v16248_v62 = vcombine.high %v6457_v38, %v6465_v47  ;;  %v6441_v63 = vld [vmem:[%s20342_s21 + $0x8a0] sm:$0xff] }
 0xeda   : > { %v15991_v26 = vcombine.low %v6201_v44, %v6209_v24  ;;  %v16232_v36 = vcombine.high %v6441_v63, %v6449_v16  ;;  %v6169_v58 = vld [vmem:[%s20342_s21 + $0x20] sm:$0xff]  ;;  %v16231_v35 = vcombine.low %v6441_v63, %v6449_v16 }
 0xedb   : > { %9736 = vmatpush1.bf16.msra.mxu1 %v16023_v21  ;;  %v10393_v31 = vmul.f32 0.7978846, %v10345_v32  ;;  %v16247_v21 = vcombine.low %v6457_v38, %v6465_v47  ;;  %v6177_v4 = vld [vmem:[%s20342_s21 + $0x60] sm:$0xff] }
 0xedc   : > { %9787 = vmatpush1.bf16.msra.mxu0 %v16279_v37  ;;  %9737 = vmatprep.subr.bf16.mxu1 %v16008_v40  ;;  %v6425_v23 = vld [vmem:[%s20342_s21 + $0x820] sm:$0xff]  ;;  %v15960_v41 = vcombine.high %v6169_v58, %v6177_v4  ;;  %v15959_v24 = vcombine.low %v6169_v58, %v6177_v4 }
 0xedd   : > { %9788 = vmatprep.subr.bf16.mxu0 %v16264_v10  ;;  %19010 = vtanh.f32 %v10393_v31  ;;  %v6433_v37 = vld [vmem:[%s20342_s21 + $0x860] sm:$0xff] }
 0xede   : > { %v16216_v20 = vcombine.high %v6425_v23, %v6433_v37  ;;  %v6409_v40 = vld [vmem:[%s20342_s21 + $0x7a0] sm:$0xff]  ;;  %v16215_v38 = vcombine.low %v6425_v23, %v6433_v37 }
 0xedf   : > { %9738 = vmatpush1.bf16.msra.mxu1 %v16007_v19  ;;  %v6417_v10 = vld [vmem:[%s20342_s21 + $0x7e0] sm:$0xff] }
 0xee0   : > { %9789 = vmatpush1.bf16.msra.mxu0 %v16263_v43  ;;  %9739 = vmatprep.subr.bf16.mxu1 %v15992_v28  ;;  %v6665_v44 = vld [vmem:[%s20342_s21 + $0xfa0] sm:$0xff]  ;;  %v16200_v47 = vcombine.high %v6409_v40, %v6417_v10  ;;  %v16199_v27 = vcombine.low %v6409_v40, %v6417_v10 }
 0xee1   : > { %9790 = vmatprep.subr.bf16.mxu0 %v16248_v62  ;;  %v6673_v48 = vld [vmem:[%s20342_s21 + $0xfe0] sm:$0xff] }
 0xee2   : > { %v16456_v32 = vcombine.high %v6665_v44, %v6673_v48  ;;  %v6393_v19 = vld [vmem:[%s20342_s21 + $0x720] sm:$0xff]  ;;  %v16455_v63 = vcombine.low %v6665_v44, %v6673_v48 }
 0xee3   : > { %9740 = vmatpush1.bf16.msra.mxu1 %v15991_v26  ;;  %v6401_v43 = vld [vmem:[%s20342_s21 + $0x760] sm:$0xff]  ;;  %v10137_v26 = vmul.f32 0.5, %v21886_v30 }
 0xee4   : > { %9791 = vmatpush1.bf16.msra.mxu0 %v16247_v21  ;;  %9741 = vmatprep.subr.bf16.mxu1 %v15976_v8  ;;  %v6649_v31 = vld [vmem:[%s20342_s21 + $0xf20] sm:$0xff]  ;;  %v16184_v16 = vcombine.high %v6393_v19, %v6401_v43  ;;  %v10153_v21 = vmul.f32 0.5, %v21904_v42 }
 0xee5   : > { %9792 = vmatprep.subr.bf16.mxu0 %v16232_v36  ;;  %v6657_v28 = vld [vmem:[%s20342_s21 + $0xf60] sm:$0xff] }
 0xee6   : > { %v19009_v50 = vpop.eup %19008  ;;  %v16440_v36 = vcombine.high %v6649_v31, %v6657_v28  ;;  %v6377_v58 = vld [vmem:[%s20342_s21 + $0x6a0] sm:$0xff]  ;;  %v16439_v30 = vcombine.low %v6649_v31, %v6657_v28 }
 0xee7   : > { %9742 = vmatpush1.bf16.msra.mxu1 %v15975_v61  ;;  %v10473_v62 = vadd.f32 1.0, %v19009_v50  ;;  %v6385_v4 = vld [vmem:[%s20342_s21 + $0x6e0] sm:$0xff] }
 0xee8   : > { %9793 = vmatpush1.bf16.msra.mxu0 %v16231_v35  ;;  %9743 = vmatprep.subr.bf16.mxu1 %v15960_v41  ;;  %v6633_v23 = vld [vmem:[%s20342_s21 + $0xea0] sm:$0xff]  ;;  %v16183_v41 = vcombine.low %v6393_v19, %v6401_v43  ;;  %v16168_v42 = vcombine.high %v6377_v58, %v6385_v4 }
 0xee9   : > { %9794 = vmatprep.subr.bf16.mxu0 %v16216_v20  ;;  %v6641_v37 = vld [vmem:[%s20342_s21 + $0xee0] sm:$0xff]  ;;  %v10521_v61 = vmul.f32 %v10473_v62, %v10137_v26 }
 0xeea   : > { %v19011_v55 = vpop.eup %19010  ;;  %v16424_v40 = vcombine.high %v6633_v23, %v6641_v37  ;;  %v6361_v10 = vld [vmem:[%s20342_s21 + $0x620] sm:$0xff] }
 0xeeb   : > { %9744 = vmatpush1.bf16.msra.mxu1 %v15959_v24  ;;  %v10489_v8 = vadd.f32 1.0, %v19011_v55  ;;  %v6369_v44 = vld [vmem:[%s20342_s21 + $0x660] sm:$0xff]  ;;  %v16167_v24 = vcombine.low %v6377_v58, %v6385_v4 }
 0xeec   : > { %9795 = vmatpush1.bf16.msra.mxu0 %v16215_v38  ;;  %9745 = vmatprep.subr.bf16.mxu1 %v16200_v47  ;;  %v6617_v48 = vld [vmem:[%s20342_s21 + $0xe20] sm:$0xff]  ;;  %v16423_v38 = vcombine.low %v6633_v23, %v6641_v37  ;;  %v16152_v47 = vcombine.high %v6361_v10, %v6369_v44  ;;  %v16151_v62 = vcombine.low %v6361_v10, %v6369_v44 }
 0xeed   : > { %9796 = vmatprep.subr.bf16.mxu0 %v16456_v32  ;;  %v10537_v35 = vmul.f32 %v10489_v8, %v10153_v21  ;;  %v6625_v50 = vld [vmem:[%s20342_s21 + $0xe60] sm:$0xff] }
 0xeee   : > { %v16408_v32 = vcombine.high %v6617_v48, %v6625_v50  ;;  %v6345_v19 = vld [vmem:[%s20342_s21 + $0x5a0] sm:$0xff]  ;;  %v16407_v55 = vcombine.low %v6617_v48, %v6625_v50 }
 0xeef   : > { %9746 = vmatpush2.bf16.msra.mxu1 %v16199_v27  ;;  %v21952_v20 = vpack.c.bf16 %v10537_v35, %v10521_v61  ;;  %v6353_v43 = vld [vmem:[%s20342_s21 + $0x5e0] sm:$0xff] }
 0xef0   : > { %9797 = vmatpush2.bf16.msra.mxu0 %v16455_v63  ;;  %9747 = vmatprep.subr.bf16.mxu1 %v16184_v16  ;;  %v6601_v31 = vld [vmem:[%s20342_s21 + $0xda0] sm:$0xff]  ;;  %v16136_v27 = vcombine.high %v6345_v19, %v6353_v43 }
 0xef1   : > { %9798 = vmatprep.subr.bf16.mxu0 %v16440_v36  ;;  %v6609_v28 = vld [vmem:[%s20342_s21 + $0xde0] sm:$0xff]  ;;  %v16135_v36 = vcombine.low %v6345_v19, %v6353_v43  ;;  %v6282_v43 = vld [vmem:[%s20342_s21 + $0x3a8] sm:$0xff] }
 0xef2   : > { %v16392_v63 = vcombine.high %v6601_v31, %v6609_v28  ;;  %v6329_v16 = vld [vmem:[%s20342_s21 + $0x520] sm:$0xff]  ;;  %v16391_v58 = vcombine.low %v6601_v31, %v6609_v28  ;;  %v6290_v31 = vld [vmem:[%s20342_s21 + $0x3e8] sm:$0xff] }
 0xef3   : > { %9748 = vmatpush2.bf16.msra.mxu1 %v16183_v41  ;;  %v6337_v26 = vld [vmem:[%s20342_s21 + $0x560] sm:$0xff]  ;;  %v6538_v28 = vld [vmem:[%s20342_s21 + $0xba8] sm:$0xff] }
 0xef4   : > { %9799 = vmatpush2.bf16.msra.mxu0 %v16439_v30  ;;  %9749 = vmatprep.subr.bf16.mxu1 %v16168_v42  ;;  %v6585_v21 = vld [vmem:[%s20342_s21 + $0xd20] sm:$0xff]  ;;  %v16120_v4 = vcombine.high %v6329_v16, %v6337_v26  ;;  %v16119_v30 = vcombine.low %v6329_v16, %v6337_v26  ;;  %v16074_v16 = vcombine.high %v6282_v43, %v6290_v31 }
 0xef5   : > { %9800 = vmatprep.subr.bf16.mxu0 %v16424_v40  ;;  %v6593_v8 = vld [vmem:[%s20342_s21 + $0xd60] sm:$0xff] }
 0xef6   : > { %v16376_v23 = vcombine.high %v6585_v21, %v6593_v8  ;;  %v6313_v37 = vld [vmem:[%s20342_s21 + $0x4a0] sm:$0xff]  ;;  %v16375_v42 = vcombine.low %v6585_v21, %v6593_v8  ;;  %v6266_v21 = vld [vmem:[%s20342_s21 + $0x328] sm:$0xff]  ;;  %v21983_v8 = vrot.slane %v21865_v13, %v20594_v0 }
 0xef7   : > { %9750 = vmatpush2.bf16.msra.mxu1 %v16167_v24  ;;  %v6321_v61 = vld [vmem:[%s20342_s21 + $0x4e0] sm:$0xff] }
 0xef8   : > { %9801 = vmatpush2.bf16.msra.mxu0 %v16423_v38  ;;  %9751 = vmatprep.subr.bf16.mxu1 %v16152_v47  ;;  %v6569_v35 = vld [vmem:[%s20342_s21 + $0xca0] sm:$0xff]  ;;  %v16104_v40 = vcombine.high %v6313_v37, %v6321_v61  ;;  %v16103_v38 = vcombine.low %v6313_v37, %v6321_v61 }
 0xef9   : > { %9802 = vmatprep.subr.bf16.mxu0 %v16408_v32  ;;  %v6577_v41 = vld [vmem:[%s20342_s21 + $0xce0] sm:$0xff] }
 0xefa   : > { %v16360_v10 = vcombine.high %v6569_v35, %v6577_v41  ;;  %v6297_v44 = vld [vmem:[%s20342_s21 + $0x420] sm:$0xff]  ;;  %v16359_v47 = vcombine.low %v6569_v35, %v6577_v41  ;;  %v16073_v35 = vcombine.low %v6282_v43, %v6290_v31 }
 0xefb   : > { %9752 = vmatpush2.bf16.msra.mxu1 %v16151_v62  ;;  %v6305_v48 = vld [vmem:[%s20342_s21 + $0x460] sm:$0xff]  ;;  %v6546_v62 = vld [vmem:[%s20342_s21 + $0xbe8] sm:$0xff] }
 0xefc   : > { %9803 = vmatpush2.bf16.msra.mxu0 %v16407_v55  ;;  %9753 = vmatprep.subr.bf16.mxu1 %v16136_v27  ;;  %v6553_v50 = vld [vmem:[%s20342_s21 + $0xc20] sm:$0xff]  ;;  %v16088_v32 = vcombine.high %v6297_v44, %v6305_v48  ;;  %v16087_v55 = vcombine.low %v6297_v44, %v6305_v48  ;;  %v16330_v26 = vcombine.high %v6538_v28, %v6546_v62  ;;  %v6250_v44 = vld [vmem:[%s20342_s21 + $0x2a8] sm:$0xff] }
 0xefd   : > { %9804 = vmatprep.subr.bf16.mxu0 %v16392_v63  ;;  %v6561_v24 = vld [vmem:[%s20342_s21 + $0xc60] sm:$0xff]  ;;  %v6692_v63 = vrot.slane %v21865_v13, %v20600_v2  ;;  %v16329_v41 = vcombine.low %v6538_v28, %v6546_v62 }
 0xefe   : > { %v16344_v19 = vcombine.high %v6553_v50, %v6561_v24  ;;  %v16343_v27 = vcombine.low %v6553_v50, %v6561_v24  ;;  %v6258_v24 = vld [vmem:[%s20342_s21 + $0x2e8] sm:$0xff] }
 0xeff   : > { %9754 = vmatpush2.bf16.msra.mxu1 %v16135_v36  ;;  %v6274_v36 = vld [vmem:[%s20342_s21 + $0x368] sm:$0xff] }
 0xf00   : > { %9805 = vmatpush2.bf16.msra.mxu0 %v16391_v58  ;;  %9755 = vmatprep.subr.bf16.mxu1 %v16120_v4  ;;  %v6522_v58 = vld [vmem:[%s20342_s21 + $0xb28] sm:$0xff]  ;;  %v16057_v43 = vcombine.low %v6266_v21, %v6274_v36 }
 0xf01   : > { %9806 = vmatprep.subr.bf16.mxu0 %v16376_v23  ;;  %v6530_v4 = vld [vmem:[%s20342_s21 + $0xb68] sm:$0xff] }
 0xf03   : > { %9756 = vmatpush2.bf16.msra.mxu1 %v16119_v30 }
 0xf04   : > { %9807 = vmatpush2.bf16.msra.mxu0 %v16375_v42  ;;  %9757 = vmatprep.subr.bf16.mxu1 %v16104_v40  ;;  %v16058_v40 = vcombine.high %v6266_v21, %v6274_v36  ;;  %v6234_v21 = vld [vmem:[%s20342_s21 + $0x228] sm:$0xff] }
 0xf05   : > { %9808 = vmatprep.subr.bf16.mxu0 %v16360_v10  ;;  %v16314_v10 = vcombine.high %v6522_v58, %v6530_v4 }
 0xf07   : > { %9758 = vmatpush2.bf16.msra.mxu1 %v16103_v38  ;;  %v6506_v38 = vld [vmem:[%s20342_s21 + $0xaa8] sm:$0xff] }
 0xf08   : > { %9809 = vmatpush2.bf16.msra.mxu0 %v16359_v47  ;;  %9759 = vmatprep.subr.bf16.mxu1 %v16088_v32  ;;  %v6514_v47 = vld [vmem:[%s20342_s21 + $0xae8] sm:$0xff] }
 0xf09   : > { %9810 = vmatprep.subr.bf16.mxu0 %v16344_v19 }
 0xf0b   : > { %9760 = vmatpush2.bf16.msra.mxu1 %v16087_v55  ;;  %v9457_v23 = vpop.f32.mrf.mxu1  ;;  %v16313_v55 = vcombine.low %v6522_v58, %v6530_v4 }
 0xf0c   : > { %9811 = vmatpush2.bf16.msra.mxu0 %v16343_v27  ;;  %v9508_v37 = vpop.f32.mrf.mxu0  ;;  %v9458_v61 = vadd.f32 %v9457_v23, %v6692_v63  ;;  %9831 = vmatprep.subr.bf16.mxu1 %v16074_v16  ;;  %v16298_v23 = vcombine.high %v6506_v38, %v6514_v47 }
 0xf0d   : > { %9882 = vmatprep.subr.bf16.mxu0 %v16330_v26  ;;  %v9459_v30 = vpop.f32.mrf.mxu1  ;;  %v16042_v26 = vcombine.high %v6250_v44, %v6258_v24 }
 0xf0e   : > { %v9510_v42 = vpop.f32.mrf.mxu0  ;;  %v21989_v48 = vadd.f32 %v9508_v37, %v9458_v61  ;;  %9762 = vmatmul.mubr.bf16.vlgmr.msra.gmra.mxu1 %v21629_v6  ;;  %v9460_v50 = vadd.f32 %v9459_v30, %v21983_v8  ;;  %v6242_v61 = vld [vmem:[%s20342_s21 + $0x268] sm:$0xff] }
 0xf0f   : > { %9813 = vmatmul.mubr.bf16.vlgmr.msra.gmra.mxu0 %v21631_v9  ;;  %9771 = vmatprep.mubr.bf16.mxu1 %v21650_v3  ;;  %v9461_v32 = vpop.f32.mrf.mxu1 }
 0xf10   : > { %9822 = vmatprep.mubr.bf16.mxu0 %v21652_v11  ;;  %v9512_v19 = vpop.f32.mrf.mxu0  ;;  %v10187_v31 = vmul.f32 0.044715, %v21989_v48  ;;  %9832 = vmatpush1.bf16.msra.mxu1 %v16073_v35  ;;  %v22000_v28 = vadd.f32 %v9510_v42, %v9460_v50  ;;  %v9462_v62 = vadd.f32 %v9461_v32, %v6692_v63  ;;  %v6490_v35 = vld [vmem:[%s20342_s21 + $0xa28] sm:$0xff] }
 0xf11   : > { %9883 = vmatpush1.bf16.msra.mxu0 %v16329_v41  ;;  %9833 = vmatprep.subr.bf16.mxu1 %v16058_v40  ;;  %v22002_v27 = vpop.f32.mrf.mxu1  ;;  %v6498_v41 = vld [vmem:[%s20342_s21 + $0xa68] sm:$0xff]  ;;  %v16041_v40 = vcombine.low %v6250_v44, %v6258_v24 }
 0xf12   : > { %9884 = vmatprep.subr.bf16.mxu0 %v16314_v10  ;;  %v22004_v16 = vpop.f32.mrf.mxu0  ;;  %v10235_v36 = vmul.f32 %v10187_v31, %v21989_v48  ;;  %v22008_v37 = vadd.f32 %v9512_v19, %v9462_v62  ;;  %v16297_v10 = vcombine.low %v6506_v38, %v6514_v47  ;;  %v16026_v31 = vcombine.high %v6234_v21, %v6242_v61  ;;  %v6474_v44 = vld [vmem:[%s20342_s21 + $0x9a8] sm:$0xff] }
 0xf13   : > { %v9467_v30 = vpop.f32.mrf.mxu1  ;;  %v16282_v62 = vcombine.high %v6490_v35, %v6498_v41  ;;  %v6482_v24 = vld [vmem:[%s20342_s21 + $0x9e8] sm:$0xff] }
 0xf14   : > { %v9518_v42 = vpop.f32.mrf.mxu0  ;;  %v10283_v58 = vmul.f32 %v10235_v36, %v21989_v48  ;;  %v10203_v4 = vmul.f32 0.044715, %v22008_v37  ;;  %9834 = vmatpush1.bf16.msra.mxu1 %v16057_v43  ;;  %v9468_v50 = vadd.f32 %v9467_v30, %v6692_v63  ;;  %v6226_v43 = vld [vmem:[%s20342_s21 + $0x1e8] sm:$0xff]  ;;  %v16025_v30 = vcombine.low %v6234_v21, %v6242_v61 }
 0xf15   : > { %9885 = vmatpush1.bf16.msra.mxu0 %v16313_v55  ;;  %9835 = vmatprep.subr.bf16.mxu1 %v16042_v26  ;;  %v9469_v32 = vpop.f32.mrf.mxu1  ;;  %v16266_v45 = vcombine.high %v6474_v44, %v6482_v24  ;;  %v6466_v21 = vld [vmem:[%s20342_s21 + $0x968] sm:$0xff] }
 0xf16   : > { %9886 = vmatprep.subr.bf16.mxu0 %v16298_v23  ;;  %v9520_v19 = vpop.f32.mrf.mxu0  ;;  %v10331_v54 = vadd.f32 %v10283_v58, %v21989_v48  ;;  %v10251_v36 = vmul.f32 %v10203_v4, %v22008_v37  ;;  %9772 = vmatmul.mubr.bf16.gmra.mxu1 %v21660_v51  ;;  %v22023_v38 = vadd.f32 %v9518_v42, %v9468_v50 }
 0xf17   : > { %9823 = vmatmul.mubr.bf16.gmra.mxu0 %v21662_v18  ;;  %9863 = vmatprep.mubr.bf16.mxu1 %v21623_v56  ;;  %v9470_v63 = vadd.f32 %v9469_v32, %v21983_v8  ;;  %v9471_v47 = vpop.f32.mrf.mxu1  ;;  %v16281_v42 = vcombine.low %v6490_v35, %v6498_v41  ;;  %v16010_v32 = vcombine.high %v6218_v7, %v6226_v43 }
 0xf18   : > { %9914 = vmatprep.mubr.bf16.mxu0 %v21625_v57  ;;  %v9522_v55 = vpop.f32.mrf.mxu0  ;;  %v10379_v26 = vmul.f32 0.7978846, %v10331_v54  ;;  %v10299_v23 = vmul.f32 %v10251_v36, %v22008_v37  ;;  %9836 = vmatpush1.bf16.msra.mxu1 %v16041_v40  ;;  %v6202_v47 = vld [vmem:[%s20342_s21 + $0x128] sm:$0xff]  ;;  %v16009_v35 = vcombine.low %v6218_v7, %v6226_v43  ;;  %v16265_v41 = vcombine.low %v6474_v44, %v6482_v24 }
 0xf19   : > { %9887 = vmatpush1.bf16.msra.mxu0 %v16297_v10  ;;  %v22029_v58 = vadd.f32 %v9520_v19, %v9470_v63  ;;  %9837 = vmatprep.subr.bf16.mxu1 %v16026_v31  ;;  %v9472_v4 = vpop.f32.mrf.mxu1  ;;  %v6210_v40 = vld [vmem:[%s20342_s21 + $0x168] sm:$0xff] }
 0xf1a   : > { %9888 = vmatprep.subr.bf16.mxu0 %v16282_v62  ;;  %v9523_v50 = vpop.f32.mrf.mxu0  ;;  %19012 = vtanh.f32 %v10379_v26  ;;  %v10347_v54 = vadd.f32 %v10299_v23, %v22008_v37  ;;  %v6458_v10 = vld [vmem:[%s20342_s21 + $0x928] sm:$0xff]  ;;  %v15994_v19 = vcombine.high %v6202_v47, %v6210_v40  ;;  %v15993_v26 = vcombine.low %v6202_v47, %v6210_v40 }
 0xf1b   : > { %v16250_v31 = vcombine.high %v6458_v10, %v6466_v21  ;;  %v6186_v62 = vld [vmem:[%s20342_s21 + $0xa8] sm:$0xff]  ;;  %v16249_v23 = vcombine.low %v6458_v10, %v6466_v21 }
 0xf1c   : > { %v10395_v61 = vmul.f32 0.7978846, %v10347_v54  ;;  %9838 = vmatpush1.bf16.msra.mxu1 %v16025_v30  ;;  %v6194_v36 = vld [vmem:[%s20342_s21 + $0xe8] sm:$0xff] }
 0xf1d   : > { %9889 = vmatpush1.bf16.msra.mxu0 %v16281_v42  ;;  %9839 = vmatprep.subr.bf16.mxu1 %v16010_v32  ;;  %v6442_v63 = vld [vmem:[%s20342_s21 + $0x8a8] sm:$0xff]  ;;  %v15977_v42 = vcombine.low %v6186_v62, %v6194_v36 }
 0xf1e   : > { %9890 = vmatprep.subr.bf16.mxu0 %v16266_v45  ;;  %19014 = vtanh.f32 %v10395_v61  ;;  %v6450_v55 = vld [vmem:[%s20342_s21 + $0x8e8] sm:$0xff]  ;;  %v15978_v45 = vcombine.high %v6186_v62, %v6194_v36 }
 0xf1f   : > { %v16234_v7 = vcombine.high %v6442_v63, %v6450_v55  ;;  %v6170_v43 = vld [vmem:[%s20342_s21 + $0x28] sm:$0xff]  ;;  %v16233_v4 = vcombine.low %v6442_v63, %v6450_v55 }
 0xf20   : > { %9840 = vmatpush1.bf16.msra.mxu1 %v16009_v35  ;;  %v6178_v44 = vld [vmem:[%s20342_s21 + $0x68] sm:$0xff] }
 0xf21   : > { %9891 = vmatpush1.bf16.msra.mxu0 %v16265_v41  ;;  %9841 = vmatprep.subr.bf16.mxu1 %v15994_v19  ;;  %v6426_v24 = vld [vmem:[%s20342_s21 + $0x828] sm:$0xff]  ;;  %v15962_v50 = vcombine.high %v6170_v43, %v6178_v44  ;;  %v15961_v61 = vcombine.low %v6170_v43, %v6178_v44 }
 0xf22   : > { %9892 = vmatprep.subr.bf16.mxu0 %v16250_v31  ;;  %v6434_v30 = vld [vmem:[%s20342_s21 + $0x868] sm:$0xff] }
 0xf23   : > { %v16218_v32 = vcombine.high %v6426_v24, %v6434_v30  ;;  %v6410_v47 = vld [vmem:[%s20342_s21 + $0x7a8] sm:$0xff]  ;;  %v16217_v35 = vcombine.low %v6426_v24, %v6434_v30 }
 0xf24   : > { %9842 = vmatpush1.bf16.msra.mxu1 %v15993_v26  ;;  %v6418_v54 = vld [vmem:[%s20342_s21 + $0x7e8] sm:$0xff] }
 0xf25   : > { %9893 = vmatpush1.bf16.msra.mxu0 %v16249_v23  ;;  %9843 = vmatprep.subr.bf16.mxu1 %v15978_v45  ;;  %v6666_v40 = vld [vmem:[%s20342_s21 + $0xfa8] sm:$0xff]  ;;  %v16202_v41 = vcombine.high %v6410_v47, %v6418_v54  ;;  %v16201_v23 = vcombine.low %v6410_v47, %v6418_v54  ;;  %v10139_v45 = vmul.f32 0.5, %v21989_v48 }
 0xf26   : > { %9894 = vmatprep.subr.bf16.mxu0 %v16234_v7  ;;  %v6674_v10 = vld [vmem:[%s20342_s21 + $0xfe8] sm:$0xff]  ;;  %v10155_v7 = vmul.f32 0.5, %v22008_v37 }
 0xf27   : > { %v19013_v21 = vpop.eup %19012  ;;  %v16458_v19 = vcombine.high %v6666_v40, %v6674_v10  ;;  %v6394_v31 = vld [vmem:[%s20342_s21 + $0x728] sm:$0xff]  ;;  %v16457_v44 = vcombine.low %v6666_v40, %v6674_v10 }
 0xf28   : > { %9844 = vmatpush1.bf16.msra.mxu1 %v15977_v42  ;;  %v10475_v62 = vadd.f32 1.0, %v19013_v21  ;;  %v6402_v36 = vld [vmem:[%s20342_s21 + $0x768] sm:$0xff] }
 0xf29   : > { %9895 = vmatpush1.bf16.msra.mxu0 %v16233_v4  ;;  %9845 = vmatprep.subr.bf16.mxu1 %v15962_v50  ;;  %v6650_v63 = vld [vmem:[%s20342_s21 + $0xf28] sm:$0xff]  ;;  %v16186_v24 = vcombine.high %v6394_v31, %v6402_v36  ;;  %v16185_v37 = vcombine.low %v6394_v31, %v6402_v36 }
 0xf2a   : > { %9896 = vmatprep.subr.bf16.mxu0 %v16218_v32  ;;  %v6658_v55 = vld [vmem:[%s20342_s21 + $0xf68] sm:$0xff]  ;;  %v10523_v4 = vmul.f32 %v10475_v62, %v10139_v45 }
 0xf2b   : > { %v19015_v26 = vpop.eup %19014  ;;  %v16442_v30 = vcombine.high %v6650_v63, %v6658_v55  ;;  %v6378_v42 = vld [vmem:[%s20342_s21 + $0x6a8] sm:$0xff]  ;;  %v16441_v40 = vcombine.low %v6650_v63, %v6658_v55 }
 0xf2c   : > { %v10491_v43 = vadd.f32 1.0, %v19015_v26  ;;  %9846 = vmatpush1.bf16.msra.mxu1 %v15961_v61  ;;  %v6386_v32 = vld [vmem:[%s20342_s21 + $0x6e8] sm:$0xff] }
 0xf2d   : > { %9897 = vmatpush1.bf16.msra.mxu0 %v16217_v35  ;;  %9847 = vmatprep.subr.bf16.mxu1 %v16202_v41  ;;  %v6634_v47 = vld [vmem:[%s20342_s21 + $0xea8] sm:$0xff]  ;;  %v16170_v10 = vcombine.high %v6378_v42, %v6386_v32  ;;  %v16169_v62 = vcombine.low %v6378_v42, %v6386_v32 }
 0xf2e   : > { %9898 = vmatprep.subr.bf16.mxu0 %v16458_v19  ;;  %v10539_v50 = vmul.f32 %v10491_v43, %v10155_v7  ;;  %v6642_v48 = vld [vmem:[%s20342_s21 + $0xee8] sm:$0xff] }
 0xf2f   : > { %v16426_v21 = vcombine.high %v6634_v47, %v6642_v48  ;;  %v6362_v61 = vld [vmem:[%s20342_s21 + $0x628] sm:$0xff]  ;;  %v16425_v26 = vcombine.low %v6634_v47, %v6642_v48 }
 0xf30   : > { %v22058_v54 = vpack.c.bf16 %v10539_v50, %v10523_v4  ;;  %9848 = vmatpush2.bf16.msra.mxu1 %v16201_v23  ;;  %v6370_v35 = vld [vmem:[%s20342_s21 + $0x668] sm:$0xff] }
 0xf31   : > { %9899 = vmatpush2.bf16.msra.mxu0 %v16457_v44  ;;  %9849 = vmatprep.subr.bf16.mxu1 %v16186_v24  ;;  %v6618_v41 = vld [vmem:[%s20342_s21 + $0xe28] sm:$0xff]  ;;  %v16154_v31 = vcombine.high %v6362_v61, %v6370_v35  ;;  %v16153_v7 = vcombine.low %v6362_v61, %v6370_v35 }
 0xf32   : > { %9900 = vmatprep.subr.bf16.mxu0 %v16442_v30  ;;  %v6626_v19 = vld [vmem:[%s20342_s21 + $0xe68] sm:$0xff] }
 0xf33   : > { %v16410_v36 = vcombine.high %v6618_v41, %v6626_v19  ;;  %v6346_v63 = vld [vmem:[%s20342_s21 + $0x5a8] sm:$0xff]  ;;  %v16409_v43 = vcombine.low %v6618_v41, %v6626_v19 }
 0xf34   : > { %9850 = vmatpush2.bf16.msra.mxu1 %v16185_v37  ;;  %v6354_v55 = vld [vmem:[%s20342_s21 + $0x5e8] sm:$0xff] }
 0xf35   : > { %9901 = vmatpush2.bf16.msra.mxu0 %v16441_v40  ;;  %9851 = vmatprep.subr.bf16.mxu1 %v16170_v10  ;;  %v6602_v23 = vld [vmem:[%s20342_s21 + $0xda8] sm:$0xff]  ;;  %v16138_v44 = vcombine.high %v6346_v63, %v6354_v55  ;;  %v16137_v32 = vcombine.low %v6346_v63, %v6354_v55 }
 0xf36   : > { %9902 = vmatprep.subr.bf16.mxu0 %v16426_v21  ;;  %v6610_v45 = vld [vmem:[%s20342_s21 + $0xde8] sm:$0xff] }
 0xf37   : > { %v16394_v24 = vcombine.high %v6602_v23, %v6610_v45  ;;  %v6330_v30 = vld [vmem:[%s20342_s21 + $0x528] sm:$0xff]  ;;  %v16393_v47 = vcombine.low %v6602_v23, %v6610_v45 }
 0xf38   : > { %9852 = vmatpush2.bf16.msra.mxu1 %v16169_v62  ;;  %v6338_v42 = vld [vmem:[%s20342_s21 + $0x568] sm:$0xff] }
 0xf39   : > { %9903 = vmatpush2.bf16.msra.mxu0 %v16425_v26  ;;  %9853 = vmatprep.subr.bf16.mxu1 %v16154_v31  ;;  %v6586_v4 = vld [vmem:[%s20342_s21 + $0xd28] sm:$0xff]  ;;  %v16122_v48 = vcombine.high %v6330_v30, %v6338_v42  ;;  %v16121_v35 = vcombine.low %v6330_v30, %v6338_v42  ;;  %v6547_v30 = vld [vmem:[%s20342_s21 + $0xbf0] sm:$0xff] }
 0xf3a   : > { %9904 = vmatprep.subr.bf16.mxu0 %v16410_v36  ;;  %v6594_v50 = vld [vmem:[%s20342_s21 + $0xd68] sm:$0xff] }
 0xf3b   : > { %v16378_v37 = vcombine.high %v6586_v4, %v6594_v50  ;;  %v6314_v40 = vld [vmem:[%s20342_s21 + $0x4a8] sm:$0xff]  ;;  %v16377_v41 = vcombine.low %v6586_v4, %v6594_v50  ;;  %v22086_v50 = vrot.slane %v21865_v13, %v21052_v25 }
 0xf3c   : > { %9854 = vmatpush2.bf16.msra.mxu1 %v16153_v7  ;;  %v6322_v10 = vld [vmem:[%s20342_s21 + $0x4e8] sm:$0xff] }
 0xf3d   : > { %9905 = vmatpush2.bf16.msra.mxu0 %v16409_v43  ;;  %9855 = vmatprep.subr.bf16.mxu1 %v16138_v44  ;;  %v6570_v21 = vld [vmem:[%s20342_s21 + $0xca8] sm:$0xff]  ;;  %v16106_v19 = vcombine.high %v6314_v40, %v6322_v10  ;;  %v16105_v55 = vcombine.low %v6314_v40, %v6322_v10  ;;  %v6283_v43 = vld [vmem:[%s20342_s21 + $0x3b0] sm:$0xff] }
 0xf3e   : > { %9906 = vmatprep.subr.bf16.mxu0 %v16394_v24  ;;  %v6578_v61 = vld [vmem:[%s20342_s21 + $0xce8] sm:$0xff]  ;;  %v6291_v44 = vld [vmem:[%s20342_s21 + $0x3f0] sm:$0xff] }
 0xf3f   : > { %v16362_v62 = vcombine.high %v6570_v21, %v6578_v61  ;;  %v6298_v26 = vld [vmem:[%s20342_s21 + $0x428] sm:$0xff]  ;;  %v16361_v23 = vcombine.low %v6570_v21, %v6578_v61  ;;  %v6539_v24 = vld [vmem:[%s20342_s21 + $0xbb0] sm:$0xff] }
 0xf40   : > { %9856 = vmatpush2.bf16.msra.mxu1 %v16137_v32  ;;  %v6306_v31 = vld [vmem:[%s20342_s21 + $0x468] sm:$0xff]  ;;  %v16076_v32 = vcombine.high %v6283_v43, %v6291_v44  ;;  %v6275_v40 = vld [vmem:[%s20342_s21 + $0x370] sm:$0xff] }
 0xf41   : > { %9907 = vmatpush2.bf16.msra.mxu0 %v16393_v47  ;;  %9857 = vmatprep.subr.bf16.mxu1 %v16122_v48  ;;  %v6554_v36 = vld [vmem:[%s20342_s21 + $0xc28] sm:$0xff]  ;;  %v16090_v45 = vcombine.high %v6298_v26, %v6306_v31  ;;  %v16089_v42 = vcombine.low %v6298_v26, %v6306_v31  ;;  %v16332_v47 = vcombine.high %v6539_v24, %v6547_v30  ;;  %v6267_v48 = vld [vmem:[%s20342_s21 + $0x330] sm:$0xff] }
 0xf42   : > { %9908 = vmatprep.subr.bf16.mxu0 %v16378_v37  ;;  %v6562_v63 = vld [vmem:[%s20342_s21 + $0xc68] sm:$0xff]  ;;  %v22091_v37 = vrot.slane %v21865_v13, %v21061_v39  ;;  %v6523_v10 = vld [vmem:[%s20342_s21 + $0xb30] sm:$0xff]  ;;  %v16060_v31 = vcombine.high %v6267_v48, %v6275_v40 }
 0xf43   : > { %v16346_v7 = vcombine.high %v6554_v36, %v6562_v63  ;;  %v16345_v4 = vcombine.low %v6554_v36, %v6562_v63  ;;  %v6531_v21 = vld [vmem:[%s20342_s21 + $0xb70] sm:$0xff] }
 0xf44   : > { %9858 = vmatpush2.bf16.msra.mxu1 %v16121_v35  ;;  %v16316_v36 = vcombine.high %v6523_v10, %v6531_v21  ;;  %v22098_v63 = vld [vmem:[%s20342_s21 + $0x2b0] sm:$0xff] }
 0xf45   : > { %9909 = vmatpush2.bf16.msra.mxu0 %v16377_v41  ;;  %9859 = vmatprep.subr.bf16.mxu1 %v16106_v19  ;;  %v16075_v19 = vcombine.low %v6283_v43, %v6291_v44  ;;  %v22112_v43 = vld [vmem:[%s20342_s21 + $0xaf0] sm:$0xff] }
 0xf46   : > { %9910 = vmatprep.subr.bf16.mxu0 %v16362_v62  ;;  %v16331_v62 = vcombine.low %v6539_v24, %v6547_v30  ;;  %v16059_v30 = vcombine.low %v6267_v48, %v6275_v40 }
 0xf48   : > { %9860 = vmatpush2.bf16.msra.mxu1 %v16105_v55 }
 0xf49   : > { %9911 = vmatpush2.bf16.msra.mxu0 %v16361_v23  ;;  %9861 = vmatprep.subr.bf16.mxu1 %v16090_v45  ;;  %v22106_v45 = vld [vmem:[%s20342_s21 + $0x2f0] sm:$0xff] }
 0xf4a   : > { %9912 = vmatprep.subr.bf16.mxu0 %v16346_v7  ;;  %v22109_v7 = vld [vmem:[%s20342_s21 + $0xab0] sm:$0xff]  ;;  %v16044_v48 = vcombine.high %v22098_v63, %v22106_v45 }
 0xf4b   : > { %v16300_v40 = vcombine.high %v22109_v7, %v22112_v43  ;;  %v16299_v46 = vcombine.low %v22109_v7, %v22112_v43 }
 0xf4c   : > { %9862 = vmatpush2.bf16.msra.mxu1 %v16089_v42  ;;  %v9559_v61 = vpop.f32.mrf.mxu1 }
 0xf4d   : > { %9913 = vmatpush2.bf16.msra.mxu0 %v16345_v4  ;;  %v9610_v35 = vpop.f32.mrf.mxu0  ;;  %v9560_v41 = vadd.f32 %v9559_v61, %v22086_v50  ;;  %9933 = vmatprep.subr.bf16.mxu1 %v16076_v32  ;;  %v22121_v61 = vld [vmem:[%s20342_s21 + $0x230] sm:$0xff] }
 0xf4e   : > { %9984 = vmatprep.subr.bf16.mxu0 %v16332_v47  ;;  %v9561_v26 = vpop.f32.mrf.mxu1  ;;  %v16315_v47 = vcombine.low %v6523_v10, %v6531_v21  ;;  %v6491_v21 = vld [vmem:[%s20342_s21 + $0xa30] sm:$0xff] }
 0xf4f   : > { %v9612_v13 = vpop.f32.mrf.mxu0  ;;  %v22100_v55 = vadd.f32 %v9610_v35, %v9560_v41  ;;  %9864 = vmatmul.mubr.bf16.vlgmr.msra.gmra.mxu1 %v21629_v6  ;;  %v9562_v23 = vadd.f32 %v9561_v26, %v22091_v37  ;;  %v22124_v35 = vld [vmem:[%s20342_s21 + $0x270] sm:$0xff] }
 0xf50   : > { %9915 = vmatmul.mubr.bf16.vlgmr.msra.gmra.mxu0 %v21631_v9  ;;  %9873 = vmatprep.mubr.bf16.mxu1 %v21650_v3  ;;  %v9563_v44 = vpop.f32.mrf.mxu1 }
 0xf51   : > { %9924 = vmatprep.mubr.bf16.mxu0 %v21652_v11  ;;  %v9614_v24 = vpop.f32.mrf.mxu0  ;;  %v10189_v42 = vmul.f32 0.044715, %v22100_v55  ;;  %9934 = vmatpush1.bf16.msra.mxu1 %v16075_v19  ;;  %v22117_v4 = vadd.f32 %v9612_v13, %v9562_v23  ;;  %v9564_v32 = vadd.f32 %v9563_v44, %v22086_v50  ;;  %v6499_v23 = vld [vmem:[%s20342_s21 + $0xa70] sm:$0xff]  ;;  %v16043_v44 = vcombine.low %v22098_v63, %v22106_v45 }
 0xf52   : > { %9985 = vmatpush1.bf16.msra.mxu0 %v16331_v62  ;;  %9935 = vmatprep.subr.bf16.mxu1 %v16060_v31  ;;  %v9565_v41 = vpop.f32.mrf.mxu1  ;;  %v16027_v63 = vcombine.low %v22121_v61, %v22124_v35 }
 0xf53   : > { %9986 = vmatprep.subr.bf16.mxu0 %v16316_v36  ;;  %v9616_v26 = vpop.f32.mrf.mxu0  ;;  %v10237_v19 = vmul.f32 %v10189_v42, %v22100_v55  ;;  %v10190_v62 = vmul.f32 0.044715, %v22117_v4  ;;  %v22132_v13 = vadd.f32 %v9614_v24, %v9564_v32  ;;  %v9566_v10 = vadd.f32 %v9565_v41, %v22091_v37 }
 0xf54   : > { %v9569_v31 = vpop.f32.mrf.mxu1  ;;  %v16028_v42 = vcombine.high %v22121_v61, %v22124_v35  ;;  %v6475_v61 = vld [vmem:[%s20342_s21 + $0x9b0] sm:$0xff] }
 0xf55   : > { %v9620_v36 = vpop.f32.mrf.mxu0  ;;  %v10285_v24 = vmul.f32 %v10237_v19, %v22100_v55  ;;  %v10238_v32 = vmul.f32 %v10190_v62, %v22117_v4  ;;  %v10205_v41 = vmul.f32 0.044715, %v22132_v13  ;;  %9936 = vmatpush1.bf16.msra.mxu1 %v16059_v30  ;;  %v22148_v45 = vadd.f32 %v9616_v26, %v9566_v10  ;;  %v6227_v62 = vld [vmem:[%s20342_s21 + $0x1f0] sm:$0xff] }
 0xf56   : > { %9987 = vmatpush1.bf16.msra.mxu0 %v16315_v47  ;;  %v9570_v7 = vadd.f32 %v9569_v31, %v22086_v50  ;;  %9937 = vmatprep.subr.bf16.mxu1 %v16044_v48  ;;  %v9571_v43 = vpop.f32.mrf.mxu1  ;;  %v16284_v19 = vcombine.high %v6491_v21, %v6499_v23  ;;  %v6483_v35 = vld [vmem:[%s20342_s21 + $0x9f0] sm:$0xff]  ;;  %v16283_v31 = vcombine.low %v6491_v21, %v6499_v23 }
 0xf57   : > { %9988 = vmatprep.subr.bf16.mxu0 %v16300_v40  ;;  %v9622_v49 = vpop.f32.mrf.mxu0  ;;  %v10333_v17 = vadd.f32 %v10285_v24, %v22100_v55  ;;  %v10286_v30 = vmul.f32 %v10238_v32, %v22117_v4  ;;  %v10253_v47 = vmul.f32 %v10205_v41, %v22132_v13  ;;  %9874 = vmatmul.mubr.bf16.gmra.mxu1 %v21660_v51  ;;  %v10206_v50 = vmul.f32 0.044715, %v22148_v45 }
 0xf58   : > { %9925 = vmatmul.mubr.bf16.gmra.mxu0 %v21662_v18  ;;  %v22161_v26 = vadd.f32 %v9620_v36, %v9570_v7  ;;  %9965 = vmatprep.mubr.bf16.mxu1 %v21623_v56  ;;  %v9572_v48 = vadd.f32 %v9571_v43, %v22091_v37  ;;  %v9573_v40 = vpop.f32.mrf.mxu1  ;;  %v16012_v36 = vcombine.high %v6219_v52, %v6227_v62 }
 0xf59   : > { %10016 = vmatprep.mubr.bf16.mxu0 %v21625_v57  ;;  %v9624_v10 = vpop.f32.mrf.mxu0  ;;  %v10381_v24 = vmul.f32 0.7978846, %v10333_v17  ;;  %v10301_v32 = vmul.f32 %v10253_v47, %v22132_v13  ;;  %9938 = vmatpush1.bf16.msra.mxu1 %v16043_v44  ;;  %v10334_v41 = vadd.f32 %v10286_v30, %v22117_v4  ;;  %v10254_v7 = vmul.f32 %v10206_v50, %v22148_v45  ;;  %v6203_v17 = vld [vmem:[%s20342_s21 + $0x130] sm:$0xff] }
 0xf5a   : > { %9989 = vmatpush1.bf16.msra.mxu0 %v16299_v46  ;;  %v22169_v53 = vadd.f32 %v9622_v49, %v9572_v48  ;;  %9939 = vmatprep.subr.bf16.mxu1 %v16028_v42  ;;  %v9574_v37 = vpop.f32.mrf.mxu1  ;;  %v16268_v21 = vcombine.high %v6475_v61, %v6483_v35  ;;  %v6211_v44 = vld [vmem:[%s20342_s21 + $0x170] sm:$0xff]  ;;  %v16011_v42 = vcombine.low %v6219_v52, %v6227_v62 }
 0xf5b   : > { %9990 = vmatprep.subr.bf16.mxu0 %v16284_v19  ;;  %v9625_v43 = vpop.f32.mrf.mxu0  ;;  %19016 = vtanh.f32 %v10381_v24  ;;  %v10349_v23 = vadd.f32 %v10301_v32, %v22132_v13  ;;  %v6459_v47 = vld [vmem:[%s20342_s21 + $0x930] sm:$0xff]  ;;  %v10382_v40 = vmul.f32 0.7978846, %v10334_v41  ;;  %v10302_v30 = vmul.f32 %v10254_v7, %v22148_v45 }
 0xf5c   : > { %v6467_v46 = vld [vmem:[%s20342_s21 + $0x970] sm:$0xff]  ;;  %v16267_v19 = vcombine.low %v6475_v61, %v6483_v35  ;;  %v15996_v50 = vcombine.high %v6203_v17, %v6211_v44  ;;  %v15995_v52 = vcombine.low %v6203_v17, %v6211_v44 }
 0xf5d   : > { %v10397_v49 = vmul.f32 0.7978846, %v10349_v23  ;;  %9940 = vmatpush1.bf16.msra.mxu1 %v16027_v63  ;;  %v16252_v48 = vcombine.high %v6459_v47, %v6467_v46  ;;  %v6187_v10 = vld [vmem:[%s20342_s21 + $0xb0] sm:$0xff]  ;;  %v10350_v24 = vadd.f32 %v10302_v30, %v22148_v45  ;;  %19018 = vtanh.f32 %v10382_v40 }
 0xf5e   : > { %9991 = vmatpush1.bf16.msra.mxu0 %v16283_v31  ;;  %9941 = vmatprep.subr.bf16.mxu1 %v16012_v36  ;;  %v6195_v32 = vld [vmem:[%s20342_s21 + $0xf0] sm:$0xff]  ;;  %v16251_v62 = vcombine.low %v6459_v47, %v6467_v46 }
 0xf5f   : > { %9992 = vmatprep.subr.bf16.mxu0 %v16268_v21  ;;  %19020 = vtanh.f32 %v10397_v49  ;;  %v6443_v41 = vld [vmem:[%s20342_s21 + $0x8b0] sm:$0xff]  ;;  %v10398_v63 = vmul.f32 0.7978846, %v10350_v24  ;;  %v15980_v61 = vcombine.high %v6187_v10, %v6195_v32  ;;  %v15979_v21 = vcombine.low %v6187_v10, %v6195_v32 }
 0xf60   : > { %v6451_v7 = vld [vmem:[%s20342_s21 + $0x8f0] sm:$0xff] }
 0xf61   : > { %9942 = vmatpush1.bf16.msra.mxu1 %v16011_v42  ;;  %v16236_v35 = vcombine.high %v6443_v41, %v6451_v7  ;;  %v6171_v31 = vld [vmem:[%s20342_s21 + $0x30] sm:$0xff]  ;;  %19022 = vtanh.f32 %v10398_v63  ;;  %v16235_v23 = vcombine.low %v6443_v41, %v6451_v7 }
 0xf62   : > { %9993 = vmatpush1.bf16.msra.mxu0 %v16267_v19  ;;  %9943 = vmatprep.subr.bf16.mxu1 %v15996_v50  ;;  %v6179_v36 = vld [vmem:[%s20342_s21 + $0x70] sm:$0xff] }
 0xf63   : > { %9994 = vmatprep.subr.bf16.mxu0 %v16252_v48  ;;  %v6427_v37 = vld [vmem:[%s20342_s21 + $0x830] sm:$0xff]  ;;  %v15964_v17 = vcombine.high %v6171_v31, %v6179_v36  ;;  %v15963_v42 = vcombine.low %v6171_v31, %v6179_v36 }
 0xf64   : > { %v6435_v43 = vld [vmem:[%s20342_s21 + $0x870] sm:$0xff] }
 0xf65   : > { %9944 = vmatpush1.bf16.msra.mxu1 %v15995_v52  ;;  %v16220_v44 = vcombine.high %v6427_v37, %v6435_v43  ;;  %v6411_v47 = vld [vmem:[%s20342_s21 + $0x7b0] sm:$0xff]  ;;  %v16219_v19 = vcombine.low %v6427_v37, %v6435_v43 }
 0xf66   : > { %9995 = vmatpush1.bf16.msra.mxu0 %v16251_v62  ;;  %9945 = vmatprep.subr.bf16.mxu1 %v15980_v61  ;;  %v6419_v46 = vld [vmem:[%s20342_s21 + $0x7f0] sm:$0xff]  ;;  %v10141_v61 = vmul.f32 0.5, %v22100_v55 }
 0xf67   : > { %9996 = vmatprep.subr.bf16.mxu0 %v16236_v35  ;;  %v6667_v40 = vld [vmem:[%s20342_s21 + $0xfb0] sm:$0xff]  ;;  %v16204_v50 = vcombine.high %v6411_v47, %v6419_v46  ;;  %v16203_v62 = vcombine.low %v6411_v47, %v6419_v46  ;;  %v10157_v35 = vmul.f32 0.5, %v22132_v13 }
 0xf68   : > { %v6675_v30 = vld [vmem:[%s20342_s21 + $0xff0] sm:$0xff]  ;;  %v19017_v49 = vpop.eup %19016 }
 0xf69   : > { %9946 = vmatpush1.bf16.msra.mxu1 %v15979_v21  ;;  %v16460_v48 = vcombine.high %v6667_v40, %v6675_v30  ;;  %v6395_v10 = vld [vmem:[%s20342_s21 + $0x730] sm:$0xff]  ;;  %v10477_v32 = vadd.f32 1.0, %v19017_v49  ;;  %v16459_v36 = vcombine.low %v6667_v40, %v6675_v30  ;;  %v10158_v40 = vmul.f32 0.5, %v22148_v45 }
 0xf6a   : > { %9997 = vmatpush1.bf16.msra.mxu0 %v16235_v23  ;;  %9947 = vmatprep.subr.bf16.mxu1 %v15964_v17  ;;  %v19019_v24 = vpop.eup %19018  ;;  %v6403_v41 = vld [vmem:[%s20342_s21 + $0x770] sm:$0xff] }
 0xf6b   : > { %9998 = vmatprep.subr.bf16.mxu0 %v16220_v44  ;;  %v6651_v7 = vld [vmem:[%s20342_s21 + $0xf30] sm:$0xff]  ;;  %v16188_v37 = vcombine.high %v6395_v10, %v6403_v41  ;;  %v10478_v17 = vadd.f32 1.0, %v19019_v24  ;;  %v10525_v49 = vmul.f32 %v10477_v32, %v10141_v61  ;;  %v16187_v13 = vcombine.low %v6395_v10, %v6403_v41 }
 0xf6c   : > { %v6659_v63 = vld [vmem:[%s20342_s21 + $0xf70] sm:$0xff]  ;;  %v19021_v52 = vpop.eup %19020 }
 0xf6d   : > { %v10493_v31 = vadd.f32 1.0, %v19021_v52  ;;  %9948 = vmatpush1.bf16.msra.mxu1 %v15963_v42  ;;  %v16444_v43 = vcombine.high %v6651_v7, %v6659_v63  ;;  %v6379_v21 = vld [vmem:[%s20342_s21 + $0x6b0] sm:$0xff]  ;;  %v10142_v42 = vmul.f32 0.5, %v22117_v4 }
 0xf6e   : > { %9999 = vmatpush1.bf16.msra.mxu0 %v16219_v19  ;;  %9949 = vmatprep.subr.bf16.mxu1 %v16204_v50  ;;  %v6387_v23 = vld [vmem:[%s20342_s21 + $0x6f0] sm:$0xff]  ;;  %v19023_v44 = vpop.eup %19022  ;;  %v16443_v50 = vcombine.low %v6651_v7, %v6659_v63 }
 0xf6f   : > { %10000 = vmatprep.subr.bf16.mxu0 %v16460_v48  ;;  %v10541_v47 = vmul.f32 %v10493_v31, %v10157_v35  ;;  %v6635_v55 = vld [vmem:[%s20342_s21 + $0xeb0] sm:$0xff]  ;;  %v10494_v30 = vadd.f32 1.0, %v19023_v44  ;;  %v16172_v48 = vcombine.high %v6379_v21, %v6387_v23  ;;  %v10526_v10 = vmul.f32 %v10478_v17, %v10142_v42 }
 0xf70   : > { %v6643_v46 = vld [vmem:[%s20342_s21 + $0xef0] sm:$0xff] }
 0xf71   : > { %v22202_v19 = vpack.c.bf16 %v10541_v47, %v10525_v49  ;;  %9950 = vmatpush2.bf16.msra.mxu1 %v16203_v62  ;;  %v16428_v24 = vcombine.high %v6635_v55, %v6643_v46  ;;  %v6363_v32 = vld [vmem:[%s20342_s21 + $0x630] sm:$0xff]  ;;  %v10542_v41 = vmul.f32 %v10494_v30, %v10158_v40  ;;  %v16171_v62 = vcombine.low %v6379_v21, %v6387_v23 }
 0xf72   : > { %10001 = vmatpush2.bf16.msra.mxu0 %v16459_v36  ;;  %9951 = vmatprep.subr.bf16.mxu1 %v16188_v37  ;;  %v6371_v4 = vld [vmem:[%s20342_s21 + $0x670] sm:$0xff]  ;;  %v16427_v7 = vcombine.low %v6635_v55, %v6643_v46 }
 0xf73   : > { %10002 = vmatprep.subr.bf16.mxu0 %v16444_v43  ;;  %v6619_v52 = vld [vmem:[%s20342_s21 + $0xe30] sm:$0xff]  ;;  %v22208_v61 = vpack.c.bf16 %v10542_v41, %v10526_v10  ;;  %v16156_v63 = vcombine.high %v6363_v32, %v6371_v4  ;;  %v16155_v17 = vcombine.low %v6363_v32, %v6371_v4 }
 0xf74   : > { %v6627_v45 = vld [vmem:[%s20342_s21 + $0xe70] sm:$0xff] }
 0xf75   : > { %9952 = vmatpush2.bf16.msra.mxu1 %v16187_v13  ;;  %v16412_v35 = vcombine.high %v6619_v52, %v6627_v45  ;;  %v6347_v31 = vld [vmem:[%s20342_s21 + $0x5b0] sm:$0xff]  ;;  %v16411_v44 = vcombine.low %v6619_v52, %v6627_v45 }
 0xf76   : > { %10003 = vmatpush2.bf16.msra.mxu0 %v16443_v50  ;;  %9953 = vmatprep.subr.bf16.mxu1 %v16172_v48  ;;  %v6355_v36 = vld [vmem:[%s20342_s21 + $0x5f0] sm:$0xff] }
 0xf77   : > { %10004 = vmatprep.subr.bf16.mxu0 %v16428_v24  ;;  %v6603_v37 = vld [vmem:[%s20342_s21 + $0xdb0] sm:$0xff]  ;;  %v16140_v21 = vcombine.high %v6347_v31, %v6355_v36  ;;  %v16139_v13 = vcombine.low %v6347_v31, %v6355_v36 }
 0xf78   : > { %v6611_v43 = vld [vmem:[%s20342_s21 + $0xdf0] sm:$0xff] }
 0xf79   : > { %9954 = vmatpush2.bf16.msra.mxu1 %v16171_v62  ;;  %v16396_v23 = vcombine.high %v6603_v37, %v6611_v43  ;;  %v6331_v49 = vld [vmem:[%s20342_s21 + $0x530] sm:$0xff]  ;;  %v16395_v42 = vcombine.low %v6603_v37, %v6611_v43  ;;  %v6284_v43 = vld [vmem:[%s20342_s21 + $0x3b8] sm:$0xff] }
 0xf7a   : > { %10005 = vmatpush2.bf16.msra.mxu0 %v16427_v7  ;;  %9955 = vmatprep.subr.bf16.mxu1 %v16156_v63  ;;  %v6339_v47 = vld [vmem:[%s20342_s21 + $0x570] sm:$0xff] }
 0xf7b   : > { %10006 = vmatprep.subr.bf16.mxu0 %v16412_v35  ;;  %v6587_v55 = vld [vmem:[%s20342_s21 + $0xd30] sm:$0xff]  ;;  %v16124_v40 = vcombine.high %v6331_v49, %v6339_v47  ;;  %v16123_v10 = vcombine.low %v6331_v49, %v6339_v47 }
 0xf7c   : > { %v6595_v46 = vld [vmem:[%s20342_s21 + $0xd70] sm:$0xff] }
 0xf7d   : > { %9956 = vmatpush2.bf16.msra.mxu1 %v16155_v17  ;;  %v16380_v30 = vcombine.high %v6587_v55, %v6595_v46  ;;  %v6315_v50 = vld [vmem:[%s20342_s21 + $0x4b0] sm:$0xff]  ;;  %v16379_v41 = vcombine.low %v6587_v55, %v6595_v46  ;;  %v6292_v17 = vld [vmem:[%s20342_s21 + $0x3f8] sm:$0xff] }
 0xf7e   : > { %10007 = vmatpush2.bf16.msra.mxu0 %v16411_v44  ;;  %9957 = vmatprep.subr.bf16.mxu1 %v16140_v21  ;;  %v6323_v48 = vld [vmem:[%s20342_s21 + $0x4f0] sm:$0xff]  ;;  %v6540_v44 = vld [vmem:[%s20342_s21 + $0xbb8] sm:$0xff]  ;;  %v16078_v46 = vcombine.high %v6284_v43, %v6292_v17 }
 0xf7f   : > { %10008 = vmatprep.subr.bf16.mxu0 %v16396_v23  ;;  %v6571_v24 = vld [vmem:[%s20342_s21 + $0xcb0] sm:$0xff]  ;;  %v16108_v4 = vcombine.high %v6315_v50, %v6323_v48  ;;  %v16107_v35 = vcombine.low %v6315_v50, %v6323_v48  ;;  %v6548_v21 = vld [vmem:[%s20342_s21 + $0xbf8] sm:$0xff] }
 0xf80   : > { %v6579_v32 = vld [vmem:[%s20342_s21 + $0xcf0] sm:$0xff]  ;;  %v6524_v50 = vld [vmem:[%s20342_s21 + $0xb38] sm:$0xff] }
 0xf81   : > { %9958 = vmatpush2.bf16.msra.mxu1 %v16139_v13  ;;  %v16364_v52 = vcombine.high %v6571_v24, %v6579_v32  ;;  %v6299_v45 = vld [vmem:[%s20342_s21 + $0x430] sm:$0xff]  ;;  %v16363_v31 = vcombine.low %v6571_v24, %v6579_v32  ;;  %v16334_v13 = vcombine.high %v6540_v44, %v6548_v21  ;;  %v6532_v48 = vld [vmem:[%s20342_s21 + $0xb78] sm:$0xff] }
 0xf82   : > { %10009 = vmatpush2.bf16.msra.mxu0 %v16395_v42  ;;  %9959 = vmatprep.subr.bf16.mxu1 %v16124_v40  ;;  %v6307_v62 = vld [vmem:[%s20342_s21 + $0x470] sm:$0xff]  ;;  %v6268_v42 = vld [vmem:[%s20342_s21 + $0x338] sm:$0xff] }
 0xf83   : > { %10010 = vmatprep.subr.bf16.mxu0 %v16380_v30  ;;  %v6555_v7 = vld [vmem:[%s20342_s21 + $0xc30] sm:$0xff]  ;;  %v16092_v36 = vcombine.high %v6299_v45, %v6307_v62  ;;  %v16091_v23 = vcombine.low %v6299_v45, %v6307_v62  ;;  %v6276_v30 = vld [vmem:[%s20342_s21 + $0x378] sm:$0xff] }
 0xf84   : > { %v6563_v63 = vld [vmem:[%s20342_s21 + $0xc70] sm:$0xff]  ;;  %v16062_v62 = vcombine.high %v6268_v42, %v6276_v30 }
 0xf85   : > { %9960 = vmatpush2.bf16.msra.mxu1 %v16123_v10  ;;  %v16348_v37 = vcombine.high %v6555_v7, %v6563_v63  ;;  %v16347_v49 = vcombine.low %v6555_v7, %v6563_v63  ;;  %v19116_v47 = vld [vmem:[%s20345_s28] sm:$0xff]  ;;  %v16318_v7 = vcombine.high %v6524_v50, %v6532_v48  ;;  %v22243_v63 = vld [vmem:[%s20342_s21 + $0x2b8] sm:$0xff] }
 0xf86   : > { %10011 = vmatpush2.bf16.msra.mxu0 %v16379_v41  ;;  %9961 = vmatprep.subr.bf16.mxu1 %v16108_v4  ;;  %v22232_v55 = vrot.slane %v19116_v47, %v21079_v12  ;;  %v22236_v40 = vrot.slane %v19116_v47, %v21082_v14  ;;  %v16077_v41 = vcombine.low %v6284_v43, %v6292_v17  ;;  %v22257_v43 = vld [vmem:[%s20342_s21 + $0xaf8] sm:$0xff] }
 0xf87   : > { %10012 = vmatprep.subr.bf16.mxu0 %v16364_v52  ;;  %v16333_v4 = vcombine.low %v6540_v44, %v6548_v21  ;;  %v16061_v21 = vcombine.low %v6268_v42, %v6276_v30  ;;  %v6220_v12 = vld [vmem:[%s20342_s21 + $0x1b8] sm:$0xff] }
 0xf89   : > { %9962 = vmatpush2.bf16.msra.mxu1 %v16107_v35 }
 0xf8a   : > { %10013 = vmatpush2.bf16.msra.mxu0 %v16363_v31  ;;  %9963 = vmatprep.subr.bf16.mxu1 %v16092_v36  ;;  %v22251_v36 = vld [vmem:[%s20342_s21 + $0x2f8] sm:$0xff] }
 0xf8b   : > { %10014 = vmatprep.subr.bf16.mxu0 %v16348_v37  ;;  %v22254_v37 = vld [vmem:[%s20342_s21 + $0xab8] sm:$0xff]  ;;  %v16046_v42 = vcombine.high %v22243_v63, %v22251_v36 }
 0xf8c   : > { %v16302_v30 = vcombine.high %v22254_v37, %v22257_v43 }
 0xf8d   : > { %9964 = vmatpush2.bf16.msra.mxu1 %v16091_v23  ;;  %v9661_v24 = vpop.f32.mrf.mxu1 }
 0xf8e   : > { %10015 = vmatpush2.bf16.msra.mxu0 %v16347_v49  ;;  %v9712_v32 = vpop.f32.mrf.mxu0  ;;  %v9662_v10 = vadd.f32 %v9661_v24, %v22232_v55  ;;  %10035 = vmatprep.subr.bf16.mxu1 %v16078_v46  ;;  %v16317_v46 = vcombine.low %v6524_v50, %v6532_v48  ;;  %v22269_v24 = vld [vmem:[%s20342_s21 + $0x278] sm:$0xff] }
 0xf8f   : > { %10086 = vmatprep.subr.bf16.mxu0 %v16334_v13  ;;  %v9663_v52 = vpop.f32.mrf.mxu1  ;;  %v22266_v13 = vld [vmem:[%s20342_s21 + $0x238] sm:$0xff] }
 0xf90   : > { %v9714_v45 = vpop.f32.mrf.mxu0  ;;  %v22245_v35 = vadd.f32 %v9712_v32, %v9662_v10  ;;  %9966 = vmatmul.mubr.bf16.vlgmr.msra.gmra.mxu1 %v21629_v6  ;;  %v9664_v31 = vadd.f32 %v9663_v52, %v22236_v40  ;;  %v6492_v48 = vld [vmem:[%s20342_s21 + $0xa38] sm:$0xff] }
 0xf91   : > { %10017 = vmatmul.mubr.bf16.vlgmr.msra.gmra.mxu0 %v21631_v9  ;;  %9975 = vmatprep.mubr.bf16.mxu1 %v21650_v3  ;;  %v9665_v17 = vpop.f32.mrf.mxu1 }
 0xf92   : > { %10026 = vmatprep.mubr.bf16.mxu0 %v21652_v11  ;;  %v9716_v44 = vpop.f32.mrf.mxu0  ;;  %v10191_v23 = vmul.f32 0.044715, %v22245_v35  ;;  %10036 = vmatpush1.bf16.msra.mxu1 %v16077_v41  ;;  %v22262_v49 = vadd.f32 %v9714_v45, %v9664_v31  ;;  %v9666_v47 = vadd.f32 %v9665_v17, %v22232_v55  ;;  %v6500_v45 = vld [vmem:[%s20342_s21 + $0xa78] sm:$0xff]  ;;  %v16045_v31 = vcombine.low %v22243_v63, %v22251_v36 }
 0xf93   : > { %10087 = vmatpush1.bf16.msra.mxu0 %v16333_v4  ;;  %10037 = vmatprep.subr.bf16.mxu1 %v16062_v62  ;;  %v9667_v32 = vpop.f32.mrf.mxu1  ;;  %v16301_v17 = vcombine.low %v22254_v37, %v22257_v43  ;;  %v16029_v63 = vcombine.low %v22266_v13, %v22269_v24 }
 0xf94   : > { %10088 = vmatprep.subr.bf16.mxu0 %v16318_v7  ;;  %v9718_v10 = vpop.f32.mrf.mxu0  ;;  %v10239_v41 = vmul.f32 %v10191_v23, %v22245_v35  ;;  %v10192_v4 = vmul.f32 0.044715, %v22262_v49  ;;  %v22277_v52 = vadd.f32 %v9716_v44, %v9666_v47  ;;  %v9668_v50 = vadd.f32 %v9667_v32, %v22236_v40 }
 0xf95   : > { %v9671_v62 = vpop.f32.mrf.mxu1  ;;  %v16030_v23 = vcombine.high %v22266_v13, %v22269_v24  ;;  %v6476_v13 = vld [vmem:[%s20342_s21 + $0x9b8] sm:$0xff] }
 0xf96   : > { %v9722_v7 = vpop.f32.mrf.mxu0  ;;  %v10287_v44 = vmul.f32 %v10239_v41, %v22245_v35  ;;  %v10240_v47 = vmul.f32 %v10192_v4, %v22262_v49  ;;  %v10207_v32 = vmul.f32 0.044715, %v22277_v52  ;;  %10038 = vmatpush1.bf16.msra.mxu1 %v16061_v21  ;;  %v22293_v36 = vadd.f32 %v9718_v10, %v9668_v50  ;;  %v6228_v4 = vld [vmem:[%s20342_s21 + $0x1f8] sm:$0xff] }
 0xf97   : > { %10089 = vmatpush1.bf16.msra.mxu0 %v16317_v46  ;;  %v9672_v37 = vadd.f32 %v9671_v62, %v22232_v55  ;;  %10039 = vmatprep.subr.bf16.mxu1 %v16046_v42  ;;  %v9673_v43 = vpop.f32.mrf.mxu1  ;;  %v16286_v41 = vcombine.high %v6492_v48, %v6500_v45  ;;  %v6484_v24 = vld [vmem:[%s20342_s21 + $0x9f8] sm:$0xff]  ;;  %v16285_v62 = vcombine.low %v6492_v48, %v6500_v45 }
 0xf98   : > { %10090 = vmatprep.subr.bf16.mxu0 %v16302_v30  ;;  %v9724_v34 = vpop.f32.mrf.mxu0  ;;  %v10335_v14 = vadd.f32 %v10287_v44, %v22245_v35  ;;  %v10288_v21 = vmul.f32 %v10240_v47, %v22262_v49  ;;  %v10255_v46 = vmul.f32 %v10207_v32, %v22277_v52  ;;  %9976 = vmatmul.mubr.bf16.gmra.mxu1 %v21660_v51  ;;  %v10208_v55 = vmul.f32 0.044715, %v22293_v36 }
 0xf99   : > { %10027 = vmatmul.mubr.bf16.gmra.mxu0 %v21662_v18  ;;  %v22306_v10 = vadd.f32 %v9722_v7, %v9672_v37  ;;  %10067 = vmatprep.mubr.bf16.mxu1 %v21623_v56  ;;  %v9674_v42 = vadd.f32 %v9673_v43, %v22236_v40  ;;  %v9675_v30 = vpop.f32.mrf.mxu1  ;;  %v16014_v7 = vcombine.high %v6220_v12, %v6228_v4  ;;  %v6460_v43 = vld [vmem:[%s20342_s21 + $0x938] sm:$0xff] }
 0xf9a   : > { %10118 = vmatprep.mubr.bf16.mxu0 %v21625_v57  ;;  %v9726_v50 = vpop.f32.mrf.mxu0  ;;  %v10383_v44 = vmul.f32 0.7978846, %v10335_v14  ;;  %v10303_v47 = vmul.f32 %v10255_v46, %v22277_v52  ;;  %10040 = vmatpush1.bf16.msra.mxu1 %v16045_v31  ;;  %v10336_v32 = vadd.f32 %v10288_v21, %v22262_v49  ;;  %v10256_v56 = vmul.f32 %v10208_v55, %v22293_v36  ;;  %v6204_v14 = vld [vmem:[%s20342_s21 + $0x138] sm:$0xff] }
 0xf9b   : > { %10091 = vmatpush1.bf16.msra.mxu0 %v16301_v17  ;;  %v22314_v57 = vadd.f32 %v9724_v34, %v9674_v42  ;;  %10041 = vmatprep.subr.bf16.mxu1 %v16030_v23  ;;  %v9676_v40 = vpop.f32.mrf.mxu1  ;;  %v16270_v48 = vcombine.high %v6476_v13, %v6484_v24  ;;  %v6212_v31 = vld [vmem:[%s20342_s21 + $0x178] sm:$0xff]  ;;  %v9362_v34 = vadd.f32 %v21896_v5, %v21877_v22 }
 0xf9c   : > { %10092 = vmatprep.subr.bf16.mxu0 %v16286_v41  ;;  %v9727_v37 = vpop.f32.mrf.mxu0  ;;  %19024 = vtanh.f32 %v10383_v44  ;;  %v10351_v45 = vadd.f32 %v10303_v47, %v22277_v52  ;;  %v6468_v17 = vld [vmem:[%s20342_s21 + $0x978] sm:$0xff]  ;;  %v10384_v46 = vmul.f32 0.7978846, %v10336_v32  ;;  %v10304_v21 = vmul.f32 %v10256_v56, %v22293_v36 }
 0xf9d   : > { %v16013_v41 = vcombine.low %v6220_v12, %v6228_v4  ;;  %v16269_v55 = vcombine.low %v6476_v13, %v6484_v24  ;;  %v15998_v42 = vcombine.high %v6204_v14, %v6212_v31  ;;  %v16254_v30 = vcombine.high %v6460_v43, %v6468_v17  ;;  %v6188_v50 = vld [vmem:[%s20342_s21 + $0xb8] sm:$0xff] }
 0xf9e   : > { %v10399_v23 = vmul.f32 0.7978846, %v10351_v45  ;;  %10042 = vmatpush1.bf16.msra.mxu1 %v16029_v63  ;;  %v10352_v44 = vadd.f32 %v10304_v21, %v22293_v36  ;;  %19026 = vtanh.f32 %v10384_v46  ;;  %v6196_v47 = vld [vmem:[%s20342_s21 + $0xf8] sm:$0xff]  ;;  %v15997_v12 = vcombine.low %v6204_v14, %v6212_v31 }
 0xf9f   : > { %10093 = vmatpush1.bf16.msra.mxu0 %v16285_v62  ;;  %10043 = vmatprep.subr.bf16.mxu1 %v16014_v7  ;;  %v6444_v32 = vld [vmem:[%s20342_s21 + $0x8b8] sm:$0xff]  ;;  %v16253_v63 = vcombine.low %v6460_v43, %v6468_v17  ;;  %v22330_v4 = vadd.f32 %v21898_v33, %v9362_v34  ;;  %v15982_v13 = vcombine.high %v6188_v50, %v6196_v47 }
 0xfa0   : > { %10094 = vmatprep.subr.bf16.mxu0 %v16270_v48  ;;  %19028 = vtanh.f32 %v10399_v23  ;;  %v6452_v22 = vld [vmem:[%s20342_s21 + $0x8f8] sm:$0xff]  ;;  %v10400_v5 = vmul.f32 0.7978846, %v10352_v44  ;;  %v9464_v7 = vadd.f32 %v22002_v27, %v21983_v8  ;;  %v10186_v48 = vmul.f32 0.044715, %v21892_v29 }
 0xfa1   : > { %v16238_v24 = vcombine.high %v6444_v32, %v6452_v22  ;;  %v6172_v62 = vld [vmem:[%s20342_s21 + $0x38] sm:$0xff]  ;;  %v15981_v33 = vcombine.low %v6188_v50, %v6196_v47  ;;  %v16237_v14 = vcombine.low %v6444_v32, %v6452_v22  ;;  %v10202_v45 = vmul.f32 0.044715, %v22330_v4 }
 0xfa2   : > { %10044 = vmatpush1.bf16.msra.mxu1 %v16013_v41  ;;  %19030 = vtanh.f32 %v10400_v5  ;;  %v6180_v56 = vld [vmem:[%s20342_s21 + $0x78] sm:$0xff]  ;;  %v22342_v8 = vadd.f32 %v22004_v16, %v9464_v7  ;;  %v10234_v23 = vmul.f32 %v10186_v48, %v21892_v29  ;;  %v10143_v7 = vmul.f32 0.5, %v22245_v35 }
 0xfa3   : > { %10095 = vmatpush1.bf16.msra.mxu0 %v16269_v55  ;;  %10045 = vmatprep.subr.bf16.mxu1 %v15998_v42  ;;  %v6428_v40 = vld [vmem:[%s20342_s21 + $0x838] sm:$0xff]  ;;  %v15966_v31 = vcombine.high %v6172_v62, %v6180_v56  ;;  %v15965_v41 = vcombine.low %v6172_v62, %v6180_v56  ;;  %v10250_v42 = vmul.f32 %v10202_v45, %v22330_v4  ;;  %v10159_v56 = vmul.f32 0.5, %v22277_v52 }
 0xfa4   : > { %10096 = vmatprep.subr.bf16.mxu0 %v16254_v30  ;;  %v6436_v37 = vld [vmem:[%s20342_s21 + $0x878] sm:$0xff]  ;;  %v10188_v30 = vmul.f32 0.044715, %v22000_v28  ;;  %v10204_v32 = vmul.f32 0.044715, %v22342_v8 }
 0xfa5   : > { %v16222_v43 = vcombine.high %v6428_v40, %v6436_v37  ;;  %v6412_v17 = vld [vmem:[%s20342_s21 + $0x7b8] sm:$0xff]  ;;  %v16221_v55 = vcombine.low %v6428_v40, %v6436_v37  ;;  %v10298_v48 = vmul.f32 %v10250_v42, %v22330_v4 }
 0xfa6   : > { %10046 = vmatpush1.bf16.msra.mxu1 %v15997_v12  ;;  %v6420_v27 = vld [vmem:[%s20342_s21 + $0x7f8] sm:$0xff]  ;;  %v10236_v35 = vmul.f32 %v10188_v30, %v22000_v28  ;;  %v10252_v52 = vmul.f32 %v10204_v32, %v22342_v8 }
 0xfa7   : > { %10097 = vmatpush1.bf16.msra.mxu0 %v16253_v63  ;;  %10047 = vmatprep.subr.bf16.mxu1 %v15982_v13  ;;  %v6668_v46 = vld [vmem:[%s20342_s21 + $0xfb8] sm:$0xff]  ;;  %v16206_v16 = vcombine.high %v6412_v17, %v6420_v27  ;;  %v16205_v62 = vcombine.low %v6412_v17, %v6420_v27 }
 0xfa8   : > { %10098 = vmatprep.subr.bf16.mxu0 %v16238_v24  ;;  %v6676_v21 = vld [vmem:[%s20342_s21 + $0xff8] sm:$0xff]  ;;  %v10282_v24 = vmul.f32 %v10234_v23, %v21892_v29 }
 0xfa9   : > { %v19025_v34 = vpop.eup %19024  ;;  %v16462_v50 = vcombine.high %v6668_v46, %v6676_v21  ;;  %v6396_v44 = vld [vmem:[%s20342_s21 + $0x738] sm:$0xff]  ;;  %v16461_v37 = vcombine.low %v6668_v46, %v6676_v21  ;;  %v10144_v21 = vmul.f32 0.5, %v22262_v49  ;;  %v10300_v49 = vmul.f32 %v10252_v52, %v22342_v8 }
 0xfaa   : > { %10048 = vmatpush1.bf16.msra.mxu1 %v15981_v33  ;;  %v10479_v22 = vadd.f32 1.0, %v19025_v34  ;;  %v6404_v5 = vld [vmem:[%s20342_s21 + $0x778] sm:$0xff] }
 0xfab   : > { %10099 = vmatpush1.bf16.msra.mxu0 %v16237_v14  ;;  %10049 = vmatprep.subr.bf16.mxu1 %v15966_v31  ;;  %v19027_v47 = vpop.eup %19026  ;;  %v6652_v12 = vld [vmem:[%s20342_s21 + $0xf38] sm:$0xff]  ;;  %v16190_v33 = vcombine.high %v6396_v44, %v6404_v5  ;;  %v16189_v46 = vcombine.low %v6396_v44, %v6404_v5 }
 0xfac   : > { %10100 = vmatprep.subr.bf16.mxu0 %v16222_v43  ;;  %v6660_v63 = vld [vmem:[%s20342_s21 + $0xf78] sm:$0xff]  ;;  %v10480_v43 = vadd.f32 1.0, %v19027_v47  ;;  %v10527_v27 = vmul.f32 %v10479_v22, %v10143_v7 }
 0xfad   : > { %v19029_v13 = vpop.eup %19028  ;;  %v16446_v14 = vcombine.high %v6652_v12, %v6660_v63  ;;  %v6380_v45 = vld [vmem:[%s20342_s21 + $0x6b8] sm:$0xff]  ;;  %v16445_v30 = vcombine.low %v6652_v12, %v6660_v63  ;;  %v10284_v12 = vmul.f32 %v10236_v35, %v22000_v28  ;;  %v10348_v35 = vadd.f32 %v10300_v49, %v22342_v8 }
 0xfae   : > { %v10495_v40 = vadd.f32 1.0, %v19029_v13  ;;  %10050 = vmatpush1.bf16.msra.mxu1 %v15965_v41  ;;  %v6388_v31 = vld [vmem:[%s20342_s21 + $0x6f8] sm:$0xff]  ;;  %v10528_v22 = vmul.f32 %v10480_v43, %v10144_v21 }
 0xfaf   : > { %10101 = vmatpush1.bf16.msra.mxu0 %v16221_v55  ;;  %10051 = vmatprep.subr.bf16.mxu1 %v16206_v16  ;;  %v19031_v17 = vpop.eup %19030  ;;  %v6636_v23 = vld [vmem:[%s20342_s21 + $0xeb8] sm:$0xff]  ;;  %v10160_v55 = vmul.f32 0.5, %v22293_v36  ;;  %v16173_v63 = vcombine.low %v6380_v45, %v6388_v31 }
 0xfb0   : > { %10102 = vmatprep.subr.bf16.mxu0 %v16462_v50  ;;  %v10543_v34 = vmul.f32 %v10495_v40, %v10159_v56  ;;  %v6644_v41 = vld [vmem:[%s20342_s21 + $0xef8] sm:$0xff]  ;;  %v10496_v42 = vadd.f32 1.0, %v19031_v17  ;;  %v16174_v50 = vcombine.high %v6380_v45, %v6388_v31 }
 0xfb1   : > { %v16430_v47 = vcombine.high %v6636_v23, %v6644_v41  ;;  %v6364_v32 = vld [vmem:[%s20342_s21 + $0x638] sm:$0xff]  ;;  %v16429_v56 = vcombine.low %v6636_v23, %v6644_v41 }
 0xfb2   : > { %v22367_v16 = vpack.c.bf16 %v10543_v34, %v10527_v27  ;;  %10052 = vmatpush2.bf16.msra.mxu1 %v16205_v62  ;;  %v10544_v44 = vmul.f32 %v10496_v42, %v10160_v55  ;;  %v6372_v5 = vld [vmem:[%s20342_s21 + $0x678] sm:$0xff]  ;;  %v10330_v62 = vadd.f32 %v10282_v24, %v21892_v29  ;;  %v10332_v27 = vadd.f32 %v10284_v12, %v22000_v28 }
 0xfb3   : > { %10103 = vmatpush2.bf16.msra.mxu0 %v16461_v37  ;;  %10053 = vmatprep.subr.bf16.mxu1 %v16190_v33  ;;  %v6620_v36 = vld [vmem:[%s20342_s21 + $0xe38] sm:$0xff]  ;;  %v16158_v40 = vcombine.high %v6364_v32, %v6372_v5  ;;  %v16157_v45 = vcombine.low %v6364_v32, %v6372_v5  ;;  %v10396_v42 = vmul.f32 0.7978846, %v10348_v35 }
 0xfb4   : > { %10104 = vmatprep.subr.bf16.mxu0 %v16446_v14  ;;  %v6628_v13 = vld [vmem:[%s20342_s21 + $0xe78] sm:$0xff]  ;;  %v22375_v7 = vpack.c.bf16 %v10544_v44, %v10528_v22  ;;  %v10346_v14 = vadd.f32 %v10298_v48, %v22330_v4  ;;  %v10378_v52 = vmul.f32 0.7978846, %v10330_v62 }
 0xfb5   : > { %v16414_v37 = vcombine.high %v6620_v36, %v6628_v13  ;;  %v6348_v33 = vld [vmem:[%s20342_s21 + $0x5b8] sm:$0xff]  ;;  %v16413_v31 = vcombine.low %v6620_v36, %v6628_v13 }
 0xfb6   : > { %10054 = vmatpush2.bf16.msra.mxu1 %v16189_v46  ;;  %v6356_v43 = vld [vmem:[%s20342_s21 + $0x5f8] sm:$0xff]  ;;  %v10394_v41 = vmul.f32 0.7978846, %v10346_v14  ;;  %19032 = vtanh.f32 %v10378_v52 }
 0xfb7   : > { %10105 = vmatpush2.bf16.msra.mxu0 %v16445_v30  ;;  %10055 = vmatprep.subr.bf16.mxu1 %v16174_v50  ;;  %v6604_v17 = vld [vmem:[%s20342_s21 + $0xdb8] sm:$0xff]  ;;  %v16142_v34 = vcombine.high %v6348_v33, %v6356_v43  ;;  %v16141_v30 = vcombine.low %v6348_v33, %v6356_v43 }
 0xfb8   : > { %10106 = vmatprep.subr.bf16.mxu0 %v16430_v47  ;;  %v6612_v24 = vld [vmem:[%s20342_s21 + $0xdf8] sm:$0xff]  ;;  %v10380_v47 = vmul.f32 0.7978846, %v10332_v27  ;;  %19034 = vtanh.f32 %v10394_v41 }
 0xfb9   : > { %v16398_v23 = vcombine.high %v6604_v17, %v6612_v24  ;;  %v6332_v48 = vld [vmem:[%s20342_s21 + $0x538] sm:$0xff]  ;;  %v16397_v50 = vcombine.low %v6604_v17, %v6612_v24  ;;  %19036 = vtanh.f32 %v10396_v42 }
 0xfba   : > { %10056 = vmatpush2.bf16.msra.mxu1 %v16173_v63  ;;  %v6340_v46 = vld [vmem:[%s20342_s21 + $0x578] sm:$0xff]  ;;  %19038 = vtanh.f32 %v10380_v47  ;;  %v18171_v47 = vld [vmem:[%s20351_s15 + $0x2e0] ss:$16 sps:$4 sm:$0xff]  }
 0xfbb   : > { %10107 = vmatpush2.bf16.msra.mxu0 %v16429_v56  ;;  %10057 = vmatprep.subr.bf16.mxu1 %v16158_v40  ;;  %v6588_v21 = vld [vmem:[%s20342_s21 + $0xd38] sm:$0xff]  ;;  %v16126_v32 = vcombine.high %v6332_v48, %v6340_v46  ;;  %v16125_v13 = vcombine.low %v6332_v48, %v6340_v46 }
 0xfbc   : > { %10108 = vmatprep.subr.bf16.mxu0 %v16414_v37  ;;  %v6596_v55 = vld [vmem:[%s20342_s21 + $0xd78] sm:$0xff] }
 0xfbd   : > { %v16382_v22 = vcombine.high %v6588_v21, %v6596_v55  ;;  %v6316_v44 = vld [vmem:[%s20342_s21 + $0x4b8] sm:$0xff]  ;;  %v16381_v62 = vcombine.low %v6588_v21, %v6596_v55 }
 0xfbe   : > { %10058 = vmatpush2.bf16.msra.mxu1 %v16157_v45  ;;  %v6324_v49 = vld [vmem:[%s20342_s21 + $0x4f8] sm:$0xff] }
 0xfbf   : > { %10109 = vmatpush2.bf16.msra.mxu0 %v16413_v31  ;;  %10059 = vmatprep.subr.bf16.mxu1 %v16142_v34  ;;  %v6572_v5 = vld [vmem:[%s20342_s21 + $0xcb8] sm:$0xff]  ;;  %v16110_v12 = vcombine.high %v6316_v44, %v6324_v49  ;;  %v16109_v14 = vcombine.low %v6316_v44, %v6324_v49  ;;  %v18170_v34 = vld [vmem:[%s20351_s15 + $0xe4] ss:$16 sps:$4 sm:$0xff]  }
 0xfc0   : > { %10110 = vmatprep.subr.bf16.mxu0 %v16398_v23  ;;  %v6580_v36 = vld [vmem:[%s20342_s21 + $0xcf8] sm:$0xff]  ;;  %v18173_v23 = vld [vmem:[%s20351_s15 + $0x2e4] ss:$16 sps:$4 sm:$0xff]  }
 0xfc1   : > { %v16366_v63 = vcombine.high %v6572_v5, %v6580_v36  ;;  %v6300_v56 = vld [vmem:[%s20342_s21 + $0x438] sm:$0xff]  ;;  %v16365_v43 = vcombine.low %v6572_v5, %v6580_v36  ;;  %v18176_v49 = vld [vmem:[%s20351_s15 + $0xc4] ss:$16 sps:$4 sm:$0xff]  }
 0xfc2   : > { %10060 = vmatpush2.bf16.msra.mxu1 %v16141_v30  ;;  %v6308_v40 = vld [vmem:[%s20342_s21 + $0x478] sm:$0xff]  ;;  %v18179_v5 = vld [vmem:[%s20351_s15 + $0x2c4] ss:$16 sps:$4 sm:$0xff]  }
 0xfc3   : > { %10111 = vmatpush2.bf16.msra.mxu0 %v16397_v50  ;;  %10061 = vmatprep.subr.bf16.mxu1 %v16126_v32  ;;  %v6556_v37 = vld [vmem:[%s20342_s21 + $0xc38] sm:$0xff]  ;;  %v16094_v17 = vcombine.high %v6300_v56, %v6308_v40  ;;  %v16093_v45 = vcombine.low %v6300_v56, %v6308_v40  ;;  %v19033_v52 = vpop.eup %19032  ;;  %v18168_v50 = vld [vmem:[%s20351_s15 + $0xe0] ss:$16 sps:$4 sm:$0xff]  }
 0xfc4   : > { %10112 = vmatprep.subr.bf16.mxu0 %v16382_v22  ;;  %v6564_v33 = vld [vmem:[%s20342_s21 + $0xc78] sm:$0xff]  ;;  %v10474_v36 = vadd.f32 1.0, %v19033_v52 }
 0xfc5   : > { %v16350_v24 = vcombine.high %v6556_v37, %v6564_v33  ;;  %v22398_v35 = vld [vmem:[%s20345_s28 + $0x8] sm:$0xff]  ;;  %v16349_v31 = vcombine.low %v6556_v37, %v6564_v33  ;;  %v19035_v48 = vpop.eup %19034  ;;  %v10138_v37 = vmul.f32 0.5, %v21892_v29  ;;  %v18182_v29 = vld [vmem:[%s20351_s15 + $0xa4] ss:$16 sps:$4 sm:$0xff]  }
 0xfc6   : > { %10062 = vmatpush2.bf16.msra.mxu1 %v16125_v13  ;;  %v22402_v27 = vrot.slane %v22398_v35, %v20597_v1  ;;  %v19037_v41 = vpop.eup %19036  ;;  %v22408_v46 = vrot.slane %v22398_v35, %v20591_v60  ;;  %v10490_v32 = vadd.f32 1.0, %v19035_v48 }
 0xfc7   : > { %10113 = vmatpush2.bf16.msra.mxu0 %v16381_v62  ;;  %10063 = vmatprep.subr.bf16.mxu1 %v16110_v12  ;;  %v19039_v42 = vpop.eup %19038  ;;  %v10492_v13 = vadd.f32 1.0, %v19037_v41 }
 0xfc8   : > { %10114 = vmatprep.subr.bf16.mxu0 %v16366_v63  ;;  %v10154_v63 = vmul.f32 0.5, %v22330_v4  ;;  %v10476_v33 = vadd.f32 1.0, %v19039_v42 }
 0xfca   : > { %10064 = vmatpush2.bf16.msra.mxu1 %v16109_v14 }
 0xfcb   : > { %10115 = vmatpush2.bf16.msra.mxu0 %v16365_v43  ;;  %10065 = vmatprep.subr.bf16.mxu1 %v16094_v17  ;;  %v18177_v43 = vld [vmem:[%s20351_s15 + $0x2c0] ss:$16 sps:$4 sm:$0xff]  }
 0xfcc   : > { %10116 = vmatprep.subr.bf16.mxu0 %v16350_v24 }
 0xfce   : > { %10066 = vmatpush2.bf16.msra.mxu1 %v16093_v45  ;;  %v9763_v21 = vpop.f32.mrf.mxu1  ;;  %v18185_v45 = vld [vmem:[%s20351_s15 + $0x2a4] ss:$16 sps:$4 sm:$0xff]  }
 0xfcf   : > { %10117 = vmatpush2.bf16.msra.mxu0 %v16349_v31  ;;  %v9814_v55 = vpop.f32.mrf.mxu0  ;;  %v9764_v30 = vadd.f32 %v9763_v21, %v22402_v27  ;;  %13695 = vmatprep.subr.bf16.mxu1 %v18170_v34  ;;  %v10140_v31 = vmul.f32 0.5, %v22000_v28 }
 0xfd0   : > { %13746 = vmatprep.subr.bf16.mxu0 %v18173_v23  ;;  %v9765_v22 = vpop.f32.mrf.mxu1 }
 0xfd1   : > { %v9816_v44 = vpop.f32.mrf.mxu0  ;;  %v22415_v62 = vadd.f32 %v9814_v55, %v9764_v30  ;;  %10068 = vmatmul.mubr.bf16.vlgmr.msra.gmra.mxu1 %v21629_v6  ;;  %v9766_v12 = vadd.f32 %v9765_v22, %v22408_v46  ;;  %v10156_v6 = vmul.f32 0.5, %v22342_v8  ;;  %v10522_v8 = vmul.f32 %v10474_v36, %v10138_v37 }
 0xfd2   : > { %10119 = vmatmul.mubr.bf16.vlgmr.msra.gmra.mxu0 %v21631_v9  ;;  %10077 = vmatprep.mubr.bf16.mxu1 %v21650_v3  ;;  %v9767_v56 = vpop.f32.mrf.mxu1  ;;  %v18174_v3 = vld [vmem:[%s20351_s15 + $0xc0] ss:$16 sps:$4 sm:$0xff]   ;;  %v10524_v42 = vmul.f32 %v10476_v33, %v10140_v31 }
 0xfd3   : > { %10128 = vmatprep.mubr.bf16.mxu0 %v21652_v11  ;;  %v9818_v40 = vpop.f32.mrf.mxu0  ;;  %v10193_v9 = vmul.f32 0.044715, %v22415_v62  ;;  %13696 = vmatpush1.bf16.msra.mxu1 %v18168_v50  ;;  %v22426_v14 = vadd.f32 %v9816_v44, %v9766_v12  ;;  %v9768_v4 = vadd.f32 %v9767_v56, %v22402_v27  ;;  %v10538_v11 = vmul.f32 %v10490_v32, %v10154_v63  ;;  %v18183_v32 = vld [vmem:[%s20351_s15 + $0x2a0] ss:$16 sps:$4 sm:$0xff]   ;;  %v18188_v12 = vld [vmem:[%s20351_s15 + $0x84] ss:$16 sps:$4 sm:$0xff]  }
 0xfd4   : > { %13747 = vmatpush1.bf16.msra.mxu0 %v18171_v47  ;;  %13697 = vmatprep.subr.bf16.mxu1 %v18176_v49  ;;  %v9769_v17 = vpop.f32.mrf.mxu1  ;;  %v10540_v52 = vmul.f32 %v10492_v13, %v10156_v6  ;;  %v18180_v47 = vld [vmem:[%s20351_s15 + $0xa0] ss:$16 sps:$4 sm:$0xff]   ;;  %v18191_v63 = vld [vmem:[%s20351_s15 + $0x284] ss:$16 sps:$4 sm:$0xff]  }
 0xfd5   : > { %13748 = vmatprep.subr.bf16.mxu0 %v18179_v5  ;;  %v9820_v24 = vpop.f32.mrf.mxu0  ;;  %v10241_v34 = vmul.f32 %v10193_v9, %v22415_v62  ;;  %v10194_v23 = vmul.f32 0.044715, %v22426_v14  ;;  %v22436_v48 = vadd.f32 %v9818_v40, %v9768_v4  ;;  %v9770_v41 = vadd.f32 %v9769_v17, %v22408_v46 }
 0xfd6   : > { %v9773_v21 = vpop.f32.mrf.mxu1  ;;  %v22444_v22 = vpack.c.bf16 %v10538_v11, %v10522_v8  ;;  %v22449_v5 = vpack.c.bf16 %v10540_v52, %v10524_v42  ;;  %v18197_v8 = vld [vmem:[%s20351_s15 + $0x264] ss:$16 sps:$4 sm:$0xff]  }
 0xfd7   : > { %v9824_v55 = vpop.f32.mrf.mxu0  ;;  %v10289_v30 = vmul.f32 %v10241_v34, %v22415_v62  ;;  %v10242_v50 = vmul.f32 %v10194_v23, %v22426_v14  ;;  %v10209_v28 = vmul.f32 0.044715, %v22436_v48  ;;  %13698 = vmatpush1.bf16.msra.mxu1 %v18174_v3  ;;  %v22446_v44 = vadd.f32 %v9820_v24, %v9770_v41  ;;  %v18192_v41 = vld [vmem:[%s20351_s15 + $0x60] ss:$16 sps:$4 sm:$0xff]   ;;  %v18203_v42 = vld [vmem:[%s20351_s15 + $0x244] ss:$16 sps:$4 sm:$0xff]  }
 0xfd8   : > { %13749 = vmatpush1.bf16.msra.mxu0 %v18177_v43  ;;  %v9774_v49 = vadd.f32 %v9773_v21, %v22402_v27  ;;  %13699 = vmatprep.subr.bf16.mxu1 %v18182_v29  ;;  %v9775_v36 = vpop.f32.mrf.mxu1  ;;  %v18195_v21 = vld [vmem:[%s20351_s15 + $0x260] ss:$16 sps:$4 sm:$0xff]  }
 0xfd9   : > { %13750 = vmatprep.subr.bf16.mxu0 %v18185_v45  ;;  %v9826_v13 = vpop.f32.mrf.mxu0  ;;  %v10337_v56 = vadd.f32 %v10289_v30, %v22415_v62  ;;  %v10290_v40 = vmul.f32 %v10242_v50, %v22426_v14  ;;  %v10257_v37 = vmul.f32 %v10209_v28, %v22436_v48  ;;  %10078 = vmatmul.mubr.bf16.gmra.mxu1 %v21660_v51  ;;  %v10210_v27 = vmul.f32 0.044715, %v22446_v44  ;;  %v18186_v51 = vld [vmem:[%s20351_s15 + $0x80] ss:$16 sps:$4 sm:$0xff]   ;;  %v18194_v45 = vld [vmem:[%s20351_s15 + $0x64] ss:$16 sps:$4 sm:$0xff]  }
 0xfda   : > { %10129 = vmatmul.mubr.bf16.gmra.mxu0 %v21662_v18  ;;  %v22459_v6 = vadd.f32 %v9824_v55, %v9774_v49  ;;  %13727 = vmatprep.mubr.bf16.mxu1 %v22444_v22  ;;  %v9776_v33 = vadd.f32 %v9775_v36, %v22408_v46  ;;  %v9777_v9 = vpop.f32.mrf.mxu1  ;;  %v18189_v18 = vld [vmem:[%s20351_s15 + $0x280] ss:$16 sps:$4 sm:$0xff]   ;;  %v18200_v55 = vld [vmem:[%s20351_s15 + $0x44] ss:$16 sps:$4 sm:$0xff]  }
 0xfdb   : > { %13778 = vmatprep.mubr.bf16.mxu0 %v22449_v5  ;;  %v9828_v4 = vpop.f32.mrf.mxu0  ;;  %v10385_v3 = vmul.f32 0.7978846, %v10337_v56  ;;  %v10305_v43 = vmul.f32 %v10257_v37, %v22436_v48  ;;  %13700 = vmatpush1.bf16.msra.mxu1 %v18180_v47  ;;  %v10338_v11 = vadd.f32 %v10290_v40, %v22426_v14  ;;  %v10258_v17 = vmul.f32 %v10210_v27, %v22446_v44  ;;  %v18198_v28 = vld [vmem:[%s20351_s15 + $0x40] ss:$16 sps:$4 sm:$0xff]   ;;  %v18206_v49 = vld [vmem:[%s20351_s15 + $0x24] ss:$16 sps:$4 sm:$0xff]  }
 0xfdc   : > { %13751 = vmatpush1.bf16.msra.mxu0 %v18183_v32  ;;  %v22469_v24 = vadd.f32 %v9826_v13, %v9776_v33  ;;  %13701 = vmatprep.subr.bf16.mxu1 %v18188_v12  ;;  %v9778_v46 = vpop.f32.mrf.mxu1  ;;  %v18201_v47 = vld [vmem:[%s20351_s15 + $0x240] ss:$16 sps:$4 sm:$0xff]   ;;  %v10218_v32 = vmul.f32 0.044715, %v21924_v15  ;;  %v18209_v36 = vld [vmem:[%s20351_s15 + $0x224] ss:$16 sps:$4 sm:$0xff]  }
 0xfdd   : > { %13752 = vmatprep.subr.bf16.mxu0 %v18191_v63  ;;  %v9829_v29 = vpop.f32.mrf.mxu0  ;;  %19040 = vtanh.f32 %v10385_v3  ;;  %v10353_v31 = vadd.f32 %v10305_v43, %v22436_v48  ;;  %v10386_v52 = vmul.f32 0.7978846, %v10338_v11  ;;  %v10306_v34 = vmul.f32 %v10258_v17, %v22446_v44  ;;  %v18204_v12 = vld [vmem:[%s20351_s15 + $0x20] ss:$16 sps:$4 sm:$0xff]   ;;  %v18212_v40 = vld [vmem:[%s20351_s15 + $0x4] ss:$16 sps:$4 sm:$0xff]  }
 0xfde   : > { %v10220_v13 = vmul.f32 0.044715, %v22029_v58  ;;  %v18207_v63 = vld [vmem:[%s20351_s15 + $0x220] ss:$16 sps:$4 sm:$0xff]   ;;  %v10266_v56 = vmul.f32 %v10218_v32, %v21924_v15  ;;  %v18215_v37 = vld [vmem:[%s20351_s15 + $0x204] ss:$16 sps:$4 sm:$0xff]  }
 0xfdf   : > { %v10401_v23 = vmul.f32 0.7978846, %v10353_v31  ;;  %13702 = vmatpush1.bf16.msra.mxu1 %v18186_v51  ;;  %v10354_v30 = vadd.f32 %v10306_v34, %v22446_v44  ;;  %19042 = vtanh.f32 %v10386_v52  ;;  %v10217_v9 = vmul.f32 0.044715, %v21919_v59  ;;  %v18210_v4 = vld [vmem:[%s20351_s15] ss:$16 sps:$4 sm:$0xff]  }
 0xfe0   : > { %13753 = vmatpush1.bf16.msra.mxu0 %v18189_v18  ;;  %13703 = vmatprep.subr.bf16.mxu1 %v18194_v45  ;;  %v10268_v27 = vmul.f32 %v10220_v13, %v22029_v58  ;;  %v18213_v3 = vld [vmem:[%s20351_s15 + $0x200] ss:$16 sps:$4 sm:$0xff]   ;;  %v10219_v43 = vmul.f32 0.044715, %v22023_v38  ;;  %v18218_v51 = vld [vmem:[%s20351_s15 + $0x1e4] ss:$16 sps:$4 sm:$0xff]   ;;  %v10314_v11 = vmul.f32 %v10266_v56, %v21924_v15 }
 0xfe1   : > { %13754 = vmatprep.subr.bf16.mxu0 %v18197_v8  ;;  %19044 = vtanh.f32 %v10401_v23  ;;  %v10402_v50 = vmul.f32 0.7978846, %v10354_v30  ;;  %v18221_v18 = vld [vmem:[%s20351_s15 + $0x3e4] ss:$16 sps:$4 sm:$0xff]   ;;  %v18216_v8 = vld [vmem:[%s20351_s15 + $0x1e0] ss:$16 sps:$4 sm:$0xff]   ;;  %v10265_v31 = vmul.f32 %v10217_v9, %v21919_v59 }
 0xfe2   : > { %v10316_v29 = vmul.f32 %v10268_v27, %v22029_v58  ;;  %v10145_v52 = vmul.f32 0.5, %v22415_v62  ;;  %v10161_v34 = vmul.f32 0.5, %v22436_v48  ;;  %v10362_v30 = vadd.f32 %v10314_v11, %v21924_v15  ;;  %v18225_v56 = vld [vmem:[%s20351_s15 + $0x3c0] ss:$16 sps:$4 sm:$0xff]   ;;  %v18236_v11 = vld [vmem:[%s20351_s15 + $0x184] ss:$16 sps:$4 sm:$0xff]  }
 0xfe3   : > { %13704 = vmatpush1.bf16.msra.mxu1 %v18192_v41  ;;  %19046 = vtanh.f32 %v10402_v50  ;;  %v18219_v41 = vld [vmem:[%s20351_s15 + $0x3e0] ss:$16 sps:$4 sm:$0xff]   ;;  %v10146_v32 = vmul.f32 0.5, %v22426_v14  ;;  %v10313_v13 = vmul.f32 %v10265_v31, %v21919_v59  ;;  %v18233_v14 = vld [vmem:[%s20351_s15 + $0x3a4] ss:$16 sps:$4 sm:$0xff]  }
 0xfe4   : > { %13755 = vmatpush1.bf16.msra.mxu0 %v18195_v21  ;;  %13705 = vmatprep.subr.bf16.mxu1 %v18200_v55  ;;  %v10267_v21 = vmul.f32 %v10219_v43, %v22023_v38  ;;  %v18224_v55 = vld [vmem:[%s20351_s15 + $0x1c4] ss:$16 sps:$4 sm:$0xff]   ;;  %v18228_v43 = vld [vmem:[%s20351_s15 + $0x1a0] ss:$16 sps:$4 sm:$0xff]  }
 0xfe5   : > { %13756 = vmatprep.subr.bf16.mxu0 %v18203_v42  ;;  %v18227_v42 = vld [vmem:[%s20351_s15 + $0x3c4] ss:$16 sps:$4 sm:$0xff]  }
 0xfe6   : > { %v18242_v31 = vld [vmem:[%s20351_s15 + $0x164] ss:$16 sps:$4 sm:$0xff]  }
 0xfe7   : > { %13706 = vmatpush1.bf16.msra.mxu1 %v18198_v28 }
 0xfe8   : > { %13757 = vmatpush1.bf16.msra.mxu0 %v18201_v47  ;;  %13707 = vmatprep.subr.bf16.mxu1 %v18206_v49  ;;  %v10364_v47 = vadd.f32 %v10316_v29, %v22029_v58  ;;  %v10162_v49 = vmul.f32 0.5, %v22446_v44  ;;  %v10410_v44 = vmul.f32 0.7978846, %v10362_v30  ;;  %v18234_v29 = vld [vmem:[%s20351_s15 + $0x180] ss:$16 sps:$4 sm:$0xff]  }
 0xfe9   : > { %13758 = vmatprep.subr.bf16.mxu0 %v18209_v36  ;;  %v18254_v30 = vld [vmem:[%s20351_s15 + $0x124] ss:$16 sps:$4 sm:$0xff]  }
 0xfea   : > { %v19041_v33 = vpop.eup %19040  ;;  %v10412_v9 = vmul.f32 0.7978846, %v10364_v47  ;;  %19048 = vtanh.f32 %v10410_v44  ;;  %v18255_v47 = vld [vmem:[%s20351_s15 + $0x320] ss:$16 sps:$4 sm:$0xff]   ;;  %v6724_v44 = vrot.slane %v22398_v35, %v20600_v2 }
 0xfeb   : > { %13708 = vmatpush1.bf16.msra.mxu1 %v18204_v12  ;;  %v10481_v46 = vadd.f32 1.0, %v19041_v33 }
 0xfec   : > { %13759 = vmatpush1.bf16.msra.mxu0 %v18207_v63  ;;  %13709 = vmatprep.subr.bf16.mxu1 %v18212_v40  ;;  %v19043_v17 = vpop.eup %19042  ;;  %v18222_v63 = vld [vmem:[%s20351_s15 + $0x1c0] ss:$16 sps:$4 sm:$0xff]   ;;  %v10315_v40 = vmul.f32 %v10267_v21, %v22023_v38  ;;  %19050 = vtanh.f32 %v10412_v9  ;;  %v18251_v21 = vld [vmem:[%s20351_s15 + $0x344] ss:$16 sps:$4 sm:$0xff]  }
 0xfed   : > { %13760 = vmatprep.subr.bf16.mxu0 %v18215_v37  ;;  %v10482_v50 = vadd.f32 1.0, %v19043_v17  ;;  %v10529_v62 = vmul.f32 %v10481_v46, %v10145_v52  ;;  %v18230_v37 = vld [vmem:[%s20351_s15 + $0x1a4] ss:$16 sps:$4 sm:$0xff]  }
 0xfee   : > { %v19045_v45 = vpop.eup %19044  ;;  %v18239_v17 = vld [vmem:[%s20351_s15 + $0x384] ss:$16 sps:$4 sm:$0xff]  }
 0xfef   : > { %v10497_v23 = vadd.f32 1.0, %v19045_v45  ;;  %13710 = vmatpush1.bf16.msra.mxu1 %v18210_v4  ;;  %v10530_v27 = vmul.f32 %v10482_v50, %v10146_v32  ;;  %v18237_v45 = vld [vmem:[%s20351_s15 + $0x380] ss:$16 sps:$4 sm:$0xff]   ;;  %v18245_v52 = vld [vmem:[%s20351_s15 + $0x364] ss:$16 sps:$4 sm:$0xff]  }
 0xff0   : > { %13761 = vmatpush1.bf16.msra.mxu0 %v18213_v3  ;;  %13711 = vmatprep.subr.bf16.mxu1 %v18218_v51  ;;  %v19047_v28 = vpop.eup %19046  ;;  %v10361_v3 = vadd.f32 %v10313_v13, %v21919_v59  ;;  %v18231_v51 = vld [vmem:[%s20351_s15 + $0x3a0] ss:$16 sps:$4 sm:$0xff]   ;;  %v18257_v50 = vld [vmem:[%s20351_s15 + $0x324] ss:$16 sps:$4 sm:$0xff]  }
 0xff1   : > { %13762 = vmatprep.subr.bf16.mxu0 %v18221_v18  ;;  %v10545_v48 = vmul.f32 %v10497_v23, %v10161_v34  ;;  %v10498_v36 = vadd.f32 1.0, %v19047_v28  ;;  %v10363_v18 = vadd.f32 %v10315_v40, %v22023_v38  ;;  %v18240_v34 = vld [vmem:[%s20351_s15 + $0x160] ss:$16 sps:$4 sm:$0xff]   ;;  %v18260_v32 = vld [vmem:[%s20351_s15 + $0x104] ss:$16 sps:$4 sm:$0xff]   ;;  %v10170_v40 = vmul.f32 0.5, %v21924_v15 }
 0xff2   : > { %v10409_v46 = vmul.f32 0.7978846, %v10361_v3  ;;  %v18243_v23 = vld [vmem:[%s20351_s15 + $0x360] ss:$16 sps:$4 sm:$0xff]  }
 0xff3   : > { %v22513_v12 = vpack.c.bf16 %v10545_v48, %v10529_v62  ;;  %13712 = vmatpush2.bf16.msra.mxu1 %v18216_v8  ;;  %v10546_v33 = vmul.f32 %v10498_v36, %v10162_v49  ;;  %v10411_v8 = vmul.f32 0.7978846, %v10363_v18  ;;  %v18252_v48 = vld [vmem:[%s20351_s15 + $0x120] ss:$16 sps:$4 sm:$0xff]   ;;  %v18263_v49 = vld [vmem:[%s20351_s15 + $0x304] ss:$16 sps:$4 sm:$0xff]  }
 0xff4   : > { %13763 = vmatpush2.bf16.msra.mxu0 %v18219_v41  ;;  %13713 = vmatprep.subr.bf16.mxu1 %v18224_v55  ;;  %19052 = vtanh.f32 %v10409_v46  ;;  %v18248_v41 = vld [vmem:[%s20351_s15 + $0x144] ss:$16 sps:$4 sm:$0xff]   ;;  %v18246_v55 = vld [vmem:[%s20351_s15 + $0x140] ss:$16 sps:$4 sm:$0xff]  }
 0xff5   : > { %13764 = vmatprep.subr.bf16.mxu0 %v18227_v42  ;;  %v22520_v4 = vpack.c.bf16 %v10546_v33, %v10530_v27  ;;  %19054 = vtanh.f32 %v10411_v8  ;;  %v18249_v42 = vld [vmem:[%s20351_s15 + $0x340] ss:$16 sps:$4 sm:$0xff]   ;;  %v18266_v27 = vld [vmem:[%s20351_s15 + $0x4e4] ss:$16 sps:$4 sm:$0xff]  }
 0xff6   : > { %v18269_v33 = vld [vmem:[%s20351_s15 + $0x6e4] ss:$16 sps:$4 sm:$0xff]  }
 0xff7   : > { %13714 = vmatpush2.bf16.msra.mxu1 %v18222_v63  ;;  %v19049_v28 = vpop.eup %19048  ;;  %v18258_v63 = vld [vmem:[%s20351_s15 + $0x100] ss:$16 sps:$4 sm:$0xff]  }
 0xff8   : > { %13765 = vmatpush2.bf16.msra.mxu0 %v18225_v56  ;;  %13715 = vmatprep.subr.bf16.mxu1 %v18230_v37  ;;  %v10506_v36 = vadd.f32 1.0, %v19049_v28  ;;  %v18261_v56 = vld [vmem:[%s20351_s15 + $0x300] ss:$16 sps:$4 sm:$0xff]   ;;  %v10172_v37 = vmul.f32 0.5, %v22029_v58 }
 0xff9   : > { %13766 = vmatprep.subr.bf16.mxu0 %v18233_v14  ;;  %v19051_v62 = vpop.eup %19050  ;;  %v18264_v58 = vld [vmem:[%s20351_s15 + $0x4e0] ss:$16 sps:$4 sm:$0xff]  }
 0xffa   : > { %v10508_v13 = vadd.f32 1.0, %v19051_v62  ;;  %v10554_v3 = vmul.f32 %v10506_v36, %v10170_v40  ;;  %v18270_v28 = vld [vmem:[%s20351_s15 + $0x4c0] ss:$16 sps:$4 sm:$0xff]  }
 0xffb   : > { %13716 = vmatpush2.bf16.msra.mxu1 %v18228_v43  ;;  %v18273_v62 = vld [vmem:[%s20351_s15 + $0x6c0] ss:$16 sps:$4 sm:$0xff]  }
 0xffc   : > { %13767 = vmatpush2.bf16.msra.mxu0 %v18231_v51  ;;  %13717 = vmatprep.subr.bf16.mxu1 %v18236_v11  ;;  %v10556_v43 = vmul.f32 %v10508_v13, %v10172_v37  ;;  %v18267_v11 = vld [vmem:[%s20351_s15 + $0x6e0] ss:$16 sps:$4 sm:$0xff]  }
 0xffd   : > { %13768 = vmatprep.subr.bf16.mxu0 %v18239_v17 }
 0xfff   : > { %13718 = vmatpush2.bf16.msra.mxu1 %v18234_v29  ;;  %v22554_v29 = vpack.c.bf16 %v10554_v3, %v10554_v3  ;;  %v6728_v3 = vrot.slane %v22398_v35, %v20594_v0 }
0x1000   : > { %13769 = vmatpush2.bf16.msra.mxu0 %v18237_v45  ;;  %13719 = vmatprep.subr.bf16.mxu1 %v18242_v31  ;;  %v22556_v45 = vpack.c.bf16 %v10556_v43, %v10556_v43 }
0x1001   : > { %13770 = vmatprep.subr.bf16.mxu0 %v18245_v52  ;;  %v19053_v14 = vpop.eup %19052  ;;  %v18272_v52 = vld [vmem:[%s20351_s15 + $0x4c4] ss:$16 sps:$4 sm:$0xff]  }
0x1002   : > { %v19055_v9 = vpop.eup %19054  ;;  %v10505_v17 = vadd.f32 1.0, %v19053_v14 }
0x1003   : > { %13720 = vmatpush2.bf16.msra.mxu1 %v18240_v34  ;;  %v10507_v46 = vadd.f32 1.0, %v19055_v9  ;;  %v18275_v34 = vld [vmem:[%s20351_s15 + $0x6c4] ss:$16 sps:$4 sm:$0xff]   ;;  %v18279_v9 = vld [vmem:[%s20351_s15 + $0x6a0] ss:$16 sps:$4 sm:$0xff]  }
0x1004   : > { %13771 = vmatpush2.bf16.msra.mxu0 %v18243_v23  ;;  %13721 = vmatprep.subr.bf16.mxu1 %v18248_v41  ;;  %v10169_v41 = vmul.f32 0.5, %v21919_v59 }
0x1005   : > { %13772 = vmatprep.subr.bf16.mxu0 %v18251_v21  ;;  %v10171_v21 = vmul.f32 0.5, %v22023_v38 }
0x1007   : > { %13722 = vmatpush2.bf16.msra.mxu1 %v18246_v55 }
0x1008   : > { %13773 = vmatpush2.bf16.msra.mxu0 %v18249_v42  ;;  %13723 = vmatprep.subr.bf16.mxu1 %v18254_v30 }
0x1009   : > { %13774 = vmatprep.subr.bf16.mxu0 %v18257_v50 }
0x100b   : > { %13724 = vmatpush2.bf16.msra.mxu1 %v18252_v48  ;;  %v10553_v48 = vmul.f32 %v10505_v17, %v10169_v41 }
0x100c   : > { %13775 = vmatpush2.bf16.msra.mxu0 %v18255_v47  ;;  %13725 = vmatprep.subr.bf16.mxu1 %v18260_v32  ;;  %v10555_v47 = vmul.f32 %v10507_v46, %v10171_v21  ;;  %v18278_v32 = vld [vmem:[%s20351_s15 + $0x4a4] ss:$16 sps:$4 sm:$0xff]  }
0x100d   : > { %13776 = vmatprep.subr.bf16.mxu0 %v18263_v49  ;;  %v18281_v49 = vld [vmem:[%s20351_s15 + $0x6a4] ss:$16 sps:$4 sm:$0xff]   ;;  %v22586_v14 = vpack.c.bf16 %v10553_v48, %v10553_v48 }
0x100e   : > { %v18293_v48 = vld [vmem:[%s20351_s15 + $0x664] ss:$16 sps:$4 sm:$0xff]  }
0x100f   : > { %13726 = vmatpush2.bf16.msra.mxu1 %v18258_v63  ;;  %v9865_v15 = vpop.f32.mrf.mxu1 }
0x1010   : > { %13777 = vmatpush2.bf16.msra.mxu0 %v18261_v56  ;;  %v9916_v51 = vpop.f32.mrf.mxu0  ;;  %v9866_v18 = vadd.f32 %v9865_v15, %v6724_v44  ;;  %13797 = vmatprep.subr.bf16.mxu1 %v18266_v27  ;;  %v22588_v27 = vpack.c.bf16 %v10555_v47, %v10555_v47 }
0x1011   : > { %13848 = vmatprep.subr.bf16.mxu0 %v18269_v33  ;;  %v22558_v8 = vpop.f32.mrf.mxu1  ;;  %v18276_v33 = vld [vmem:[%s20351_s15 + $0x4a0] ss:$16 sps:$4 sm:$0xff]  }
0x1012   : > { %v22560_v31 = vpop.f32.mrf.mxu0  ;;  %v22564_v23 = vadd.f32 %v9916_v51, %v9866_v18  ;;  %13728 = vmatmul.mubr.bf16.vlgmr.msra.gmra.mxu1 %v21952_v20  ;;  %v18284_v18 = vld [vmem:[%s20351_s15 + $0x484] ss:$16 sps:$4 sm:$0xff]  }
0x1013   : > { %13779 = vmatmul.mubr.bf16.vlgmr.msra.gmra.mxu0 %v22058_v54  ;;  %13737 = vmatprep.mubr.bf16.mxu1 %v22554_v29  ;;  %v9869_v55 = vpop.f32.mrf.mxu1 }
0x1014   : > { %13788 = vmatprep.mubr.bf16.mxu0 %v22556_v45  ;;  %v9920_v42 = vpop.f32.mrf.mxu0  ;;  %v10195_v30 = vmul.f32 0.044715, %v22564_v23  ;;  %13798 = vmatpush1.bf16.msra.mxu1 %v18264_v58  ;;  %v9870_v50 = vadd.f32 %v9869_v55, %v6724_v44  ;;  %v18287_v58 = vld [vmem:[%s20351_s15 + $0x684] ss:$16 sps:$4 sm:$0xff]   ;;  %v18282_v55 = vld [vmem:[%s20351_s15 + $0x480] ss:$16 sps:$4 sm:$0xff]  }
0x1015   : > { %13849 = vmatpush1.bf16.msra.mxu0 %v18267_v11  ;;  %13799 = vmatprep.subr.bf16.mxu1 %v18272_v52  ;;  %v22575_v59 = vpop.f32.mrf.mxu1 }
0x1016   : > { %13850 = vmatprep.subr.bf16.mxu0 %v18275_v34  ;;  %v22577_v38 = vpop.f32.mrf.mxu0  ;;  %v10243_v36 = vmul.f32 %v10195_v30, %v22564_v23  ;;  %v22582_v13 = vadd.f32 %v9920_v42, %v9870_v50  ;;  %v18285_v42 = vld [vmem:[%s20351_s15 + $0x680] ss:$16 sps:$4 sm:$0xff]  }
0x1017   : > { %v9875_v63 = vpop.f32.mrf.mxu1 }
0x1018   : > { %v9926_v56 = vpop.f32.mrf.mxu0  ;;  %v10291_v40 = vmul.f32 %v10243_v36, %v22564_v23  ;;  %v10211_v37 = vmul.f32 0.044715, %v22582_v13  ;;  %13800 = vmatpush1.bf16.msra.mxu1 %v18270_v28  ;;  %v9876_v43 = vadd.f32 %v9875_v63, %v6724_v44  ;;  %v18291_v36 = vld [vmem:[%s20351_s15 + $0x660] ss:$16 sps:$4 sm:$0xff]   ;;  %v18296_v63 = vld [vmem:[%s20351_s15 + $0x444] ss:$16 sps:$4 sm:$0xff]  }
0x1019   : > { %13851 = vmatpush1.bf16.msra.mxu0 %v18273_v62  ;;  %13801 = vmatprep.subr.bf16.mxu1 %v18278_v32  ;;  %v9877_v15 = vpop.f32.mrf.mxu1  ;;  %v18290_v62 = vld [vmem:[%s20351_s15 + $0x464] ss:$16 sps:$4 sm:$0xff]  }
0x101a   : > { %13852 = vmatprep.subr.bf16.mxu0 %v18281_v49  ;;  %v9928_v51 = vpop.f32.mrf.mxu0  ;;  %v10339_v11 = vadd.f32 %v10291_v40, %v22564_v23  ;;  %v10259_v17 = vmul.f32 %v10211_v37, %v22582_v13  ;;  %13738 = vmatmul.mubr.bf16.gmra.mxu1 %v22586_v14  ;;  %v22600_v46 = vadd.f32 %v9926_v56, %v9876_v43  ;;  %v18288_v49 = vld [vmem:[%s20351_s15 + $0x460] ss:$16 sps:$4 sm:$0xff]   ;;  %v18299_v56 = vld [vmem:[%s20351_s15 + $0x644] ss:$16 sps:$4 sm:$0xff]  }
0x101b   : > { %13789 = vmatmul.mubr.bf16.gmra.mxu0 %v22588_v27  ;;  %13829 = vmatprep.mubr.bf16.mxu1 %v22208_v61  ;;  %v9878_v44 = vadd.f32 %v9877_v15, %v6728_v3  ;;  %v9879_v52 = vpop.f32.mrf.mxu1  ;;  %v18294_v40 = vld [vmem:[%s20351_s15 + $0x440] ss:$16 sps:$4 sm:$0xff]   ;;  %v18305_v43 = vld [vmem:[%s20351_s15 + $0x624] ss:$16 sps:$4 sm:$0xff]   ;;  %v10224_v15 = vmul.f32 0.044715, %v22314_v57 }
0x101c   : > { %13880 = vmatprep.mubr.bf16.mxu0 %v22375_v7  ;;  %v9930_v34 = vpop.f32.mrf.mxu0  ;;  %v10387_v41 = vmul.f32 0.7978846, %v10339_v11  ;;  %v10307_v21 = vmul.f32 %v10259_v17, %v22582_v13  ;;  %13802 = vmatpush1.bf16.msra.mxu1 %v18276_v33  ;;  %v18297_v37 = vld [vmem:[%s20351_s15 + $0x640] ss:$16 sps:$4 sm:$0xff]   ;;  %v10222_v33 = vmul.f32 0.044715, %v22169_v53 }
0x101d   : > { %13853 = vmatpush1.bf16.msra.mxu0 %v18279_v9  ;;  %v22607_v30 = vadd.f32 %v9928_v51, %v9878_v44  ;;  %13803 = vmatprep.subr.bf16.mxu1 %v18284_v18  ;;  %v9880_v50 = vpop.f32.mrf.mxu1  ;;  %v18302_v9 = vld [vmem:[%s20351_s15 + $0x424] ss:$16 sps:$4 sm:$0xff]   ;;  %v9872_v51 = vadd.f32 %v22575_v59, %v6728_v3  ;;  %v9868_v18 = vadd.f32 %v22558_v8, %v6728_v3  ;;  %v18303_v11 = vld [vmem:[%s20351_s15 + $0x620] ss:$16 sps:$4 sm:$0xff]   ;;  %v10221_v3 = vmul.f32 0.044715, %v22161_v26 }
0x101e   : > { %13854 = vmatprep.subr.bf16.mxu0 %v18287_v58  ;;  %v9931_v28 = vpop.f32.mrf.mxu0  ;;  %19056 = vtanh.f32 %v10387_v41  ;;  %v10355_v47 = vadd.f32 %v10307_v21, %v22582_v13  ;;  %v18300_v58 = vld [vmem:[%s20351_s15 + $0x420] ss:$16 sps:$4 sm:$0xff]   ;;  %v10270_v17 = vmul.f32 %v10222_v33, %v22169_v53  ;;  %v18308_v44 = vld [vmem:[%s20351_s15 + $0x404] ss:$16 sps:$4 sm:$0xff]   ;;  %v10272_v34 = vmul.f32 %v10224_v15, %v22314_v57 }
0x101f   : > { %v18311_v52 = vld [vmem:[%s20351_s15 + $0x604] ss:$16 sps:$4 sm:$0xff]   ;;  %v22631_v59 = vadd.f32 %v22577_v38, %v9872_v51  ;;  %v22635_v41 = vadd.f32 %v22560_v31, %v9868_v18  ;;  %v18306_v21 = vld [vmem:[%s20351_s15 + $0x400] ss:$16 sps:$4 sm:$0xff]  }
0x1020   : > { %v10403_v32 = vmul.f32 0.7978846, %v10355_v47  ;;  %13804 = vmatpush1.bf16.msra.mxu1 %v18282_v55  ;;  %v18309_v55 = vld [vmem:[%s20351_s15 + $0x600] ss:$16 sps:$4 sm:$0xff]   ;;  %v18314_v50 = vld [vmem:[%s20351_s15 + $0x5e4] ss:$16 sps:$4 sm:$0xff]   ;;  %v10318_v38 = vmul.f32 %v10270_v17, %v22169_v53  ;;  %v10320_v31 = vmul.f32 %v10272_v34, %v22314_v57 }
0x1021   : > { %13855 = vmatpush1.bf16.msra.mxu0 %v18285_v42  ;;  %13805 = vmatprep.subr.bf16.mxu1 %v18290_v62  ;;  %v10223_v42 = vmul.f32 0.044715, %v22306_v10  ;;  %v18317_v28 = vld [vmem:[%s20351_s15 + $0x7e4] ss:$16 sps:$4 sm:$0xff]  }
0x1022   : > { %13856 = vmatprep.subr.bf16.mxu0 %v18293_v48  ;;  %19058 = vtanh.f32 %v10403_v32  ;;  %v10212_v48 = vmul.f32 0.044715, %v22631_v59  ;;  %v10269_v32 = vmul.f32 %v10221_v3, %v22161_v26  ;;  %v10366_v15 = vadd.f32 %v10318_v38, %v22169_v53  ;;  %v18329_v3 = vld [vmem:[%s20351_s15 + $0x7a4] ss:$16 sps:$4 sm:$0xff]   ;;  %v18324_v38 = vld [vmem:[%s20351_s15 + $0x5a0] ss:$16 sps:$4 sm:$0xff]  }
0x1023   : > { %v10271_v33 = vmul.f32 %v10223_v42, %v22306_v10 }
0x1024   : > { %13806 = vmatpush1.bf16.msra.mxu1 %v18288_v49  ;;  %v18312_v49 = vld [vmem:[%s20351_s15 + $0x5e0] ss:$16 sps:$4 sm:$0xff]   ;;  %v10260_v18 = vmul.f32 %v10212_v48, %v22631_v59 }
0x1025   : > { %13857 = vmatpush1.bf16.msra.mxu0 %v18291_v36  ;;  %13807 = vmatprep.subr.bf16.mxu1 %v18296_v63  ;;  %v18315_v36 = vld [vmem:[%s20351_s15 + $0x7e0] ss:$16 sps:$4 sm:$0xff]   ;;  %v10147_v63 = vmul.f32 0.5, %v22564_v23  ;;  %v10319_v34 = vmul.f32 %v10271_v33, %v22306_v10  ;;  %v18341_v33 = vld [vmem:[%s20351_s15 + $0x764] ss:$16 sps:$4 sm:$0xff]  }
0x1026   : > { %13858 = vmatprep.subr.bf16.mxu0 %v18299_v56  ;;  %v10196_v56 = vmul.f32 0.044715, %v22635_v41 }
0x1027   : > { %v10367_v48 = vadd.f32 %v10319_v34, %v22306_v10 }
0x1028   : > { %13808 = vmatpush1.bf16.msra.mxu1 %v18294_v40  ;;  %v10163_v40 = vmul.f32 0.5, %v22582_v13  ;;  %v10368_v13 = vadd.f32 %v10320_v31, %v22314_v57  ;;  %v18332_v31 = vld [vmem:[%s20351_s15 + $0x584] ss:$16 sps:$4 sm:$0xff]  }
0x1029   : > { %13859 = vmatpush1.bf16.msra.mxu0 %v18297_v37  ;;  %13809 = vmatprep.subr.bf16.mxu1 %v18302_v9  ;;  %v18320_v9 = vld [vmem:[%s20351_s15 + $0x5c4] ss:$16 sps:$4 sm:$0xff]  }
0x102a   : > { %13860 = vmatprep.subr.bf16.mxu0 %v18305_v43  ;;  %v18323_v43 = vld [vmem:[%s20351_s15 + $0x7c4] ss:$16 sps:$4 sm:$0xff]   ;;  %v10416_v42 = vmul.f32 0.7978846, %v10368_v13  ;;  %v18342_v13 = vld [vmem:[%s20351_s15 + $0x540] ss:$16 sps:$4 sm:$0xff]  }
0x102b   : > { %v19057_v8 = vpop.eup %19056 }
0x102c   : > { %13810 = vmatpush1.bf16.msra.mxu1 %v18300_v58  ;;  %v10483_v62 = vadd.f32 1.0, %v19057_v8  ;;  %v10317_v58 = vmul.f32 %v10269_v32, %v22161_v26  ;;  %v18326_v8 = vld [vmem:[%s20351_s15 + $0x5a4] ss:$16 sps:$4 sm:$0xff]  }
0x102d   : > { %13861 = vmatpush1.bf16.msra.mxu0 %v18303_v11  ;;  %13811 = vmatprep.subr.bf16.mxu1 %v18308_v44  ;;  %v10244_v11 = vmul.f32 %v10196_v56, %v22635_v41  ;;  %v18318_v44 = vld [vmem:[%s20351_s15 + $0x5c0] ss:$16 sps:$4 sm:$0xff]  }
0x102e   : > { %13862 = vmatprep.subr.bf16.mxu0 %v18311_v52  ;;  %v10531_v23 = vmul.f32 %v10483_v62, %v10147_v63  ;;  %v18321_v52 = vld [vmem:[%s20351_s15 + $0x7c0] ss:$16 sps:$4 sm:$0xff]  }
0x102f   : > { %v19059_v47 = vpop.eup %19058  ;;  %v18327_v62 = vld [vmem:[%s20351_s15 + $0x7a0] ss:$16 sps:$4 sm:$0xff]  }
0x1030   : > { %v10499_v37 = vadd.f32 1.0, %v19059_v47  ;;  %13812 = vmatpush1.bf16.msra.mxu1 %v18306_v21  ;;  %v10414_v21 = vmul.f32 0.7978846, %v10366_v15  ;;  %v18335_v47 = vld [vmem:[%s20351_s15 + $0x784] ss:$16 sps:$4 sm:$0xff]  }
0x1031   : > { %13863 = vmatpush1.bf16.msra.mxu0 %v18309_v55  ;;  %13813 = vmatprep.subr.bf16.mxu1 %v18314_v50  ;;  %v10308_v55 = vmul.f32 %v10260_v18, %v22631_v59  ;;  %v10365_v50 = vadd.f32 %v10317_v58, %v22161_v26  ;;  %v18333_v63 = vld [vmem:[%s20351_s15 + $0x780] ss:$16 sps:$4 sm:$0xff]   ;;  %v18347_v18 = vld [vmem:[%s20351_s15 + $0x744] ss:$16 sps:$4 sm:$0xff]  }
0x1032   : > { %13864 = vmatprep.subr.bf16.mxu0 %v18317_v28  ;;  %v10547_v51 = vmul.f32 %v10499_v37, %v10163_v40  ;;  %v10292_v28 = vmul.f32 %v10244_v11, %v22635_v41  ;;  %19060 = vtanh.f32 %v10414_v21  ;;  %v10415_v40 = vmul.f32 0.7978846, %v10367_v48  ;;  %v18338_v37 = vld [vmem:[%s20351_s15 + $0x564] ss:$16 sps:$4 sm:$0xff]   ;;  %v18339_v15 = vld [vmem:[%s20351_s15 + $0x760] ss:$16 sps:$4 sm:$0xff]  }
0x1033   : > { %19062 = vtanh.f32 %v10416_v42  ;;  %v10356_v32 = vadd.f32 %v10308_v55, %v22631_v59  ;;  %v18345_v58 = vld [vmem:[%s20351_s15 + $0x740] ss:$16 sps:$4 sm:$0xff]   ;;  %v18350_v11 = vld [vmem:[%s20351_s15 + $0x524] ss:$16 sps:$4 sm:$0xff]   ;;  %v10176_v48 = vmul.f32 0.5, %v22314_v57 }
0x1034   : > { %v22659_v17 = vpack.c.bf16 %v10547_v51, %v10531_v23  ;;  %13814 = vmatpush2.bf16.msra.mxu1 %v18312_v49  ;;  %v10413_v49 = vmul.f32 0.7978846, %v10365_v50  ;;  %v10340_v56 = vadd.f32 %v10292_v28, %v22635_v41  ;;  %v18344_v51 = vld [vmem:[%s20351_s15 + $0x544] ss:$16 sps:$4 sm:$0xff]   ;;  %v18354_v28 = vld [vmem:[%s20351_s15 + $0x500] ss:$16 sps:$4 sm:$0xff]  }
0x1035   : > { %13865 = vmatpush2.bf16.msra.mxu0 %v18315_v36  ;;  %13815 = vmatprep.subr.bf16.mxu1 %v18320_v9  ;;  %v18330_v36 = vld [vmem:[%s20351_s15 + $0x580] ss:$16 sps:$4 sm:$0xff]   ;;  %v10404_v9 = vmul.f32 0.7978846, %v10356_v32  ;;  %v18356_v21 = vld [vmem:[%s20351_s15 + $0x504] ss:$16 sps:$4 sm:$0xff]  }
0x1036   : > { %13866 = vmatprep.subr.bf16.mxu0 %v18323_v43  ;;  %v18336_v43 = vld [vmem:[%s20351_s15 + $0x560] ss:$16 sps:$4 sm:$0xff]   ;;  %19064 = vtanh.f32 %v10413_v49  ;;  %v10388_v23 = vmul.f32 0.7978846, %v10340_v56  ;;  %v18359_v55 = vld [vmem:[%s20351_s15 + $0x704] ss:$16 sps:$4 sm:$0xff]  }
0x1037   : > { %19066 = vtanh.f32 %v10415_v40  ;;  %v18362_v32 = vld [vmem:[%s20351_s15 + $0x8e4] ss:$16 sps:$4 sm:$0xff]  }
0x1038   : > { %13816 = vmatpush2.bf16.msra.mxu1 %v18318_v44  ;;  %19068 = vtanh.f32 %v10404_v9  ;;  %v18353_v44 = vld [vmem:[%s20351_s15 + $0x724] ss:$16 sps:$4 sm:$0xff]   ;;  %v18360_v9 = vld [vmem:[%s20351_s15 + $0x8e0] ss:$16 sps:$4 sm:$0xff]  }
0x1039   : > { %13867 = vmatpush2.bf16.msra.mxu0 %v18321_v52  ;;  %13817 = vmatprep.subr.bf16.mxu1 %v18326_v8  ;;  %19070 = vtanh.f32 %v10388_v23  ;;  %v18348_v8 = vld [vmem:[%s20351_s15 + $0x520] ss:$16 sps:$4 sm:$0xff]   ;;  %v18365_v49 = vld [vmem:[%s20351_s15 + $0xae4] ss:$16 sps:$4 sm:$0xff]  }
0x103a   : > { %13868 = vmatprep.subr.bf16.mxu0 %v18329_v3  ;;  %v18351_v3 = vld [vmem:[%s20351_s15 + $0x720] ss:$16 sps:$4 sm:$0xff]  }
0x103c   : > { %13818 = vmatpush2.bf16.msra.mxu1 %v18324_v38  ;;  %v18357_v38 = vld [vmem:[%s20351_s15 + $0x700] ss:$16 sps:$4 sm:$0xff]  }
0x103d   : > { %13869 = vmatpush2.bf16.msra.mxu0 %v18327_v62  ;;  %13819 = vmatprep.subr.bf16.mxu1 %v18332_v31  ;;  %v10174_v62 = vmul.f32 0.5, %v22169_v53 }
0x103e   : > { %13870 = vmatprep.subr.bf16.mxu0 %v18335_v47  ;;  %v22698_v47 = vrot.slane %v22398_v35, %v21052_v25 }
0x103f   : > { %v19061_v52 = vpop.eup %19060 }
0x1040   : > { %13820 = vmatpush2.bf16.msra.mxu1 %v18330_v36  ;;  %v19063_v34 = vpop.eup %19062  ;;  %v10510_v42 = vadd.f32 1.0, %v19061_v52  ;;  %v10173_v52 = vmul.f32 0.5, %v22161_v26  ;;  %v18366_v26 = vld [vmem:[%s20351_s15 + $0x8c0] ss:$16 sps:$4 sm:$0xff]  }
0x1041   : > { %13871 = vmatpush2.bf16.msra.mxu0 %v18333_v63  ;;  %13821 = vmatprep.subr.bf16.mxu1 %v18338_v37  ;;  %v10512_v50 = vadd.f32 1.0, %v19063_v34  ;;  %v10175_v34 = vmul.f32 0.5, %v22306_v10 }
0x1042   : > { %13872 = vmatprep.subr.bf16.mxu0 %v18341_v33  ;;  %v10558_v63 = vmul.f32 %v10510_v42, %v10174_v62 }
0x1043   : > { %v19065_v31 = vpop.eup %19064  ;;  %v10560_v56 = vmul.f32 %v10512_v50, %v10176_v48 }
0x1044   : > { %13822 = vmatpush2.bf16.msra.mxu1 %v18336_v43  ;;  %v19067_v36 = vpop.eup %19066  ;;  %v18363_v43 = vld [vmem:[%s20351_s15 + $0xae0] ss:$16 sps:$4 sm:$0xff]   ;;  %v10509_v25 = vadd.f32 1.0, %v19065_v31  ;;  %v18374_v31 = vld [vmem:[%s20351_s15 + $0x8a4] ss:$16 sps:$4 sm:$0xff]  }
0x1045   : > { %13873 = vmatpush2.bf16.msra.mxu0 %v18339_v15  ;;  %13823 = vmatprep.subr.bf16.mxu1 %v18344_v51  ;;  %v19069_v40 = vpop.eup %19068  ;;  %v10511_v35 = vadd.f32 1.0, %v19067_v36  ;;  %v22705_v15 = vpack.c.bf16 %v10558_v63, %v10558_v63  ;;  %v22707_v23 = vpack.c.bf16 %v10560_v56, %v10560_v56 }
0x1046   : > { %13874 = vmatprep.subr.bf16.mxu0 %v18347_v18  ;;  %v19071_v37 = vpop.eup %19070  ;;  %v10557_v10 = vmul.f32 %v10509_v25, %v10173_v52  ;;  %v22747_v25 = vld [vmem:[%s20345_s28 + $0x8] sm:$0xff] }
0x1048   : > { %13824 = vmatpush2.bf16.msra.mxu1 %v18342_v13  ;;  %v18368_v13 = vld [vmem:[%s20351_s15 + $0x8c4] ss:$16 sps:$4 sm:$0xff]  }
0x1049   : > { %13875 = vmatpush2.bf16.msra.mxu0 %v18345_v58  ;;  %13825 = vmatprep.subr.bf16.mxu1 %v18350_v11  ;;  %v18371_v58 = vld [vmem:[%s20351_s15 + $0xac4] ss:$16 sps:$4 sm:$0xff]   ;;  %v10500_v11 = vadd.f32 1.0, %v19069_v40 }
0x104a   : > { %13876 = vmatprep.subr.bf16.mxu0 %v18353_v44 }
0x104c   : > { %13826 = vmatpush2.bf16.msra.mxu1 %v18348_v8 }
0x104d   : > { %13877 = vmatpush2.bf16.msra.mxu0 %v18351_v3  ;;  %13827 = vmatprep.subr.bf16.mxu1 %v18356_v21  ;;  %v10164_v21 = vmul.f32 0.5, %v22631_v59  ;;  %v18377_v59 = vld [vmem:[%s20351_s15 + $0xaa4] ss:$16 sps:$4 sm:$0xff]  }
0x104e   : > { %13878 = vmatprep.subr.bf16.mxu0 %v18359_v55  ;;  %v10484_v55 = vadd.f32 1.0, %v19071_v37 }
0x1050   : > { %13828 = vmatpush2.bf16.msra.mxu1 %v18354_v28  ;;  %v9967_v53 = vpop.f32.mrf.mxu1  ;;  %v18369_v28 = vld [vmem:[%s20351_s15 + $0xac0] ss:$16 sps:$4 sm:$0xff]  }
0x1051   : > { %13879 = vmatpush2.bf16.msra.mxu0 %v18357_v38  ;;  %v10018_v57 = vpop.f32.mrf.mxu0  ;;  %v9968_v33 = vadd.f32 %v9967_v53, %v22698_v47  ;;  %13899 = vmatprep.subr.bf16.mxu1 %v18362_v32  ;;  %v10559_v38 = vmul.f32 %v10511_v35, %v10175_v34  ;;  %v10148_v32 = vmul.f32 0.5, %v22635_v41  ;;  %v18372_v41 = vld [vmem:[%s20351_s15 + $0x8a0] ss:$16 sps:$4 sm:$0xff]   ;;  %v6736_v35 = vrot.slane %v22747_v25, %v21061_v39  ;;  %v18380_v34 = vld [vmem:[%s20351_s15 + $0x884] ss:$16 sps:$4 sm:$0xff]  }
0x1052   : > { %13950 = vmatprep.subr.bf16.mxu0 %v18365_v49  ;;  %v22709_v51 = vpop.f32.mrf.mxu1  ;;  %v10548_v49 = vmul.f32 %v10500_v11, %v10164_v21 }
0x1053   : > { %v22711_v18 = vpop.f32.mrf.mxu0  ;;  %v22715_v44 = vadd.f32 %v10018_v57, %v9968_v33  ;;  %13830 = vmatmul.mubr.bf16.vlgmr.msra.gmra.mxu1 %v22202_v19  ;;  %v10532_v53 = vmul.f32 %v10484_v55, %v10148_v32  ;;  %v22740_v33 = vpack.c.bf16 %v10557_v10, %v10557_v10  ;;  %v18381_v10 = vld [vmem:[%s20351_s15 + $0xa80] ss:$16 sps:$4 sm:$0xff]   ;;  %v18386_v32 = vld [vmem:[%s20351_s15 + $0x864] ss:$16 sps:$4 sm:$0xff]  }
0x1054   : > { %13881 = vmatmul.mubr.bf16.vlgmr.msra.gmra.mxu0 %v22367_v16  ;;  %13839 = vmatprep.mubr.bf16.mxu1 %v22705_v15  ;;  %v9971_v8 = vpop.f32.mrf.mxu1 }
0x1055   : > { %13890 = vmatprep.mubr.bf16.mxu0 %v22707_v23  ;;  %v10022_v3 = vpop.f32.mrf.mxu0  ;;  %v10197_v42 = vmul.f32 0.044715, %v22715_v44  ;;  %13900 = vmatpush1.bf16.msra.mxu1 %v18360_v9  ;;  %v9972_v50 = vadd.f32 %v9971_v8, %v22698_v47  ;;  %v22742_v9 = vpack.c.bf16 %v10559_v38, %v10559_v38  ;;  %v18383_v8 = vld [vmem:[%s20351_s15 + $0xa84] ss:$16 sps:$4 sm:$0xff]  }
0x1056   : > { %13951 = vmatpush1.bf16.msra.mxu0 %v18363_v43  ;;  %13901 = vmatprep.subr.bf16.mxu1 %v18368_v13  ;;  %v22728_v62 = vpop.f32.mrf.mxu1  ;;  %v18375_v43 = vld [vmem:[%s20351_s15 + $0xaa0] ss:$16 sps:$4 sm:$0xff]  }
0x1057   : > { %13952 = vmatprep.subr.bf16.mxu0 %v18371_v58  ;;  %v22730_v48 = vpop.f32.mrf.mxu0  ;;  %v10245_v36 = vmul.f32 %v10197_v42, %v22715_v44  ;;  %v22736_v63 = vadd.f32 %v10022_v3, %v9972_v50  ;;  %v22752_v58 = vpack.c.bf16 %v10548_v49, %v10532_v53  ;;  %v18389_v49 = vld [vmem:[%s20351_s15 + $0xa64] ss:$16 sps:$4 sm:$0xff]   ;;  %v18387_v53 = vld [vmem:[%s20351_s15 + $0xa60] ss:$16 sps:$4 sm:$0xff]  }
0x1058   : > { %v9977_v56 = vpop.f32.mrf.mxu1 }
0x1059   : > { %v10028_v40 = vpop.f32.mrf.mxu0  ;;  %v10293_v57 = vmul.f32 %v10245_v36, %v22715_v44  ;;  %v10213_v37 = vmul.f32 0.044715, %v22736_v63  ;;  %13902 = vmatpush1.bf16.msra.mxu1 %v18366_v26  ;;  %v9978_v13 = vadd.f32 %v9977_v56, %v22698_v47 }
0x105a   : > { %13953 = vmatpush1.bf16.msra.mxu0 %v18369_v28  ;;  %13903 = vmatprep.subr.bf16.mxu1 %v18374_v31  ;;  %v9979_v11 = vpop.f32.mrf.mxu1  ;;  %v18378_v28 = vld [vmem:[%s20351_s15 + $0x880] ss:$16 sps:$4 sm:$0xff]  }
0x105b   : > { %13954 = vmatprep.subr.bf16.mxu0 %v18377_v59  ;;  %v10030_v52 = vpop.f32.mrf.mxu0  ;;  %v10341_v3 = vadd.f32 %v10293_v57, %v22715_v44  ;;  %v10261_v21 = vmul.f32 %v10213_v37, %v22736_v63  ;;  %13840 = vmatmul.mubr.bf16.gmra.mxu1 %v22740_v33  ;;  %v22760_v39 = vadd.f32 %v10028_v40, %v9978_v13  ;;  %v18384_v40 = vld [vmem:[%s20351_s15 + $0x860] ss:$16 sps:$4 sm:$0xff]   ;;  %v18392_v57 = vld [vmem:[%s20351_s15 + $0x844] ss:$16 sps:$4 sm:$0xff]   ;;  %v10226_v13 = vmul.f32 0.044715, %v22469_v24 }
0x105c   : > { %13891 = vmatmul.mubr.bf16.gmra.mxu0 %v22742_v9  ;;  %13931 = vmatprep.mubr.bf16.mxu1 %v22520_v4  ;;  %v9980_v47 = vadd.f32 %v9979_v11, %v6736_v35  ;;  %v9981_v55 = vpop.f32.mrf.mxu1  ;;  %v18395_v37 = vld [vmem:[%s20351_s15 + $0xa44] ss:$16 sps:$4 sm:$0xff]  }
0x105d   : > { %13982 = vmatprep.mubr.bf16.mxu0 %v22752_v58  ;;  %v10032_v42 = vpop.f32.mrf.mxu0  ;;  %v10389_v50 = vmul.f32 0.7978846, %v10341_v3  ;;  %v10309_v26 = vmul.f32 %v10261_v21, %v22736_v63  ;;  %13904 = vmatpush1.bf16.msra.mxu1 %v18372_v41  ;;  %v18390_v41 = vld [vmem:[%s20351_s15 + $0x840] ss:$16 sps:$4 sm:$0xff]   ;;  %v18398_v11 = vld [vmem:[%s20351_s15 + $0x824] ss:$16 sps:$4 sm:$0xff]   ;;  %v9970_v3 = vadd.f32 %v22709_v51, %v6736_v35  ;;  %v10274_v55 = vmul.f32 %v10226_v13, %v22469_v24 }
0x105e   : > { %13955 = vmatpush1.bf16.msra.mxu0 %v18375_v43  ;;  %v22767_v38 = vadd.f32 %v10030_v52, %v9980_v47  ;;  %13905 = vmatprep.subr.bf16.mxu1 %v18380_v34  ;;  %v9982_v31 = vpop.f32.mrf.mxu1  ;;  %v18393_v43 = vld [vmem:[%s20351_s15 + $0xa40] ss:$16 sps:$4 sm:$0xff]   ;;  %v18401_v52 = vld [vmem:[%s20351_s15 + $0xa24] ss:$16 sps:$4 sm:$0xff]   ;;  %v10228_v34 = vmul.f32 0.044715, %v22607_v30 }
0x105f   : > { %13956 = vmatprep.subr.bf16.mxu0 %v18383_v8  ;;  %v10033_v59 = vpop.f32.mrf.mxu0  ;;  %19072 = vtanh.f32 %v10389_v50  ;;  %v10357_v36 = vadd.f32 %v10309_v26, %v22736_v63  ;;  %v9974_v8 = vadd.f32 %v22728_v62, %v6736_v35  ;;  %v18396_v21 = vld [vmem:[%s20351_s15 + $0x820] ss:$16 sps:$4 sm:$0xff]   ;;  %v18404_v42 = vld [vmem:[%s20351_s15 + $0x804] ss:$16 sps:$4 sm:$0xff]   ;;  %v10225_v35 = vmul.f32 0.044715, %v22459_v6 }
0x1060   : > { %v18399_v47 = vld [vmem:[%s20351_s15 + $0xa20] ss:$16 sps:$4 sm:$0xff]   ;;  %v18407_v50 = vld [vmem:[%s20351_s15 + $0xa04] ss:$16 sps:$4 sm:$0xff]   ;;  %v10276_v26 = vmul.f32 %v10228_v34, %v22607_v30  ;;  %v10227_v59 = vmul.f32 0.044715, %v22600_v46 }
0x1061   : > { %v10405_v56 = vmul.f32 0.7978846, %v10357_v36  ;;  %13906 = vmatpush1.bf16.msra.mxu1 %v18378_v28  ;;  %v22791_v62 = vadd.f32 %v22730_v48, %v9974_v8  ;;  %v22795_v28 = vadd.f32 %v22711_v18, %v9970_v3  ;;  %v18405_v31 = vld [vmem:[%s20351_s15 + $0xa00] ss:$16 sps:$4 sm:$0xff]   ;;  %v10322_v48 = vmul.f32 %v10274_v55, %v22469_v24  ;;  %v18416_v34 = vld [vmem:[%s20351_s15 + $0x9c4] ss:$16 sps:$4 sm:$0xff]  }
0x1062   : > { %13957 = vmatpush1.bf16.msra.mxu0 %v18381_v10  ;;  %13907 = vmatprep.subr.bf16.mxu1 %v18386_v32  ;;  %v18402_v10 = vld [vmem:[%s20351_s15 + $0x800] ss:$16 sps:$4 sm:$0xff]   ;;  %v18410_v32 = vld [vmem:[%s20351_s15 + $0x9e4] ss:$16 sps:$4 sm:$0xff]   ;;  %v10324_v18 = vmul.f32 %v10276_v26, %v22607_v30  ;;  %v10165_v13 = vmul.f32 0.5, %v22736_v63 }
0x1063   : > { %13958 = vmatprep.subr.bf16.mxu0 %v18389_v49  ;;  %19074 = vtanh.f32 %v10405_v56  ;;  %v18413_v49 = vld [vmem:[%s20351_s15 + $0xbe4] ss:$16 sps:$4 sm:$0xff]   ;;  %v10214_v56 = vmul.f32 0.044715, %v22791_v62  ;;  %v10370_v3 = vadd.f32 %v10322_v48, %v22469_v24  ;;  %v18414_v26 = vld [vmem:[%s20351_s15 + $0x9c0] ss:$16 sps:$4 sm:$0xff]  }
0x1064   : > { %v18419_v8 = vld [vmem:[%s20351_s15 + $0xbc4] ss:$16 sps:$4 sm:$0xff]   ;;  %v10372_v63 = vadd.f32 %v10324_v18, %v22607_v30  ;;  %v18423_v18 = vld [vmem:[%s20351_s15 + $0xba0] ss:$16 sps:$4 sm:$0xff]  }
0x1065   : > { %13908 = vmatpush1.bf16.msra.mxu1 %v18384_v40 }
0x1066   : > { %13959 = vmatpush1.bf16.msra.mxu0 %v18387_v53  ;;  %13909 = vmatprep.subr.bf16.mxu1 %v18392_v57  ;;  %v10273_v53 = vmul.f32 %v10225_v35, %v22459_v6  ;;  %v18408_v57 = vld [vmem:[%s20351_s15 + $0x9e0] ss:$16 sps:$4 sm:$0xff]  }
0x1067   : > { %13960 = vmatprep.subr.bf16.mxu0 %v18395_v37  ;;  %v18411_v37 = vld [vmem:[%s20351_s15 + $0xbe0] ss:$16 sps:$4 sm:$0xff]  }
0x1068   : > { %v10321_v55 = vmul.f32 %v10273_v53, %v22459_v6  ;;  %v18428_v53 = vld [vmem:[%s20351_s15 + $0x984] ss:$16 sps:$4 sm:$0xff]  }
0x1069   : > { %13910 = vmatpush1.bf16.msra.mxu1 %v18390_v41  ;;  %v10149_v41 = vmul.f32 0.5, %v22715_v44 }
0x106a   : > { %13961 = vmatpush1.bf16.msra.mxu0 %v18393_v43  ;;  %13911 = vmatprep.subr.bf16.mxu1 %v18398_v11  ;;  %v10198_v43 = vmul.f32 0.044715, %v22795_v28  ;;  %v10369_v48 = vadd.f32 %v10321_v55, %v22459_v6  ;;  %v18443_v55 = vld [vmem:[%s20351_s15 + $0xb44] ss:$16 sps:$4 sm:$0xff]  }
0x106b   : > { %13962 = vmatprep.subr.bf16.mxu0 %v18401_v52  ;;  %v10275_v52 = vmul.f32 %v10227_v59, %v22600_v46  ;;  %v10418_v59 = vmul.f32 0.7978846, %v10370_v3 }
0x106c   : > { %v19073_v51 = vpop.eup %19072 }
0x106d   : > { %13912 = vmatpush1.bf16.msra.mxu1 %v18396_v21  ;;  %v10485_v36 = vadd.f32 1.0, %v19073_v51  ;;  %v18417_v51 = vld [vmem:[%s20351_s15 + $0xbc0] ss:$16 sps:$4 sm:$0xff]   ;;  %v10323_v35 = vmul.f32 %v10275_v52, %v22600_v46  ;;  %19076 = vtanh.f32 %v10418_v59 }
0x106e   : > { %13963 = vmatpush1.bf16.msra.mxu0 %v18399_v47  ;;  %13913 = vmatprep.subr.bf16.mxu1 %v18404_v42  ;;  %v10262_v47 = vmul.f32 %v10214_v56, %v22791_v62  ;;  %v10246_v42 = vmul.f32 %v10198_v43, %v22795_v28  ;;  %v18420_v56 = vld [vmem:[%s20351_s15 + $0x9a0] ss:$16 sps:$4 sm:$0xff]  }
0x106f   : > { %13964 = vmatprep.subr.bf16.mxu0 %v18407_v50  ;;  %v10533_v44 = vmul.f32 %v10485_v36, %v10149_v41  ;;  %v10417_v41 = vmul.f32 0.7978846, %v10369_v48  ;;  %v18426_v43 = vld [vmem:[%s20351_s15 + $0x980] ss:$16 sps:$4 sm:$0xff]   ;;  %v18455_v48 = vld [vmem:[%s20351_s15 + $0xb04] ss:$16 sps:$4 sm:$0xff]  }
0x1070   : > { %v19075_v40 = vpop.eup %19074  ;;  %v10294_v36 = vmul.f32 %v10246_v42, %v22795_v28  ;;  %v18438_v42 = vld [vmem:[%s20351_s15 + $0x940] ss:$16 sps:$4 sm:$0xff]  }
0x1071   : > { %v10501_v11 = vadd.f32 1.0, %v19075_v40  ;;  %13914 = vmatpush1.bf16.msra.mxu1 %v18402_v10  ;;  %v18422_v10 = vld [vmem:[%s20351_s15 + $0x9a4] ss:$16 sps:$4 sm:$0xff]   ;;  %v10371_v40 = vadd.f32 %v10323_v35, %v22600_v46  ;;  %v18444_v59 = vld [vmem:[%s20351_s15 + $0x920] ss:$16 sps:$4 sm:$0xff]  }
0x1072   : > { %13965 = vmatpush1.bf16.msra.mxu0 %v18405_v31  ;;  %13915 = vmatprep.subr.bf16.mxu1 %v18410_v32  ;;  %v18425_v31 = vld [vmem:[%s20351_s15 + $0xba4] ss:$16 sps:$4 sm:$0xff]   ;;  %v10310_v32 = vmul.f32 %v10262_v47, %v22791_v62 }
0x1073   : > { %13966 = vmatprep.subr.bf16.mxu0 %v18413_v49  ;;  %v10549_v21 = vmul.f32 %v10501_v11, %v10165_v13  ;;  %v10420_v49 = vmul.f32 0.7978846, %v10372_v63  ;;  %v18429_v13 = vld [vmem:[%s20351_s15 + $0xb80] ss:$16 sps:$4 sm:$0xff]   ;;  %v10342_v11 = vadd.f32 %v10294_v36, %v22795_v28  ;;  %v10419_v52 = vmul.f32 0.7978846, %v10371_v40 }
0x1074   : > { %v18440_v63 = vld [vmem:[%s20351_s15 + $0x944] ss:$16 sps:$4 sm:$0xff]   ;;  %v18453_v40 = vld [vmem:[%s20351_s15 + $0xb00] ss:$16 sps:$4 sm:$0xff]  }
0x1075   : > { %v22819_v50 = vpack.c.bf16 %v10549_v21, %v10533_v44  ;;  %13916 = vmatpush2.bf16.msra.mxu1 %v18408_v57  ;;  %v18431_v57 = vld [vmem:[%s20351_s15 + $0xb84] ss:$16 sps:$4 sm:$0xff]   ;;  %19078 = vtanh.f32 %v10420_v49  ;;  %v18432_v44 = vld [vmem:[%s20351_s15 + $0x960] ss:$16 sps:$4 sm:$0xff]   ;;  %v10390_v47 = vmul.f32 0.7978846, %v10342_v11 }
0x1076   : > { %13967 = vmatpush2.bf16.msra.mxu0 %v18411_v37  ;;  %13917 = vmatprep.subr.bf16.mxu1 %v18416_v34  ;;  %v10358_v37 = vadd.f32 %v10310_v32, %v22791_v62  ;;  %v18434_v34 = vld [vmem:[%s20351_s15 + $0x964] ss:$16 sps:$4 sm:$0xff]   ;;  %v18435_v21 = vld [vmem:[%s20351_s15 + $0xb60] ss:$16 sps:$4 sm:$0xff]   ;;  %19080 = vtanh.f32 %v10417_v41 }
0x1077   : > { %13968 = vmatprep.subr.bf16.mxu0 %v18419_v8  ;;  %v18437_v8 = vld [vmem:[%s20351_s15 + $0xb64] ss:$16 sps:$4 sm:$0xff]   ;;  %19082 = vtanh.f32 %v10419_v52  ;;  %v18447_v32 = vld [vmem:[%s20351_s15 + $0xb20] ss:$16 sps:$4 sm:$0xff]  }
0x1078   : > { %v10406_v3 = vmul.f32 0.7978846, %v10358_v37  ;;  %v18449_v35 = vld [vmem:[%s20351_s15 + $0xb24] ss:$16 sps:$4 sm:$0xff]  }
0x1079   : > { %13918 = vmatpush2.bf16.msra.mxu1 %v18414_v26  ;;  %v18441_v26 = vld [vmem:[%s20351_s15 + $0xb40] ss:$16 sps:$4 sm:$0xff]   ;;  %v18452_v49 = vld [vmem:[%s20351_s15 + $0x904] ss:$16 sps:$4 sm:$0xff]  }
0x107a   : > { %13969 = vmatpush2.bf16.msra.mxu0 %v18417_v51  ;;  %13919 = vmatprep.subr.bf16.mxu1 %v18422_v10  ;;  %19084 = vtanh.f32 %v10406_v3  ;;  %v18446_v51 = vld [vmem:[%s20351_s15 + $0x924] ss:$16 sps:$4 sm:$0xff]   ;;  %v19077_v10 = vpop.eup %19076 }
0x107b   : > { %13970 = vmatprep.subr.bf16.mxu0 %v18425_v31  ;;  %19086 = vtanh.f32 %v10390_v47  ;;  %v10514_v36 = vadd.f32 1.0, %v19077_v10  ;;  %v18458_v41 = vld [vmem:[%s20351_s15 + $0xce4] ss:$16 sps:$4 sm:$0xff]   ;;  %v18459_v47 = vld [vmem:[%s20351_s15 + $0xee0] ss:$16 sps:$4 sm:$0xff]  }
0x107c   : > { %v18464_v10 = vld [vmem:[%s20351_s15 + $0xcc4] ss:$16 sps:$4 sm:$0xff]  }
0x107d   : > { %13920 = vmatpush2.bf16.msra.mxu1 %v18420_v56 }
0x107e   : > { %13971 = vmatpush2.bf16.msra.mxu0 %v18423_v18  ;;  %13921 = vmatprep.subr.bf16.mxu1 %v18428_v53  ;;  %v18450_v18 = vld [vmem:[%s20351_s15 + $0x900] ss:$16 sps:$4 sm:$0xff]   ;;  %v10178_v53 = vmul.f32 0.5, %v22469_v24 }
0x107f   : > { %13972 = vmatprep.subr.bf16.mxu0 %v18431_v57  ;;  %v10180_v57 = vmul.f32 0.5, %v22607_v30 }
0x1080   : > { %v10562_v11 = vmul.f32 %v10514_v36, %v10178_v53 }
0x1081   : > { %13922 = vmatpush2.bf16.msra.mxu1 %v18426_v43  ;;  %v18461_v43 = vld [vmem:[%s20351_s15 + $0xee4] ss:$16 sps:$4 sm:$0xff]  }
0x1082   : > { %13973 = vmatpush2.bf16.msra.mxu0 %v18429_v13  ;;  %13923 = vmatprep.subr.bf16.mxu1 %v18434_v34  ;;  %v19079_v31 = vpop.eup %19078 }
0x1083   : > { %13974 = vmatprep.subr.bf16.mxu0 %v18437_v8  ;;  %v10516_v56 = vadd.f32 1.0, %v19079_v31  ;;  %v19081_v37 = vpop.eup %19080  ;;  %v23835_v8 = vld [vmem:[#allocation52_spill] sm:$0xff]  ;;  %v18467_v31 = vld [vmem:[%s20351_s15 + $0xec4] ss:$16 sps:$4 sm:$0xff]  }
0x1084   : > { %v19083_v13 = vpop.eup %19082  ;;  %v22860_v3 = vrot.slane %v22747_v25, %v23835_v8 }
0x1085   : > { %13924 = vmatpush2.bf16.msra.mxu1 %v18432_v44  ;;  %v10564_v52 = vmul.f32 %v10516_v56, %v10180_v57  ;;  %v18462_v57 = vld [vmem:[%s20351_s15 + $0xcc0] ss:$16 sps:$4 sm:$0xff]  }
0x1086   : > { %13975 = vmatpush2.bf16.msra.mxu0 %v18435_v21  ;;  %13925 = vmatprep.subr.bf16.mxu1 %v18440_v63  ;;  %v18456_v21 = vld [vmem:[%s20351_s15 + $0xce0] ss:$16 sps:$4 sm:$0xff]   ;;  %v10513_v63 = vadd.f32 1.0, %v19081_v37 }
0x1087   : > { %13976 = vmatprep.subr.bf16.mxu0 %v18443_v55  ;;  %v19085_v34 = vpop.eup %19084  ;;  %v10515_v55 = vadd.f32 1.0, %v19083_v13  ;;  %v18470_v13 = vld [vmem:[%s20351_s15 + $0xca4] ss:$16 sps:$4 sm:$0xff]  }
0x1088   : > { %v19087_v44 = vpop.eup %19086 }
0x1089   : > { %13926 = vmatpush2.bf16.msra.mxu1 %v18438_v42  ;;  %v22868_v42 = vpack.c.bf16 %v10562_v11, %v10562_v11  ;;  %v18473_v11 = vld [vmem:[%s20351_s15 + $0xea4] ss:$16 sps:$4 sm:$0xff]  }
0x108a   : > { %13977 = vmatpush2.bf16.msra.mxu0 %v18441_v26  ;;  %13927 = vmatprep.subr.bf16.mxu1 %v18446_v51  ;;  %v22870_v26 = vpack.c.bf16 %v10564_v52, %v10564_v52  ;;  %v10150_v52 = vmul.f32 0.5, %v22795_v28  ;;  %v18468_v28 = vld [vmem:[%s20351_s15 + $0xca0] ss:$16 sps:$4 sm:$0xff]  }
0x108b   : > { %13978 = vmatprep.subr.bf16.mxu0 %v18449_v35 }
0x108d   : > { %13928 = vmatpush2.bf16.msra.mxu1 %v18444_v59  ;;  %v10502_v59 = vadd.f32 1.0, %v19085_v34 }
0x108e   : > { %13979 = vmatpush2.bf16.msra.mxu0 %v18447_v32  ;;  %13929 = vmatprep.subr.bf16.mxu1 %v18452_v49  ;;  %v10177_v49 = vmul.f32 0.5, %v22459_v6  ;;  %v18465_v6 = vld [vmem:[%s20351_s15 + $0xec0] ss:$16 sps:$4 sm:$0xff]  }
0x108f   : > { %13980 = vmatprep.subr.bf16.mxu0 %v18455_v48  ;;  %v10179_v48 = vmul.f32 0.5, %v22600_v46 }
0x1090   : > { %v10561_v37 = vmul.f32 %v10513_v63, %v10177_v49  ;;  %v18476_v49 = vld [vmem:[%s20351_s15 + $0xc84] ss:$16 sps:$4 sm:$0xff]  }
0x1091   : > { %13930 = vmatpush2.bf16.msra.mxu1 %v18450_v18  ;;  %v22862_v24 = vpop.f32.mrf.mxu1  ;;  %v10166_v18 = vmul.f32 0.5, %v22791_v62  ;;  %v10563_v46 = vmul.f32 %v10515_v55, %v10179_v48  ;;  %v18479_v48 = vld [vmem:[%s20351_s15 + $0xe84] ss:$16 sps:$4 sm:$0xff]  }
0x1092   : > { %13981 = vmatpush2.bf16.msra.mxu0 %v18453_v40  ;;  %v22864_v30 = vpop.f32.mrf.mxu0  ;;  %14001 = vmatprep.subr.bf16.mxu1 %v18458_v41  ;;  %v10486_v40 = vadd.f32 1.0, %v19087_v44  ;;  %v22898_v55 = vpack.c.bf16 %v10561_v37, %v10561_v37 }
0x1093   : > { %14052 = vmatprep.subr.bf16.mxu0 %v18461_v43  ;;  %v10071_v51 = vpop.f32.mrf.mxu1  ;;  %v10550_v62 = vmul.f32 %v10502_v59, %v10166_v18 }
0x1094   : > { %v10122_v35 = vpop.f32.mrf.mxu0  ;;  %13932 = vmatmul.mubr.bf16.vlgmr.msra.gmra.mxu1 %v22513_v12  ;;  %v10072_v32 = vadd.f32 %v10071_v51, %v22860_v3  ;;  %v22900_v51 = vpack.c.bf16 %v10563_v46, %v10563_v46 }
0x1095   : > { %13983 = vmatmul.mubr.bf16.vlgmr.msra.gmra.mxu0 %v22659_v17  ;;  %13941 = vmatprep.mubr.bf16.mxu1 %v22868_v42  ;;  %v10073_v36 = vpop.f32.mrf.mxu1 }
0x1096   : > { %13992 = vmatprep.mubr.bf16.mxu0 %v22870_v26  ;;  %v22881_v56 = vpop.f32.mrf.mxu0  ;;  %14002 = vmatpush1.bf16.msra.mxu1 %v18456_v21  ;;  %v22884_v53 = vadd.f32 %v10122_v35, %v10072_v32  ;;  %v18471_v35 = vld [vmem:[%s20351_s15 + $0xea0] ss:$16 sps:$4 sm:$0xff]  }
0x1097   : > { %14053 = vmatpush1.bf16.msra.mxu0 %v18459_v47  ;;  %14003 = vmatprep.subr.bf16.mxu1 %v18464_v10  ;;  %v10075_v41 = vpop.f32.mrf.mxu1  ;;  %v10534_v47 = vmul.f32 %v10486_v40, %v10150_v52  ;;  %v23836_v40 = vld [vmem:[#allocation51_spill] sm:$0xff] }
0x1098   : > { %14054 = vmatprep.subr.bf16.mxu0 %v18467_v31  ;;  %v10126_v43 = vpop.f32.mrf.mxu0  ;;  %v10200_v34 = vmul.f32 0.044715, %v22884_v53  ;;  %v10076_v8 = vadd.f32 %v10075_v41, %v22860_v3  ;;  %v18474_v41 = vld [vmem:[%s20351_s15 + $0xc80] ss:$16 sps:$4 sm:$0xff]  }
0x1099   : > { %v22893_v44 = vpop.f32.mrf.mxu1  ;;  %v22906_v31 = vpack.c.bf16 %v10550_v62, %v10534_v47 }
0x109a   : > { %v22895_v21 = vpop.f32.mrf.mxu0  ;;  %v10248_v63 = vmul.f32 %v10200_v34, %v22884_v53  ;;  %14004 = vmatpush1.bf16.msra.mxu1 %v18462_v57  ;;  %v22904_v10 = vadd.f32 %v10126_v43, %v10076_v8  ;;  %v6740_v57 = vrot.slane %v22747_v25, %v23836_v40  ;;  %v18477_v43 = vld [vmem:[%s20351_s15 + $0xe80] ss:$16 sps:$4 sm:$0xff]   ;;  %v18482_v34 = vld [vmem:[%s20351_s15 + $0xc64] ss:$16 sps:$4 sm:$0xff]  }
0x109b   : > { %14055 = vmatpush1.bf16.msra.mxu0 %v18465_v6  ;;  %14005 = vmatprep.subr.bf16.mxu1 %v18470_v13  ;;  %v10081_v59 = vpop.f32.mrf.mxu1  ;;  %v18485_v8 = vld [vmem:[%s20351_s15 + $0xe64] ss:$16 sps:$4 sm:$0xff]  }
0x109c   : > { %14056 = vmatprep.subr.bf16.mxu0 %v18473_v11  ;;  %v10132_v32 = vpop.f32.mrf.mxu0  ;;  %v10296_v18 = vmul.f32 %v10248_v63, %v22884_v53  ;;  %13942 = vmatmul.mubr.bf16.gmra.mxu1 %v22898_v55  ;;  %v10216_v6 = vmul.f32 0.044715, %v22904_v10  ;;  %v10074_v11 = vadd.f32 %v10073_v36, %v6740_v57  ;;  %v10082_v47 = vadd.f32 %v10081_v59, %v22860_v3  ;;  %v18480_v36 = vld [vmem:[%s20351_s15 + $0xc60] ss:$16 sps:$4 sm:$0xff]   ;;  %v18491_v40 = vld [vmem:[%s20351_s15 + $0xe44] ss:$16 sps:$4 sm:$0xff]  }
0x109d   : > { %13993 = vmatmul.mubr.bf16.gmra.mxu0 %v22900_v51  ;;  %14033 = vmatprep.mubr.bf16.mxu1 %v22906_v31  ;;  %v10083_v37 = vpop.f32.mrf.mxu1 }
0x109e   : > { %v10134_v46 = vpop.f32.mrf.mxu0  ;;  %14006 = vmatpush1.bf16.msra.mxu1 %v18468_v28  ;;  %v10344_v13 = vadd.f32 %v10296_v18, %v22884_v53  ;;  %v10264_v52 = vmul.f32 %v10216_v6, %v22904_v10  ;;  %v10070_v28 = vadd.f32 %v22862_v24, %v6740_v57  ;;  %v18488_v18 = vld [vmem:[%s20351_s15 + $0xc44] ss:$16 sps:$4 sm:$0xff]   ;;  %v22934_v24 = vadd.f32 %v10132_v32, %v10082_v47 }
0x109f   : > { %14057 = vmatpush1.bf16.msra.mxu0 %v18471_v35  ;;  %14007 = vmatprep.subr.bf16.mxu1 %v18476_v49  ;;  %v10084_v25 = vpop.f32.mrf.mxu1  ;;  %v18483_v49 = vld [vmem:[%s20351_s15 + $0xe60] ss:$16 sps:$4 sm:$0xff]   ;;  %v10230_v37 = vmul.f32 0.044715, %v22767_v38  ;;  %v18494_v32 = vld [vmem:[%s20351_s15 + $0xc24] ss:$16 sps:$4 sm:$0xff]  }
0x10a0   : > { %14058 = vmatprep.subr.bf16.mxu0 %v18479_v48  ;;  %v10135_v62 = vpop.f32.mrf.mxu0  ;;  %v10392_v63 = vmul.f32 0.7978846, %v10344_v13  ;;  %v10312_v35 = vmul.f32 %v10264_v52, %v22904_v10  ;;  %v22929_v48 = vadd.f32 %v22881_v56, %v10074_v11  ;;  %v22937_v59 = vadd.f32 %v22864_v30, %v10070_v28  ;;  %v18486_v56 = vld [vmem:[%s20351_s15 + $0xc40] ss:$16 sps:$4 sm:$0xff]   ;;  %v18497_v30 = vld [vmem:[%s20351_s15 + $0xe24] ss:$16 sps:$4 sm:$0xff]  }
0x10a1   : > { %v18489_v46 = vld [vmem:[%s20351_s15 + $0xe40] ss:$16 sps:$4 sm:$0xff]   ;;  %v10232_v13 = vmul.f32 0.044715, %v22934_v24  ;;  %v10278_v52 = vmul.f32 %v10230_v37, %v22767_v38  ;;  %v10229_v28 = vmul.f32 0.044715, %v22760_v39 }
0x10a2   : > { %14008 = vmatpush1.bf16.msra.mxu1 %v18474_v41  ;;  %v10360_v3 = vadd.f32 %v10312_v35, %v22904_v10  ;;  %19088 = vtanh.f32 %v10392_v63  ;;  %v10215_v41 = vmul.f32 0.044715, %v22929_v48  ;;  %v10199_v11 = vmul.f32 0.044715, %v22937_v59  ;;  %v18492_v25 = vld [vmem:[%s20351_s15 + $0xc20] ss:$16 sps:$4 sm:$0xff]  }
0x10a3   : > { %14059 = vmatpush1.bf16.msra.mxu0 %v18477_v43  ;;  %14009 = vmatprep.subr.bf16.mxu1 %v18482_v34  ;;  %v10080_v43 = vadd.f32 %v22893_v44, %v6740_v57  ;;  %v18495_v62 = vld [vmem:[%s20351_s15 + $0xe20] ss:$16 sps:$4 sm:$0xff]   ;;  %v18500_v34 = vld [vmem:[%s20351_s15 + $0xc04] ss:$16 sps:$4 sm:$0xff]   ;;  %v10280_v47 = vmul.f32 %v10232_v13, %v22934_v24 }
0x10a4   : > { %14060 = vmatprep.subr.bf16.mxu0 %v18485_v8  ;;  %v10408_v6 = vmul.f32 0.7978846, %v10360_v3  ;;  %v10263_v44 = vmul.f32 %v10215_v41, %v22929_v48  ;;  %v18503_v8 = vld [vmem:[%s20351_s15 + $0xe04] ss:$16 sps:$4 sm:$0xff]   ;;  %v10247_v63 = vmul.f32 %v10199_v11, %v22937_v59  ;;  %v18498_v35 = vld [vmem:[%s20351_s15 + $0xc00] ss:$16 sps:$4 sm:$0xff]  }
0x10a5   : > { %v22953_v57 = vadd.f32 %v22895_v21, %v10080_v43  ;;  %v10326_v21 = vmul.f32 %v10278_v52, %v22767_v38  ;;  %v18509_v3 = vld [vmem:[%s20351_s15 + $0xfe4] ss:$16 sps:$4 sm:$0xff]   ;;  %v10328_v37 = vmul.f32 %v10280_v47, %v22934_v24  ;;  %v18504_v41 = vld [vmem:[%s20351_s15 + $0xde0] ss:$16 sps:$4 sm:$0xff]   ;;  %v10168_v47 = vmul.f32 0.5, %v22904_v10 }
0x10a6   : > { %14010 = vmatpush1.bf16.msra.mxu1 %v18480_v36  ;;  %19090 = vtanh.f32 %v10408_v6  ;;  %v18501_v36 = vld [vmem:[%s20351_s15 + $0xe00] ss:$16 sps:$4 sm:$0xff]   ;;  %v18512_v11 = vld [vmem:[%s20351_s15 + $0xdc4] ss:$16 sps:$4 sm:$0xff]  }
0x10a7   : > { %14061 = vmatpush1.bf16.msra.mxu0 %v18483_v49  ;;  %14011 = vmatprep.subr.bf16.mxu1 %v18488_v18  ;;  %v10311_v49 = vmul.f32 %v10263_v44, %v22929_v48  ;;  %v10231_v18 = vmul.f32 0.044715, %v22953_v57  ;;  %v18507_v43 = vld [vmem:[%s20351_s15 + $0xfe0] ss:$16 sps:$4 sm:$0xff]   ;;  %v18515_v52 = vld [vmem:[%s20351_s15 + $0xfc4] ss:$16 sps:$4 sm:$0xff]   ;;  %v10376_v44 = vadd.f32 %v10328_v37, %v22934_v24 }
0x10a8   : > { %14062 = vmatprep.subr.bf16.mxu0 %v18491_v40  ;;  %v18506_v40 = vld [vmem:[%s20351_s15 + $0xde4] ss:$16 sps:$4 sm:$0xff]  }
0x10a9   : > { %v10279_v13 = vmul.f32 %v10231_v18, %v22953_v57 }
0x10aa   : > { %14012 = vmatpush1.bf16.msra.mxu1 %v18486_v56  ;;  %v10295_v56 = vmul.f32 %v10247_v63, %v22937_v59 }
0x10ab   : > { %14063 = vmatpush1.bf16.msra.mxu0 %v18489_v46  ;;  %14013 = vmatprep.subr.bf16.mxu1 %v18494_v32  ;;  %v10277_v46 = vmul.f32 %v10229_v28, %v22760_v39  ;;  %v10374_v32 = vadd.f32 %v10326_v21, %v22767_v38  ;;  %v10327_v18 = vmul.f32 %v10279_v13, %v22953_v57  ;;  %v18527_v13 = vld [vmem:[%s20351_s15 + $0xf84] ss:$16 sps:$4 sm:$0xff]  }
0x10ac   : > { %14064 = vmatprep.subr.bf16.mxu0 %v18497_v30  ;;  %v10359_v30 = vadd.f32 %v10311_v49, %v22929_v48 }
0x10ad   : > { %v10325_v28 = vmul.f32 %v10277_v46, %v22760_v39  ;;  %v10422_v21 = vmul.f32 0.7978846, %v10374_v32  ;;  %v10375_v32 = vadd.f32 %v10327_v18, %v22953_v57  ;;  %v18545_v18 = vld [vmem:[%s20351_s15 + $0xf24] ss:$16 sps:$4 sm:$0xff]  }
0x10ae   : > { %14014 = vmatpush1.bf16.msra.mxu1 %v18492_v25  ;;  %v10407_v49 = vmul.f32 0.7978846, %v10359_v30  ;;  %v18524_v30 = vld [vmem:[%s20351_s15 + $0xd84] ss:$16 sps:$4 sm:$0xff]  }
0x10af   : > { %14065 = vmatpush1.bf16.msra.mxu0 %v18495_v62  ;;  %14015 = vmatprep.subr.bf16.mxu1 %v18500_v34  ;;  %v19089_v6 = vpop.eup %19088  ;;  %v10343_v34 = vadd.f32 %v10295_v56, %v22937_v59  ;;  %v10373_v46 = vadd.f32 %v10325_v28, %v22760_v39  ;;  %19092 = vtanh.f32 %v10422_v21  ;;  %v18539_v28 = vld [vmem:[%s20351_s15 + $0xf44] ss:$16 sps:$4 sm:$0xff]  }
0x10b0   : > { %14066 = vmatprep.subr.bf16.mxu0 %v18503_v8  ;;  %v10488_v25 = vadd.f32 1.0, %v19089_v6  ;;  %v10152_v8 = vmul.f32 0.5, %v22884_v53  ;;  %v10424_v6 = vmul.f32 0.7978846, %v10376_v44  ;;  %19094 = vtanh.f32 %v10407_v49  ;;  %v18530_v44 = vld [vmem:[%s20351_s15 + $0xd64] ss:$16 sps:$4 sm:$0xff]  }
0x10b1   : > { %v10391_v37 = vmul.f32 0.7978846, %v10343_v34  ;;  %v18533_v34 = vld [vmem:[%s20351_s15 + $0xf64] ss:$16 sps:$4 sm:$0xff]  }
0x10b2   : > { %14016 = vmatpush1.bf16.msra.mxu1 %v18498_v35  ;;  %v18510_v35 = vld [vmem:[%s20351_s15 + $0xdc0] ss:$16 sps:$4 sm:$0xff]   ;;  %v10536_v53 = vmul.f32 %v10488_v25, %v10152_v8  ;;  %19096 = vtanh.f32 %v10424_v6  ;;  %v18542_v49 = vld [vmem:[%s20351_s15 + $0xd24] ss:$16 sps:$4 sm:$0xff]  }
0x10b3   : > { %14067 = vmatpush1.bf16.msra.mxu0 %v18501_v36  ;;  %14017 = vmatprep.subr.bf16.mxu1 %v18506_v40  ;;  %v19091_v62 = vpop.eup %19090  ;;  %v18513_v36 = vld [vmem:[%s20351_s15 + $0xfc0] ss:$16 sps:$4 sm:$0xff]   ;;  %v18518_v40 = vld [vmem:[%s20351_s15 + $0xda4] ss:$16 sps:$4 sm:$0xff]   ;;  %19098 = vtanh.f32 %v10391_v37 }
0x10b4   : > { %14068 = vmatprep.subr.bf16.mxu0 %v18509_v3  ;;  %v10504_v63 = vadd.f32 1.0, %v19091_v62  ;;  %v18521_v3 = vld [vmem:[%s20351_s15 + $0xfa4] ss:$16 sps:$4 sm:$0xff]   ;;  %v18525_v25 = vld [vmem:[%s20351_s15 + $0xf80] ss:$16 sps:$4 sm:$0xff]  }
0x10b5   : > { %v10423_v62 = vmul.f32 0.7978846, %v10375_v32  ;;  %v18528_v8 = vld [vmem:[%s20351_s15 + $0xd60] ss:$16 sps:$4 sm:$0xff]  }
0x10b6   : > { %14018 = vmatpush2.bf16.msra.mxu1 %v18504_v41  ;;  %v10552_v10 = vmul.f32 %v10504_v63, %v10168_v47  ;;  %v18516_v41 = vld [vmem:[%s20351_s15 + $0xda0] ss:$16 sps:$4 sm:$0xff]   ;;  %v18536_v63 = vld [vmem:[%s20351_s15 + $0xd44] ss:$16 sps:$4 sm:$0xff]  }
0x10b7   : > { %14069 = vmatpush2.bf16.msra.mxu0 %v18507_v43  ;;  %14019 = vmatprep.subr.bf16.mxu1 %v18512_v11  ;;  %v18519_v43 = vld [vmem:[%s20351_s15 + $0xfa0] ss:$16 sps:$4 sm:$0xff]   ;;  %v10421_v11 = vmul.f32 0.7978846, %v10373_v46  ;;  %v18548_v46 = vld [vmem:[%s20351_s15 + $0xd04] ss:$16 sps:$4 sm:$0xff]  }
0x10b8   : > { %14070 = vmatprep.subr.bf16.mxu0 %v18515_v52  ;;  %v22987_v56 = vpack.c.bf16 %v10552_v10, %v10536_v53  ;;  %v18522_v52 = vld [vmem:[%s20351_s15 + $0xd80] ss:$16 sps:$4 sm:$0xff]  }
0x10b9   : > { %v18531_v47 = vld [vmem:[%s20351_s15 + $0xf60] ss:$16 sps:$4 sm:$0xff]   ;;  %19100 = vtanh.f32 %v10421_v11  ;;  %v10167_v11 = vmul.f32 0.5, %v22929_v48  ;;  %v18557_v48 = vld [vmem:[%s20351_s15 + $0x2ec] ss:$16 sps:$4 sm:$0xff]  }
0x10ba   : > { %14020 = vmatpush2.bf16.msra.mxu1 %v18510_v35  ;;  %14084 = vmatprep.mubr.bf16.mxu0 %v22987_v56  ;;  %19102 = vtanh.f32 %v10423_v62  ;;  %v18534_v35 = vld [vmem:[%s20351_s15 + $0xd40] ss:$16 sps:$4 sm:$0xff]   ;;  %v10182_v62 = vmul.f32 0.5, %v22767_v38 }
0x10bb   : > { %14071 = vmatpush2.bf16.msra.mxu0 %v18513_v36  ;;  %14021 = vmatprep.subr.bf16.mxu1 %v18518_v40  ;;  %v18537_v36 = vld [vmem:[%s20351_s15 + $0xf40] ss:$16 sps:$4 sm:$0xff]  }
0x10bc   : > { %14072 = vmatprep.subr.bf16.mxu0 %v18521_v3  ;;  %v19093_v21 = vpop.eup %19092  ;;  %v18540_v10 = vld [vmem:[%s20351_s15 + $0xd20] ss:$16 sps:$4 sm:$0xff]  }
0x10bd   : > { %v19095_v40 = vpop.eup %19094  ;;  %v18543_v6 = vld [vmem:[%s20351_s15 + $0xf20] ss:$16 sps:$4 sm:$0xff]   ;;  %v10518_v32 = vadd.f32 1.0, %v19093_v21 }
0x10be   : > { %14022 = vmatpush2.bf16.msra.mxu1 %v18516_v41  ;;  %v10503_v37 = vadd.f32 1.0, %v19095_v40  ;;  %v18551_v41 = vld [vmem:[%s20351_s15 + $0xf04] ss:$16 sps:$4 sm:$0xff]  }
0x10bf   : > { %14073 = vmatpush2.bf16.msra.mxu0 %v18519_v43  ;;  %14023 = vmatprep.subr.bf16.mxu1 %v18524_v30  ;;  %v19097_v3 = vpop.eup %19096  ;;  %v11113_v43 = vld [vmem:[%s23837_s1] sm:$0xf] }
0x10c0   : > { %14074 = vmatprep.subr.bf16.mxu0 %v18527_v13  ;;  %v19099_v53 = vpop.eup %19098  ;;  %v10520_v30 = vadd.f32 1.0, %v19097_v3  ;;  %v23024_v38 = vrot.slane %v11113_v43, %v20591_v60  ;;  %v18552_v3 = vld [vmem:[%s20351_s15 + $0xe8] ss:$16 sps:$4 sm:$0xff]  }
0x10c1   : > { %v10487_v13 = vadd.f32 1.0, %v19099_v53  ;;  %v18555_v53 = vld [vmem:[%s20351_s15 + $0x2e8] ss:$16 sps:$4 sm:$0xff]  }
0x10c2   : > { %14024 = vmatpush2.bf16.msra.mxu1 %v18522_v52  ;;  %v18546_v52 = vld [vmem:[%s20351_s15 + $0xd00] ss:$16 sps:$4 sm:$0xff]  }
0x10c3   : > { %14075 = vmatpush2.bf16.msra.mxu0 %v18525_v25  ;;  %14025 = vmatprep.subr.bf16.mxu1 %v18530_v44  ;;  %v18549_v25 = vld [vmem:[%s20351_s15 + $0xf00] ss:$16 sps:$4 sm:$0xff]   ;;  %v10184_v44 = vmul.f32 0.5, %v22934_v24 }
0x10c4   : > { %14076 = vmatprep.subr.bf16.mxu0 %v18533_v34 }
0x10c5   : > { %v10568_v21 = vmul.f32 %v10520_v30, %v10184_v44 }
0x10c6   : > { %14026 = vmatpush2.bf16.msra.mxu1 %v18528_v8  ;;  %v19101_v34 = vpop.eup %19100  ;;  %v10151_v8 = vmul.f32 0.5, %v22937_v59 }
0x10c7   : > { %14077 = vmatpush2.bf16.msra.mxu0 %v18531_v47  ;;  %14027 = vmatprep.subr.bf16.mxu1 %v18536_v63  ;;  %v10551_v47 = vmul.f32 %v10503_v37, %v10167_v11  ;;  %v11118_v63 = vrot.slane %v11113_v43, %v20597_v1  ;;  %v23032_v37 = vpack.c.bf16 %v10568_v21, %v10568_v21  ;;  %v18563_v43 = vld [vmem:[%s20351_s15 + $0x2cc] ss:$16 sps:$4 sm:$0xff]   ;;  %v10183_v11 = vmul.f32 0.5, %v22953_v57 }
0x10c8   : > { %14078 = vmatprep.subr.bf16.mxu0 %v18539_v28  ;;  %v18554_v28 = vld [vmem:[%s20351_s15 + $0xec] ss:$16 sps:$4 sm:$0xff]  }
0x10ca   : > { %14028 = vmatpush2.bf16.msra.mxu1 %v18534_v35  ;;  %v19103_v35 = vpop.eup %19102 }
0x10cb   : > { %14079 = vmatpush2.bf16.msra.mxu0 %v18537_v36  ;;  %14029 = vmatprep.subr.bf16.mxu1 %v18542_v49  ;;  %v10566_v36 = vmul.f32 %v10518_v32, %v10182_v62  ;;  %v10535_v49 = vmul.f32 %v10487_v13, %v10151_v8  ;;  %v10181_v32 = vmul.f32 0.5, %v22760_v39  ;;  %v18561_v8 = vld [vmem:[%s20351_s15 + $0x2c8] ss:$16 sps:$4 sm:$0xff]  }
0x10cc   : > { %14080 = vmatprep.subr.bf16.mxu0 %v18545_v18  ;;  %v10517_v18 = vadd.f32 1.0, %v19101_v34  ;;  %v18558_v34 = vld [vmem:[%s20351_s15 + $0xc8] ss:$16 sps:$4 sm:$0xff]  }
0x10cd   : > { %v23026_v40 = vpack.c.bf16 %v10551_v47, %v10535_v49 }
0x10ce   : > { %14030 = vmatpush2.bf16.msra.mxu1 %v18540_v10  ;;  %v10519_v10 = vadd.f32 1.0, %v19103_v35  ;;  %v10565_v39 = vmul.f32 %v10517_v18, %v10181_v32  ;;  %v18569_v35 = vld [vmem:[%s20351_s15 + $0x2ac] ss:$16 sps:$4 sm:$0xff]  }
0x10cf   : > { %14081 = vmatpush2.bf16.msra.mxu0 %v18543_v6  ;;  %14031 = vmatprep.subr.bf16.mxu1 %v18548_v46  ;;  %v23030_v6 = vpack.c.bf16 %v10566_v36, %v10566_v36 }
0x10d0   : > { %14082 = vmatprep.subr.bf16.mxu0 %v18551_v41  ;;  %v18560_v41 = vld [vmem:[%s20351_s15 + $0xcc] ss:$16 sps:$4 sm:$0xff]   ;;  %v10567_v47 = vmul.f32 %v10519_v10, %v10183_v11  ;;  %v18567_v10 = vld [vmem:[%s20351_s15 + $0x2a8] ss:$16 sps:$4 sm:$0xff]  }
0x10d2   : > { %14032 = vmatpush2.bf16.msra.mxu1 %v18546_v52  ;;  %v13729_v24 = vpop.f32.mrf.mxu1 }
0x10d3   : > { %14083 = vmatpush2.bf16.msra.mxu0 %v18549_v25  ;;  %v13780_v59 = vpop.f32.mrf.mxu0  ;;  %v13730_v1 = vadd.f32 %v13729_v24, %v11118_v63  ;;  %14103 = vmatprep.subr.bf16.mxu1 %v18554_v28 }
0x10d4   : > { %14154 = vmatprep.subr.bf16.mxu0 %v18557_v48  ;;  %v13731_v60 = vpop.f32.mrf.mxu1  ;;  %v18566_v48 = vld [vmem:[%s20351_s15 + $0xac] ss:$16 sps:$4 sm:$0xff]  }
0x10d5   : > { %v13782_v46 = vpop.f32.mrf.mxu0  ;;  %v23037_v30 = vadd.f32 %v13780_v59, %v13730_v1  ;;  %14034 = vmatmul.mubr.bf16.vlgmr.msra.gmra.mxu1 %v22819_v50  ;;  %v13732_v13 = vadd.f32 %v13731_v60, %v23024_v38  ;;  %v23054_v59 = vpack.c.bf16 %v10565_v39, %v10565_v39  ;;  %v18573_v39 = vld [vmem:[%s20351_s15 + $0x288] ss:$16 sps:$4 sm:$0xff]  }
0x10d6   : > { %14085 = vmatmul.mubr.bf16.vlgmr.msra.gmra.mxu0 %v23026_v40  ;;  %14043 = vmatprep.mubr.bf16.mxu1 %v23030_v6  ;;  %v13733_v52 = vpop.f32.mrf.mxu1 }
0x10d7   : > { %14094 = vmatprep.mubr.bf16.mxu0 %v23032_v37  ;;  %v13784_v25 = vpop.f32.mrf.mxu0  ;;  %14104 = vmatpush1.bf16.msra.mxu1 %v18552_v3  ;;  %v23045_v62 = vadd.f32 %v13782_v46, %v13732_v13  ;;  %v13734_v44 = vadd.f32 %v13733_v52, %v11118_v63  ;;  %v23058_v3 = vpack.c.bf16 %v10567_v47, %v10567_v47  ;;  %v18584_v47 = vld [vmem:[%s20351_s15 + $0x4c] ss:$16 sps:$4 sm:$0xff]  }
0x10d8   : > { %14155 = vmatpush1.bf16.msra.mxu0 %v18555_v53  ;;  %14105 = vmatprep.subr.bf16.mxu1 %v18560_v41  ;;  %v13735_v57 = vpop.f32.mrf.mxu1  ;;  %v18564_v53 = vld [vmem:[%s20351_s15 + $0xa8] ss:$16 sps:$4 sm:$0xff]   ;;  %v18572_v41 = vld [vmem:[%s20351_s15 + $0x8c] ss:$16 sps:$4 sm:$0xff]  }
0x10d9   : > { %14156 = vmatprep.subr.bf16.mxu0 %v18563_v43  ;;  %v13786_v28 = vpop.f32.mrf.mxu0  ;;  %v23051_v36 = vadd.f32 %v13784_v25, %v13734_v44  ;;  %v13736_v21 = vadd.f32 %v13735_v57, %v23024_v38  ;;  %v18575_v43 = vld [vmem:[%s20351_s15 + $0x28c] ss:$16 sps:$4 sm:$0xff]   ;;  %v18570_v25 = vld [vmem:[%s20351_s15 + $0x88] ss:$16 sps:$4 sm:$0xff]  }
0x10da   : > { %v13739_v49 = vpop.f32.mrf.mxu1  ;;  %v18578_v44 = vld [vmem:[%s20351_s15 + $0x6c] ss:$16 sps:$4 sm:$0xff]  }
0x10db   : > { %v13790_v24 = vpop.f32.mrf.mxu0  ;;  %14106 = vmatpush1.bf16.msra.mxu1 %v18558_v34  ;;  %v23056_v18 = vadd.f32 %v13786_v28, %v13736_v21  ;;  %v13740_v1 = vadd.f32 %v13739_v49, %v11118_v63  ;;  %v18576_v34 = vld [vmem:[%s20351_s15 + $0x68] ss:$16 sps:$4 sm:$0xff]   ;;  %v18587_v57 = vld [vmem:[%s20351_s15 + $0x24c] ss:$16 sps:$4 sm:$0xff]  }
0x10dc   : > { %14157 = vmatpush1.bf16.msra.mxu0 %v18561_v8  ;;  %14107 = vmatprep.subr.bf16.mxu1 %v18566_v48  ;;  %v13741_v60 = vpop.f32.mrf.mxu1  ;;  %v18579_v8 = vld [vmem:[%s20351_s15 + $0x268] ss:$16 sps:$4 sm:$0xff]   ;;  %v18593_v21 = vld [vmem:[%s20351_s15 + $0x22c] ss:$16 sps:$4 sm:$0xff]  }
0x10dd   : > { %14158 = vmatprep.subr.bf16.mxu0 %v18569_v35  ;;  %v13792_v46 = vpop.f32.mrf.mxu0  ;;  %v23064_v32 = vadd.f32 %v13790_v24, %v13740_v1  ;;  %14044 = vmatmul.mubr.bf16.gmra.mxu1 %v23054_v59  ;;  %v13742_v63 = vadd.f32 %v13741_v60, %v23024_v38  ;;  %v18582_v28 = vld [vmem:[%s20351_s15 + $0x48] ss:$16 sps:$4 sm:$0xff]   ;;  %v18590_v35 = vld [vmem:[%s20351_s15 + $0x2c] ss:$16 sps:$4 sm:$0xff]  }
0x10de   : > { %14095 = vmatmul.mubr.bf16.gmra.mxu0 %v23058_v3  ;;  %14135 = vmatprep.mubr.bf16.mxu1 %v22444_v22  ;;  %v13743_v13 = vpop.f32.mrf.mxu1  ;;  %v18585_v48 = vld [vmem:[%s20351_s15 + $0x248] ss:$16 sps:$4 sm:$0xff]   ;;  %v18596_v1 = vld [vmem:[%s20351_s15 + $0xc] ss:$16 sps:$4 sm:$0xff]  }
0x10df   : > { %14186 = vmatprep.mubr.bf16.mxu0 %v22449_v5  ;;  %v13794_v11 = vpop.f32.mrf.mxu0  ;;  %14108 = vmatpush1.bf16.msra.mxu1 %v18564_v53  ;;  %v23071_v52 = vadd.f32 %v13792_v46, %v13742_v63  ;;  %v18581_v5 = vld [vmem:[%s20351_s15 + $0x26c] ss:$16 sps:$4 sm:$0xff]   ;;  %v18588_v49 = vld [vmem:[%s20351_s15 + $0x28] ss:$16 sps:$4 sm:$0xff]  }
0x10e0   : > { %14159 = vmatpush1.bf16.msra.mxu0 %v18567_v10  ;;  %14109 = vmatprep.subr.bf16.mxu1 %v18572_v41  ;;  %v13744_v38 = vpop.f32.mrf.mxu1  ;;  %v18591_v24 = vld [vmem:[%s20351_s15 + $0x228] ss:$16 sps:$4 sm:$0xff]   ;;  %v18599_v53 = vld [vmem:[%s20351_s15 + $0x20c] ss:$16 sps:$4 sm:$0xff]  }
0x10e1   : > { %14160 = vmatprep.subr.bf16.mxu0 %v18575_v43  ;;  %v13795_v22 = vpop.f32.mrf.mxu0  ;;  %v18594_v10 = vld [vmem:[%s20351_s15 + $0x8] ss:$16 sps:$4 sm:$0xff]   ;;  %v18602_v46 = vld [vmem:[%s20351_s15 + $0x1ec] ss:$16 sps:$4 sm:$0xff]  }
0x10e2   : > { %v18597_v60 = vld [vmem:[%s20351_s15 + $0x208] ss:$16 sps:$4 sm:$0xff]   ;;  %v18605_v41 = vld [vmem:[%s20351_s15 + $0x3ec] ss:$16 sps:$4 sm:$0xff]  }
0x10e3   : > { %14110 = vmatpush1.bf16.msra.mxu1 %v18570_v25  ;;  %v18600_v43 = vld [vmem:[%s20351_s15 + $0x1e8] ss:$16 sps:$4 sm:$0xff]   ;;  %v18608_v13 = vld [vmem:[%s20351_s15 + $0x1cc] ss:$16 sps:$4 sm:$0xff]  }
0x10e4   : > { %14161 = vmatpush1.bf16.msra.mxu0 %v18573_v39  ;;  %14111 = vmatprep.subr.bf16.mxu1 %v18578_v44  ;;  %v18603_v63 = vld [vmem:[%s20351_s15 + $0x3e8] ss:$16 sps:$4 sm:$0xff]   ;;  %v18611_v11 = vld [vmem:[%s20351_s15 + $0x3cc] ss:$16 sps:$4 sm:$0xff]  }
0x10e5   : > { %14162 = vmatprep.subr.bf16.mxu0 %v18581_v5  ;;  %v18606_v25 = vld [vmem:[%s20351_s15 + $0x1c8] ss:$16 sps:$4 sm:$0xff]   ;;  %v18614_v38 = vld [vmem:[%s20351_s15 + $0x1ac] ss:$16 sps:$4 sm:$0xff]  }
0x10e6   : > { %v18609_v39 = vld [vmem:[%s20351_s15 + $0x3c8] ss:$16 sps:$4 sm:$0xff]   ;;  %v18617_v22 = vld [vmem:[%s20351_s15 + $0x3ac] ss:$16 sps:$4 sm:$0xff]  }
0x10e7   : > { %14112 = vmatpush1.bf16.msra.mxu1 %v18576_v34  ;;  %v18612_v44 = vld [vmem:[%s20351_s15 + $0x1a8] ss:$16 sps:$4 sm:$0xff]   ;;  %v18620_v34 = vld [vmem:[%s20351_s15 + $0x18c] ss:$16 sps:$4 sm:$0xff]  }
0x10e8   : > { %14163 = vmatpush1.bf16.msra.mxu0 %v18579_v8  ;;  %14113 = vmatprep.subr.bf16.mxu1 %v18584_v47  ;;  %v18615_v5 = vld [vmem:[%s20351_s15 + $0x3a8] ss:$16 sps:$4 sm:$0xff]   ;;  %v18623_v8 = vld [vmem:[%s20351_s15 + $0x38c] ss:$16 sps:$4 sm:$0xff]  }
0x10e9   : > { %14164 = vmatprep.subr.bf16.mxu0 %v18587_v57  ;;  %v18618_v47 = vld [vmem:[%s20351_s15 + $0x188] ss:$16 sps:$4 sm:$0xff]  }
0x10ea   : > { %v18621_v57 = vld [vmem:[%s20351_s15 + $0x388] ss:$16 sps:$4 sm:$0xff]  }
0x10eb   : > { %14114 = vmatpush1.bf16.msra.mxu1 %v18582_v28  ;;  %v18626_v28 = vld [vmem:[%s20351_s15 + $0x16c] ss:$16 sps:$4 sm:$0xff]  }
0x10ec   : > { %14165 = vmatpush1.bf16.msra.mxu0 %v18585_v48  ;;  %14115 = vmatprep.subr.bf16.mxu1 %v18590_v35  ;;  %v18629_v48 = vld [vmem:[%s20351_s15 + $0x36c] ss:$16 sps:$4 sm:$0xff]   ;;  %v18624_v35 = vld [vmem:[%s20351_s15 + $0x168] ss:$16 sps:$4 sm:$0xff]  }
0x10ed   : > { %14166 = vmatprep.subr.bf16.mxu0 %v18593_v21  ;;  %v18627_v21 = vld [vmem:[%s20351_s15 + $0x368] ss:$16 sps:$4 sm:$0xff]  }
0x10ef   : > { %14116 = vmatpush1.bf16.msra.mxu1 %v18588_v49  ;;  %v18632_v49 = vld [vmem:[%s20351_s15 + $0x14c] ss:$16 sps:$4 sm:$0xff]  }
0x10f0   : > { %14167 = vmatpush1.bf16.msra.mxu0 %v18591_v24  ;;  %14117 = vmatprep.subr.bf16.mxu1 %v18596_v1  ;;  %v18635_v24 = vld [vmem:[%s20351_s15 + $0x34c] ss:$16 sps:$4 sm:$0xff]   ;;  %v18630_v1 = vld [vmem:[%s20351_s15 + $0x148] ss:$16 sps:$4 sm:$0xff]  }
0x10f1   : > { %14168 = vmatprep.subr.bf16.mxu0 %v18599_v53  ;;  %v18633_v53 = vld [vmem:[%s20351_s15 + $0x348] ss:$16 sps:$4 sm:$0xff]  }
0x10f3   : > { %14118 = vmatpush1.bf16.msra.mxu1 %v18594_v10  ;;  %v18638_v10 = vld [vmem:[%s20351_s15 + $0x12c] ss:$16 sps:$4 sm:$0xff]  }
0x10f4   : > { %14169 = vmatpush1.bf16.msra.mxu0 %v18597_v60  ;;  %14119 = vmatprep.subr.bf16.mxu1 %v18602_v46  ;;  %v18641_v60 = vld [vmem:[%s20351_s15 + $0x32c] ss:$16 sps:$4 sm:$0xff]   ;;  %v18636_v46 = vld [vmem:[%s20351_s15 + $0x128] ss:$16 sps:$4 sm:$0xff]  }
0x10f5   : > { %14170 = vmatprep.subr.bf16.mxu0 %v18605_v41  ;;  %v18639_v41 = vld [vmem:[%s20351_s15 + $0x328] ss:$16 sps:$4 sm:$0xff]  }
0x10f7   : > { %14120 = vmatpush2.bf16.msra.mxu1 %v18600_v43  ;;  %v18644_v43 = vld [vmem:[%s20351_s15 + $0x10c] ss:$16 sps:$4 sm:$0xff]  }
0x10f8   : > { %14171 = vmatpush2.bf16.msra.mxu0 %v18603_v63  ;;  %14121 = vmatprep.subr.bf16.mxu1 %v18608_v13  ;;  %v18647_v63 = vld [vmem:[%s20351_s15 + $0x30c] ss:$16 sps:$4 sm:$0xff]   ;;  %v18642_v13 = vld [vmem:[%s20351_s15 + $0x108] ss:$16 sps:$4 sm:$0xff]  }
0x10f9   : > { %14172 = vmatprep.subr.bf16.mxu0 %v18611_v11  ;;  %v18645_v11 = vld [vmem:[%s20351_s15 + $0x308] ss:$16 sps:$4 sm:$0xff]  }
0x10fb   : > { %14122 = vmatpush2.bf16.msra.mxu1 %v18606_v25  ;;  %v18650_v25 = vld [vmem:[%s20351_s15 + $0x4ec] ss:$16 sps:$4 sm:$0xff]  }
0x10fc   : > { %14173 = vmatpush2.bf16.msra.mxu0 %v18609_v39  ;;  %14123 = vmatprep.subr.bf16.mxu1 %v18614_v38  ;;  %v18653_v39 = vld [vmem:[%s20351_s15 + $0x6ec] ss:$16 sps:$4 sm:$0xff]  }
0x10fd   : > { %14174 = vmatprep.subr.bf16.mxu0 %v18617_v22 }
0x10ff   : > { %14124 = vmatpush2.bf16.msra.mxu1 %v18612_v44 }
0x1100   : > { %14175 = vmatpush2.bf16.msra.mxu0 %v18615_v5  ;;  %14125 = vmatprep.subr.bf16.mxu1 %v18620_v34  ;;  %v18648_v5 = vld [vmem:[%s20351_s15 + $0x4e8] ss:$16 sps:$4 sm:$0xff]  }
0x1101   : > { %14176 = vmatprep.subr.bf16.mxu0 %v18623_v8  ;;  %v18651_v34 = vld [vmem:[%s20351_s15 + $0x6e8] ss:$16 sps:$4 sm:$0xff]  }
0x1103   : > { %14126 = vmatpush2.bf16.msra.mxu1 %v18618_v47 }
0x1104   : > { %14177 = vmatpush2.bf16.msra.mxu0 %v18621_v57  ;;  %14127 = vmatprep.subr.bf16.mxu1 %v18626_v28  ;;  %v18656_v57 = vld [vmem:[%s20351_s15 + $0x4cc] ss:$16 sps:$4 sm:$0xff]  }
0x1105   : > { %14178 = vmatprep.subr.bf16.mxu0 %v18629_v48  ;;  %v18659_v28 = vld [vmem:[%s20351_s15 + $0x6cc] ss:$16 sps:$4 sm:$0xff]  }
0x1107   : > { %14128 = vmatpush2.bf16.msra.mxu1 %v18624_v35 }
0x1108   : > { %14179 = vmatpush2.bf16.msra.mxu0 %v18627_v21  ;;  %14129 = vmatprep.subr.bf16.mxu1 %v18632_v49 }
0x1109   : > { %14180 = vmatprep.subr.bf16.mxu0 %v18635_v24 }
0x110b   : > { %14130 = vmatpush2.bf16.msra.mxu1 %v18630_v1  ;;  %v18654_v1 = vld [vmem:[%s20351_s15 + $0x4c8] ss:$16 sps:$4 sm:$0xff]  }
0x110c   : > { %14181 = vmatpush2.bf16.msra.mxu0 %v18633_v53  ;;  %14131 = vmatprep.subr.bf16.mxu1 %v18638_v10  ;;  %v18662_v53 = vld [vmem:[%s20351_s15 + $0x4ac] ss:$16 sps:$4 sm:$0xff]  }
0x110d   : > { %14182 = vmatprep.subr.bf16.mxu0 %v18641_v60 }
0x110f   : > { %14132 = vmatpush2.bf16.msra.mxu1 %v18636_v46 }
0x1110   : > { %14183 = vmatpush2.bf16.msra.mxu0 %v18639_v41  ;;  %14133 = vmatprep.subr.bf16.mxu1 %v18644_v43  ;;  %v18660_v43 = vld [vmem:[%s20351_s15 + $0x4a8] ss:$16 sps:$4 sm:$0xff]  }
0x1111   : > { %14184 = vmatprep.subr.bf16.mxu0 %v18647_v63  ;;  %v18663_v63 = vld [vmem:[%s20351_s15 + $0x6a8] ss:$16 sps:$4 sm:$0xff]  }
0x1113   : > { %14134 = vmatpush2.bf16.msra.mxu1 %v18642_v13  ;;  %v13831_v38 = vpop.f32.mrf.mxu1 }
0x1114   : > { %14185 = vmatpush2.bf16.msra.mxu0 %v18645_v11  ;;  %v13882_v22 = vpop.f32.mrf.mxu0  ;;  %v13832_v44 = vadd.f32 %v13831_v38, %v23037_v30  ;;  %14205 = vmatprep.subr.bf16.mxu1 %v18650_v25  ;;  %v18668_v25 = vld [vmem:[%s20351_s15 + $0x48c] ss:$16 sps:$4 sm:$0xff]  }
0x1115   : > { %14256 = vmatprep.subr.bf16.mxu0 %v18653_v39  ;;  %v13833_v8 = vpop.f32.mrf.mxu1  ;;  %v18671_v39 = vld [vmem:[%s20351_s15 + $0x68c] ss:$16 sps:$4 sm:$0xff]  }
0x1116   : > { %v13884_v47 = vpop.f32.mrf.mxu0  ;;  %v23130_v48 = vadd.f32 %v13882_v22, %v13832_v44  ;;  %14136 = vmatmul.mubr.bf16.vlgmr.msra.gmra.mxu1 %v21952_v20  ;;  %v13834_v35 = vadd.f32 %v13833_v8, %v23045_v62  ;;  %v18657_v20 = vld [vmem:[%s20351_s15 + $0x6c8] ss:$16 sps:$4 sm:$0xff]  }
0x1117   : > { %14187 = vmatmul.mubr.bf16.vlgmr.msra.gmra.mxu0 %v22058_v54  ;;  %14145 = vmatprep.mubr.bf16.mxu1 %v22554_v29  ;;  %v13835_v30 = vpop.f32.mrf.mxu1  ;;  %v18665_v29 = vld [vmem:[%s20351_s15 + $0x6ac] ss:$16 sps:$4 sm:$0xff]   ;;  %v18675_v8 = vld [vmem:[%s20351_s15 + $0x668] ss:$16 sps:$4 sm:$0xff]  }
0x1118   : > { %14196 = vmatprep.mubr.bf16.mxu0 %v22556_v45  ;;  %v13886_v21 = vpop.f32.mrf.mxu0  ;;  %14206 = vmatpush1.bf16.msra.mxu1 %v18648_v5  ;;  %v23137_v49 = vadd.f32 %v13884_v47, %v13834_v35  ;;  %v13836_v24 = vadd.f32 %v13835_v30, %v23051_v36  ;;  %v18669_v5 = vld [vmem:[%s20351_s15 + $0x688] ss:$16 sps:$4 sm:$0xff]   ;;  %v18680_v47 = vld [vmem:[%s20351_s15 + $0x44c] ss:$16 sps:$4 sm:$0xff]  }
0x1119   : > { %14257 = vmatpush1.bf16.msra.mxu0 %v18651_v34  ;;  %14207 = vmatprep.subr.bf16.mxu1 %v18656_v57  ;;  %v13837_v54 = vpop.f32.mrf.mxu1  ;;  %v18672_v34 = vld [vmem:[%s20351_s15 + $0x468] ss:$16 sps:$4 sm:$0xff]   ;;  %v18683_v57 = vld [vmem:[%s20351_s15 + $0x64c] ss:$16 sps:$4 sm:$0xff]  }
0x111a   : > { %14258 = vmatprep.subr.bf16.mxu0 %v18659_v28  ;;  %v13888_v62 = vpop.f32.mrf.mxu0  ;;  %v23144_v45 = vadd.f32 %v13886_v21, %v13836_v24  ;;  %v13838_v10 = vadd.f32 %v13837_v54, %v23056_v18  ;;  %v18678_v28 = vld [vmem:[%s20351_s15 + $0x448] ss:$16 sps:$4 sm:$0xff]   ;;  %v18686_v30 = vld [vmem:[%s20351_s15 + $0x42c] ss:$16 sps:$4 sm:$0xff]  }
0x111b   : > { %v13841_v60 = vpop.f32.mrf.mxu1  ;;  %v18681_v35 = vld [vmem:[%s20351_s15 + $0x648] ss:$16 sps:$4 sm:$0xff]   ;;  %v18689_v21 = vld [vmem:[%s20351_s15 + $0x62c] ss:$16 sps:$4 sm:$0xff]  }
0x111c   : > { %v13892_v46 = vpop.f32.mrf.mxu0  ;;  %14208 = vmatpush1.bf16.msra.mxu1 %v18654_v1  ;;  %v23147_v36 = vadd.f32 %v13888_v62, %v13838_v10  ;;  %v13842_v41 = vadd.f32 %v13841_v60, %v23064_v32  ;;  %v18684_v24 = vld [vmem:[%s20351_s15 + $0x428] ss:$16 sps:$4 sm:$0xff]   ;;  %v18695_v54 = vld [vmem:[%s20351_s15 + $0x60c] ss:$16 sps:$4 sm:$0xff]  }
0x111d   : > { %14259 = vmatpush1.bf16.msra.mxu0 %v18657_v20  ;;  %14209 = vmatprep.subr.bf16.mxu1 %v18662_v53  ;;  %v13843_v13 = vpop.f32.mrf.mxu1  ;;  %v18687_v1 = vld [vmem:[%s20351_s15 + $0x628] ss:$16 sps:$4 sm:$0xff]   ;;  %v18692_v20 = vld [vmem:[%s20351_s15 + $0x40c] ss:$16 sps:$4 sm:$0xff]  }
0x111e   : > { %14260 = vmatprep.subr.bf16.mxu0 %v18665_v29  ;;  %v13894_v11 = vpop.f32.mrf.mxu0  ;;  %v23154_v38 = vadd.f32 %v13892_v46, %v13842_v41  ;;  %14146 = vmatmul.mubr.bf16.gmra.mxu1 %v22586_v14  ;;  %v13844_v18 = vadd.f32 %v13843_v13, %v23071_v52  ;;  %v18666_v14 = vld [vmem:[%s20351_s15 + $0x488] ss:$16 sps:$4 sm:$0xff]   ;;  %v18674_v52 = vld [vmem:[%s20351_s15 + $0x46c] ss:$16 sps:$4 sm:$0xff]  }
0x111f   : > { %14197 = vmatmul.mubr.bf16.gmra.mxu0 %v22588_v27  ;;  %14237 = vmatprep.mubr.bf16.mxu1 %v22208_v61  ;;  %v13845_v32 = vpop.f32.mrf.mxu1  ;;  %v18690_v62 = vld [vmem:[%s20351_s15 + $0x408] ss:$16 sps:$4 sm:$0xff]   ;;  %v18698_v29 = vld [vmem:[%s20351_s15 + $0x5ec] ss:$16 sps:$4 sm:$0xff]  }
0x1120   : > { %14288 = vmatprep.mubr.bf16.mxu0 %v22375_v7  ;;  %v13896_v22 = vpop.f32.mrf.mxu0  ;;  %14210 = vmatpush1.bf16.msra.mxu1 %v18660_v43  ;;  %v23161_v44 = vadd.f32 %v13894_v11, %v13844_v18  ;;  %v18677_v7 = vld [vmem:[%s20351_s15 + $0x66c] ss:$16 sps:$4 sm:$0xff]   ;;  %v18693_v53 = vld [vmem:[%s20351_s15 + $0x608] ss:$16 sps:$4 sm:$0xff]  }
0x1121   : > { %14261 = vmatpush1.bf16.msra.mxu0 %v18663_v63  ;;  %14211 = vmatprep.subr.bf16.mxu1 %v18668_v25  ;;  %v13846_v27 = vpop.f32.mrf.mxu1  ;;  %v18701_v10 = vld [vmem:[%s20351_s15 + $0x7ec] ss:$16 sps:$4 sm:$0xff]   ;;  %v18696_v60 = vld [vmem:[%s20351_s15 + $0x5e8] ss:$16 sps:$4 sm:$0xff]  }
0x1122   : > { %14262 = vmatprep.subr.bf16.mxu0 %v18671_v39  ;;  %v13897_v61 = vpop.f32.mrf.mxu0  ;;  %v18699_v46 = vld [vmem:[%s20351_s15 + $0x7e8] ss:$16 sps:$4 sm:$0xff]   ;;  %v18704_v41 = vld [vmem:[%s20351_s15 + $0x5cc] ss:$16 sps:$4 sm:$0xff]  }
0x1123   : > { %v18707_v43 = vld [vmem:[%s20351_s15 + $0x7cc] ss:$16 sps:$4 sm:$0xff]   ;;  %v18702_v63 = vld [vmem:[%s20351_s15 + $0x5c8] ss:$16 sps:$4 sm:$0xff]  }
0x1124   : > { %14212 = vmatpush1.bf16.msra.mxu1 %v18666_v14  ;;  %v18705_v13 = vld [vmem:[%s20351_s15 + $0x7c8] ss:$16 sps:$4 sm:$0xff]   ;;  %v18710_v11 = vld [vmem:[%s20351_s15 + $0x5ac] ss:$16 sps:$4 sm:$0xff]  }
0x1125   : > { %14263 = vmatpush1.bf16.msra.mxu0 %v18669_v5  ;;  %14213 = vmatprep.subr.bf16.mxu1 %v18674_v52  ;;  %v18713_v25 = vld [vmem:[%s20351_s15 + $0x7ac] ss:$16 sps:$4 sm:$0xff]   ;;  %v18708_v39 = vld [vmem:[%s20351_s15 + $0x5a8] ss:$16 sps:$4 sm:$0xff]  }
0x1126   : > { %14264 = vmatprep.subr.bf16.mxu0 %v18677_v7  ;;  %v18711_v18 = vld [vmem:[%s20351_s15 + $0x7a8] ss:$16 sps:$4 sm:$0xff]   ;;  %v18716_v32 = vld [vmem:[%s20351_s15 + $0x58c] ss:$16 sps:$4 sm:$0xff]  }
0x1127   : > { %v18719_v22 = vld [vmem:[%s20351_s15 + $0x78c] ss:$16 sps:$4 sm:$0xff]   ;;  %v18714_v14 = vld [vmem:[%s20351_s15 + $0x588] ss:$16 sps:$4 sm:$0xff]  }
0x1128   : > { %14214 = vmatpush1.bf16.msra.mxu1 %v18672_v34  ;;  %v18717_v5 = vld [vmem:[%s20351_s15 + $0x788] ss:$16 sps:$4 sm:$0xff]   ;;  %v18722_v27 = vld [vmem:[%s20351_s15 + $0x56c] ss:$16 sps:$4 sm:$0xff]  }
0x1129   : > { %14265 = vmatpush1.bf16.msra.mxu0 %v18675_v8  ;;  %14215 = vmatprep.subr.bf16.mxu1 %v18680_v47  ;;  %v18725_v61 = vld [vmem:[%s20351_s15 + $0x76c] ss:$16 sps:$4 sm:$0xff]   ;;  %v18720_v52 = vld [vmem:[%s20351_s15 + $0x568] ss:$16 sps:$4 sm:$0xff]  }
0x112a   : > { %14266 = vmatprep.subr.bf16.mxu0 %v18683_v57  ;;  %v18723_v7 = vld [vmem:[%s20351_s15 + $0x768] ss:$16 sps:$4 sm:$0xff]   ;;  %v18728_v34 = vld [vmem:[%s20351_s15 + $0x54c] ss:$16 sps:$4 sm:$0xff]  }
0x112b   : > { %v18731_v8 = vld [vmem:[%s20351_s15 + $0x74c] ss:$16 sps:$4 sm:$0xff]   ;;  %v18726_v47 = vld [vmem:[%s20351_s15 + $0x548] ss:$16 sps:$4 sm:$0xff]  }
0x112c   : > { %14216 = vmatpush1.bf16.msra.mxu1 %v18678_v28  ;;  %v18729_v57 = vld [vmem:[%s20351_s15 + $0x748] ss:$16 sps:$4 sm:$0xff]   ;;  %v18734_v28 = vld [vmem:[%s20351_s15 + $0x52c] ss:$16 sps:$4 sm:$0xff]  }
0x112d   : > { %14267 = vmatpush1.bf16.msra.mxu0 %v18681_v35  ;;  %14217 = vmatprep.subr.bf16.mxu1 %v18686_v30  ;;  %v18737_v35 = vld [vmem:[%s20351_s15 + $0x72c] ss:$16 sps:$4 sm:$0xff]   ;;  %v18732_v30 = vld [vmem:[%s20351_s15 + $0x528] ss:$16 sps:$4 sm:$0xff]  }
0x112e   : > { %14268 = vmatprep.subr.bf16.mxu0 %v18689_v21  ;;  %v18735_v21 = vld [vmem:[%s20351_s15 + $0x728] ss:$16 sps:$4 sm:$0xff]  }
0x1130   : > { %14218 = vmatpush1.bf16.msra.mxu1 %v18684_v24  ;;  %v18740_v24 = vld [vmem:[%s20351_s15 + $0x50c] ss:$16 sps:$4 sm:$0xff]  }
0x1131   : > { %14269 = vmatpush1.bf16.msra.mxu0 %v18687_v1  ;;  %14219 = vmatprep.subr.bf16.mxu1 %v18692_v20  ;;  %v18743_v1 = vld [vmem:[%s20351_s15 + $0x70c] ss:$16 sps:$4 sm:$0xff]   ;;  %v18738_v20 = vld [vmem:[%s20351_s15 + $0x508] ss:$16 sps:$4 sm:$0xff]  }
0x1132   : > { %14270 = vmatprep.subr.bf16.mxu0 %v18695_v54  ;;  %v18741_v54 = vld [vmem:[%s20351_s15 + $0x708] ss:$16 sps:$4 sm:$0xff]  }
0x1134   : > { %14220 = vmatpush1.bf16.msra.mxu1 %v18690_v62  ;;  %v18746_v62 = vld [vmem:[%s20351_s15 + $0x8ec] ss:$16 sps:$4 sm:$0xff]  }
0x1135   : > { %14271 = vmatpush1.bf16.msra.mxu0 %v18693_v53  ;;  %14221 = vmatprep.subr.bf16.mxu1 %v18698_v29  ;;  %v18749_v53 = vld [vmem:[%s20351_s15 + $0xaec] ss:$16 sps:$4 sm:$0xff]  }
0x1136   : > { %14272 = vmatprep.subr.bf16.mxu0 %v18701_v10 }
0x1138   : > { %14222 = vmatpush2.bf16.msra.mxu1 %v18696_v60  ;;  %v18744_v60 = vld [vmem:[%s20351_s15 + $0x8e8] ss:$16 sps:$4 sm:$0xff]  }
0x1139   : > { %14273 = vmatpush2.bf16.msra.mxu0 %v18699_v46  ;;  %14223 = vmatprep.subr.bf16.mxu1 %v18704_v41  ;;  %v18747_v46 = vld [vmem:[%s20351_s15 + $0xae8] ss:$16 sps:$4 sm:$0xff]  }
0x113a   : > { %14274 = vmatprep.subr.bf16.mxu0 %v18707_v43 }
0x113c   : > { %14224 = vmatpush2.bf16.msra.mxu1 %v18702_v63  ;;  %v18752_v63 = vld [vmem:[%s20351_s15 + $0x8cc] ss:$16 sps:$4 sm:$0xff]  }
0x113d   : > { %14275 = vmatpush2.bf16.msra.mxu0 %v18705_v13  ;;  %14225 = vmatprep.subr.bf16.mxu1 %v18710_v11  ;;  %v18755_v13 = vld [vmem:[%s20351_s15 + $0xacc] ss:$16 sps:$4 sm:$0xff]  }
0x113e   : > { %14276 = vmatprep.subr.bf16.mxu0 %v18713_v25 }
0x1140   : > { %14226 = vmatpush2.bf16.msra.mxu1 %v18708_v39  ;;  %v18750_v39 = vld [vmem:[%s20351_s15 + $0x8c8] ss:$16 sps:$4 sm:$0xff]  }
0x1141   : > { %14277 = vmatpush2.bf16.msra.mxu0 %v18711_v18  ;;  %14227 = vmatprep.subr.bf16.mxu1 %v18716_v32  ;;  %v18753_v18 = vld [vmem:[%s20351_s15 + $0xac8] ss:$16 sps:$4 sm:$0xff]  }
0x1142   : > { %14278 = vmatprep.subr.bf16.mxu0 %v18719_v22 }
0x1144   : > { %14228 = vmatpush2.bf16.msra.mxu1 %v18714_v14  ;;  %v18756_v14 = vld [vmem:[%s20351_s15 + $0x8a8] ss:$16 sps:$4 sm:$0xff]  }
0x1145   : > { %14279 = vmatpush2.bf16.msra.mxu0 %v18717_v5  ;;  %14229 = vmatprep.subr.bf16.mxu1 %v18722_v27  ;;  %v18759_v5 = vld [vmem:[%s20351_s15 + $0xaa8] ss:$16 sps:$4 sm:$0xff]  }
0x1146   : > { %14280 = vmatprep.subr.bf16.mxu0 %v18725_v61 }
0x1148   : > { %14230 = vmatpush2.bf16.msra.mxu1 %v18720_v52  ;;  %v18764_v52 = vld [vmem:[%s20351_s15 + $0x88c] ss:$16 sps:$4 sm:$0xff]  }
0x1149   : > { %14281 = vmatpush2.bf16.msra.mxu0 %v18723_v7  ;;  %14231 = vmatprep.subr.bf16.mxu1 %v18728_v34  ;;  %v18767_v7 = vld [vmem:[%s20351_s15 + $0xa8c] ss:$16 sps:$4 sm:$0xff]  }
0x114a   : > { %14282 = vmatprep.subr.bf16.mxu0 %v18731_v8 }
0x114c   : > { %14232 = vmatpush2.bf16.msra.mxu1 %v18726_v47  ;;  %v18762_v47 = vld [vmem:[%s20351_s15 + $0x888] ss:$16 sps:$4 sm:$0xff]  }
0x114d   : > { %14283 = vmatpush2.bf16.msra.mxu0 %v18729_v57  ;;  %14233 = vmatprep.subr.bf16.mxu1 %v18734_v28  ;;  %v18765_v57 = vld [vmem:[%s20351_s15 + $0xa88] ss:$16 sps:$4 sm:$0xff]   ;;  %v18770_v28 = vld [vmem:[%s20351_s15 + $0x86c] ss:$16 sps:$4 sm:$0xff]  }
0x114e   : > { %14284 = vmatprep.subr.bf16.mxu0 %v18737_v35  ;;  %v18771_v35 = vld [vmem:[%s20351_s15 + $0xa68] ss:$16 sps:$4 sm:$0xff]  }
0x1150   : > { %14234 = vmatpush2.bf16.msra.mxu1 %v18732_v30  ;;  %v18776_v30 = vld [vmem:[%s20351_s15 + $0x84c] ss:$16 sps:$4 sm:$0xff]  }
0x1151   : > { %14285 = vmatpush2.bf16.msra.mxu0 %v18735_v21  ;;  %14235 = vmatprep.subr.bf16.mxu1 %v18740_v24  ;;  %v18779_v21 = vld [vmem:[%s20351_s15 + $0xa4c] ss:$16 sps:$4 sm:$0xff]   ;;  %v18774_v24 = vld [vmem:[%s20351_s15 + $0x848] ss:$16 sps:$4 sm:$0xff]  }
0x1152   : > { %14286 = vmatprep.subr.bf16.mxu0 %v18743_v1  ;;  %v18777_v1 = vld [vmem:[%s20351_s15 + $0xa48] ss:$16 sps:$4 sm:$0xff]  }
0x1154   : > { %14236 = vmatpush2.bf16.msra.mxu1 %v18738_v20  ;;  %v23215_v29 = vpop.f32.mrf.mxu1  ;;  %v18782_v20 = vld [vmem:[%s20351_s15 + $0x82c] ss:$16 sps:$4 sm:$0xff]  }
0x1155   : > { %14287 = vmatpush2.bf16.msra.mxu0 %v18741_v54  ;;  %v23217_v10 = vpop.f32.mrf.mxu0  ;;  %14307 = vmatprep.subr.bf16.mxu1 %v18746_v62  ;;  %v18785_v54 = vld [vmem:[%s20351_s15 + $0xa2c] ss:$16 sps:$4 sm:$0xff]   ;;  %v18780_v62 = vld [vmem:[%s20351_s15 + $0x828] ss:$16 sps:$4 sm:$0xff]  }
0x1156   : > { %14358 = vmatprep.subr.bf16.mxu0 %v18749_v53  ;;  %v23221_v41 = vpop.f32.mrf.mxu1  ;;  %v18783_v53 = vld [vmem:[%s20351_s15 + $0xa28] ss:$16 sps:$4 sm:$0xff]  }
0x1157   : > { %v23223_v43 = vpop.f32.mrf.mxu0  ;;  %14238 = vmatmul.mubr.bf16.vlgmr.msra.gmra.mxu1 %v22202_v19 }
0x1158   : > { %14289 = vmatmul.mubr.bf16.vlgmr.msra.gmra.mxu0 %v22367_v16  ;;  %14247 = vmatprep.mubr.bf16.mxu1 %v22705_v15  ;;  %v23231_v11 = vpop.f32.mrf.mxu1  ;;  %v18758_v15 = vld [vmem:[%s20351_s15 + $0x8ac] ss:$16 sps:$4 sm:$0xff]  }
0x1159   : > { %14298 = vmatprep.mubr.bf16.mxu0 %v22707_v23  ;;  %v23233_v25 = vpop.f32.mrf.mxu0  ;;  %14308 = vmatpush1.bf16.msra.mxu1 %v18744_v60  ;;  %v18761_v23 = vld [vmem:[%s20351_s15 + $0xaac] ss:$16 sps:$4 sm:$0xff]  }
0x115a   : > { %14359 = vmatpush1.bf16.msra.mxu0 %v18747_v46  ;;  %14309 = vmatprep.subr.bf16.mxu1 %v18752_v63  ;;  %v23237_v19 = vpop.f32.mrf.mxu1  ;;  %v18788_v60 = vld [vmem:[%s20351_s15 + $0x80c] ss:$16 sps:$4 sm:$0xff]   ;;  %v18786_v63 = vld [vmem:[%s20351_s15 + $0x808] ss:$16 sps:$4 sm:$0xff]  }
0x115b   : > { %14360 = vmatprep.subr.bf16.mxu0 %v18755_v13  ;;  %v23239_v16 = vpop.f32.mrf.mxu0  ;;  %v18791_v46 = vld [vmem:[%s20351_s15 + $0xa0c] ss:$16 sps:$4 sm:$0xff]   ;;  %v18789_v13 = vld [vmem:[%s20351_s15 + $0xa08] ss:$16 sps:$4 sm:$0xff]  }
0x115c   : > { %v23243_v32 = vpop.f32.mrf.mxu1 }
0x115d   : > { %v23245_v22 = vpop.f32.mrf.mxu0  ;;  %14310 = vmatpush1.bf16.msra.mxu1 %v18750_v39  ;;  %v18794_v39 = vld [vmem:[%s20351_s15 + $0x9ec] ss:$16 sps:$4 sm:$0xff]  }
0x115e   : > { %14361 = vmatpush1.bf16.msra.mxu0 %v18753_v18  ;;  %14311 = vmatprep.subr.bf16.mxu1 %v18758_v15  ;;  %v23249_v27 = vpop.f32.mrf.mxu1  ;;  %v18797_v18 = vld [vmem:[%s20351_s15 + $0xbec] ss:$16 sps:$4 sm:$0xff]   ;;  %v18792_v15 = vld [vmem:[%s20351_s15 + $0x9e8] ss:$16 sps:$4 sm:$0xff]  }
0x115f   : > { %14362 = vmatprep.subr.bf16.mxu0 %v18761_v23  ;;  %v23251_v61 = vpop.f32.mrf.mxu0  ;;  %14248 = vmatmul.mubr.bf16.gmra.mxu1 %v22740_v33  ;;  %v18795_v23 = vld [vmem:[%s20351_s15 + $0xbe8] ss:$16 sps:$4 sm:$0xff]  }
0x1160   : > { %14299 = vmatmul.mubr.bf16.gmra.mxu0 %v22742_v9  ;;  %14339 = vmatprep.mubr.bf16.mxu1 %v22520_v4  ;;  %v13947_v34 = vpop.f32.mrf.mxu1  ;;  %v18773_v4 = vld [vmem:[%s20351_s15 + $0xa6c] ss:$16 sps:$4 sm:$0xff]  }
0x1161   : > { %14390 = vmatprep.mubr.bf16.mxu0 %v22752_v58  ;;  %v13998_v8 = vpop.f32.mrf.mxu0  ;;  %14312 = vmatpush1.bf16.msra.mxu1 %v18756_v14  ;;  %v18768_v58 = vld [vmem:[%s20351_s15 + $0x868] ss:$16 sps:$4 sm:$0xff]   ;;  %v18800_v14 = vld [vmem:[%s20351_s15 + $0x9cc] ss:$16 sps:$4 sm:$0xff]  }
0x1162   : > { %14363 = vmatpush1.bf16.msra.mxu0 %v18759_v5  ;;  %14313 = vmatprep.subr.bf16.mxu1 %v18764_v52  ;;  %v13948_v33 = vpop.f32.mrf.mxu1  ;;  %v18803_v5 = vld [vmem:[%s20351_s15 + $0xbcc] ss:$16 sps:$4 sm:$0xff]   ;;  %v18798_v52 = vld [vmem:[%s20351_s15 + $0x9c8] ss:$16 sps:$4 sm:$0xff]  }
0x1163   : > { %14364 = vmatprep.subr.bf16.mxu0 %v18767_v7  ;;  %v13999_v9 = vpop.f32.mrf.mxu0  ;;  %v18801_v7 = vld [vmem:[%s20351_s15 + $0xbc8] ss:$16 sps:$4 sm:$0xff]   ;;  %v18806_v34 = vld [vmem:[%s20351_s15 + $0x9ac] ss:$16 sps:$4 sm:$0xff]  }
0x1164   : > { %v18809_v8 = vld [vmem:[%s20351_s15 + $0xbac] ss:$16 sps:$4 sm:$0xff]  }
0x1165   : > { %14314 = vmatpush1.bf16.msra.mxu1 %v18762_v47  ;;  %v18804_v47 = vld [vmem:[%s20351_s15 + $0x9a8] ss:$16 sps:$4 sm:$0xff]   ;;  %v18812_v33 = vld [vmem:[%s20351_s15 + $0x98c] ss:$16 sps:$4 sm:$0xff]  }
0x1166   : > { %14365 = vmatpush1.bf16.msra.mxu0 %v18765_v57  ;;  %14315 = vmatprep.subr.bf16.mxu1 %v18770_v28  ;;  %v18807_v57 = vld [vmem:[%s20351_s15 + $0xba8] ss:$16 sps:$4 sm:$0xff]   ;;  %v18815_v9 = vld [vmem:[%s20351_s15 + $0xb8c] ss:$16 sps:$4 sm:$0xff]  }
0x1167   : > { %14366 = vmatprep.subr.bf16.mxu0 %v18773_v4  ;;  %v18810_v28 = vld [vmem:[%s20351_s15 + $0x988] ss:$16 sps:$4 sm:$0xff]  }
0x1168   : > { %v18813_v4 = vld [vmem:[%s20351_s15 + $0xb88] ss:$16 sps:$4 sm:$0xff]  }
0x1169   : > { %14316 = vmatpush1.bf16.msra.mxu1 %v18768_v58  ;;  %v18818_v58 = vld [vmem:[%s20351_s15 + $0x96c] ss:$16 sps:$4 sm:$0xff]  }
0x116a   : > { %14367 = vmatpush1.bf16.msra.mxu0 %v18771_v35  ;;  %14317 = vmatprep.subr.bf16.mxu1 %v18776_v30  ;;  %v18821_v35 = vld [vmem:[%s20351_s15 + $0xb6c] ss:$16 sps:$4 sm:$0xff]   ;;  %v18816_v30 = vld [vmem:[%s20351_s15 + $0x968] ss:$16 sps:$4 sm:$0xff]  }
0x116b   : > { %14368 = vmatprep.subr.bf16.mxu0 %v18779_v21  ;;  %v18819_v21 = vld [vmem:[%s20351_s15 + $0xb68] ss:$16 sps:$4 sm:$0xff]  }
0x116d   : > { %14318 = vmatpush1.bf16.msra.mxu1 %v18774_v24  ;;  %v18824_v24 = vld [vmem:[%s20351_s15 + $0x94c] ss:$16 sps:$4 sm:$0xff]  }
0x116e   : > { %14369 = vmatpush1.bf16.msra.mxu0 %v18777_v1  ;;  %14319 = vmatprep.subr.bf16.mxu1 %v18782_v20  ;;  %v18827_v1 = vld [vmem:[%s20351_s15 + $0xb4c] ss:$16 sps:$4 sm:$0xff]   ;;  %v18822_v20 = vld [vmem:[%s20351_s15 + $0x948] ss:$16 sps:$4 sm:$0xff]  }
0x116f   : > { %14370 = vmatprep.subr.bf16.mxu0 %v18785_v54  ;;  %v18825_v54 = vld [vmem:[%s20351_s15 + $0xb48] ss:$16 sps:$4 sm:$0xff]  }
0x1171   : > { %14320 = vmatpush1.bf16.msra.mxu1 %v18780_v62  ;;  %v18830_v62 = vld [vmem:[%s20351_s15 + $0x92c] ss:$16 sps:$4 sm:$0xff]  }
0x1172   : > { %14371 = vmatpush1.bf16.msra.mxu0 %v18783_v53  ;;  %14321 = vmatprep.subr.bf16.mxu1 %v18788_v60  ;;  %v18833_v53 = vld [vmem:[%s20351_s15 + $0xb2c] ss:$16 sps:$4 sm:$0xff]   ;;  %v18828_v60 = vld [vmem:[%s20351_s15 + $0x928] ss:$16 sps:$4 sm:$0xff]  }
0x1173   : > { %14372 = vmatprep.subr.bf16.mxu0 %v18791_v46  ;;  %v18831_v46 = vld [vmem:[%s20351_s15 + $0xb28] ss:$16 sps:$4 sm:$0xff]  }
0x1175   : > { %14322 = vmatpush1.bf16.msra.mxu1 %v18786_v63  ;;  %v18836_v63 = vld [vmem:[%s20351_s15 + $0x90c] ss:$16 sps:$4 sm:$0xff]  }
0x1176   : > { %14373 = vmatpush1.bf16.msra.mxu0 %v18789_v13  ;;  %14323 = vmatprep.subr.bf16.mxu1 %v18794_v39  ;;  %v18839_v13 = vld [vmem:[%s20351_s15 + $0xb0c] ss:$16 sps:$4 sm:$0xff]   ;;  %v13934_v39 = vadd.f32 %v23215_v29, %v23130_v48  ;;  %v13940_v48 = vadd.f32 %v23237_v19, %v23147_v36  ;;  %v13944_v36 = vadd.f32 %v23243_v32, %v23154_v38 }
0x1177   : > { %14374 = vmatprep.subr.bf16.mxu0 %v18797_v18  ;;  %v18834_v18 = vld [vmem:[%s20351_s15 + $0x908] ss:$16 sps:$4 sm:$0xff]  }
0x1179   : > { %14324 = vmatpush2.bf16.msra.mxu1 %v18792_v15  ;;  %v18837_v15 = vld [vmem:[%s20351_s15 + $0xb08] ss:$16 sps:$4 sm:$0xff]  }
0x117a   : > { %14375 = vmatpush2.bf16.msra.mxu0 %v18795_v23  ;;  %14325 = vmatprep.subr.bf16.mxu1 %v18800_v14  ;;  %v13936_v23 = vadd.f32 %v23221_v41, %v23137_v49  ;;  %v18842_v14 = vld [vmem:[%s20351_s15 + $0xcec] ss:$16 sps:$4 sm:$0xff]  }
0x117b   : > { %14376 = vmatprep.subr.bf16.mxu0 %v18803_v5  ;;  %v18845_v5 = vld [vmem:[%s20351_s15 + $0xeec] ss:$16 sps:$4 sm:$0xff]  }
0x117c   : > { %v13987_v49 = vadd.f32 %v23223_v43, %v13936_v23  ;;  %v23841_v23 = vld [vmem:[#allocation55_spill] sm:$0xff] }
0x117d   : > { %14326 = vmatpush2.bf16.msra.mxu1 %v18798_v52  ;;  %v13938_v52 = vadd.f32 %v23231_v11, %v23144_v45 }
0x117e   : > { %14377 = vmatpush2.bf16.msra.mxu0 %v18801_v7  ;;  %14327 = vmatprep.subr.bf16.mxu1 %v18806_v34  ;;  %v13985_v7 = vadd.f32 %v23217_v10, %v13934_v39  ;;  %v18848_v10 = vld [vmem:[%s20351_s15 + $0xccc] ss:$16 sps:$4 sm:$0xff]  }
0x117f   : > { %14378 = vmatprep.subr.bf16.mxu0 %v18809_v8  ;;  %v18840_v8 = vld [vmem:[%s20351_s15 + $0xce8] ss:$16 sps:$4 sm:$0xff]   ;;  %v13989_v45 = vadd.f32 %v23233_v25, %v13938_v52  ;;  %v13946_v25 = vadd.f32 %v23249_v27, %v23161_v44 }
0x1181   : > { %14328 = vmatpush2.bf16.msra.mxu1 %v18804_v47  ;;  %v18843_v47 = vld [vmem:[%s20351_s15 + $0xee8] ss:$16 sps:$4 sm:$0xff]  }
0x1182   : > { %14379 = vmatpush2.bf16.msra.mxu0 %v18807_v57  ;;  %14329 = vmatprep.subr.bf16.mxu1 %v18812_v33  ;;  %v18851_v33 = vld [vmem:[%s20351_s15 + $0xecc] ss:$16 sps:$4 sm:$0xff]  }
0x1183   : > { %14380 = vmatprep.subr.bf16.mxu0 %v18815_v9  ;;  %v13991_v9 = vadd.f32 %v23239_v16, %v13940_v48  ;;  %v18849_v16 = vld [vmem:[%s20351_s15 + $0xec8] ss:$16 sps:$4 sm:$0xff]  }
0x1185   : > { %14330 = vmatpush2.bf16.msra.mxu1 %v18810_v28  ;;  %v23838_v28 = vld [vmem:[#allocation54_spill] sm:$0xff] }
0x1186   : > { %14381 = vmatpush2.bf16.msra.mxu0 %v18813_v4  ;;  %14331 = vmatprep.subr.bf16.mxu1 %v18818_v58  ;;  %v18846_v58 = vld [vmem:[%s20351_s15 + $0xcc8] ss:$16 sps:$4 sm:$0xff]  }
0x1187   : > { %14382 = vmatprep.subr.bf16.mxu0 %v18821_v35  ;;  %v18854_v35 = vld [vmem:[%s20351_s15 + $0xcac] ss:$16 sps:$4 sm:$0xff]  }
0x1189   : > { %14332 = vmatpush2.bf16.msra.mxu1 %v18816_v30  ;;  %v23839_v30 = vld [vmem:[#allocation53_spill] sm:$0xff] }
0x118a   : > { %14383 = vmatpush2.bf16.msra.mxu0 %v18819_v21  ;;  %14333 = vmatprep.subr.bf16.mxu1 %v18824_v24 }
0x118b   : > { %14384 = vmatprep.subr.bf16.mxu0 %v18827_v1 }
0x118d   : > { %14334 = vmatpush2.bf16.msra.mxu1 %v18822_v20  ;;  %v13997_v20 = vadd.f32 %v23251_v61, %v13946_v25  ;;  %v18863_v61 = vld [vmem:[%s20351_s15 + $0xe8c] ss:$16 sps:$4 sm:$0xff]   ;;  %v18876_v25 = vld [vmem:[%s20351_s15 + $0xc28] ss:$16 sps:$4 sm:$0xff]  }
0x118e   : > { %14385 = vmatpush2.bf16.msra.mxu0 %v18825_v54  ;;  %14335 = vmatprep.subr.bf16.mxu1 %v18830_v62 }
0x118f   : > { %14386 = vmatprep.subr.bf16.mxu0 %v18833_v53  ;;  %v23840_v53 = vld [vmem:[#allocation57_spill] sm:$0xff] }
0x1191   : > { %14336 = vmatpush2.bf16.msra.mxu1 %v18828_v60 }
0x1192   : > { %14387 = vmatpush2.bf16.msra.mxu0 %v18831_v46  ;;  %14337 = vmatprep.subr.bf16.mxu1 %v18836_v63  ;;  %v18852_v63 = vld [vmem:[%s20351_s15 + $0xca8] ss:$16 sps:$4 sm:$0xff]  }
0x1193   : > { %14388 = vmatprep.subr.bf16.mxu0 %v18839_v13  ;;  %v18855_v13 = vld [vmem:[%s20351_s15 + $0xea8] ss:$16 sps:$4 sm:$0xff]  }
0x1195   : > { %14338 = vmatpush2.bf16.msra.mxu1 %v18834_v18  ;;  %v14035_v29 = vpop.f32.mrf.mxu1 }
0x1196   : > { %14389 = vmatpush2.bf16.msra.mxu0 %v18837_v15  ;;  %v14086_v34 = vpop.f32.mrf.mxu0  ;;  %v14036_v41 = vadd.f32 %v14035_v29, %v13985_v7  ;;  %14409 = vmatprep.subr.bf16.mxu1 %v18842_v14  ;;  %v18860_v15 = vld [vmem:[%s20351_s15 + $0xc8c] ss:$16 sps:$4 sm:$0xff]  }
0x1197   : > { %14460 = vmatprep.subr.bf16.mxu0 %v18845_v5  ;;  %v14037_v11 = vpop.f32.mrf.mxu1  ;;  %v23842_v29 = vld [vmem:[#allocation60_spill] sm:$0xff] }
0x1198   : > { %v14088_v57 = vpop.f32.mrf.mxu0  ;;  %v14087_v19 = vadd.f32 %v14086_v34, %v14036_v41  ;;  %14340 = vmatmul.mubr.bf16.vlgmr.msra.gmra.mxu1 %v22513_v12  ;;  %v14038_v43 = vadd.f32 %v14037_v11, %v13987_v49  ;;  %v18861_v49 = vld [vmem:[%s20351_s15 + $0xe88] ss:$16 sps:$4 sm:$0xff]   ;;  %v18866_v41 = vld [vmem:[%s20351_s15 + $0xc6c] ss:$16 sps:$4 sm:$0xff]  }
0x1199   : > { %14391 = vmatmul.mubr.bf16.vlgmr.msra.gmra.mxu0 %v22659_v17  ;;  %14349 = vmatprep.mubr.bf16.mxu1 %v22868_v42  ;;  %v14039_v38 = vpop.f32.mrf.mxu1  ;;  %v18857_v42 = vld [vmem:[%s20351_s15 + $0xeac] ss:$16 sps:$4 sm:$0xff]   ;;  %v18864_v11 = vld [vmem:[%s20351_s15 + $0xc68] ss:$16 sps:$4 sm:$0xff]  }
0x119a   : > { %14400 = vmatprep.mubr.bf16.mxu0 %v22870_v26  ;;  %v14090_v32 = vpop.f32.mrf.mxu0  ;;  %v23336_v4 = vadd.f32 %v14087_v19, %v23838_v28  ;;  %14410 = vmatpush1.bf16.msra.mxu1 %v18840_v8  ;;  %v14089_v12 = vadd.f32 %v14088_v57, %v14038_v43  ;;  %v14040_v17 = vadd.f32 %v14039_v38, %v13989_v45  ;;  %v18869_v8 = vld [vmem:[%s20351_s15 + $0xe6c] ss:$16 sps:$4 sm:$0xff]   ;;  %v18867_v57 = vld [vmem:[%s20351_s15 + $0xe68] ss:$16 sps:$4 sm:$0xff]  }
0x119b   : > { %14461 = vmatpush1.bf16.msra.mxu0 %v18843_v47  ;;  %14411 = vmatprep.subr.bf16.mxu1 %v18848_v10  ;;  %v14041_v44 = vpop.f32.mrf.mxu1  ;;  %v13995_v26 = vadd.f32 %v23245_v22, %v13944_v36  ;;  %v23843_v47 = vld [vmem:[#allocation58_spill] sm:$0xff] }
0x119c   : > { %14462 = vmatprep.subr.bf16.mxu0 %v18851_v33  ;;  %v14092_v27 = vpop.f32.mrf.mxu0  ;;  %14523 = vst [vmem:[#allocation2 + $0x30] sm:$0xff] %v23336_v4  ;;  %v23345_v21 = vadd.f32 %v14089_v12, %v23839_v30  ;;  %v14091_v24 = vadd.f32 %v14090_v32, %v14040_v17  ;;  %v14042_v1 = vadd.f32 %v14041_v44, %v13991_v9  ;;  %v18872_v10 = vld [vmem:[%s20351_s15 + $0xc4c] ss:$16 sps:$4 sm:$0xff]   ;;  %v18870_v36 = vld [vmem:[%s20351_s15 + $0xc48] ss:$16 sps:$4 sm:$0xff]  }
0x119d   : > { %v14045_v54 = vpop.f32.mrf.mxu1  ;;  %v18875_v33 = vld [vmem:[%s20351_s15 + $0xe4c] ss:$16 sps:$4 sm:$0xff]   ;;  %v18873_v19 = vld [vmem:[%s20351_s15 + $0xe48] ss:$16 sps:$4 sm:$0xff]  }
0x119e   : > { %v14096_v62 = vpop.f32.mrf.mxu0  ;;  %14524 = vst [vmem:[#allocation2] sm:$0xff] %v23345_v21  ;;  %v23350_v60 = vadd.f32 %v14091_v24, %v23840_v53  ;;  %14412 = vmatpush1.bf16.msra.mxu1 %v18846_v58  ;;  %v14093_v22 = vadd.f32 %v14092_v27, %v14042_v1  ;;  %v14046_v46 = vadd.f32 %v14045_v54, %v13995_v26  ;;  %v18878_v43 = vld [vmem:[%s20351_s15 + $0xc2c] ss:$16 sps:$4 sm:$0xff]   ;;  %v18879_v38 = vld [vmem:[%s20351_s15 + $0xe28] ss:$16 sps:$4 sm:$0xff]  }
0x119f   : > { %14463 = vmatpush1.bf16.msra.mxu0 %v18849_v16  ;;  %14413 = vmatprep.subr.bf16.mxu1 %v18854_v35  ;;  %v14047_v39 = vpop.f32.mrf.mxu1  ;;  %v18881_v9 = vld [vmem:[%s20351_s15 + $0xe2c] ss:$16 sps:$4 sm:$0xff]   ;;  %v18882_v12 = vld [vmem:[%s20351_s15 + $0xc08] ss:$16 sps:$4 sm:$0xff]  }
0x11a0   : > { %14464 = vmatprep.subr.bf16.mxu0 %v18857_v42  ;;  %v14098_v18 = vpop.f32.mrf.mxu0  ;;  %14527 = vst [vmem:[#allocation2 + $0x50] sm:$0xff] %v23350_v60  ;;  %v23358_v14 = vadd.f32 %v14093_v22, %v23841_v23  ;;  %v14097_v5 = vadd.f32 %v14096_v62, %v14046_v46  ;;  %14350 = vmatmul.mubr.bf16.gmra.mxu1 %v22898_v55  ;;  %v18884_v32 = vld [vmem:[%s20351_s15 + $0xc0c] ss:$16 sps:$4 sm:$0xff]   ;;  %v18885_v17 = vld [vmem:[%s20351_s15 + $0xe08] ss:$16 sps:$4 sm:$0xff]  }
0x11a1   : > { %14401 = vmatmul.mubr.bf16.gmra.mxu0 %v22900_v51  ;;  %v14048_v52 = vadd.f32 %v14047_v39, %v13997_v20  ;;  %14441 = vmatprep.mubr.bf16.mxu1 %v22906_v31  ;;  %v14049_v7 = vpop.f32.mrf.mxu1  ;;  %v18858_v51 = vld [vmem:[%s20351_s15 + $0xc88] ss:$16 sps:$4 sm:$0xff]   ;;  %v18887_v28 = vld [vmem:[%s20351_s15 + $0xe0c] ss:$16 sps:$4 sm:$0xff]  }
0x11a2   : > { %14492 = vmatprep.mubr.bf16.mxu0 %v22987_v56  ;;  %v14100_v48 = vpop.f32.mrf.mxu0  ;;  %14528 = vst [vmem:[#allocation2 + $0x20] sm:$0xff] %v23358_v14  ;;  %v23366_v34 = vadd.f32 %v14097_v5, %v23842_v29  ;;  %14414 = vmatpush1.bf16.msra.mxu1 %v18852_v63  ;;  %v18890_v58 = vld [vmem:[%s20351_s15 + $0xdec] ss:$16 sps:$4 sm:$0xff]   ;;  %v18888_v44 = vld [vmem:[%s20351_s15 + $0xde8] ss:$16 sps:$4 sm:$0xff]  }
0x11a3   : > { %14465 = vmatpush1.bf16.msra.mxu0 %v18855_v13  ;;  %v14099_v55 = vadd.f32 %v14098_v18, %v14048_v52  ;;  %14415 = vmatprep.subr.bf16.mxu1 %v18860_v15  ;;  %v14050_v31 = vpop.f32.mrf.mxu1  ;;  %v18893_v16 = vld [vmem:[%s20351_s15 + $0xfec] ss:$16 sps:$4 sm:$0xff]   ;;  %v18891_v27 = vld [vmem:[%s20351_s15 + $0xfe8] ss:$16 sps:$4 sm:$0xff]  }
0x11a4   : > { %14466 = vmatprep.subr.bf16.mxu0 %v18863_v61  ;;  %v14101_v56 = vpop.f32.mrf.mxu0  ;;  %14531 = vst [vmem:[#allocation2 + $0x28] sm:$0x3] %v23366_v34  ;;  %v18896_v35 = vld [vmem:[%s20351_s15 + $0xdcc] ss:$16 sps:$4 sm:$0xff]   ;;  %v18894_v26 = vld [vmem:[%s20351_s15 + $0xdc8] ss:$16 sps:$4 sm:$0xff]  }
0x11a5   : > { %v23374_v45 = vadd.f32 %v14099_v55, %v23843_v47  ;;  %v18899_v42 = vld [vmem:[%s20351_s15 + $0xfcc] ss:$16 sps:$4 sm:$0xff]   ;;  %v18897_v30 = vld [vmem:[%s20351_s15 + $0xfc8] ss:$16 sps:$4 sm:$0xff]   ;;  %v19118_v56 = vld [vmem:[%s23844_s27] sm:$0xf] }
0x11a6   : > { %14416 = vmatpush1.bf16.msra.mxu1 %v18858_v51  ;;  %v18902_v24 = vld [vmem:[%s20351_s15 + $0xdac] ss:$16 sps:$4 sm:$0xff]   ;;  %v18900_v20 = vld [vmem:[%s20351_s15 + $0xda8] ss:$16 sps:$4 sm:$0xff]  }
0x11a7   : > { %14532 = vst [vmem:[#allocation2 + $0x48] sm:$0x3] %v23374_v45  ;;  %14467 = vmatpush1.bf16.msra.mxu0 %v18861_v49  ;;  %14417 = vmatprep.subr.bf16.mxu1 %v18866_v41  ;;  %v18905_v1 = vld [vmem:[%s20351_s15 + $0xfac] ss:$16 sps:$4 sm:$0xff]   ;;  %v18903_v54 = vld [vmem:[%s20351_s15 + $0xfa8] ss:$16 sps:$4 sm:$0xff]   ;;  %v11126_v41 = vrot.slane %v19118_v56, %v20600_v2 }
0x11a8   : > { %14468 = vmatprep.subr.bf16.mxu0 %v18869_v8  ;;  %v18908_v62 = vld [vmem:[%s20351_s15 + $0xd8c] ss:$16 sps:$4 sm:$0xff]   ;;  %v18906_v22 = vld [vmem:[%s20351_s15 + $0xd88] ss:$16 sps:$4 sm:$0xff]   ;;  %v11130_v8 = vrot.slane %v19118_v56, %v20594_v0 }
0x11a9   : > { %v18911_v53 = vld [vmem:[%s20351_s15 + $0xf8c] ss:$16 sps:$4 sm:$0xff]   ;;  %v18909_v46 = vld [vmem:[%s20351_s15 + $0xf88] ss:$16 sps:$4 sm:$0xff]  }
0x11aa   : > { %14418 = vmatpush1.bf16.msra.mxu1 %v18864_v11  ;;  %v18914_v63 = vld [vmem:[%s20351_s15 + $0xd6c] ss:$16 sps:$4 sm:$0xff]   ;;  %v18912_v39 = vld [vmem:[%s20351_s15 + $0xd68] ss:$16 sps:$4 sm:$0xff]  }
0x11ab   : > { %14469 = vmatpush1.bf16.msra.mxu0 %v18867_v57  ;;  %14419 = vmatprep.subr.bf16.mxu1 %v18872_v10  ;;  %v18917_v13 = vld [vmem:[%s20351_s15 + $0xf6c] ss:$16 sps:$4 sm:$0xff]   ;;  %v18915_v18 = vld [vmem:[%s20351_s15 + $0xf68] ss:$16 sps:$4 sm:$0xff]  }
0x11ac   : > { %14470 = vmatprep.subr.bf16.mxu0 %v18875_v33  ;;  %v18920_v15 = vld [vmem:[%s20351_s15 + $0xd4c] ss:$16 sps:$4 sm:$0xff]   ;;  %v18918_v23 = vld [vmem:[%s20351_s15 + $0xd48] ss:$16 sps:$4 sm:$0xff]  }
0x11ad   : > { %v18923_v61 = vld [vmem:[%s20351_s15 + $0xf4c] ss:$16 sps:$4 sm:$0xff]   ;;  %v18921_v5 = vld [vmem:[%s20351_s15 + $0xf48] ss:$16 sps:$4 sm:$0xff]  }
0x11ae   : > { %14420 = vmatpush1.bf16.msra.mxu1 %v18870_v36  ;;  %v18926_v52 = vld [vmem:[%s20351_s15 + $0xd2c] ss:$16 sps:$4 sm:$0xff]   ;;  %v18924_v48 = vld [vmem:[%s20351_s15 + $0xd28] ss:$16 sps:$4 sm:$0xff]  }
0x11af   : > { %14471 = vmatpush1.bf16.msra.mxu0 %v18873_v19  ;;  %14421 = vmatprep.subr.bf16.mxu1 %v18878_v43  ;;  %v18929_v7 = vld [vmem:[%s20351_s15 + $0xf2c] ss:$16 sps:$4 sm:$0xff]   ;;  %v18927_v29 = vld [vmem:[%s20351_s15 + $0xf28] ss:$16 sps:$4 sm:$0xff]  }
0x11b0   : > { %14472 = vmatprep.subr.bf16.mxu0 %v18881_v9  ;;  %v18932_v55 = vld [vmem:[%s20351_s15 + $0xd0c] ss:$16 sps:$4 sm:$0xff]   ;;  %v18930_v49 = vld [vmem:[%s20351_s15 + $0xd08] ss:$16 sps:$4 sm:$0xff]  }
0x11b1   : > { %v18935_v51 = vld [vmem:[%s20351_s15 + $0xf0c] ss:$16 sps:$4 sm:$0xff]   ;;  %v18933_v31 = vld [vmem:[%s20351_s15 + $0xf08] ss:$16 sps:$4 sm:$0xff]   ;;  %s23853_s15 = sld [smem:[#allocation77_spill]] (!%p16975_p4) }
0x11b2   : > { %14422 = vmatpush1.bf16.msra.mxu1 %v18876_v25 }
0x11b3   : > { %14473 = vmatpush1.bf16.msra.mxu0 %v18879_v38  ;;  %14423 = vmatprep.subr.bf16.mxu1 %v18884_v32 }
0x11b4   : > { %14474 = vmatprep.subr.bf16.mxu0 %v18887_v28 }
0x11b6   : > { %14424 = vmatpush1.bf16.msra.mxu1 %v18882_v12 }
0x11b7   : > { %14475 = vmatpush1.bf16.msra.mxu0 %v18885_v17  ;;  %14425 = vmatprep.subr.bf16.mxu1 %v18890_v58 }
0x11b8   : > { %14476 = vmatprep.subr.bf16.mxu0 %v18893_v16 }
0x11ba   : > { %14426 = vmatpush2.bf16.msra.mxu1 %v18888_v44 }
0x11bb   : > { %14477 = vmatpush2.bf16.msra.mxu0 %v18891_v27  ;;  %14427 = vmatprep.subr.bf16.mxu1 %v18896_v35 }
0x11bc   : > { %14478 = vmatprep.subr.bf16.mxu0 %v18899_v42 }
0x11be   : > { %14428 = vmatpush2.bf16.msra.mxu1 %v18894_v26 }
0x11bf   : > { %14479 = vmatpush2.bf16.msra.mxu0 %v18897_v30  ;;  %14429 = vmatprep.subr.bf16.mxu1 %v18902_v24 }
0x11c0   : > { %14480 = vmatprep.subr.bf16.mxu0 %v18905_v1 }
0x11c2   : > { %14430 = vmatpush2.bf16.msra.mxu1 %v18900_v20 }
0x11c3   : > { %14481 = vmatpush2.bf16.msra.mxu0 %v18903_v54  ;;  %14431 = vmatprep.subr.bf16.mxu1 %v18908_v62 }
0x11c4   : > { %14482 = vmatprep.subr.bf16.mxu0 %v18911_v53 }
0x11c6   : > { %14432 = vmatpush2.bf16.msra.mxu1 %v18906_v22 }
0x11c7   : > { %14483 = vmatpush2.bf16.msra.mxu0 %v18909_v46  ;;  %14433 = vmatprep.subr.bf16.mxu1 %v18914_v63 }
0x11c8   : > { %14484 = vmatprep.subr.bf16.mxu0 %v18917_v13 }
0x11ca   : > { %14434 = vmatpush2.bf16.msra.mxu1 %v18912_v39 }
0x11cb   : > { %14485 = vmatpush2.bf16.msra.mxu0 %v18915_v18  ;;  %14435 = vmatprep.subr.bf16.mxu1 %v18920_v15 }
0x11cc   : > { %14486 = vmatprep.subr.bf16.mxu0 %v18923_v61 }
0x11ce   : > { %14436 = vmatpush2.bf16.msra.mxu1 %v18918_v23 }
0x11cf   : > { %14487 = vmatpush2.bf16.msra.mxu0 %v18921_v5  ;;  %14437 = vmatprep.subr.bf16.mxu1 %v18926_v52 }
0x11d0   : > { %14488 = vmatprep.subr.bf16.mxu0 %v18929_v7 }
0x11d2   : > { %14438 = vmatpush2.bf16.msra.mxu1 %v18924_v48 }
0x11d3   : > { %14489 = vmatpush2.bf16.msra.mxu0 %v18927_v29  ;;  %14439 = vmatprep.subr.bf16.mxu1 %v18932_v55 }
0x11d4   : > { %14490 = vmatprep.subr.bf16.mxu0 %v18935_v51 }
0x11d6   : > { %14440 = vmatpush2.bf16.msra.mxu1 %v18930_v49  ;;  %v14137_v47 = vpop.f32.mrf.mxu1 }
0x11d7   : > { %14491 = vmatpush2.bf16.msra.mxu0 %v18933_v31  ;;  %v14188_v11 = vpop.f32.mrf.mxu0  ;;  %v14138_v57 = vadd.f32 %v14137_v47, %v11126_v41 }
0x11d8   : > { %v14139_v10 = vpop.f32.mrf.mxu1 }
0x11d9   : > { %v14190_v33 = vpop.f32.mrf.mxu0  ;;  %v14189_v36 = vadd.f32 %v14188_v11, %v14138_v57  ;;  %14442 = vmatmul.mubr.bf16.vlgmr.msra.gmra.mxu1 %v22819_v50  ;;  %v14140_v19 = vadd.f32 %v14139_v10, %v11130_v8 }
0x11da   : > { %14493 = vmatmul.mubr.bf16.vlgmr.msra.gmra.mxu0 %v23026_v40  ;;  %14451 = vmatprep.mubr.bf16.mxu1 %v23030_v6  ;;  %v14141_v2 = vpop.f32.mrf.mxu1 }
0x11db   : > { %14502 = vmatprep.mubr.bf16.mxu0 %v23032_v37  ;;  %v14192_v43 = vpop.f32.mrf.mxu0  ;;  %v14191_v0 = vadd.f32 %v14190_v33, %v14140_v19  ;;  %v14142_v9 = vadd.f32 %v14141_v2, %v11126_v41 }
0x11dc   : > { %v14143_v25 = vpop.f32.mrf.mxu1 }
0x11dd   : > { %v14194_v38 = vpop.f32.mrf.mxu0  ;;  %v14193_v32 = vadd.f32 %v14192_v43, %v14142_v9  ;;  %v14144_v28 = vadd.f32 %v14143_v25, %v11130_v8 }
0x11de   : > { %v14147_v12 = vpop.f32.mrf.mxu1 }
0x11df   : > { %v14198_v17 = vpop.f32.mrf.mxu0  ;;  %v14195_v58 = vadd.f32 %v14194_v38, %v14144_v28  ;;  %v14148_v16 = vadd.f32 %v14147_v12, %v11126_v41 }
0x11e0   : > { %v14149_v50 = vpop.f32.mrf.mxu1 }
0x11e1   : > { %v14200_v44 = vpop.f32.mrf.mxu0  ;;  %v14199_v40 = vadd.f32 %v14198_v17, %v14148_v16  ;;  %14452 = vmatmul.mubr.bf16.gmra.mxu1 %v23054_v59  ;;  %v14150_v6 = vadd.f32 %v14149_v50, %v11130_v8 }
0x11e2   : > { %14503 = vmatmul.mubr.bf16.gmra.mxu0 %v23058_v3  ;;  %v14151_v37 = vpop.f32.mrf.mxu1 }
0x11e3   : > { %v14202_v27 = vpop.f32.mrf.mxu0  ;;  %v14201_v35 = vadd.f32 %v14200_v44, %v14150_v6 }
0x11e4   : > { %v14152_v42 = vpop.f32.mrf.mxu1 }
0x11e5   : > { %v14203_v26 = vpop.f32.mrf.mxu0 }
0x1217   : > { %v14239_v30 = vpop.f32.mrf.mxu1 }
0x1218   : > { %v14290_v24 = vpop.f32.mrf.mxu0  ;;  %v14240_v1 = vadd.f32 %v14239_v30, %v14189_v36 }
0x1219   : > { %v14241_v20 = vpop.f32.mrf.mxu1 }
0x121a   : > { %v14292_v54 = vpop.f32.mrf.mxu0  ;;  %v14291_v62 = vadd.f32 %v14290_v24, %v14240_v1  ;;  %v14242_v53 = vadd.f32 %v14241_v20, %v14191_v0 }
0x121b   : > { %v14243_v22 = vpop.f32.mrf.mxu1 }
0x121c   : > { %v14294_v46 = vpop.f32.mrf.mxu0  ;;  %v14293_v63 = vadd.f32 %v14292_v54, %v14242_v53  ;;  %v14244_v13 = vadd.f32 %v14243_v22, %v14193_v32  ;;  %v23845_v53 = vld [vmem:[#allocation56_spill] sm:$0xff] }
0x121d   : > { %v14245_v59 = vpop.f32.mrf.mxu1 }
0x121e   : > { %v14296_v39 = vpop.f32.mrf.mxu0  ;;  %v14295_v3 = vadd.f32 %v14294_v46, %v14244_v13  ;;  %v14246_v18 = vadd.f32 %v14245_v59, %v14195_v58 }
0x121f   : > { %v14249_v15 = vpop.f32.mrf.mxu1 }
0x1220   : > { %v14300_v61 = vpop.f32.mrf.mxu0  ;;  %v14297_v23 = vadd.f32 %v14296_v39, %v14246_v18  ;;  %v14250_v5 = vadd.f32 %v14249_v15, %v14199_v40  ;;  %v23846_v39 = vld [vmem:[#allocation59_spill] sm:$0xff] }
0x1221   : > { %v14251_v52 = vpop.f32.mrf.mxu1 }
0x1222   : > { %v14302_v7 = vpop.f32.mrf.mxu0  ;;  %v14301_v48 = vadd.f32 %v14300_v61, %v14250_v5  ;;  %v14252_v29 = vadd.f32 %v14251_v52, %v14201_v35  ;;  %v23847_v52 = vld [vmem:[#allocation61_spill] sm:$0xff] }
0x1223   : > { %v14253_v55 = vpop.f32.mrf.mxu1 }
0x1224   : > { %v14304_v51 = vpop.f32.mrf.mxu0  ;;  %v14303_v49 = vadd.f32 %v14302_v7, %v14252_v29 }
0x1225   : > { %v14254_v31 = vpop.f32.mrf.mxu1 }
0x1226   : > { %v14305_v56 = vpop.f32.mrf.mxu0 }
0x1258   : > { %v14341_v41 = vpop.f32.mrf.mxu1 }
0x1259   : > { %v14392_v8 = vpop.f32.mrf.mxu0  ;;  %v14342_v28 = vadd.f32 %v14341_v41, %v14291_v62 }
0x125a   : > { %v14343_v47 = vpop.f32.mrf.mxu1 }
0x125b   : > { %v14394_v11 = vpop.f32.mrf.mxu0  ;;  %v14344_v12 = vadd.f32 %v14343_v47, %v14293_v63  ;;  %v14393_v17 = vadd.f32 %v14392_v8, %v14342_v28 }
0x125c   : > { %v14345_v57 = vpop.f32.mrf.mxu1 }
0x125d   : > { %v14396_v10 = vpop.f32.mrf.mxu0  ;;  %v14346_v58 = vadd.f32 %v14345_v57, %v14295_v3  ;;  %v14395_v40 = vadd.f32 %v14394_v11, %v14344_v12  ;;  %v23849_v11 = vld [vmem:[#allocation63_spill] sm:$0xff] }
0x125e   : > { %v14347_v33 = vpop.f32.mrf.mxu1 }
0x125f   : > { %v14398_v36 = vpop.f32.mrf.mxu0  ;;  %v14348_v16 = vadd.f32 %v14347_v33, %v14297_v23  ;;  %v14397_v35 = vadd.f32 %v14396_v10, %v14346_v58 }
0x1260   : > { %v14351_v19 = vpop.f32.mrf.mxu1 }
0x1261   : > { %v14402_v2 = vpop.f32.mrf.mxu0  ;;  %v14352_v42 = vadd.f32 %v14351_v19, %v14301_v48  ;;  %v14399_v24 = vadd.f32 %v14398_v36, %v14348_v16  ;;  %v23850_v19 = vld [vmem:[#allocation64_spill] sm:$0xff] }
0x1262   : > { %v14353_v43 = vpop.f32.mrf.mxu1 }
0x1263   : > { %v14404_v0 = vpop.f32.mrf.mxu0  ;;  %v14354_v54 = vadd.f32 %v14353_v43, %v14303_v49  ;;  %v14403_v59 = vadd.f32 %v14402_v2, %v14352_v42  ;;  %v23848_v49 = vld [vmem:[#allocation62_spill] sm:$0xff] }
0x1264   : > { %v14355_v9 = vpop.f32.mrf.mxu1 }
0x1265   : > { %v14406_v25 = vpop.f32.mrf.mxu0  ;;  %v14405_v5 = vadd.f32 %v14404_v0, %v14354_v54 }
0x1266   : > { %v14356_v38 = vpop.f32.mrf.mxu1 }
0x1267   : > { %v14407_v32 = vpop.f32.mrf.mxu0 }
0x1299   : > { %v14443_v50 = vpop.f32.mrf.mxu1 }
0x129a   : > { %v14494_v44 = vpop.f32.mrf.mxu0  ;;  %v14444_v6 = vadd.f32 %v14443_v50, %v14393_v17 }
0x129b   : > { %v14445_v37 = vpop.f32.mrf.mxu1 }
0x129c   : > { %v14496_v27 = vpop.f32.mrf.mxu0  ;;  %v14495_v26 = vadd.f32 %v14494_v44, %v14444_v6  ;;  %v14446_v30 = vadd.f32 %v14445_v37, %v14395_v40 }
0x129d   : > { %v14447_v1 = vpop.f32.mrf.mxu1 }
0x129e   : > { %v14498_v20 = vpop.f32.mrf.mxu0  ;;  %v23434_v62 = vadd.f32 %v14495_v26, %v23845_v53  ;;  %v14497_v22 = vadd.f32 %v14496_v27, %v14446_v30  ;;  %v14448_v46 = vadd.f32 %v14447_v1, %v14397_v35 }
0x129f   : > { %v14449_v63 = vpop.f32.mrf.mxu1 }
0x12a0   : > { %v14500_v13 = vpop.f32.mrf.mxu0  ;;  %14525 = vst [vmem:[#allocation2 + $0x58] sm:$0xff] %v23434_v62  ;;  %v23438_v3 = vadd.f32 %v14497_v22, %v23846_v39  ;;  %v14499_v18 = vadd.f32 %v14498_v20, %v14448_v46  ;;  %v14450_v15 = vadd.f32 %v14449_v63, %v14399_v24 }
0x12a1   : > { %v14453_v61 = vpop.f32.mrf.mxu1 }
0x12a2   : > { %v14504_v23 = vpop.f32.mrf.mxu0  ;;  %14526 = vst [vmem:[#allocation2 + $0x18] sm:$0xff] %v23438_v3  ;;  %v23442_v7 = vadd.f32 %v14499_v18, %v23847_v52  ;;  %v14501_v48 = vadd.f32 %v14500_v13, %v14450_v15  ;;  %v14454_v29 = vadd.f32 %v14453_v61, %v14403_v59 }
0x12a3   : > { %v14455_v55 = vpop.f32.mrf.mxu1 }
0x12a4   : > { %v14506_v51 = vpop.f32.mrf.mxu0  ;;  %14529 = vst [vmem:[#allocation2 + $0x8] sm:$0xff] %v23442_v7  ;;  %v23446_v31 = vadd.f32 %v14501_v48, %v23848_v49  ;;  %v14505_v56 = vadd.f32 %v14504_v23, %v14454_v29  ;;  %v14456_v41 = vadd.f32 %v14455_v55, %v14405_v5 }
0x12a5   : > { %v14457_v8 = vpop.f32.mrf.mxu1 }
0x12a6   : > { %v14508_v47 = vpop.f32.mrf.mxu0  ;;  %14530 = vst [vmem:[#allocation2 + $0x38] sm:$0xff] %v23446_v31  ;;  %v23450_v57 = vadd.f32 %v14505_v56, %v23849_v11  ;;  %v14507_v10 = vadd.f32 %v14506_v51, %v14456_v41  ;;  %14538 = sbr.rel (%p16975_p4) target bundleno = 5405 (0x151d), region = 172 }
0x12a7   : > { %v14458_v33 = vpop.f32.mrf.mxu1 }
0x12a8   : > { %v14509_v36 = vpop.f32.mrf.mxu0  ;;  %14533 = vst [vmem:[#allocation2 + $0x10] sm:$0x3] %v23450_v57  ;;  %v23454_v2 = vadd.f32 %v14507_v10, %v23850_v19 }
0x12aa   : > { %14534 = vst [vmem:[#allocation2 + $0x40] sm:$0x3] %v23454_v2 }
0x12ab   : > { %v14655_v43 = vld [vmem:[#allocation23 + $0xf8] sm:$0xff]  ;;  %v14654_v38 = vld [vmem:[#allocation23 + $0xf0] sm:$0xff]  ;;  %v23461_v28 = vsel %vm4460_vm7, %v23336_v4, %v23350_v60  ;;  %v19717_v12 = vmov 1983009808   ;;  %v14653_v50 = vld [vmem:[#allocation23 + $0xe8] sm:$0xff]  ;;  %v23466_v44 = vsel %vm4460_vm7, %v23345_v21, %v23358_v14  ;;  %v23471_v40 = vsel %vm4460_vm7, %v23434_v62, %v23442_v7 }
0x12ac   : > { %v14687_v0 = vld [vmem:[#allocation23 + $0x1f8] sm:$0xff]  ;;  %17028 = vmatprep.subr.mxu0 %v14655_v43  ;;  %v14686_v32 = vld [vmem:[#allocation23 + $0x1f0] sm:$0xff]  ;;  %v14608_v17 = vunpack.c.l.s4 %v19717_v12  ;;  %v23476_v6 = vsel %vm4460_vm7, %v23438_v3, %v23446_v31  ;;  %v14685_v37 = vld [vmem:[#allocation23 + $0x1e8] sm:$0xff]  ;;  %v14605_v42 = vcombine.low %v23461_v28, %v23466_v44  ;;  %14759 = vmatprep.mubr.f32.mxu0 %v23466_v44  ;;  %vm19719_vm1 = vmmov 0  }
0x12ad   : > { %v14639_v9 = vld [vmem:[#allocation23 + $0x78] sm:$0xff]  ;;  %17063 = vmatprep.subr.mxu1 %v14687_v0  ;;  %v14638_v58 = vld [vmem:[#allocation23 + $0x70] sm:$0xff]  ;;  %v14637_v27 = vld [vmem:[#allocation23 + $0x68] sm:$0xff]  ;;  %v14606_v30 = vcombine.low %v23471_v40, %v23476_v6  ;;  %14829 = vmatprep.mubr.f32.mxu1 %v23476_v6  ;;  %vm14939_vm2 = vcmask 261120  }
0x12ae   : > { %v14671_v25 = vld [vmem:[#allocation23 + $0x178] sm:$0xff]  ;;  %17029 = vmatpush3.msra.mxu0 %v14639_v9  ;;  %v14670_v16 = vld [vmem:[#allocation23 + $0x170] sm:$0xff]  ;;  %v14669_v35 = vld [vmem:[#allocation23 + $0x168] sm:$0xff]  ;;  %v14609_v26 = vunpack.c.0.s8 %v14608_v17 }
0x12af   : > { %17064 = vmatpush3.msra.mxu1 %v14671_v25  ;;  %17030 = vmatprep.subr.mxu0 %v14654_v38  ;;  %v14652_v24 = vld [vmem:[#allocation23 + $0xe0] sm:$0xff]  ;;  %v23852_v53 = vld [vmem:[#allocation50_spill] sm:$0xff]  ;;  %v14651_v46 = vld [vmem:[#allocation23 + $0xd8] sm:$0xff] }
0x12b0   : > { %17065 = vmatprep.subr.mxu1 %v14686_v32  ;;  %17031 = vmatpush3.msra.mxu0 %v14638_v58  ;;  %v14684_v1 = vld [vmem:[#allocation23 + $0x1e0] sm:$0xff]  ;;  %v14612_v22 = vsub.s32 %v14609_v26, %v23852_v53  ;;  %v14683_v63 = vld [vmem:[#allocation23 + $0x1d8] sm:$0xff]  ;;  %v14650_v15 = vld [vmem:[#allocation23 + $0xd0] sm:$0xff] }
0x12b1   : > { %17066 = vmatpush3.msra.mxu1 %v14670_v16  ;;  %17032 = vmatprep.subr.mxu0 %v14653_v50  ;;  %v14636_v20 = vld [vmem:[#allocation23 + $0x60] sm:$0xff]  ;;  %v14635_v13 = vld [vmem:[#allocation23 + $0x58] sm:$0xff]  ;;  %v14682_v61 = vld [vmem:[#allocation23 + $0x1d0] sm:$0xff] }
0x12b2   : > { %17067 = vmatprep.subr.mxu1 %v14685_v37  ;;  %v14668_v54 = vld [vmem:[#allocation23 + $0x160] sm:$0xff]  ;;  %17033 = vmatpush3.msra.mxu0 %v14637_v27  ;;  %v14667_v59 = vld [vmem:[#allocation23 + $0x158] sm:$0xff]  ;;  %v14613_v39 = vrot.slane %v14605_v42, %v14612_v22  ;;  %v14620_v18 = vrot.slane %v14606_v30, %v14612_v22  ;;  %v14634_v23 = vld [vmem:[#allocation23 + $0x50] sm:$0xff] }
0x12b3   : > { %17068 = vmatpush3.msra.mxu1 %v14669_v35  ;;  %17034 = vmatprep.subr.mxu0 %v14652_v24  ;;  %v14666_v5 = vld [vmem:[#allocation23 + $0x150] sm:$0xff]  ;;  %v14649_v48 = vld [vmem:[#allocation23 + $0xc8] sm:$0xff]  ;;  %v14648_v49 = vld [vmem:[#allocation23 + $0xc0] sm:$0xff] }
0x12b4   : > { %17069 = vmatprep.subr.mxu1 %v14684_v1  ;;  %17035 = vmatpush3.msra.mxu0 %v14636_v20  ;;  %v14621_v52 = vcombine.low %v14613_v39, %v14620_v18  ;;  %v14681_v29 = vld [vmem:[#allocation23 + $0x1c8] sm:$0xff]  ;;  %v14680_v56 = vld [vmem:[#allocation23 + $0x1c0] sm:$0xff]  ;;  %v14647_v47 = vld [vmem:[#allocation23 + $0xb8] sm:$0xff]  ;;  %v19718_v39 = vmov 0.0  }
0x12b5   : > { %17070 = vmatpush3.msra.mxu1 %v14668_v54  ;;  %17036 = vmatprep.subr.mxu0 %v14651_v46  ;;  %v14633_v55 = vld [vmem:[#allocation23 + $0x48] sm:$0xff]  ;;  %v14632_v41 = vld [vmem:[#allocation23 + $0x40] sm:$0xff]  ;;  %v14679_v11 = vld [vmem:[#allocation23 + $0x1b8] sm:$0xff] }
0x12b6   : > { %17071 = vmatprep.subr.mxu1 %v14683_v63  ;;  %17037 = vmatpush3.msra.mxu0 %v14635_v13  ;;  %v14665_v51 = vld [vmem:[#allocation23 + $0x148] sm:$0xff]  ;;  %14623 = vst [vmem:[#allocation30] sm:$0xff] %v14621_v52  ;;  %v14664_v8 = vld [vmem:[#allocation23 + $0x140] sm:$0xff]  ;;  %v14631_v10 = vld [vmem:[#allocation23 + $0x38] sm:$0xff] }
0x12b7   : > { %17072 = vmatpush3.msra.mxu1 %v14667_v59  ;;  %17038 = vmatprep.subr.mxu0 %v14650_v15  ;;  %v14663_v33 = vld [vmem:[#allocation23 + $0x138] sm:$0xff]  ;;  %v14646_v36 = vld [vmem:[#allocation23 + $0xb0] sm:$0xff]  ;;  %v14645_v9 = vld [vmem:[#allocation23 + $0xa8] sm:$0xff] }
0x12b8   : > { %17073 = vmatprep.subr.mxu1 %v14682_v61  ;;  %17039 = vmatpush3.msra.mxu0 %v14634_v23  ;;  %v14678_v19 = vld [vmem:[#allocation23 + $0x1b0] sm:$0xff]  ;;  %v14677_v25 = vld [vmem:[#allocation23 + $0x1a8] sm:$0xff]  ;;  %v14644_v12 = vld [vmem:[#allocation23 + $0xa0] sm:$0xff] }
0x12b9   : > { %17074 = vmatpush3.msra.mxu1 %v14666_v5  ;;  %17040 = vmatprep.subr.mxu0 %v14649_v48  ;;  %v14630_v43 = vld [vmem:[#allocation23 + $0x30] sm:$0xff]  ;;  %v14629_v38 = vld [vmem:[#allocation23 + $0x28] sm:$0xff]  ;;  %v14676_v17 = vld [vmem:[#allocation23 + $0x1a0] sm:$0xff] }
0x12ba   : > { %17075 = vmatprep.subr.mxu1 %v14681_v29  ;;  %17041 = vmatpush3.msra.mxu0 %v14633_v55  ;;  %v14662_v0 = vld [vmem:[#allocation23 + $0x130] sm:$0xff]  ;;  %v14661_v32 = vld [vmem:[#allocation23 + $0x128] sm:$0xff]  ;;  %v14628_v58 = vld [vmem:[#allocation23 + $0x20] sm:$0xff] }
0x12bb   : > { %17076 = vmatpush3.msra.mxu1 %v14665_v51  ;;  %17042 = vmatprep.subr.mxu0 %v14648_v49  ;;  %v14660_v16 = vld [vmem:[#allocation23 + $0x120] sm:$0xff]  ;;  %v14643_v50 = vld [vmem:[#allocation23 + $0x98] sm:$0xff]  ;;  %v14642_v42 = vld [vmem:[#allocation23 + $0x90] sm:$0xff] }
0x12bc   : > { %17077 = vmatprep.subr.mxu1 %v14680_v56  ;;  %17043 = vmatpush3.msra.mxu0 %v14632_v41  ;;  %v14675_v37 = vld [vmem:[#allocation23 + $0x198] sm:$0xff]  ;;  %v14674_v26 = vld [vmem:[#allocation23 + $0x190] sm:$0xff]  ;;  %v14641_v1 = vld [vmem:[#allocation23 + $0x88] sm:$0xff] }
0x12bd   : > { %17078 = vmatpush3.msra.mxu1 %v14664_v8  ;;  %17044 = vmatprep.subr.mxu0 %v14647_v47  ;;  %v14627_v27 = vld [vmem:[#allocation23 + $0x18] sm:$0xff]  ;;  %v14626_v30 = vld [vmem:[#allocation23 + $0x10] sm:$0xff]  ;;  %v14673_v20 = vld [vmem:[#allocation23 + $0x188] sm:$0xff] }
0x12be   : > { %17079 = vmatprep.subr.mxu1 %v14679_v11  ;;  %17045 = vmatpush3.msra.mxu0 %v14631_v10  ;;  %v14659_v35 = vld [vmem:[#allocation23 + $0x118] sm:$0xff]  ;;  %v14658_v24 = vld [vmem:[#allocation23 + $0x110] sm:$0xff]  ;;  %v14625_v54 = vld [vmem:[#allocation23 + $0x8] sm:$0xff] }
0x12bf   : > { %17080 = vmatpush3.msra.mxu1 %v14663_v33  ;;  %17046 = vmatprep.subr.mxu0 %v14646_v36  ;;  %v14657_v53 = vld [vmem:[#allocation23 + $0x108] sm:$0xff]  ;;  %v14640_v22 = vld [vmem:[#allocation23 + $0x80] sm:$0xff]  ;;  %v14850_v59 = vld [vmem:[%s23853_s15 + $0x78] sm:$0xff] }
0x12c0   : > { %17081 = vmatprep.subr.mxu1 %v14678_v19  ;;  %17047 = vmatpush3.msra.mxu0 %v14630_v43  ;;  %v14672_v46 = vld [vmem:[#allocation23 + $0x180] sm:$0xff]  ;;  %v14849_v18 = vld [vmem:[%s23853_s15 + $0x70] sm:$0xff]  ;;  %v14843_v61 = vld [vmem:[%s23853_s15 + $0x40] sm:$0xff] }
0x12c1   : > { %17082 = vmatpush3.msra.mxu1 %v14662_v0  ;;  %17048 = vmatprep.subr.mxu0 %v14645_v9  ;;  %v14624_v63 = vld [vmem:[#allocation23] sm:$0xff]  ;;  %v14845_v6 = vld [vmem:[%s23853_s15 + $0x50] sm:$0xff]  ;;  %v14842_v23 = vld [vmem:[%s23853_s15 + $0x38] sm:$0xff] }
0x12c2   : > { %17083 = vmatprep.subr.mxu1 %v14677_v25  ;;  %17049 = vmatpush3.msra.mxu0 %v14629_v38  ;;  %v14656_v13 = vld [vmem:[#allocation23 + $0x100] sm:$0xff]  ;;  %v14841_v5 = vld [vmem:[%s23853_s15 + $0x30] sm:$0xff]  ;;  %v14839_v48 = vld [vmem:[%s23853_s15 + $0x20] sm:$0xff]  ;;  %v14539_v38 = vmul.f32 %v23336_v4, %v23336_v4 }
0x12c3   : > { %17084 = vmatpush3.msra.mxu1 %v14661_v32  ;;  %17050 = vmatprep.subr.mxu0 %v14644_v12  ;;  %v14848_v44 = vld [vmem:[%s23853_s15 + $0x68] sm:$0xff]  ;;  %v14838_v29 = vld [vmem:[%s23853_s15 + $0x18] sm:$0xff]  ;;  %v14837_v55 = vld [vmem:[%s23853_s15 + $0x10] sm:$0xff]  ;;  %v14540_v32 = vmul.f32 %v23345_v21, %v23345_v21  ;;  %v14541_v12 = vmul.f32 %v23434_v62, %v23434_v62 }
0x12c4   : > { %17085 = vmatprep.subr.mxu1 %v14676_v17  ;;  %17051 = vmatpush3.msra.mxu0 %v14628_v58  ;;  %v14844_v15 = vld [vmem:[%s23853_s15 + $0x48] sm:$0xff]  ;;  %v14835_v49 = vld [vmem:[%s23853_s15] sm:$0xff]  ;;  %v14931_v56 = vld [vmem:[%s23854_s20 + $0x18] sm:$0xff]  ;;  %v14542_v17 = vmul.f32 %v23438_v3, %v23438_v3  ;;  %v14547_v58 = vmul.f32 %v23366_v34, %v23366_v34 }
0x12c5   : > { %17086 = vmatpush3.msra.mxu1 %v14660_v16  ;;  %17052 = vmatprep.subr.mxu0 %v14643_v50  ;;  %v14840_v52 = vld [vmem:[%s23853_s15 + $0x28] sm:$0xff]  ;;  %v14930_v41 = vld [vmem:[%s23854_s20 + $0x10] sm:$0xff]  ;;  %v14928_v25 = vld [vmem:[%s23854_s20] sm:$0xff]  ;;  %v14548_v16 = vmul.f32 %v23374_v45, %v23374_v45  ;;  %v14549_v50 = vmul.f32 %v23450_v57, %v23450_v57 }
0x12c6   : > { %17087 = vmatprep.subr.mxu1 %v14675_v37  ;;  %17053 = vmatpush3.msra.mxu0 %v14627_v27  ;;  %v14836_v51 = vld [vmem:[%s23853_s15 + $0x8] sm:$0xff]  ;;  %v14550_v37 = vmul.f32 %v23454_v2, %v23454_v2  ;;  %v14551_v27 = vadd.f32 %v14540_v32, %v14539_v38 }
0x12c7   : > { %17088 = vmatpush3.msra.mxu1 %v14659_v35  ;;  %17054 = vmatprep.subr.mxu0 %v14642_v42  ;;  %v16976_v11 = vld [vmem:[#allocation24] ss:$0 sm:$0xff]  ;;  %v14543_v35 = vmul.f32 %v23350_v60, %v23350_v60  ;;  %v14544_v42 = vmul.f32 %v23358_v14, %v23358_v14 }
0x12c8   : > { %17089 = vmatprep.subr.mxu1 %v14674_v26  ;;  %17055 = vmatpush3.msra.mxu0 %v14626_v30  ;;  %v14929_v9 = vld [vmem:[%s23854_s20 + $0x8] sm:$0xff]  ;;  %v14545_v26 = vmul.f32 %v23442_v7, %v23442_v7  ;;  %v14561_v30 = vsel %vm1203_vm0, %v14547_v58, 0.0 }
0x12c9   : > { %17090 = vmatpush3.msra.mxu1 %v14658_v24  ;;  %17056 = vmatprep.subr.mxu0 %v14641_v1  ;;  %v14562_v24 = vsel %vm1203_vm0, %v14548_v16, 0.0  ;;  %v14564_v1 = vsel %vm1203_vm0, %v14549_v50, 0.0 }
0x12ca   : > { %17091 = vmatprep.subr.mxu1 %v14673_v20  ;;  %17057 = vmatpush3.msra.mxu0 %v14625_v54  ;;  %v14552_v20 = vadd.f32 %v14551_v27, %v14541_v12  ;;  %v14563_v54 = vadd.f32 %v14562_v24, %v14561_v30 }
0x12cb   : > { %17092 = vmatpush3.msra.mxu1 %v14657_v53  ;;  %17058 = vmatprep.subr.mxu0 %v14640_v22  ;;  %v14546_v53 = vmul.f32 %v23446_v31, %v23446_v31  ;;  %v14556_v22 = vadd.f32 %v14544_v42, %v14543_v35 }
0x12cc   : > { %17093 = vmatprep.subr.mxu1 %v14672_v46  ;;  %17059 = vmatpush3.msra.mxu0 %v14624_v63  ;;  %v14566_v46 = vsel %vm1203_vm0, %v14550_v37, 0.0  ;;  %v14553_v63 = vadd.f32 %v14552_v20, %v14542_v17  ;;  %vm15013_vm0 = vcmask 74752  }
0x12cd   : > { %17094 = vmatpush3.msra.mxu1 %v14656_v13  ;;  %14760 = vmatmul.mubr.f32.vlgmr.msra.gmra.mxu0 %v23461_v28  ;;  %v14847_v28 = vld [vmem:[%s23853_s15 + $0x60] sm:$0xff]  ;;  %v14565_v13 = vadd.f32 %v14564_v1, %v14563_v54 }
0x12ce   : > { %14830 = vmatmul.mubr.f32.vlgmr.msra.gmra.mxu1 %v23471_v40  ;;  %17184 = vmatprep.subr.mxu0 %v19718_v39  ;;  %v14846_v40 = vld [vmem:[%s23853_s15 + $0x58] sm:$0xff] }
0x12cf   : > { %17219 = vmatprep.subr.mxu1 %v19718_v39  ;;  %17185 = vmatpush3.msra.mxu0 %v14850_v59  ;;  %v14557_v59 = vadd.f32 %v14556_v22, %v14545_v26 }
0x12d0   : > { %17186 = vmatprep.subr.mxu0 %v19718_v39  ;;  %17216 = vmatprep.mubr.msk.f32.mxu0 %vm19719_vm1, %v19718_v39 }
0x12d1   : > { %17187 = vmatpush3.msra.mxu0 %v14849_v18  ;;  %17227 = vmatprep.mubr.msk.f32.mxu1 %vm19719_vm1, %v19718_v39  ;;  %v14558_v18 = vadd.f32 %v14557_v59, %v14546_v53 }
0x12d2   : > { %17188 = vmatprep.subr.mxu0 %v19718_v39  ;;  %17220 = vmatpush3.msra.mxu1 %v14931_v56 }
0x12d3   : > { %17189 = vmatpush3.msra.mxu0 %v14848_v44  ;;  %17221 = vmatprep.subr.mxu1 %v19718_v39  ;;  %v16977_v44 = vld [vmem:[#allocation26] ss:$0 sm:$0xff] }
0x12d4   : > { %17190 = vmatprep.subr.mxu0 %v19718_v39  ;;  %17222 = vmatpush3.msra.mxu1 %v14930_v41 }
0x12d5   : > { %17191 = vmatpush3.msra.mxu0 %v14847_v28  ;;  %17223 = vmatprep.subr.mxu1 %v19718_v39 }
0x12d6   : > { %17192 = vmatprep.subr.mxu0 %v19718_v39  ;;  %17224 = vmatpush3.msra.mxu1 %v14929_v9 }
0x12d7   : > { %17193 = vmatpush3.msra.mxu0 %v14846_v40  ;;  %17225 = vmatprep.subr.mxu1 %v19718_v39 }
0x12d8   : > { %17194 = vmatprep.subr.mxu0 %v19718_v39  ;;  %17226 = vmatpush3.msra.mxu1 %v14928_v25 }
0x12d9   : > { %17195 = vmatpush3.msra.mxu0 %v14845_v6  ;;  %14554 = vadd.xlane.f32.xlu0 %v14553_v63 }
0x12da   : > { %17196 = vmatprep.subr.mxu0 %v19718_v39 }
0x12db   : > { %17197 = vmatpush3.msra.mxu0 %v14844_v15 }
0x12dc   : > { %17198 = vmatprep.subr.mxu0 %v19718_v39 }
0x12dd   : > { %17199 = vmatpush3.msra.mxu0 %v14843_v61  ;;  %14559 = vadd.xlane.f32.xlu0 %v14558_v18 }
0x12de   : > { %17200 = vmatprep.subr.mxu0 %v19718_v39 }
0x12df   : > { %17201 = vmatpush3.msra.mxu0 %v14842_v23 }
0x12e0   : > { %17202 = vmatprep.subr.mxu0 %v19718_v39 }
0x12e1   : > { %17203 = vmatpush3.msra.mxu0 %v14841_v5 }
0x12e2   : > { %17204 = vmatprep.subr.mxu0 %v19718_v39 }
0x12e3   : > { %17205 = vmatpush3.msra.mxu0 %v14840_v52 }
0x12e4   : > { %17206 = vmatprep.subr.mxu0 %v19718_v39 }
0x12e5   : > { %17207 = vmatpush3.msra.mxu0 %v14839_v48 }
0x12e6   : > { %17208 = vmatprep.subr.mxu0 %v19718_v39 }
0x12e7   : > { %17209 = vmatpush3.msra.mxu0 %v14838_v29 }
0x12e8   : > { %17210 = vmatprep.subr.mxu0 %v19718_v39 }
0x12e9   : > { %17211 = vmatpush3.msra.mxu0 %v14837_v55 }
0x12ea   : > { %17212 = vmatprep.subr.mxu0 %v19718_v39 }
0x12eb   : > { %17213 = vmatpush3.msra.mxu0 %v14836_v51 }
0x12ec   : > { %17214 = vmatprep.subr.mxu0 %v19718_v39  ;;  %v14567_v39 = vadd.f32 %v14566_v46, %v14565_v13 }
0x12ed   : > { %17215 = vmatpush3.msra.mxu0 %v14835_v49 }
0x12ee   : > { %14568 = vadd.xlane.f32.xlu1 %v14567_v39 }
0x1362   : > { %v14555_v15 = vpop.xlane.xlu0 %14554 }
0x1363   : > { %19119 = vrsqrt.f32 %v14555_v15 }
0x1366   : > { %v14560_v23 = vpop.xlane.xlu0 %14559 }
0x1370   : > { %v19120_v5 = vpop.eup %19119 }
0x1371   : > { %v14573_v52 = vmul.f32 %v19120_v5, %v23336_v4  ;;  %v14574_v48 = vmul.f32 %v19120_v5, %v23345_v21  ;;  %v14575_v29 = vmul.f32 %v19120_v5, %v23434_v62  ;;  %v14576_v55 = vmul.f32 %v19120_v5, %v23438_v3 }
0x1373   : > { %14585 = vst [vmem:[%s23855_s3] sm:$0xff] %v14573_v52 }
0x1374   : > { %14586 = vst [vmem:[%s23856_s9 + $0x8] sm:$0xff] %v14574_v48  ;;  %14587 = vst [vmem:[%s23856_s9 + $0x10] sm:$0xff] %v14575_v29 }
0x1375   : > { %14588 = vst [vmem:[%s23856_s9 + $0x18] sm:$0xff] %v14576_v55 }
0x1377   : > { %v14569_v61 = vpop.xlane.xlu1 %14568 }
0x1378   : > { %19121 = vrsqrt.f32 %v14569_v61 }
0x1379   : > { %19123 = vrsqrt.f32 %v14560_v23 }
0x1385   : > { %v19122_v51 = vpop.eup %19121 }
0x1386   : > { %v14581_v4 = vmul.f32 %v19122_v51, %v23366_v34  ;;  %v14582_v21 = vmul.f32 %v19122_v51, %v23374_v45  ;;  %v14583_v62 = vmul.f32 %v19122_v51, %v23450_v57  ;;  %v14584_v3 = vmul.f32 %v19122_v51, %v23454_v2  ;;  %v19124_v49 = vpop.eup %19123 }
0x1387   : > { %v14577_v34 = vmul.f32 %v19124_v49, %v23350_v60  ;;  %v14578_v45 = vmul.f32 %v19124_v49, %v23358_v14  ;;  %v14579_v57 = vmul.f32 %v19124_v49, %v23442_v7  ;;  %v14580_v2 = vmul.f32 %v19124_v49, %v23446_v31  ;;  %v16978_v60 = vld [vmem:[#allocation27] ss:$0 sm:$0xff] }
0x1388   : > { %14593 = vst [vmem:[%s23856_s9 + $0x40] sm:$0x3] %v14581_v4  ;;  %14594 = vst [vmem:[%s23856_s9 + $0x48] sm:$0x3] %v14582_v21 }
0x1389   : > { %14595 = vst [vmem:[%s23856_s9 + $0x50] sm:$0x3] %v14583_v62  ;;  %14596 = vst [vmem:[%s23856_s9 + $0x58] sm:$0x3] %v14584_v3 }
0x138a   : > { %14589 = vst [vmem:[%s23856_s9 + $0x20] sm:$0xff] %v14577_v34  ;;  %14590 = vst [vmem:[%s23856_s9 + $0x28] sm:$0xff] %v14578_v45 }
0x138b   : > { %14591 = vst [vmem:[%s23856_s9 + $0x30] sm:$0xff] %v14579_v57  ;;  %14592 = vst [vmem:[%s23856_s9 + $0x38] sm:$0xff] %v14580_v2 }
0x138d   : > { %v17060_v8 = vpop.f32.mrf.mxu0 }
0x138e   : > { %v17095_v47 = vpop.f32.mrf.mxu1 }
0x138f   : > { %v17061_v10 = vpop.f32.mrf.mxu0 }
0x1390   : > { %v17096_v33 = vpop.f32.mrf.mxu1  ;;  %v17062_v36 = vadd.f32 %v17061_v10, %v17060_v8 }
0x1391   : > { %v17097_v43 = vadd.f32 %v17096_v33, %v17095_v47 }
0x1392   : > { %v14762_v19 = vadd.f32 %v17062_v36, %v16976_v11 }
0x1394   : > { %v14832_v0 = vadd.f32 %v17097_v43, %v14762_v19 }
0x1396   : > { %17217 = vmatmul.mubr.f32.vlgmr.msra.gmra.mxu0 %v14832_v0 }
0x1456   : > { %v14924_v28 = vpop.f32.mrf.mxu0 }
0x1457   : > { %v14925_v40 = vadd.f32 %v16977_v44, %v14924_v28 }
0x1458   : > { %v17218_v6 = vpop.f32.mrf.mxu0 }
0x1459   : > { %17228 = vmatmul.mubr.msk.f32.vlgmr.msra.gmra.mxu1 %vm14939_vm2, %v14925_v40 }
0x1519   : > { %v15009_v14 = vpop.f32.mrf.mxu1 }
0x151a   : > { %v15010_v7 = vadd.f32 %v16978_v60, %v15009_v14 }
0x151b   : > { %v17229_v31 = vpop.f32.mrf.mxu1 }
0x151c   : > { %15014 = vst.msk [vmem:[#allocation29] sm:$0x3] %vm15013_vm0, %v15010_v7 }
0x151d PF: > { %s23857_s14 = sld [smem:[#allocation46_spill]]  ;;  %s19720_s26 = smov [#allocation29]  }
0x151e   : > { %s15022_s4 = sshll.u32 %s19720_s26, 4  ;;  %s19721_s0 = smov [#allocation30]   ;;  %s15023_s4 = int_to_ptr.vmem [resolvable:$true] %s15022_s4 }
0x151f   : > { %s15036_s11 = sshll.u32 %s19721_s0, 4  ;;  %s19565_s2 = scalar_lea.vmem %s15023_s4, 32  ;;  %s15037_s11 = int_to_ptr.vmem [resolvable:$true] %s15036_s11 }
0x1520   : > { %p19566_p8 = scmp.ne.s32.totalorder %s15023_s4, %s19565_s2  ;;  %p19572_p1 = scmp.lt.s32.totalorder %s15023_s4, %s15023_s4 }
0x1521   : > { %p19573_p11 = scmp.lt.s32.totalorder %s19565_s2, %s19565_s2 }
0x1523   : > { %p17347_p10 = scmp.eq.s32.totalorder %s23857_s14, 1  ;;  %p19574_p0 = por %p19573_p11, %p19572_p1 }
0x1525   : > { %p19567_p6 = pnand %p19566_p8, %p17347_p10 }
0x1527   : > { %p19568_p12 = pneg %p19567_p6 }
0x1529   : > { %p19575_p5 = pnand %p19574_p0, %p19568_p12 }
0x152b   : > { %19578 = shalt.err (!%p19575_p5)
}
0x152c   : > { %s23858_s27 = sld [smem:[#allocation79_spill]]  ;;  %s19589_s30 = scalar_lea.vmem %s15037_s11, 128 }
0x152d   : > { %p19590_p9 = scmp.ne.s32.totalorder %s15037_s11, %s19589_s30  ;;  %p19596_p3 = scmp.lt.s32.totalorder %s15037_s11, %s15037_s11 }
0x152e   : > { %p19597_p7 = scmp.lt.s32.totalorder %s19589_s30, %s19589_s30 }
0x152f   : > { %p19591_p13 = pnand %p19590_p9, %p17347_p10 }
0x1530   : > { %p19598_p4 = por %p19597_p7, %p19596_p3 }
0x1531   : > { %p19592_p2 = pneg %p19591_p13 }
0x1532   : > { %17281 = dma.vmem_to_hbm [thread:$0]  (%p17347_p10), %s15023_s4, 32, %s23858_s27, [#allocation5]  }
0x1533   : > { %p19599_p8 = pnand %p19598_p4, %p19592_p2 }
0x1535   : > { %19602 = shalt.err (!%p19599_p8)
}
0x1536   : > { %s23859_s7 = sld [smem:[#allocation81_spill]] }
0x153c   : > { %17283 = dma.vmem_to_hbm [thread:$0]  (%p17347_p10), %s15037_s11, 128, %s23859_s7, [#allocation31]  }
0x153d   : > { %19670 = dma.done.wait (%p17347_p10), [#allocation5], 32  }
0x153e   : > { %19672 = vsyncadd (%p17347_p10), [#allocation5], 4294967264 }
0x153f   : > { %19674 = dma.done.wait (%p17347_p10), [#allocation31], 128  }
0x1540   : > { %19676 = vsyncadd (%p17347_p10), [#allocation31], 4294967168 }
0x1541 PF: > { %s23860_s30 = sld [smem:[#allocation47_spill]] }
0x1542   : > { %s23861_s3 = sld [smem:[#allocation44_spill]] }
0x1543   : > { %s23862_s28 = sld [smem:[#allocation45_spill]] }
0x1544   : > { %s23863_s29 = sld [smem:[#allocation48_spill]] }
0x1547   : > { %p55_p6 = scmp.ge.s32.totalorder %s23860_s30, 4  }
0x1549   :  { %57 = sbr.rel (!%p55_p6) target bundleno = 37 (0x25), region = 310 }
0x154e   :  { %15056 = vsyncpa [#allocation4], 1 }
0x154f   :  { %15058 = vsyncpa [#allocation4 + $0x1], 1 }
0x1550   :  { %15059 = vsyncpa [#allocation7], 1 }
0x1551   :  { %15061 = vsyncpa [#allocation7 + $0x1], 1 }
0x1552   :  { %15062 = vsyncpa [#allocation10], 1 }
0x1553   :  { %15064 = vsyncpa [#allocation10 + $0x1], 1 }
0x1554   :  { %15065 = vsyncpa [#allocation13], 1 }
0x1555   :  { %15067 = vsyncpa [#allocation13 + $0x1], 1 }
0x1556   :  { %15068 = vsyncpa [#allocation16], 1 }
0x1557   :  { %15070 = vsyncpa [#allocation16 + $0x1], 1 }
0x1558   :  { %15071 = vsyncpa [#allocation19], 1 }
0x1559   :  { %15073 = vsyncpa [#allocation19 + $0x1], 1 }
0x155a   :  { %15074 = vsyncpa [#allocation22], 1 }
0x155b   :  { %15076 = vsyncpa [#allocation22 + $0x1], 1 }
0x155c   :  { %15077 = vsyncpa [#allocation25], 1 }
0x155d   :  { %15078 = vsyncpa [#allocation28], 1 }
0x155e   :  { %15079 = vsyncpa [#allocation5], 1 }
0x155f   :  { %15081 = vsyncpa [#allocation5 + $0x1], 1 }
0x1560   :  { %15082 = vsyncpa [#allocation31], 1 }

</bundles_post_ra>
